<compile_context>
chip_gen: v6e
topology: v6e:2x2x1
jax: 0.10.0
libtpu: 0.0.40
codegen_flags: <defaults>
</compile_context>

<pallas_src>
import functools
import math

import jax
import jax.numpy as jnp
from jax import lax
from jax.experimental import pallas as pl
from jax.experimental.pallas import tpu as pltpu  # noqa: F401  (not needed at this size)

# ----- small synthetic BERT config -----
VOCAB = 128
SEQ = 16          # max_seq_length (shrunk from 30 to a small power-of-two)
HID = 32          # hidden size
N_HEADS = 4
HEAD_DIM = HID // N_HEADS
INTER = 64        # intermediate (FFN) size
N_LAYERS = 2
LN_EPS = 1e-12
NEG_INF = -10000.0   # BERT-style additive mask value


def _ln(x, g, b):
    # x: (R, H) f32, g/b: (1, H)
    mu = jnp.mean(x, axis=-1, keepdims=True)
    var = jnp.mean((x - mu) ** 2, axis=-1, keepdims=True)
    return (x - mu) * lax.rsqrt(var + LN_EPS) * g + b


def _gelu(x):
    # TODO(synk): original BERT uses erf-GELU; tanh approximation is numerically close.
    c = math.sqrt(2.0 / math.pi)
    return 0.5 * x * (1.0 + jnp.tanh(c * (x + 0.044715 * x * x * x)))


# -------------------- fused BERT encoder kernel (emb-LN + all layers + CLS) --------------------
def _bert_encoder_kernel(x_ref, mask_ref, eg_ref, eb_ref,
                         wq_ref, bq_ref, wk_ref, bk_ref, wv_ref, bv_ref,
                         wo_ref, bo_ref, ln1g_ref, ln1b_ref,
                         wi_ref, bi_ref, wf_ref, bf_ref, ln2g_ref, ln2b_ref,
                         o_ref, *, batch, seq):
    rows = batch * seq
    scale = 1.0 / math.sqrt(HEAD_DIM)

    mask = mask_ref[...]                                   # (R, R) additive (block-diag + padding)
    h = _ln(x_ref[...], eg_ref[...], eb_ref[...])          # embedding LayerNorm, (R, H) f32

    for li in range(N_LAYERS):                             # static unroll over layers
        hb = h.astype(jnp.bfloat16)
        q = jnp.dot(hb, wq_ref[li], preferred_element_type=jnp.float32) + bq_ref[li]
        k = jnp.dot(hb, wk_ref[li], preferred_element_type=jnp.float32) + bk_ref[li]
        v = jnp.dot(hb, wv_ref[li], preferred_element_type=jnp.float32) + bv_ref[li]

        wo_l = wo_ref[li]                                  # (H, H) f32, 8-row head slices are tile-aligned
        attn = jnp.zeros((rows, HID), jnp.float32)
        for hd in range(N_HEADS):                          # static unroll; static lane slices, no reshapes
            sl = slice(hd * HEAD_DIM, (hd + 1) * HEAD_DIM)
            qh = q[:, sl].astype(jnp.bfloat16)             # (R, dH)
            kh = k[:, sl].astype(jnp.bfloat16)
            vh = v[:, sl].astype(jnp.bfloat16)
            # scores = qh @ kh.T without an explicit transpose
            s = lax.dot_general(qh, kh, (((1,), (1,)), ((), ())),
                                preferred_element_type=jnp.float32) * scale
            s = s + mask                                   # (R, R)
            m = jnp.max(s, axis=-1, keepdims=True)
            p = jnp.exp(s - m)
            p = p * pl.reciprocal(jnp.sum(p, axis=-1, keepdims=True), approx=True)
            ctx = jnp.dot(p.astype(jnp.bfloat16), vh,
                          preferred_element_type=jnp.float32)           # (R, dH)
            # concat(ctx_h) @ Wo  ==  sum_h ctx_h @ Wo[h*dH:(h+1)*dH, :]
            attn = attn + jnp.dot(ctx, wo_l[sl, :],
                                  preferred_element_type=jnp.float32)   # (R, H)
        attn = attn + bo_ref[li]

        h1 = _ln(attn + h, ln1g_ref[li], ln1b_ref[li])
        inter = _gelu(jnp.dot(h1.astype(jnp.bfloat16), wi_ref[li],
                              preferred_element_type=jnp.float32) + bi_ref[li])
        ffn = jnp.dot(inter.astype(jnp.bfloat16), wf_ref[li],
                      preferred_element_type=jnp.float32) + bf_ref[li]
        h = _ln(ffn + h1, ln2g_ref[li], ln2b_ref[li])

    # CLS extraction: one-hot selection matmul (B, R) @ (R, H) -> (B, H).
    # Avoids strided sublane gathers / masked partial stores of a (B, S, H) output.
    col = lax.broadcasted_iota(jnp.int32, (batch, rows), 1)
    row = lax.broadcasted_iota(jnp.int32, (batch, rows), 0)
    sel = (col == row * seq).astype(jnp.float32)
    o_ref[...] = jnp.dot(sel, h, preferred_element_type=jnp.float32)


def bert_encoder_pallas(emb, input_mask, params):
    """emb: (B, SEQ, HID) f32 token+pos+type embeddings, input_mask: (B, SEQ) {0,1}."""
    B, S, H = emb.shape
    R = B * S
    x = emb.reshape(R, H)

    # Block-diagonal additive attention mask over the flattened (B*SEQ) token axis:
    # a query may attend a key iff (same sequence) AND (key is a real, non-pad token).
    same_seq = (jnp.arange(R)[:, None] // S) == (jnp.arange(R)[None, :] // S)
    key_ok = input_mask.reshape(R).astype(bool)[None, :]
    add_mask = jnp.where(same_seq & key_ok, 0.0, NEG_INF).astype(jnp.float32)

    stack = lambda name: jnp.stack([l[name] for l in params['layers']])
    wq = stack('wq').astype(jnp.bfloat16)
    wk = stack('wk').astype(jnp.bfloat16)
    wv = stack('wv').astype(jnp.bfloat16)
    wo = stack('wo')                        # keep f32: per-head row slices stay (8,128)-tile aligned
    wi = stack('wi').astype(jnp.bfloat16)
    wf = stack('wf').astype(jnp.bfloat16)
    bq, bk, bv, bo = stack('bq'), stack('bk'), stack('bv'), stack('bo')
    bi, bf_ = stack('bi'), stack('bf')
    ln1g, ln1b = stack('ln1_g'), stack('ln1_b')
    ln2g, ln2b = stack('ln2_g'), stack('ln2_b')

    kernel = functools.partial(_bert_encoder_kernel, batch=B, seq=S)
    # Single invocation (grid=()): whole batch + all weights resident in VMEM (~100 KB).
    return pl.pallas_call(
        kernel,
        out_shape=jax.ShapeDtypeStruct((B, H), jnp.float32),
    )(x, add_mask, params['emb_ln_g'], params['emb_ln_b'],
      wq, bq, wk, bk, wv, bv, wo, bo, ln1g, ln1b,
      wi, bi, wf, bf_, ln2g, ln2b)


# -------------------- parameter init (deterministic, synthetic) --------------------
def init_params(key):
    scale = 0.02
    keys = jax.random.split(key, 3 + N_LAYERS)
    params = {
        'word_emb': scale * jax.random.normal(keys[0], (VOCAB, HID), jnp.float32),
        'pos_emb':  scale * jax.random.normal(keys[1], (SEQ, HID), jnp.float32),
        'type_emb': scale * jax.random.normal(keys[2], (2, HID), jnp.float32),
        'emb_ln_g': jnp.ones((1, HID), jnp.float32),
        'emb_ln_b': jnp.zeros((1, HID), jnp.float32),
        'layers': [],
    }
    for li in range(N_LAYERS):
        lk = jax.random.split(keys[3 + li], 6)
        params['layers'].append({
            'wq': scale * jax.random.normal(lk[0], (HID, HID), jnp.float32),
            'bq': jnp.zeros((1, HID), jnp.float32),
            'wk': scale * jax.random.normal(lk[1], (HID, HID), jnp.float32),
            'bk': jnp.zeros((1, HID), jnp.float32),
            'wv': scale * jax.random.normal(lk[2], (HID, HID), jnp.float32),
            'bv': jnp.zeros((1, HID), jnp.float32),
            'wo': scale * jax.random.normal(lk[3], (HID, HID), jnp.float32),
            'bo': jnp.zeros((1, HID), jnp.float32),
            'ln1_g': jnp.ones((1, HID), jnp.float32),
            'ln1_b': jnp.zeros((1, HID), jnp.float32),
            'wi': scale * jax.random.normal(lk[4], (HID, INTER), jnp.float32),
            'bi': jnp.zeros((1, INTER), jnp.float32),
            'wf': scale * jax.random.normal(lk[5], (INTER, HID), jnp.float32),
            'bf': jnp.zeros((1, HID), jnp.float32),
            'ln2_g': jnp.ones((1, HID), jnp.float32),
            'ln2_b': jnp.zeros((1, HID), jnp.float32),
        })
    return params


# -------------------- end-to-end forward (equivalent of BertLayer.forward) --------------------
def bert_feature_extractor(params, input_ids, input_mask, segment_ids):
    # TODO(synk): BertTokenizer / pretrained-checkpoint loading / DataLoader have no
    # Pallas equivalent; token ids are produced synthetically by the caller.
    positions = jnp.arange(SEQ)

    # embedding gathers are glue (plain JAX); everything downstream runs in one Pallas kernel
    emb = (params['word_emb'][input_ids]
           + params['pos_emb'][positions][None, :, :]
           + params['type_emb'][segment_ids])

    # fused kernel returns sequence_output[:, 0]  (the [CLS] embedding per node)
    return bert_encoder_pallas(emb, input_mask, params)


if __name__ == "__main__":
    key = jax.random.PRNGKey(0)
    k_param, k_ids = jax.random.split(key)

    params = init_params(k_param)

    B = 8  # number of "nodes"; B*SEQ = 128 makes the attention key axis lane-dense
    input_ids = jax.random.randint(k_ids, (B, SEQ), 0, VOCAB, dtype=jnp.int32)
    lengths = jnp.array([SEQ, 10, 6, 12, SEQ, 8, 4, 14], dtype=jnp.int32)
    input_mask = (jnp.arange(SEQ)[None, :] < lengths[:, None]).astype(jnp.int32)
    segment_ids = jnp.zeros((B, SEQ), dtype=jnp.int32)

    cls_embeddings = bert_feature_extractor(params, input_ids, input_mask, segment_ids)
    cls_embeddings = jax.block_until_ready(cls_embeddings)
    assert cls_embeddings.shape == (B, HID)
    assert bool(jnp.all(jnp.isfinite(cls_embeddings)))
    print("KERNEL_OK")
</pallas_src>

<mosaic_0001>
module attributes {stable_mosaic.version = 11 : i64} {
  func.func @_bert_encoder_kernel(%arg0: memref<128x32xf32, #tpu.memory_space<vmem>>, %arg1: memref<128x128xf32, #tpu.memory_space<vmem>>, %arg2: memref<1x32xf32, #tpu.memory_space<vmem>>, %arg3: memref<1x32xf32, #tpu.memory_space<vmem>>, %arg4: memref<2x32x32xbf16, #tpu.memory_space<vmem>>, %arg5: memref<2x1x32xf32, #tpu.memory_space<vmem>>, %arg6: memref<2x32x32xbf16, #tpu.memory_space<vmem>>, %arg7: memref<2x1x32xf32, #tpu.memory_space<vmem>>, %arg8: memref<2x32x32xbf16, #tpu.memory_space<vmem>>, %arg9: memref<2x1x32xf32, #tpu.memory_space<vmem>>, %arg10: memref<2x32x32xf32, #tpu.memory_space<vmem>>, %arg11: memref<2x1x32xf32, #tpu.memory_space<vmem>>, %arg12: memref<2x1x32xf32, #tpu.memory_space<vmem>>, %arg13: memref<2x1x32xf32, #tpu.memory_space<vmem>>, %arg14: memref<2x32x64xbf16, #tpu.memory_space<vmem>>, %arg15: memref<2x1x64xf32, #tpu.memory_space<vmem>>, %arg16: memref<2x64x32xbf16, #tpu.memory_space<vmem>>, %arg17: memref<2x1x32xf32, #tpu.memory_space<vmem>>, %arg18: memref<2x1x32xf32, #tpu.memory_space<vmem>>, %arg19: memref<2x1x32xf32, #tpu.memory_space<vmem>>, %arg20: memref<8x32xf32, #tpu.memory_space<vmem>>) attributes {dimension_semantics = [], scalar_prefetch = 0 : i64, scratch_operands = 0 : i64, tpu.core_type = #tpu.core_type<tc>} {
    %c0 = arith.constant 0 : index
    %c0_0 = arith.constant 0 : index
    %0 = vector.load %arg1[%c0, %c0_0] : memref<128x128xf32, #tpu.memory_space<vmem>>, vector<128x128xf32>
    %c0_1 = arith.constant 0 : index
    %c0_2 = arith.constant 0 : index
    %1 = vector.load %arg0[%c0_1, %c0_2] : memref<128x32xf32, #tpu.memory_space<vmem>>, vector<128x32xf32>
    %c0_3 = arith.constant 0 : index
    %c0_4 = arith.constant 0 : index
    %2 = vector.load %arg2[%c0_3, %c0_4] : memref<1x32xf32, #tpu.memory_space<vmem>>, vector<1x32xf32>
    %c0_5 = arith.constant 0 : index
    %c0_6 = arith.constant 0 : index
    %3 = vector.load %arg3[%c0_5, %c0_6] : memref<1x32xf32, #tpu.memory_space<vmem>>, vector<1x32xf32>
    %cst = arith.constant dense<0.000000e+00> : vector<128xf32>
    %4 = vector.multi_reduction <add>, %1, %cst [1] : vector<128x32xf32> to vector<128xf32>
    %5 = vector.shape_cast %4 : vector<128xf32> to vector<128x1xf32>
    %cst_7 = arith.constant 3.200000e+01 : f32
    %6 = vector.broadcast %cst_7 : f32 to vector<128x1xf32>
    %7 = arith.divf %5, %6 : vector<128x1xf32>
    %8 = vector.broadcast %7 : vector<128x1xf32> to vector<128x32xf32>
    %9 = arith.subf %1, %8 : vector<128x32xf32>
    %10 = arith.mulf %9, %9 : vector<128x32xf32>
    %cst_8 = arith.constant dense<0.000000e+00> : vector<128xf32>
    %11 = vector.multi_reduction <add>, %10, %cst_8 [1] : vector<128x32xf32> to vector<128xf32>
    %12 = vector.shape_cast %11 : vector<128xf32> to vector<128x1xf32>
    %cst_9 = arith.constant 3.200000e+01 : f32
    %13 = vector.broadcast %cst_9 : f32 to vector<128x1xf32>
    %14 = arith.divf %12, %13 : vector<128x1xf32>
    %15 = vector.broadcast %7 : vector<128x1xf32> to vector<128x32xf32>
    %16 = arith.subf %1, %15 : vector<128x32xf32>
    %cst_10 = arith.constant 9.99999996E-13 : f32
    %17 = vector.broadcast %cst_10 : f32 to vector<128x1xf32>
    %18 = arith.addf %14, %17 : vector<128x1xf32>
    %19 = math.rsqrt %18 : vector<128x1xf32>
    %20 = vector.broadcast %19 : vector<128x1xf32> to vector<128x32xf32>
    %21 = arith.mulf %16, %20 : vector<128x32xf32>
    %22 = vector.broadcast %2 : vector<1x32xf32> to vector<128x32xf32>
    %23 = arith.mulf %21, %22 : vector<128x32xf32>
    %24 = vector.broadcast %3 : vector<1x32xf32> to vector<128x32xf32>
    %25 = arith.addf %23, %24 : vector<128x32xf32>
    %26 = arith.truncf %25 : vector<128x32xf32> to vector<128x32xbf16>
    %c0_11 = arith.constant 0 : index
    %c0_12 = arith.constant 0 : index
    %c0_13 = arith.constant 0 : index
    %27 = vector.load %arg4[%c0_11, %c0_12, %c0_13] : memref<2x32x32xbf16, #tpu.memory_space<vmem>>, vector<1x32x32xbf16>
    %28 = vector.shape_cast %27 : vector<1x32x32xbf16> to vector<32x32xbf16>
    %cst_14 = arith.constant dense<0.000000e+00> : vector<128x32xf32>
    %29 = tpu.matmul %26, %28, %cst_14 {dimension_numbers = #tpu.dot_dimension_numbers<[1], [0], [0], [1], [0, 0, 1, 1], [], []>} : vector<128x32xbf16>, vector<32x32xbf16>, vector<128x32xf32> -> vector<128x32xf32>
    %c0_15 = arith.constant 0 : index
    %c0_16 = arith.constant 0 : index
    %c0_17 = arith.constant 0 : index
    %30 = vector.load %arg5[%c0_15, %c0_16, %c0_17] : memref<2x1x32xf32, #tpu.memory_space<vmem>>, vector<1x1x32xf32>
    %31 = vector.shape_cast %30 : vector<1x1x32xf32> to vector<1x32xf32>
    %32 = vector.broadcast %31 : vector<1x32xf32> to vector<128x32xf32>
    %33 = arith.addf %29, %32 : vector<128x32xf32>
    %c0_18 = arith.constant 0 : index
    %c0_19 = arith.constant 0 : index
    %c0_20 = arith.constant 0 : index
    %34 = vector.load %arg6[%c0_18, %c0_19, %c0_20] : memref<2x32x32xbf16, #tpu.memory_space<vmem>>, vector<1x32x32xbf16>
    %35 = vector.shape_cast %34 : vector<1x32x32xbf16> to vector<32x32xbf16>
    %cst_21 = arith.constant dense<0.000000e+00> : vector<128x32xf32>
    %36 = tpu.matmul %26, %35, %cst_21 {dimension_numbers = #tpu.dot_dimension_numbers<[1], [0], [0], [1], [0, 0, 1, 1], [], []>} : vector<128x32xbf16>, vector<32x32xbf16>, vector<128x32xf32> -> vector<128x32xf32>
    %c0_22 = arith.constant 0 : index
    %c0_23 = arith.constant 0 : index
    %c0_24 = arith.constant 0 : index
    %37 = vector.load %arg7[%c0_22, %c0_23, %c0_24] : memref<2x1x32xf32, #tpu.memory_space<vmem>>, vector<1x1x32xf32>
    %38 = vector.shape_cast %37 : vector<1x1x32xf32> to vector<1x32xf32>
    %39 = vector.broadcast %38 : vector<1x32xf32> to vector<128x32xf32>
    %40 = arith.addf %36, %39 : vector<128x32xf32>
    %c0_25 = arith.constant 0 : index
    %c0_26 = arith.constant 0 : index
    %c0_27 = arith.constant 0 : index
    %41 = vector.load %arg8[%c0_25, %c0_26, %c0_27] : memref<2x32x32xbf16, #tpu.memory_space<vmem>>, vector<1x32x32xbf16>
    %42 = vector.shape_cast %41 : vector<1x32x32xbf16> to vector<32x32xbf16>
    %cst_28 = arith.constant dense<0.000000e+00> : vector<128x32xf32>
    %43 = tpu.matmul %26, %42, %cst_28 {dimension_numbers = #tpu.dot_dimension_numbers<[1], [0], [0], [1], [0, 0, 1, 1], [], []>} : vector<128x32xbf16>, vector<32x32xbf16>, vector<128x32xf32> -> vector<128x32xf32>
    %c0_29 = arith.constant 0 : index
    %c0_30 = arith.constant 0 : index
    %c0_31 = arith.constant 0 : index
    %44 = vector.load %arg9[%c0_29, %c0_30, %c0_31] : memref<2x1x32xf32, #tpu.memory_space<vmem>>, vector<1x1x32xf32>
    %45 = vector.shape_cast %44 : vector<1x1x32xf32> to vector<1x32xf32>
    %46 = vector.broadcast %45 : vector<1x32xf32> to vector<128x32xf32>
    %47 = arith.addf %43, %46 : vector<128x32xf32>
    %c0_32 = arith.constant 0 : index
    %c0_33 = arith.constant 0 : index
    %c0_34 = arith.constant 0 : index
    %48 = vector.load %arg10[%c0_32, %c0_33, %c0_34] : memref<2x32x32xf32, #tpu.memory_space<vmem>>, vector<1x32x32xf32>
    %49 = vector.shape_cast %48 : vector<1x32x32xf32> to vector<32x32xf32>
    %cst_35 = arith.constant 0.000000e+00 : f32
    %50 = vector.broadcast %cst_35 : f32 to vector<128x32xf32>
    %51 = vector.extract_strided_slice %33 {offsets = [0, 0], sizes = [128, 8], strides = [1, 1]} : vector<128x32xf32> to vector<128x8xf32>
    %52 = arith.truncf %51 : vector<128x8xf32> to vector<128x8xbf16>
    %53 = vector.extract_strided_slice %40 {offsets = [0, 0], sizes = [128, 8], strides = [1, 1]} : vector<128x32xf32> to vector<128x8xf32>
    %54 = arith.truncf %53 : vector<128x8xf32> to vector<128x8xbf16>
    %55 = vector.extract_strided_slice %47 {offsets = [0, 0], sizes = [128, 8], strides = [1, 1]} : vector<128x32xf32> to vector<128x8xf32>
    %56 = arith.truncf %55 : vector<128x8xf32> to vector<128x8xbf16>
    %cst_36 = arith.constant dense<0.000000e+00> : vector<128x128xf32>
    %57 = tpu.matmul %52, %54, %cst_36 {dimension_numbers = #tpu.dot_dimension_numbers<[1], [1], [0], [0], [0, 0, 1, 0], [], []>} : vector<128x8xbf16>, vector<128x8xbf16>, vector<128x128xf32> -> vector<128x128xf32>
    %cst_37 = arith.constant 0.353553385 : f32
    %58 = vector.broadcast %cst_37 : f32 to vector<128x128xf32>
    %59 = arith.mulf %57, %58 : vector<128x128xf32>
    %60 = arith.addf %59, %0 : vector<128x128xf32>
    %cst_38 = arith.constant dense<0xFF800000> : vector<128xf32>
    %61 = vector.multi_reduction <maximumf>, %60, %cst_38 [1] : vector<128x128xf32> to vector<128xf32>
    %62 = vector.shape_cast %61 : vector<128xf32> to vector<128x1xf32>
    %63 = vector.broadcast %62 : vector<128x1xf32> to vector<128x128xf32>
    %64 = arith.subf %60, %63 : vector<128x128xf32>
    %65 = math.exp %64 : vector<128x128xf32>
    %cst_39 = arith.constant dense<0.000000e+00> : vector<128xf32>
    %66 = vector.multi_reduction <add>, %65, %cst_39 [1] : vector<128x128xf32> to vector<128xf32>
    %67 = vector.shape_cast %66 : vector<128xf32> to vector<128x1xf32>
    %68 = tpu.reciprocal %67 {approx = true} : vector<128x1xf32> -> vector<128x1xf32>
    %69 = vector.broadcast %68 : vector<128x1xf32> to vector<128x128xf32>
    %70 = arith.mulf %65, %69 : vector<128x128xf32>
    %71 = arith.truncf %70 : vector<128x128xf32> to vector<128x128xbf16>
    %cst_40 = arith.constant dense<0.000000e+00> : vector<128x8xf32>
    %72 = tpu.matmul %71, %56, %cst_40 {dimension_numbers = #tpu.dot_dimension_numbers<[1], [0], [0], [1], [0, 0, 1, 1], [], []>} : vector<128x128xbf16>, vector<128x8xbf16>, vector<128x8xf32> -> vector<128x8xf32>
    %73 = vector.extract_strided_slice %49 {offsets = [0, 0], sizes = [8, 32], strides = [1, 1]} : vector<32x32xf32> to vector<8x32xf32>
    %cst_41 = arith.constant dense<0.000000e+00> : vector<128x32xf32>
    %74 = tpu.matmul %72, %73, %cst_41 {dimension_numbers = #tpu.dot_dimension_numbers<[1], [0], [0], [1], [0, 0, 1, 1], [], []>} : vector<128x8xf32>, vector<8x32xf32>, vector<128x32xf32> -> vector<128x32xf32>
    %75 = arith.addf %50, %74 : vector<128x32xf32>
    %76 = vector.extract_strided_slice %33 {offsets = [0, 8], sizes = [128, 8], strides = [1, 1]} : vector<128x32xf32> to vector<128x8xf32>
    %77 = arith.truncf %76 : vector<128x8xf32> to vector<128x8xbf16>
    %78 = vector.extract_strided_slice %40 {offsets = [0, 8], sizes = [128, 8], strides = [1, 1]} : vector<128x32xf32> to vector<128x8xf32>
    %79 = arith.truncf %78 : vector<128x8xf32> to vector<128x8xbf16>
    %80 = vector.extract_strided_slice %47 {offsets = [0, 8], sizes = [128, 8], strides = [1, 1]} : vector<128x32xf32> to vector<128x8xf32>
    %81 = arith.truncf %80 : vector<128x8xf32> to vector<128x8xbf16>
    %cst_42 = arith.constant dense<0.000000e+00> : vector<128x128xf32>
    %82 = tpu.matmul %77, %79, %cst_42 {dimension_numbers = #tpu.dot_dimension_numbers<[1], [1], [0], [0], [0, 0, 1, 0], [], []>} : vector<128x8xbf16>, vector<128x8xbf16>, vector<128x128xf32> -> vector<128x128xf32>
    %cst_43 = arith.constant 0.353553385 : f32
    %83 = vector.broadcast %cst_43 : f32 to vector<128x128xf32>
    %84 = arith.mulf %82, %83 : vector<128x128xf32>
    %85 = arith.addf %84, %0 : vector<128x128xf32>
    %cst_44 = arith.constant dense<0xFF800000> : vector<128xf32>
    %86 = vector.multi_reduction <maximumf>, %85, %cst_44 [1] : vector<128x128xf32> to vector<128xf32>
    %87 = vector.shape_cast %86 : vector<128xf32> to vector<128x1xf32>
    %88 = vector.broadcast %87 : vector<128x1xf32> to vector<128x128xf32>
    %89 = arith.subf %85, %88 : vector<128x128xf32>
    %90 = math.exp %89 : vector<128x128xf32>
    %cst_45 = arith.constant dense<0.000000e+00> : vector<128xf32>
    %91 = vector.multi_reduction <add>, %90, %cst_45 [1] : vector<128x128xf32> to vector<128xf32>
    %92 = vector.shape_cast %91 : vector<128xf32> to vector<128x1xf32>
    %93 = tpu.reciprocal %92 {approx = true} : vector<128x1xf32> -> vector<128x1xf32>
    %94 = vector.broadcast %93 : vector<128x1xf32> to vector<128x128xf32>
    %95 = arith.mulf %90, %94 : vector<128x128xf32>
    %96 = arith.truncf %95 : vector<128x128xf32> to vector<128x128xbf16>
    %cst_46 = arith.constant dense<0.000000e+00> : vector<128x8xf32>
    %97 = tpu.matmul %96, %81, %cst_46 {dimension_numbers = #tpu.dot_dimension_numbers<[1], [0], [0], [1], [0, 0, 1, 1], [], []>} : vector<128x128xbf16>, vector<128x8xbf16>, vector<128x8xf32> -> vector<128x8xf32>
    %98 = vector.extract_strided_slice %49 {offsets = [8, 0], sizes = [8, 32], strides = [1, 1]} : vector<32x32xf32> to vector<8x32xf32>
    %cst_47 = arith.constant dense<0.000000e+00> : vector<128x32xf32>
    %99 = tpu.matmul %97, %98, %cst_47 {dimension_numbers = #tpu.dot_dimension_numbers<[1], [0], [0], [1], [0, 0, 1, 1], [], []>} : vector<128x8xf32>, vector<8x32xf32>, vector<128x32xf32> -> vector<128x32xf32>
    %100 = arith.addf %75, %99 : vector<128x32xf32>
    %101 = vector.extract_strided_slice %33 {offsets = [0, 16], sizes = [128, 8], strides = [1, 1]} : vector<128x32xf32> to vector<128x8xf32>
    %102 = arith.truncf %101 : vector<128x8xf32> to vector<128x8xbf16>
    %103 = vector.extract_strided_slice %40 {offsets = [0, 16], sizes = [128, 8], strides = [1, 1]} : vector<128x32xf32> to vector<128x8xf32>
    %104 = arith.truncf %103 : vector<128x8xf32> to vector<128x8xbf16>
    %105 = vector.extract_strided_slice %47 {offsets = [0, 16], sizes = [128, 8], strides = [1, 1]} : vector<128x32xf32> to vector<128x8xf32>
    %106 = arith.truncf %105 : vector<128x8xf32> to vector<128x8xbf16>
    %cst_48 = arith.constant dense<0.000000e+00> : vector<128x128xf32>
    %107 = tpu.matmul %102, %104, %cst_48 {dimension_numbers = #tpu.dot_dimension_numbers<[1], [1], [0], [0], [0, 0, 1, 0], [], []>} : vector<128x8xbf16>, vector<128x8xbf16>, vector<128x128xf32> -> vector<128x128xf32>
    %cst_49 = arith.constant 0.353553385 : f32
    %108 = vector.broadcast %cst_49 : f32 to vector<128x128xf32>
    %109 = arith.mulf %107, %108 : vector<128x128xf32>
    %110 = arith.addf %109, %0 : vector<128x128xf32>
    %cst_50 = arith.constant dense<0xFF800000> : vector<128xf32>
    %111 = vector.multi_reduction <maximumf>, %110, %cst_50 [1] : vector<128x128xf32> to vector<128xf32>
    %112 = vector.shape_cast %111 : vector<128xf32> to vector<128x1xf32>
    %113 = vector.broadcast %112 : vector<128x1xf32> to vector<128x128xf32>
    %114 = arith.subf %110, %113 : vector<128x128xf32>
    %115 = math.exp %114 : vector<128x128xf32>
    %cst_51 = arith.constant dense<0.000000e+00> : vector<128xf32>
    %116 = vector.multi_reduction <add>, %115, %cst_51 [1] : vector<128x128xf32> to vector<128xf32>
    %117 = vector.shape_cast %116 : vector<128xf32> to vector<128x1xf32>
    %118 = tpu.reciprocal %117 {approx = true} : vector<128x1xf32> -> vector<128x1xf32>
    %119 = vector.broadcast %118 : vector<128x1xf32> to vector<128x128xf32>
    %120 = arith.mulf %115, %119 : vector<128x128xf32>
    %121 = arith.truncf %120 : vector<128x128xf32> to vector<128x128xbf16>
    %cst_52 = arith.constant dense<0.000000e+00> : vector<128x8xf32>
    %122 = tpu.matmul %121, %106, %cst_52 {dimension_numbers = #tpu.dot_dimension_numbers<[1], [0], [0], [1], [0, 0, 1, 1], [], []>} : vector<128x128xbf16>, vector<128x8xbf16>, vector<128x8xf32> -> vector<128x8xf32>
    %123 = vector.extract_strided_slice %49 {offsets = [16, 0], sizes = [8, 32], strides = [1, 1]} : vector<32x32xf32> to vector<8x32xf32>
    %cst_53 = arith.constant dense<0.000000e+00> : vector<128x32xf32>
    %124 = tpu.matmul %122, %123, %cst_53 {dimension_numbers = #tpu.dot_dimension_numbers<[1], [0], [0], [1], [0, 0, 1, 1], [], []>} : vector<128x8xf32>, vector<8x32xf32>, vector<128x32xf32> -> vector<128x32xf32>
    %125 = arith.addf %100, %124 : vector<128x32xf32>
    %126 = vector.extract_strided_slice %33 {offsets = [0, 24], sizes = [128, 8], strides = [1, 1]} : vector<128x32xf32> to vector<128x8xf32>
    %127 = arith.truncf %126 : vector<128x8xf32> to vector<128x8xbf16>
    %128 = vector.extract_strided_slice %40 {offsets = [0, 24], sizes = [128, 8], strides = [1, 1]} : vector<128x32xf32> to vector<128x8xf32>
    %129 = arith.truncf %128 : vector<128x8xf32> to vector<128x8xbf16>
    %130 = vector.extract_strided_slice %47 {offsets = [0, 24], sizes = [128, 8], strides = [1, 1]} : vector<128x32xf32> to vector<128x8xf32>
    %131 = arith.truncf %130 : vector<128x8xf32> to vector<128x8xbf16>
    %cst_54 = arith.constant dense<0.000000e+00> : vector<128x128xf32>
    %132 = tpu.matmul %127, %129, %cst_54 {dimension_numbers = #tpu.dot_dimension_numbers<[1], [1], [0], [0], [0, 0, 1, 0], [], []>} : vector<128x8xbf16>, vector<128x8xbf16>, vector<128x128xf32> -> vector<128x128xf32>
    %cst_55 = arith.constant 0.353553385 : f32
    %133 = vector.broadcast %cst_55 : f32 to vector<128x128xf32>
    %134 = arith.mulf %132, %133 : vector<128x128xf32>
    %135 = arith.addf %134, %0 : vector<128x128xf32>
    %cst_56 = arith.constant dense<0xFF800000> : vector<128xf32>
    %136 = vector.multi_reduction <maximumf>, %135, %cst_56 [1] : vector<128x128xf32> to vector<128xf32>
    %137 = vector.shape_cast %136 : vector<128xf32> to vector<128x1xf32>
    %138 = vector.broadcast %137 : vector<128x1xf32> to vector<128x128xf32>
    %139 = arith.subf %135, %138 : vector<128x128xf32>
    %140 = math.exp %139 : vector<128x128xf32>
    %cst_57 = arith.constant dense<0.000000e+00> : vector<128xf32>
    %141 = vector.multi_reduction <add>, %140, %cst_57 [1] : vector<128x128xf32> to vector<128xf32>
    %142 = vector.shape_cast %141 : vector<128xf32> to vector<128x1xf32>
    %143 = tpu.reciprocal %142 {approx = true} : vector<128x1xf32> -> vector<128x1xf32>
    %144 = vector.broadcast %143 : vector<128x1xf32> to vector<128x128xf32>
    %145 = arith.mulf %140, %144 : vector<128x128xf32>
    %146 = arith.truncf %145 : vector<128x128xf32> to vector<128x128xbf16>
    %cst_58 = arith.constant dense<0.000000e+00> : vector<128x8xf32>
    %147 = tpu.matmul %146, %131, %cst_58 {dimension_numbers = #tpu.dot_dimension_numbers<[1], [0], [0], [1], [0, 0, 1, 1], [], []>} : vector<128x128xbf16>, vector<128x8xbf16>, vector<128x8xf32> -> vector<128x8xf32>
    %148 = vector.extract_strided_slice %49 {offsets = [24, 0], sizes = [8, 32], strides = [1, 1]} : vector<32x32xf32> to vector<8x32xf32>
    %cst_59 = arith.constant dense<0.000000e+00> : vector<128x32xf32>
    %149 = tpu.matmul %147, %148, %cst_59 {dimension_numbers = #tpu.dot_dimension_numbers<[1], [0], [0], [1], [0, 0, 1, 1], [], []>} : vector<128x8xf32>, vector<8x32xf32>, vector<128x32xf32> -> vector<128x32xf32>
    %150 = arith.addf %125, %149 : vector<128x32xf32>
    %c0_60 = arith.constant 0 : index
    %c0_61 = arith.constant 0 : index
    %c0_62 = arith.constant 0 : index
    %151 = vector.load %arg11[%c0_60, %c0_61, %c0_62] : memref<2x1x32xf32, #tpu.memory_space<vmem>>, vector<1x1x32xf32>
    %152 = vector.shape_cast %151 : vector<1x1x32xf32> to vector<1x32xf32>
    %153 = vector.broadcast %152 : vector<1x32xf32> to vector<128x32xf32>
    %154 = arith.addf %150, %153 : vector<128x32xf32>
    %155 = arith.addf %154, %25 : vector<128x32xf32>
    %c0_63 = arith.constant 0 : index
    %c0_64 = arith.constant 0 : index
    %c0_65 = arith.constant 0 : index
    %156 = vector.load %arg12[%c0_63, %c0_64, %c0_65] : memref<2x1x32xf32, #tpu.memory_space<vmem>>, vector<1x1x32xf32>
    %157 = vector.shape_cast %156 : vector<1x1x32xf32> to vector<1x32xf32>
    %c0_66 = arith.constant 0 : index
    %c0_67 = arith.constant 0 : index
    %c0_68 = arith.constant 0 : index
    %158 = vector.load %arg13[%c0_66, %c0_67, %c0_68] : memref<2x1x32xf32, #tpu.memory_space<vmem>>, vector<1x1x32xf32>
    %159 = vector.shape_cast %158 : vector<1x1x32xf32> to vector<1x32xf32>
    %cst_69 = arith.constant dense<0.000000e+00> : vector<128xf32>
    %160 = vector.multi_reduction <add>, %155, %cst_69 [1] : vector<128x32xf32> to vector<128xf32>
    %161 = vector.shape_cast %160 : vector<128xf32> to vector<128x1xf32>
    %cst_70 = arith.constant 3.200000e+01 : f32
    %162 = vector.broadcast %cst_70 : f32 to vector<128x1xf32>
    %163 = arith.divf %161, %162 : vector<128x1xf32>
    %164 = vector.broadcast %163 : vector<128x1xf32> to vector<128x32xf32>
    %165 = arith.subf %155, %164 : vector<128x32xf32>
    %166 = arith.mulf %165, %165 : vector<128x32xf32>
    %cst_71 = arith.constant dense<0.000000e+00> : vector<128xf32>
    %167 = vector.multi_reduction <add>, %166, %cst_71 [1] : vector<128x32xf32> to vector<128xf32>
    %168 = vector.shape_cast %167 : vector<128xf32> to vector<128x1xf32>
    %cst_72 = arith.constant 3.200000e+01 : f32
    %169 = vector.broadcast %cst_72 : f32 to vector<128x1xf32>
    %170 = arith.divf %168, %169 : vector<128x1xf32>
    %171 = vector.broadcast %163 : vector<128x1xf32> to vector<128x32xf32>
    %172 = arith.subf %155, %171 : vector<128x32xf32>
    %cst_73 = arith.constant 9.99999996E-13 : f32
    %173 = vector.broadcast %cst_73 : f32 to vector<128x1xf32>
    %174 = arith.addf %170, %173 : vector<128x1xf32>
    %175 = math.rsqrt %174 : vector<128x1xf32>
    %176 = vector.broadcast %175 : vector<128x1xf32> to vector<128x32xf32>
    %177 = arith.mulf %172, %176 : vector<128x32xf32>
    %178 = vector.broadcast %157 : vector<1x32xf32> to vector<128x32xf32>
    %179 = arith.mulf %177, %178 : vector<128x32xf32>
    %180 = vector.broadcast %159 : vector<1x32xf32> to vector<128x32xf32>
    %181 = arith.addf %179, %180 : vector<128x32xf32>
    %182 = arith.truncf %181 : vector<128x32xf32> to vector<128x32xbf16>
    %c0_74 = arith.constant 0 : index
    %c0_75 = arith.constant 0 : index
    %c0_76 = arith.constant 0 : index
    %183 = vector.load %arg14[%c0_74, %c0_75, %c0_76] : memref<2x32x64xbf16, #tpu.memory_space<vmem>>, vector<1x32x64xbf16>
    %184 = vector.shape_cast %183 : vector<1x32x64xbf16> to vector<32x64xbf16>
    %cst_77 = arith.constant dense<0.000000e+00> : vector<128x64xf32>
    %185 = tpu.matmul %182, %184, %cst_77 {dimension_numbers = #tpu.dot_dimension_numbers<[1], [0], [0], [1], [0, 0, 1, 1], [], []>} : vector<128x32xbf16>, vector<32x64xbf16>, vector<128x64xf32> -> vector<128x64xf32>
    %c0_78 = arith.constant 0 : index
    %c0_79 = arith.constant 0 : index
    %c0_80 = arith.constant 0 : index
    %186 = vector.load %arg15[%c0_78, %c0_79, %c0_80] : memref<2x1x64xf32, #tpu.memory_space<vmem>>, vector<1x1x64xf32>
    %187 = vector.shape_cast %186 : vector<1x1x64xf32> to vector<1x64xf32>
    %188 = vector.broadcast %187 : vector<1x64xf32> to vector<128x64xf32>
    %189 = arith.addf %185, %188 : vector<128x64xf32>
    %cst_81 = arith.constant 5.000000e-01 : f32
    %190 = vector.broadcast %cst_81 : f32 to vector<128x64xf32>
    %191 = arith.mulf %190, %189 : vector<128x64xf32>
    %cst_82 = arith.constant 4.471500e-02 : f32
    %192 = vector.broadcast %cst_82 : f32 to vector<128x64xf32>
    %193 = arith.mulf %192, %189 : vector<128x64xf32>
    %194 = arith.mulf %193, %189 : vector<128x64xf32>
    %195 = arith.mulf %194, %189 : vector<128x64xf32>
    %196 = arith.addf %189, %195 : vector<128x64xf32>
    %cst_83 = arith.constant 0.797884583 : f32
    %197 = vector.broadcast %cst_83 : f32 to vector<128x64xf32>
    %198 = arith.mulf %197, %196 : vector<128x64xf32>
    %199 = math.tanh %198 : vector<128x64xf32>
    %cst_84 = arith.constant 1.000000e+00 : f32
    %200 = vector.broadcast %cst_84 : f32 to vector<128x64xf32>
    %201 = arith.addf %200, %199 : vector<128x64xf32>
    %202 = arith.mulf %191, %201 : vector<128x64xf32>
    %203 = arith.truncf %202 : vector<128x64xf32> to vector<128x64xbf16>
    %c0_85 = arith.constant 0 : index
    %c0_86 = arith.constant 0 : index
    %c0_87 = arith.constant 0 : index
    %204 = vector.load %arg16[%c0_85, %c0_86, %c0_87] : memref<2x64x32xbf16, #tpu.memory_space<vmem>>, vector<1x64x32xbf16>
    %205 = vector.shape_cast %204 : vector<1x64x32xbf16> to vector<64x32xbf16>
    %cst_88 = arith.constant dense<0.000000e+00> : vector<128x32xf32>
    %206 = tpu.matmul %203, %205, %cst_88 {dimension_numbers = #tpu.dot_dimension_numbers<[1], [0], [0], [1], [0, 0, 1, 1], [], []>} : vector<128x64xbf16>, vector<64x32xbf16>, vector<128x32xf32> -> vector<128x32xf32>
    %c0_89 = arith.constant 0 : index
    %c0_90 = arith.constant 0 : index
    %c0_91 = arith.constant 0 : index
    %207 = vector.load %arg17[%c0_89, %c0_90, %c0_91] : memref<2x1x32xf32, #tpu.memory_space<vmem>>, vector<1x1x32xf32>
    %208 = vector.shape_cast %207 : vector<1x1x32xf32> to vector<1x32xf32>
    %209 = vector.broadcast %208 : vector<1x32xf32> to vector<128x32xf32>
    %210 = arith.addf %206, %209 : vector<128x32xf32>
    %211 = arith.addf %210, %181 : vector<128x32xf32>
    %c0_92 = arith.constant 0 : index
    %c0_93 = arith.constant 0 : index
    %c0_94 = arith.constant 0 : index
    %212 = vector.load %arg18[%c0_92, %c0_93, %c0_94] : memref<2x1x32xf32, #tpu.memory_space<vmem>>, vector<1x1x32xf32>
    %213 = vector.shape_cast %212 : vector<1x1x32xf32> to vector<1x32xf32>
    %c0_95 = arith.constant 0 : index
    %c0_96 = arith.constant 0 : index
    %c0_97 = arith.constant 0 : index
    %214 = vector.load %arg19[%c0_95, %c0_96, %c0_97] : memref<2x1x32xf32, #tpu.memory_space<vmem>>, vector<1x1x32xf32>
    %215 = vector.shape_cast %214 : vector<1x1x32xf32> to vector<1x32xf32>
    %cst_98 = arith.constant dense<0.000000e+00> : vector<128xf32>
    %216 = vector.multi_reduction <add>, %211, %cst_98 [1] : vector<128x32xf32> to vector<128xf32>
    %217 = vector.shape_cast %216 : vector<128xf32> to vector<128x1xf32>
    %cst_99 = arith.constant 3.200000e+01 : f32
    %218 = vector.broadcast %cst_99 : f32 to vector<128x1xf32>
    %219 = arith.divf %217, %218 : vector<128x1xf32>
    %220 = vector.broadcast %219 : vector<128x1xf32> to vector<128x32xf32>
    %221 = arith.subf %211, %220 : vector<128x32xf32>
    %222 = arith.mulf %221, %221 : vector<128x32xf32>
    %cst_100 = arith.constant dense<0.000000e+00> : vector<128xf32>
    %223 = vector.multi_reduction <add>, %222, %cst_100 [1] : vector<128x32xf32> to vector<128xf32>
    %224 = vector.shape_cast %223 : vector<128xf32> to vector<128x1xf32>
    %cst_101 = arith.constant 3.200000e+01 : f32
    %225 = vector.broadcast %cst_101 : f32 to vector<128x1xf32>
    %226 = arith.divf %224, %225 : vector<128x1xf32>
    %227 = vector.broadcast %219 : vector<128x1xf32> to vector<128x32xf32>
    %228 = arith.subf %211, %227 : vector<128x32xf32>
    %cst_102 = arith.constant 9.99999996E-13 : f32
    %229 = vector.broadcast %cst_102 : f32 to vector<128x1xf32>
    %230 = arith.addf %226, %229 : vector<128x1xf32>
    %231 = math.rsqrt %230 : vector<128x1xf32>
    %232 = vector.broadcast %231 : vector<128x1xf32> to vector<128x32xf32>
    %233 = arith.mulf %228, %232 : vector<128x32xf32>
    %234 = vector.broadcast %213 : vector<1x32xf32> to vector<128x32xf32>
    %235 = arith.mulf %233, %234 : vector<128x32xf32>
    %236 = vector.broadcast %215 : vector<1x32xf32> to vector<128x32xf32>
    %237 = arith.addf %235, %236 : vector<128x32xf32>
    %238 = arith.truncf %237 : vector<128x32xf32> to vector<128x32xbf16>
    %c1 = arith.constant 1 : index
    %c0_103 = arith.constant 0 : index
    %c0_104 = arith.constant 0 : index
    %239 = vector.load %arg4[%c1, %c0_103, %c0_104] : memref<2x32x32xbf16, #tpu.memory_space<vmem>>, vector<1x32x32xbf16>
    %240 = vector.shape_cast %239 : vector<1x32x32xbf16> to vector<32x32xbf16>
    %cst_105 = arith.constant dense<0.000000e+00> : vector<128x32xf32>
    %241 = tpu.matmul %238, %240, %cst_105 {dimension_numbers = #tpu.dot_dimension_numbers<[1], [0], [0], [1], [0, 0, 1, 1], [], []>} : vector<128x32xbf16>, vector<32x32xbf16>, vector<128x32xf32> -> vector<128x32xf32>
    %c1_106 = arith.constant 1 : index
    %c0_107 = arith.constant 0 : index
    %c0_108 = arith.constant 0 : index
    %242 = vector.load %arg5[%c1_106, %c0_107, %c0_108] : memref<2x1x32xf32, #tpu.memory_space<vmem>>, vector<1x1x32xf32>
    %243 = vector.shape_cast %242 : vector<1x1x32xf32> to vector<1x32xf32>
    %244 = vector.broadcast %243 : vector<1x32xf32> to vector<128x32xf32>
    %245 = arith.addf %241, %244 : vector<128x32xf32>
    %c1_109 = arith.constant 1 : index
    %c0_110 = arith.constant 0 : index
    %c0_111 = arith.constant 0 : index
    %246 = vector.load %arg6[%c1_109, %c0_110, %c0_111] : memref<2x32x32xbf16, #tpu.memory_space<vmem>>, vector<1x32x32xbf16>
    %247 = vector.shape_cast %246 : vector<1x32x32xbf16> to vector<32x32xbf16>
    %cst_112 = arith.constant dense<0.000000e+00> : vector<128x32xf32>
    %248 = tpu.matmul %238, %247, %cst_112 {dimension_numbers = #tpu.dot_dimension_numbers<[1], [0], [0], [1], [0, 0, 1, 1], [], []>} : vector<128x32xbf16>, vector<32x32xbf16>, vector<128x32xf32> -> vector<128x32xf32>
    %c1_113 = arith.constant 1 : index
    %c0_114 = arith.constant 0 : index
    %c0_115 = arith.constant 0 : index
    %249 = vector.load %arg7[%c1_113, %c0_114, %c0_115] : memref<2x1x32xf32, #tpu.memory_space<vmem>>, vector<1x1x32xf32>
    %250 = vector.shape_cast %249 : vector<1x1x32xf32> to vector<1x32xf32>
    %251 = vector.broadcast %250 : vector<1x32xf32> to vector<128x32xf32>
    %252 = arith.addf %248, %251 : vector<128x32xf32>
    %c1_116 = arith.constant 1 : index
    %c0_117 = arith.constant 0 : index
    %c0_118 = arith.constant 0 : index
    %253 = vector.load %arg8[%c1_116, %c0_117, %c0_118] : memref<2x32x32xbf16, #tpu.memory_space<vmem>>, vector<1x32x32xbf16>
    %254 = vector.shape_cast %253 : vector<1x32x32xbf16> to vector<32x32xbf16>
    %cst_119 = arith.constant dense<0.000000e+00> : vector<128x32xf32>
    %255 = tpu.matmul %238, %254, %cst_119 {dimension_numbers = #tpu.dot_dimension_numbers<[1], [0], [0], [1], [0, 0, 1, 1], [], []>} : vector<128x32xbf16>, vector<32x32xbf16>, vector<128x32xf32> -> vector<128x32xf32>
    %c1_120 = arith.constant 1 : index
    %c0_121 = arith.constant 0 : index
    %c0_122 = arith.constant 0 : index
    %256 = vector.load %arg9[%c1_120, %c0_121, %c0_122] : memref<2x1x32xf32, #tpu.memory_space<vmem>>, vector<1x1x32xf32>
    %257 = vector.shape_cast %256 : vector<1x1x32xf32> to vector<1x32xf32>
    %258 = vector.broadcast %257 : vector<1x32xf32> to vector<128x32xf32>
    %259 = arith.addf %255, %258 : vector<128x32xf32>
    %c1_123 = arith.constant 1 : index
    %c0_124 = arith.constant 0 : index
    %c0_125 = arith.constant 0 : index
    %260 = vector.load %arg10[%c1_123, %c0_124, %c0_125] : memref<2x32x32xf32, #tpu.memory_space<vmem>>, vector<1x32x32xf32>
    %261 = vector.shape_cast %260 : vector<1x32x32xf32> to vector<32x32xf32>
    %cst_126 = arith.constant 0.000000e+00 : f32
    %262 = vector.broadcast %cst_126 : f32 to vector<128x32xf32>
    %263 = vector.extract_strided_slice %245 {offsets = [0, 0], sizes = [128, 8], strides = [1, 1]} : vector<128x32xf32> to vector<128x8xf32>
    %264 = arith.truncf %263 : vector<128x8xf32> to vector<128x8xbf16>
    %265 = vector.extract_strided_slice %252 {offsets = [0, 0], sizes = [128, 8], strides = [1, 1]} : vector<128x32xf32> to vector<128x8xf32>
    %266 = arith.truncf %265 : vector<128x8xf32> to vector<128x8xbf16>
    %267 = vector.extract_strided_slice %259 {offsets = [0, 0], sizes = [128, 8], strides = [1, 1]} : vector<128x32xf32> to vector<128x8xf32>
    %268 = arith.truncf %267 : vector<128x8xf32> to vector<128x8xbf16>
    %cst_127 = arith.constant dense<0.000000e+00> : vector<128x128xf32>
    %269 = tpu.matmul %264, %266, %cst_127 {dimension_numbers = #tpu.dot_dimension_numbers<[1], [1], [0], [0], [0, 0, 1, 0], [], []>} : vector<128x8xbf16>, vector<128x8xbf16>, vector<128x128xf32> -> vector<128x128xf32>
    %cst_128 = arith.constant 0.353553385 : f32
    %270 = vector.broadcast %cst_128 : f32 to vector<128x128xf32>
    %271 = arith.mulf %269, %270 : vector<128x128xf32>
    %272 = arith.addf %271, %0 : vector<128x128xf32>
    %cst_129 = arith.constant dense<0xFF800000> : vector<128xf32>
    %273 = vector.multi_reduction <maximumf>, %272, %cst_129 [1] : vector<128x128xf32> to vector<128xf32>
    %274 = vector.shape_cast %273 : vector<128xf32> to vector<128x1xf32>
    %275 = vector.broadcast %274 : vector<128x1xf32> to vector<128x128xf32>
    %276 = arith.subf %272, %275 : vector<128x128xf32>
    %277 = math.exp %276 : vector<128x128xf32>
    %cst_130 = arith.constant dense<0.000000e+00> : vector<128xf32>
    %278 = vector.multi_reduction <add>, %277, %cst_130 [1] : vector<128x128xf32> to vector<128xf32>
    %279 = vector.shape_cast %278 : vector<128xf32> to vector<128x1xf32>
    %280 = tpu.reciprocal %279 {approx = true} : vector<128x1xf32> -> vector<128x1xf32>
    %281 = vector.broadcast %280 : vector<128x1xf32> to vector<128x128xf32>
    %282 = arith.mulf %277, %281 : vector<128x128xf32>
    %283 = arith.truncf %282 : vector<128x128xf32> to vector<128x128xbf16>
    %cst_131 = arith.constant dense<0.000000e+00> : vector<128x8xf32>
    %284 = tpu.matmul %283, %268, %cst_131 {dimension_numbers = #tpu.dot_dimension_numbers<[1], [0], [0], [1], [0, 0, 1, 1], [], []>} : vector<128x128xbf16>, vector<128x8xbf16>, vector<128x8xf32> -> vector<128x8xf32>
    %285 = vector.extract_strided_slice %261 {offsets = [0, 0], sizes = [8, 32], strides = [1, 1]} : vector<32x32xf32> to vector<8x32xf32>
    %cst_132 = arith.constant dense<0.000000e+00> : vector<128x32xf32>
    %286 = tpu.matmul %284, %285, %cst_132 {dimension_numbers = #tpu.dot_dimension_numbers<[1], [0], [0], [1], [0, 0, 1, 1], [], []>} : vector<128x8xf32>, vector<8x32xf32>, vector<128x32xf32> -> vector<128x32xf32>
    %287 = arith.addf %262, %286 : vector<128x32xf32>
    %288 = vector.extract_strided_slice %245 {offsets = [0, 8], sizes = [128, 8], strides = [1, 1]} : vector<128x32xf32> to vector<128x8xf32>
    %289 = arith.truncf %288 : vector<128x8xf32> to vector<128x8xbf16>
    %290 = vector.extract_strided_slice %252 {offsets = [0, 8], sizes = [128, 8], strides = [1, 1]} : vector<128x32xf32> to vector<128x8xf32>
    %291 = arith.truncf %290 : vector<128x8xf32> to vector<128x8xbf16>
    %292 = vector.extract_strided_slice %259 {offsets = [0, 8], sizes = [128, 8], strides = [1, 1]} : vector<128x32xf32> to vector<128x8xf32>
    %293 = arith.truncf %292 : vector<128x8xf32> to vector<128x8xbf16>
    %cst_133 = arith.constant dense<0.000000e+00> : vector<128x128xf32>
    %294 = tpu.matmul %289, %291, %cst_133 {dimension_numbers = #tpu.dot_dimension_numbers<[1], [1], [0], [0], [0, 0, 1, 0], [], []>} : vector<128x8xbf16>, vector<128x8xbf16>, vector<128x128xf32> -> vector<128x128xf32>
    %cst_134 = arith.constant 0.353553385 : f32
    %295 = vector.broadcast %cst_134 : f32 to vector<128x128xf32>
    %296 = arith.mulf %294, %295 : vector<128x128xf32>
    %297 = arith.addf %296, %0 : vector<128x128xf32>
    %cst_135 = arith.constant dense<0xFF800000> : vector<128xf32>
    %298 = vector.multi_reduction <maximumf>, %297, %cst_135 [1] : vector<128x128xf32> to vector<128xf32>
    %299 = vector.shape_cast %298 : vector<128xf32> to vector<128x1xf32>
    %300 = vector.broadcast %299 : vector<128x1xf32> to vector<128x128xf32>
    %301 = arith.subf %297, %300 : vector<128x128xf32>
    %302 = math.exp %301 : vector<128x128xf32>
    %cst_136 = arith.constant dense<0.000000e+00> : vector<128xf32>
    %303 = vector.multi_reduction <add>, %302, %cst_136 [1] : vector<128x128xf32> to vector<128xf32>
    %304 = vector.shape_cast %303 : vector<128xf32> to vector<128x1xf32>
    %305 = tpu.reciprocal %304 {approx = true} : vector<128x1xf32> -> vector<128x1xf32>
    %306 = vector.broadcast %305 : vector<128x1xf32> to vector<128x128xf32>
    %307 = arith.mulf %302, %306 : vector<128x128xf32>
    %308 = arith.truncf %307 : vector<128x128xf32> to vector<128x128xbf16>
    %cst_137 = arith.constant dense<0.000000e+00> : vector<128x8xf32>
    %309 = tpu.matmul %308, %293, %cst_137 {dimension_numbers = #tpu.dot_dimension_numbers<[1], [0], [0], [1], [0, 0, 1, 1], [], []>} : vector<128x128xbf16>, vector<128x8xbf16>, vector<128x8xf32> -> vector<128x8xf32>
    %310 = vector.extract_strided_slice %261 {offsets = [8, 0], sizes = [8, 32], strides = [1, 1]} : vector<32x32xf32> to vector<8x32xf32>
    %cst_138 = arith.constant dense<0.000000e+00> : vector<128x32xf32>
    %311 = tpu.matmul %309, %310, %cst_138 {dimension_numbers = #tpu.dot_dimension_numbers<[1], [0], [0], [1], [0, 0, 1, 1], [], []>} : vector<128x8xf32>, vector<8x32xf32>, vector<128x32xf32> -> vector<128x32xf32>
    %312 = arith.addf %287, %311 : vector<128x32xf32>
    %313 = vector.extract_strided_slice %245 {offsets = [0, 16], sizes = [128, 8], strides = [1, 1]} : vector<128x32xf32> to vector<128x8xf32>
    %314 = arith.truncf %313 : vector<128x8xf32> to vector<128x8xbf16>
    %315 = vector.extract_strided_slice %252 {offsets = [0, 16], sizes = [128, 8], strides = [1, 1]} : vector<128x32xf32> to vector<128x8xf32>
    %316 = arith.truncf %315 : vector<128x8xf32> to vector<128x8xbf16>
    %317 = vector.extract_strided_slice %259 {offsets = [0, 16], sizes = [128, 8], strides = [1, 1]} : vector<128x32xf32> to vector<128x8xf32>
    %318 = arith.truncf %317 : vector<128x8xf32> to vector<128x8xbf16>
    %cst_139 = arith.constant dense<0.000000e+00> : vector<128x128xf32>
    %319 = tpu.matmul %314, %316, %cst_139 {dimension_numbers = #tpu.dot_dimension_numbers<[1], [1], [0], [0], [0, 0, 1, 0], [], []>} : vector<128x8xbf16>, vector<128x8xbf16>, vector<128x128xf32> -> vector<128x128xf32>
    %cst_140 = arith.constant 0.353553385 : f32
    %320 = vector.broadcast %cst_140 : f32 to vector<128x128xf32>
    %321 = arith.mulf %319, %320 : vector<128x128xf32>
    %322 = arith.addf %321, %0 : vector<128x128xf32>
    %cst_141 = arith.constant dense<0xFF800000> : vector<128xf32>
    %323 = vector.multi_reduction <maximumf>, %322, %cst_141 [1] : vector<128x128xf32> to vector<128xf32>
    %324 = vector.shape_cast %323 : vector<128xf32> to vector<128x1xf32>
    %325 = vector.broadcast %324 : vector<128x1xf32> to vector<128x128xf32>
    %326 = arith.subf %322, %325 : vector<128x128xf32>
    %327 = math.exp %326 : vector<128x128xf32>
    %cst_142 = arith.constant dense<0.000000e+00> : vector<128xf32>
    %328 = vector.multi_reduction <add>, %327, %cst_142 [1] : vector<128x128xf32> to vector<128xf32>
    %329 = vector.shape_cast %328 : vector<128xf32> to vector<128x1xf32>
    %330 = tpu.reciprocal %329 {approx = true} : vector<128x1xf32> -> vector<128x1xf32>
    %331 = vector.broadcast %330 : vector<128x1xf32> to vector<128x128xf32>
    %332 = arith.mulf %327, %331 : vector<128x128xf32>
    %333 = arith.truncf %332 : vector<128x128xf32> to vector<128x128xbf16>
    %cst_143 = arith.constant dense<0.000000e+00> : vector<128x8xf32>
    %334 = tpu.matmul %333, %318, %cst_143 {dimension_numbers = #tpu.dot_dimension_numbers<[1], [0], [0], [1], [0, 0, 1, 1], [], []>} : vector<128x128xbf16>, vector<128x8xbf16>, vector<128x8xf32> -> vector<128x8xf32>
    %335 = vector.extract_strided_slice %261 {offsets = [16, 0], sizes = [8, 32], strides = [1, 1]} : vector<32x32xf32> to vector<8x32xf32>
    %cst_144 = arith.constant dense<0.000000e+00> : vector<128x32xf32>
    %336 = tpu.matmul %334, %335, %cst_144 {dimension_numbers = #tpu.dot_dimension_numbers<[1], [0], [0], [1], [0, 0, 1, 1], [], []>} : vector<128x8xf32>, vector<8x32xf32>, vector<128x32xf32> -> vector<128x32xf32>
    %337 = arith.addf %312, %336 : vector<128x32xf32>
    %338 = vector.extract_strided_slice %245 {offsets = [0, 24], sizes = [128, 8], strides = [1, 1]} : vector<128x32xf32> to vector<128x8xf32>
    %339 = arith.truncf %338 : vector<128x8xf32> to vector<128x8xbf16>
    %340 = vector.extract_strided_slice %252 {offsets = [0, 24], sizes = [128, 8], strides = [1, 1]} : vector<128x32xf32> to vector<128x8xf32>
    %341 = arith.truncf %340 : vector<128x8xf32> to vector<128x8xbf16>
    %342 = vector.extract_strided_slice %259 {offsets = [0, 24], sizes = [128, 8], strides = [1, 1]} : vector<128x32xf32> to vector<128x8xf32>
    %343 = arith.truncf %342 : vector<128x8xf32> to vector<128x8xbf16>
    %cst_145 = arith.constant dense<0.000000e+00> : vector<128x128xf32>
    %344 = tpu.matmul %339, %341, %cst_145 {dimension_numbers = #tpu.dot_dimension_numbers<[1], [1], [0], [0], [0, 0, 1, 0], [], []>} : vector<128x8xbf16>, vector<128x8xbf16>, vector<128x128xf32> -> vector<128x128xf32>
    %cst_146 = arith.constant 0.353553385 : f32
    %345 = vector.broadcast %cst_146 : f32 to vector<128x128xf32>
    %346 = arith.mulf %344, %345 : vector<128x128xf32>
    %347 = arith.addf %346, %0 : vector<128x128xf32>
    %cst_147 = arith.constant dense<0xFF800000> : vector<128xf32>
    %348 = vector.multi_reduction <maximumf>, %347, %cst_147 [1] : vector<128x128xf32> to vector<128xf32>
    %349 = vector.shape_cast %348 : vector<128xf32> to vector<128x1xf32>
    %350 = vector.broadcast %349 : vector<128x1xf32> to vector<128x128xf32>
    %351 = arith.subf %347, %350 : vector<128x128xf32>
    %352 = math.exp %351 : vector<128x128xf32>
    %cst_148 = arith.constant dense<0.000000e+00> : vector<128xf32>
    %353 = vector.multi_reduction <add>, %352, %cst_148 [1] : vector<128x128xf32> to vector<128xf32>
    %354 = vector.shape_cast %353 : vector<128xf32> to vector<128x1xf32>
    %355 = tpu.reciprocal %354 {approx = true} : vector<128x1xf32> -> vector<128x1xf32>
    %356 = vector.broadcast %355 : vector<128x1xf32> to vector<128x128xf32>
    %357 = arith.mulf %352, %356 : vector<128x128xf32>
    %358 = arith.truncf %357 : vector<128x128xf32> to vector<128x128xbf16>
    %cst_149 = arith.constant dense<0.000000e+00> : vector<128x8xf32>
    %359 = tpu.matmul %358, %343, %cst_149 {dimension_numbers = #tpu.dot_dimension_numbers<[1], [0], [0], [1], [0, 0, 1, 1], [], []>} : vector<128x128xbf16>, vector<128x8xbf16>, vector<128x8xf32> -> vector<128x8xf32>
    %360 = vector.extract_strided_slice %261 {offsets = [24, 0], sizes = [8, 32], strides = [1, 1]} : vector<32x32xf32> to vector<8x32xf32>
    %cst_150 = arith.constant dense<0.000000e+00> : vector<128x32xf32>
    %361 = tpu.matmul %359, %360, %cst_150 {dimension_numbers = #tpu.dot_dimension_numbers<[1], [0], [0], [1], [0, 0, 1, 1], [], []>} : vector<128x8xf32>, vector<8x32xf32>, vector<128x32xf32> -> vector<128x32xf32>
    %362 = arith.addf %337, %361 : vector<128x32xf32>
    %c1_151 = arith.constant 1 : index
    %c0_152 = arith.constant 0 : index
    %c0_153 = arith.constant 0 : index
    %363 = vector.load %arg11[%c1_151, %c0_152, %c0_153] : memref<2x1x32xf32, #tpu.memory_space<vmem>>, vector<1x1x32xf32>
    %364 = vector.shape_cast %363 : vector<1x1x32xf32> to vector<1x32xf32>
    %365 = vector.broadcast %364 : vector<1x32xf32> to vector<128x32xf32>
    %366 = arith.addf %362, %365 : vector<128x32xf32>
    %367 = arith.addf %366, %237 : vector<128x32xf32>
    %c1_154 = arith.constant 1 : index
    %c0_155 = arith.constant 0 : index
    %c0_156 = arith.constant 0 : index
    %368 = vector.load %arg12[%c1_154, %c0_155, %c0_156] : memref<2x1x32xf32, #tpu.memory_space<vmem>>, vector<1x1x32xf32>
    %369 = vector.shape_cast %368 : vector<1x1x32xf32> to vector<1x32xf32>
    %c1_157 = arith.constant 1 : index
    %c0_158 = arith.constant 0 : index
    %c0_159 = arith.constant 0 : index
    %370 = vector.load %arg13[%c1_157, %c0_158, %c0_159] : memref<2x1x32xf32, #tpu.memory_space<vmem>>, vector<1x1x32xf32>
    %371 = vector.shape_cast %370 : vector<1x1x32xf32> to vector<1x32xf32>
    %cst_160 = arith.constant dense<0.000000e+00> : vector<128xf32>
    %372 = vector.multi_reduction <add>, %367, %cst_160 [1] : vector<128x32xf32> to vector<128xf32>
    %373 = vector.shape_cast %372 : vector<128xf32> to vector<128x1xf32>
    %cst_161 = arith.constant 3.200000e+01 : f32
    %374 = vector.broadcast %cst_161 : f32 to vector<128x1xf32>
    %375 = arith.divf %373, %374 : vector<128x1xf32>
    %376 = vector.broadcast %375 : vector<128x1xf32> to vector<128x32xf32>
    %377 = arith.subf %367, %376 : vector<128x32xf32>
    %378 = arith.mulf %377, %377 : vector<128x32xf32>
    %cst_162 = arith.constant dense<0.000000e+00> : vector<128xf32>
    %379 = vector.multi_reduction <add>, %378, %cst_162 [1] : vector<128x32xf32> to vector<128xf32>
    %380 = vector.shape_cast %379 : vector<128xf32> to vector<128x1xf32>
    %cst_163 = arith.constant 3.200000e+01 : f32
    %381 = vector.broadcast %cst_163 : f32 to vector<128x1xf32>
    %382 = arith.divf %380, %381 : vector<128x1xf32>
    %383 = vector.broadcast %375 : vector<128x1xf32> to vector<128x32xf32>
    %384 = arith.subf %367, %383 : vector<128x32xf32>
    %cst_164 = arith.constant 9.99999996E-13 : f32
    %385 = vector.broadcast %cst_164 : f32 to vector<128x1xf32>
    %386 = arith.addf %382, %385 : vector<128x1xf32>
    %387 = math.rsqrt %386 : vector<128x1xf32>
    %388 = vector.broadcast %387 : vector<128x1xf32> to vector<128x32xf32>
    %389 = arith.mulf %384, %388 : vector<128x32xf32>
    %390 = vector.broadcast %369 : vector<1x32xf32> to vector<128x32xf32>
    %391 = arith.mulf %389, %390 : vector<128x32xf32>
    %392 = vector.broadcast %371 : vector<1x32xf32> to vector<128x32xf32>
    %393 = arith.addf %391, %392 : vector<128x32xf32>
    %394 = arith.truncf %393 : vector<128x32xf32> to vector<128x32xbf16>
    %c1_165 = arith.constant 1 : index
    %c0_166 = arith.constant 0 : index
    %c0_167 = arith.constant 0 : index
    %395 = vector.load %arg14[%c1_165, %c0_166, %c0_167] : memref<2x32x64xbf16, #tpu.memory_space<vmem>>, vector<1x32x64xbf16>
    %396 = vector.shape_cast %395 : vector<1x32x64xbf16> to vector<32x64xbf16>
    %cst_168 = arith.constant dense<0.000000e+00> : vector<128x64xf32>
    %397 = tpu.matmul %394, %396, %cst_168 {dimension_numbers = #tpu.dot_dimension_numbers<[1], [0], [0], [1], [0, 0, 1, 1], [], []>} : vector<128x32xbf16>, vector<32x64xbf16>, vector<128x64xf32> -> vector<128x64xf32>
    %c1_169 = arith.constant 1 : index
    %c0_170 = arith.constant 0 : index
    %c0_171 = arith.constant 0 : index
    %398 = vector.load %arg15[%c1_169, %c0_170, %c0_171] : memref<2x1x64xf32, #tpu.memory_space<vmem>>, vector<1x1x64xf32>
    %399 = vector.shape_cast %398 : vector<1x1x64xf32> to vector<1x64xf32>
    %400 = vector.broadcast %399 : vector<1x64xf32> to vector<128x64xf32>
    %401 = arith.addf %397, %400 : vector<128x64xf32>
    %cst_172 = arith.constant 5.000000e-01 : f32
    %402 = vector.broadcast %cst_172 : f32 to vector<128x64xf32>
    %403 = arith.mulf %402, %401 : vector<128x64xf32>
    %cst_173 = arith.constant 4.471500e-02 : f32
    %404 = vector.broadcast %cst_173 : f32 to vector<128x64xf32>
    %405 = arith.mulf %404, %401 : vector<128x64xf32>
    %406 = arith.mulf %405, %401 : vector<128x64xf32>
    %407 = arith.mulf %406, %401 : vector<128x64xf32>
    %408 = arith.addf %401, %407 : vector<128x64xf32>
    %cst_174 = arith.constant 0.797884583 : f32
    %409 = vector.broadcast %cst_174 : f32 to vector<128x64xf32>
    %410 = arith.mulf %409, %408 : vector<128x64xf32>
    %411 = math.tanh %410 : vector<128x64xf32>
    %cst_175 = arith.constant 1.000000e+00 : f32
    %412 = vector.broadcast %cst_175 : f32 to vector<128x64xf32>
    %413 = arith.addf %412, %411 : vector<128x64xf32>
    %414 = arith.mulf %403, %413 : vector<128x64xf32>
    %415 = arith.truncf %414 : vector<128x64xf32> to vector<128x64xbf16>
    %c1_176 = arith.constant 1 : index
    %c0_177 = arith.constant 0 : index
    %c0_178 = arith.constant 0 : index
    %416 = vector.load %arg16[%c1_176, %c0_177, %c0_178] : memref<2x64x32xbf16, #tpu.memory_space<vmem>>, vector<1x64x32xbf16>
    %417 = vector.shape_cast %416 : vector<1x64x32xbf16> to vector<64x32xbf16>
    %cst_179 = arith.constant dense<0.000000e+00> : vector<128x32xf32>
    %418 = tpu.matmul %415, %417, %cst_179 {dimension_numbers = #tpu.dot_dimension_numbers<[1], [0], [0], [1], [0, 0, 1, 1], [], []>} : vector<128x64xbf16>, vector<64x32xbf16>, vector<128x32xf32> -> vector<128x32xf32>
    %c1_180 = arith.constant 1 : index
    %c0_181 = arith.constant 0 : index
    %c0_182 = arith.constant 0 : index
    %419 = vector.load %arg17[%c1_180, %c0_181, %c0_182] : memref<2x1x32xf32, #tpu.memory_space<vmem>>, vector<1x1x32xf32>
    %420 = vector.shape_cast %419 : vector<1x1x32xf32> to vector<1x32xf32>
    %421 = vector.broadcast %420 : vector<1x32xf32> to vector<128x32xf32>
    %422 = arith.addf %418, %421 : vector<128x32xf32>
    %423 = arith.addf %422, %393 : vector<128x32xf32>
    %c1_183 = arith.constant 1 : index
    %c0_184 = arith.constant 0 : index
    %c0_185 = arith.constant 0 : index
    %424 = vector.load %arg18[%c1_183, %c0_184, %c0_185] : memref<2x1x32xf32, #tpu.memory_space<vmem>>, vector<1x1x32xf32>
    %425 = vector.shape_cast %424 : vector<1x1x32xf32> to vector<1x32xf32>
    %c1_186 = arith.constant 1 : index
    %c0_187 = arith.constant 0 : index
    %c0_188 = arith.constant 0 : index
    %426 = vector.load %arg19[%c1_186, %c0_187, %c0_188] : memref<2x1x32xf32, #tpu.memory_space<vmem>>, vector<1x1x32xf32>
    %427 = vector.shape_cast %426 : vector<1x1x32xf32> to vector<1x32xf32>
    %cst_189 = arith.constant dense<0.000000e+00> : vector<128xf32>
    %428 = vector.multi_reduction <add>, %423, %cst_189 [1] : vector<128x32xf32> to vector<128xf32>
    %429 = vector.shape_cast %428 : vector<128xf32> to vector<128x1xf32>
    %cst_190 = arith.constant 3.200000e+01 : f32
    %430 = vector.broadcast %cst_190 : f32 to vector<128x1xf32>
    %431 = arith.divf %429, %430 : vector<128x1xf32>
    %432 = vector.broadcast %431 : vector<128x1xf32> to vector<128x32xf32>
    %433 = arith.subf %423, %432 : vector<128x32xf32>
    %434 = arith.mulf %433, %433 : vector<128x32xf32>
    %cst_191 = arith.constant dense<0.000000e+00> : vector<128xf32>
    %435 = vector.multi_reduction <add>, %434, %cst_191 [1] : vector<128x32xf32> to vector<128xf32>
    %436 = vector.shape_cast %435 : vector<128xf32> to vector<128x1xf32>
    %cst_192 = arith.constant 3.200000e+01 : f32
    %437 = vector.broadcast %cst_192 : f32 to vector<128x1xf32>
    %438 = arith.divf %436, %437 : vector<128x1xf32>
    %439 = vector.broadcast %431 : vector<128x1xf32> to vector<128x32xf32>
    %440 = arith.subf %423, %439 : vector<128x32xf32>
    %cst_193 = arith.constant 9.99999996E-13 : f32
    %441 = vector.broadcast %cst_193 : f32 to vector<128x1xf32>
    %442 = arith.addf %438, %441 : vector<128x1xf32>
    %443 = math.rsqrt %442 : vector<128x1xf32>
    %444 = vector.broadcast %443 : vector<128x1xf32> to vector<128x32xf32>
    %445 = arith.mulf %440, %444 : vector<128x32xf32>
    %446 = vector.broadcast %425 : vector<1x32xf32> to vector<128x32xf32>
    %447 = arith.mulf %445, %446 : vector<128x32xf32>
    %448 = vector.broadcast %427 : vector<1x32xf32> to vector<128x32xf32>
    %449 = arith.addf %447, %448 : vector<128x32xf32>
    %450 = tpu.iota {dimensions = array<i32: 1>} : vector<8x128xi32>
    %451 = tpu.iota {dimensions = array<i32: 0>} : vector<8x128xi32>
    %c16_i32 = arith.constant 16 : i32
    %452 = vector.broadcast %c16_i32 : i32 to vector<8x128xi32>
    %453 = arith.muli %451, %452 : vector<8x128xi32>
    %454 = arith.cmpi eq, %450, %453 : vector<8x128xi32>
    %455 = arith.extui %454 : vector<8x128xi1> to vector<8x128xi32>
    %456 = arith.sitofp %455 : vector<8x128xi32> to vector<8x128xf32>
    %cst_194 = arith.constant dense<0.000000e+00> : vector<8x32xf32>
    %457 = tpu.matmul %456, %449, %cst_194 {dimension_numbers = #tpu.dot_dimension_numbers<[1], [0], [0], [1], [0, 0, 1, 1], [], []>} : vector<8x128xf32>, vector<128x32xf32>, vector<8x32xf32> -> vector<8x32xf32>
    %c0_195 = arith.constant 0 : index
    %c0_196 = arith.constant 0 : index
    %458 = vector.load %arg20[%c0_195, %c0_196] : memref<8x32xf32, #tpu.memory_space<vmem>>, vector<8x32xf32>
    tpu.vector_store %arg20[%c0_195, %c0_196], %457 {strides = array<i32>} : memref<8x32xf32, #tpu.memory_space<vmem>>, vector<8x32xf32>,
    return
  }
}

</mosaic_0001>

<bundles_post_ra>
// kernel: tpu_custom_call.1
= control target key start
LH: loop header
LB: loop body
LE: loop exit
PB: predicated region body
PF: predicated region fallthrough
CT: control target
= control target key end

     0   :  { %s16590_s0 = inlined_call_operand.vmem [shape: f32[128,32], index: 0, kind: input, shape index: {}]   ;;  %s16591_s1 = inlined_call_operand.vmem [shape: f32[128,128], index: 1, kind: input, shape index: {}]   ;;  %s16592_s2 = inlined_call_operand.hbm [shape: f32[1,32], index: 2, kind: input, shape index: {}]   ;;  %s16593_s3 = inlined_call_operand.hbm [shape: f32[1,32], index: 3, kind: input, shape index: {}]   ;;  %s16594_s4 = inlined_call_operand.vmem [shape: bf16[2,32,32], index: 4, kind: input, shape index: {}]   ;;  %s16595_s5 = inlined_call_operand.vmem [shape: f32[2,1,32], index: 5, kind: input, shape index: {}]   ;;  %s16596_s6 = inlined_call_operand.vmem [shape: bf16[2,32,32], index: 6, kind: input, shape index: {}]   ;;  %s16597_s7 = inlined_call_operand.vmem [shape: f32[2,1,32], index: 7, kind: input, shape index: {}]   ;;  %s16598_s8 = inlined_call_operand.hbm [shape: bf16[2,32,32], index: 8, kind: input, shape index: {}]   ;;  %s16599_s9 = inlined_call_operand.vmem [shape: f32[2,1,32], index: 9, kind: input, shape index: {}]   ;;  %s16600_s10 = inlined_call_operand.vmem [shape: f32[2,32,32], index: 10, kind: input, shape index: {}]   ;;  %s16601_s11 = inlined_call_operand.vmem [shape: f32[2,1,32], index: 11, kind: input, shape index: {}]   ;;  %s16602_s12 = inlined_call_operand.vmem [shape: f32[2,1,32], index: 12, kind: input, shape index: {}]   ;;  %s16603_s13 = inlined_call_operand.vmem [shape: f32[2,1,32], index: 13, kind: input, shape index: {}]   ;;  %s16604_s14 = inlined_call_operand.hbm [shape: bf16[2,32,64], index: 14, kind: input, shape index: {}]   ;;  %s16605_s15 = inlined_call_operand.vmem [shape: f32[2,1,64], index: 15, kind: input, shape index: {}]   ;;  %s16606_s16 = inlined_call_operand.vmem [shape: bf16[2,64,32], index: 16, kind: input, shape index: {}]   ;;  %s16607_s17 = inlined_call_operand.vmem [shape: f32[2,1,32], index: 17, kind: input, shape index: {}]   ;;  %s16608_s18 = inlined_call_operand.vmem [shape: f32[2,1,32], index: 18, kind: input, shape index: {}]   ;;  %s16609_s19 = inlined_call_operand.vmem [shape: f32[2,1,32], index: 19, kind: input, shape index: {}]   ;;  %s16610_s20 = inlined_call_operand.hbm [shape: f32[8,32], index: 20, kind: output, shape index: {}]  }
   0x1   :  { %16692 = sst [smem:[#allocation46_spill]] %s16590_s0 }
   0x2   :  { %16693 = sst [smem:[#allocation47_spill]] %s16591_s1 }
   0x3   :  { %16694 = sst [smem:[#allocation48_spill]] %s16592_s2 }
   0x4   :  { %16695 = sst [smem:[#allocation49_spill]] %s16593_s3 }
   0x5   :  { %16696 = sst [smem:[#allocation50_spill]] %s16594_s4 }
   0x6   :  { %25 = vsyncpa [#allocation3], 0 }
   0x7   :  { %26 = vsyncpa [#allocation6], 0 }
   0x8   :  { %27 = vsyncpa [#allocation9], 0 }
   0x9   :  { %28 = vsyncpa [#allocation4], 0  ;;  %s11633_s1 = smov [#allocation5]   ;;  %s11634_s23 = smov [#allocation2]  }
   0xa   :  { %s49_s22 = sshll.u32 %s11633_s1, 4  ;;  %s39_s24 = sshll.u32 %s11634_s23, 4  ;;  %s50_s22 = int_to_ptr.vmem [resolvable:$true] %s49_s22  ;;  %s40_s24 = int_to_ptr.vmem [resolvable:$true] %s39_s24 }
   0xb   :  { %s11533_s2 = scalar_lea.vmem %s50_s22, 16  ;;  %s11537_s25 = scalar_lea.vmem %s50_s22, 32 }
   0xc   :  { %p11534_p0 = scmp.ne.s32.totalorder %s50_s22, %s11533_s2  ;;  %p11538_p1 = scmp.lt.s32.totalorder %s50_s22, %s50_s22 }
   0xd   :  { %p11539_p2 = scmp.lt.s32.totalorder %s11537_s25, %s11533_s2 }
   0xf   :  { %p11540_p3 = por %p11539_p2, %p11538_p1 }
  0x11   :  { %p11541_p4 = pnand %p11540_p3, %p11534_p0 }
  0x13   :  { %11544 = shalt.err (!%p11541_p4)
}
  0x14   :  { %s16697_s27 = sld [smem:[#allocation49_spill]]  ;;  %s11553_s28 = scalar_lea.vmem %s40_s24, 16 }
  0x15   :  { %p11554_p5 = scmp.ne.s32.totalorder %s40_s24, %s11553_s28  ;;  %s11557_s4 = scalar_lea.vmem %s40_s24, 32 }
  0x16   :  { %p11558_p6 = scmp.lt.s32.totalorder %s40_s24, %s40_s24  ;;  %p11559_p7 = scmp.lt.s32.totalorder %s11557_s4, %s11553_s28 }
  0x18   :  { %p11560_p8 = por %p11559_p7, %p11558_p6 }
  0x1a   :  { %52 = dma.hbm_to_vmem [thread:$0]  %s16697_s27, 16, %s50_s22, [#allocation6]  }
  0x1b   :  { %p11561_p9 = pnand %p11560_p8, %p11554_p5 }
  0x1d   :  { %11564 = shalt.err (!%p11561_p9)
}
  0x1e   :  { %s16698_s0 = sld [smem:[#allocation48_spill]]  ;;  %s11635_s21 = smov [#allocation7]  }
  0x1f   :  { %s66_s1 = sshll.u32 %s11635_s21, 4  ;;  %s67_s1 = int_to_ptr.vmem [resolvable:$true] %s66_s1 }
  0x20   :  { %s11573_s23 = scalar_lea.vmem %s67_s1, 512  ;;  %p11578_p11 = scmp.lt.s32.totalorder %s67_s1, %s67_s1 }
  0x21   :  { %p11574_p10 = scmp.ne.s32.totalorder %s67_s1, %s11573_s23  ;;  %p11579_p12 = scmp.lt.s32.totalorder %s11573_s23, %s11573_s23 }
  0x23   :  { %p11580_p13 = por %p11579_p12, %p11578_p11 }
  0x24   :  { %42 = dma.hbm_to_vmem [thread:$0]  %s16698_s0, 16, %s40_s24, [#allocation3]  }
  0x25   :  { %p11581_p0 = pnand %p11580_p13, %p11574_p10 }
  0x27   :  { %11584 = shalt.err (!%p11581_p0)
}
  0x28   :  { %s11636_s22 = smov 64   ;;  %s11637_s2 = smov 4  }
  0x29   :  { %72 = dma.hbm_to_vmem [thread:$0]  %s16598_s8, 512, %s67_s1, [#allocation6], %s11636_s22, %s11636_s22, %s11637_s2  }
  0x2a   :  { %s11638_s26 = smov [#allocation8]  }
  0x2b   :  { %s88_s27 = sshll.u32 %s11638_s26, 4  ;;  %s89_s27 = int_to_ptr.vmem [resolvable:$true] %s88_s27 }
  0x2c   :  { %s11593_s24 = scalar_lea.vmem %s89_s27, 512  ;;  %p11598_p2 = scmp.lt.s32.totalorder %s89_s27, %s89_s27 }
  0x2d   :  { %p11594_p1 = scmp.ne.s32.totalorder %s89_s27, %s11593_s24  ;;  %p11599_p3 = scmp.lt.s32.totalorder %s11593_s24, %s11593_s24 }
  0x2f   :  { %p11600_p4 = por %p11599_p3, %p11598_p2 }
  0x31   :  { %p11601_p5 = pnand %p11600_p4, %p11594_p1 }
  0x33   :  { %11604 = shalt.err (!%p11601_p5)
}
  0x34   :  { %94 = dma.hbm_to_vmem [thread:$0]  %s16604_s14, 512, %s89_s27, [#allocation9], %s11636_s22, %s11636_s22, %s11637_s2  }
  0x35   :  { %11625 = dma.done.wait [#allocation3], 16  }
  0x36   :  { %11626 = vsyncadd [#allocation3], 4294967280 }
  0x37   :  { %11627 = dma.done.wait [#allocation6], 528  }
  0x38   :  { %11628 = vsyncadd [#allocation6], 4294966768 }
  0x39   :  { %11629 = dma.done.wait [#allocation9], 512  }
  0x3a   :  { %11630 = vsyncadd [#allocation9], 4294966784  ;;  %vm152_vm0 = vcmask 261120   ;;  %s16699_s30 = sld [smem:[#allocation46_spill]]  ;;  %vm826_vm1 = vcmask 64512   ;;  %s11639_s27 = smov 120  }
  0x3b   :  { %s16700_s29 = sld [smem:[#allocation50_spill]]  ;;  %s11640_s14 = smov 112   ;;  %vm4163_vm2 = vcmask 523264   ;;  %vm11643_vm3 = vmmov 0  }
  0x3c   :  { %s16728_s8 = sld [smem:[#allocation47_spill]]  ;;  %s11641_s22 = smov 104  }
  0x40   :  { %v134_v0 = vld [vmem:[%s16699_s30] sm:$0xff]  ;;  %v136_v1 = vld [vmem:[%s16699_s30 + $0x10] sm:$0xff]  ;;  %v135_v2 = vld [vmem:[%s16699_s30 + $0x8] sm:$0xff] }
  0x41   :  { %v153_v3 = vsel %vm152_vm0, %v134_v0, 0.0  ;;  %v159_v4 = vsel %vm152_vm0, %v136_v1, 0.0  ;;  %v137_v5 = vld [vmem:[%s16699_s30 + $0x18] sm:$0xff]  ;;  %v11780_v6 = vld [vmem:[%s16699_s30 + $0x20] sm:$0xff]  ;;  %v11785_v7 = vld [vmem:[%s16699_s30 + $0x28] sm:$0xff]  ;;  %v156_v11 = vsel %vm152_vm0, %v135_v2, 0.0 }
  0x42   :  { %154 = vadd.xlane.f32.xlu0 %v153_v3  ;;  %160 = vadd.xlane.f32.xlu1 %v159_v4  ;;  %v11790_v8 = vld [vmem:[%s16699_s30 + $0x30] sm:$0xff]  ;;  %v11795_v9 = vld [vmem:[%s16699_s30 + $0x38] sm:$0xff]  ;;  %v11800_v10 = vld [vmem:[%s16699_s30 + $0x40] sm:$0xff]  ;;  %v162_v12 = vsel %vm152_vm0, %v137_v5, 0.0  ;;  %v165_v16 = vsel %vm152_vm0, %v11780_v6, 0.0  ;;  %v168_v17 = vsel %vm152_vm0, %v11785_v7, 0.0 }
  0x43   :  { %v11807_v13 = vld [vmem:[%s16699_s30 + $0x48] sm:$0xff]  ;;  %v11812_v14 = vld [vmem:[%s16699_s30 + $0x50] sm:$0xff]  ;;  %v11817_v15 = vld [vmem:[%s16699_s30 + $0x58] sm:$0xff]  ;;  %v171_v18 = vsel %vm152_vm0, %v11790_v8, 0.0  ;;  %v174_v19 = vsel %vm152_vm0, %v11795_v9, 0.0  ;;  %v177_v20 = vsel %vm152_vm0, %v11800_v10, 0.0 }
  0x44   :  { %v180_v21 = vsel %vm152_vm0, %v11807_v13, 0.0  ;;  %v183_v22 = vsel %vm152_vm0, %v11812_v14, 0.0  ;;  %v186_v23 = vsel %vm152_vm0, %v11817_v15, 0.0  ;;  %v11838_v24 = vld [vmem:[%s16699_s30 + $0x60] sm:$0xff]  ;;  %v11843_v25 = vld [vmem:[%s16699_s30 + $0x68] sm:$0xff]  ;;  %v11852_v28 = vld [vmem:[%s16699_s30 + $0x70] sm:$0xff] }
  0x45   :  { %v189_v26 = vsel %vm152_vm0, %v11838_v24, 0.0  ;;  %v192_v27 = vsel %vm152_vm0, %v11843_v25, 0.0  ;;  %v11857_v29 = vld [vmem:[%s16699_s30 + $0x78] sm:$0xff]  ;;  %v195_v30 = vsel %vm152_vm0, %v11852_v28, 0.0 }
  0x46   :  { %157 = vadd.xlane.f32.xlu0 %v156_v11  ;;  %163 = vadd.xlane.f32.xlu1 %v162_v12  ;;  %v198_v31 = vsel %vm152_vm0, %v11857_v29, 0.0 }
  0x4a   :  { %166 = vadd.xlane.f32.xlu0 %v165_v16  ;;  %169 = vadd.xlane.f32.xlu1 %v168_v17 }
  0x4e   :  { %172 = vadd.xlane.f32.xlu0 %v171_v18  ;;  %175 = vadd.xlane.f32.xlu1 %v174_v19 }
  0x52   :  { %178 = vadd.xlane.f32.xlu0 %v177_v20  ;;  %181 = vadd.xlane.f32.xlu1 %v180_v21 }
  0x56   :  { %184 = vadd.xlane.f32.xlu0 %v183_v22  ;;  %187 = vadd.xlane.f32.xlu1 %v186_v23 }
  0x5a   :  { %190 = vadd.xlane.f32.xlu0 %v189_v26  ;;  %193 = vadd.xlane.f32.xlu1 %v192_v27 }
  0x5e   :  { %196 = vadd.xlane.f32.xlu0 %v195_v30  ;;  %199 = vadd.xlane.f32.xlu1 %v198_v31 }
  0xcb   :  { %v155_v32 = vpop.xlane.xlu0 %154  ;;  %v161_v33 = vpop.xlane.xlu1 %160 }
  0xcc   :  { %v202_v34 = vmul.f32 0.03125, %v155_v32  ;;  %v204_v35 = vmul.f32 0.03125, %v161_v33 }
  0xce   :  { %v11863_v36 = vsub.f32 %v134_v0, %v202_v34  ;;  %v11865_v37 = vsub.f32 %v136_v1, %v204_v35 }
  0xcf   :  { %v158_v38 = vpop.xlane.xlu0 %157  ;;  %v164_v39 = vpop.xlane.xlu1 %163 }
  0xd0   :  { %v203_v40 = vmul.f32 0.03125, %v158_v38  ;;  %v205_v41 = vmul.f32 0.03125, %v164_v39  ;;  %v234_v42 = vmul.f32 %v11863_v36, %v11863_v36  ;;  %v236_v43 = vmul.f32 %v11865_v37, %v11865_v37 }
  0xd2   :  { %v11871_v44 = vsub.f32 %v135_v2, %v203_v40  ;;  %v11873_v45 = vsub.f32 %v137_v5, %v205_v41  ;;  %v250_v46 = vsel %vm152_vm0, %v234_v42, 0.0  ;;  %v256_v49 = vsel %vm152_vm0, %v236_v43, 0.0 }
  0xd3   :  { %251 = vadd.xlane.f32.xlu0 %v250_v46  ;;  %v167_v47 = vpop.xlane.xlu0 %166  ;;  %v170_v48 = vpop.xlane.xlu1 %169 }
  0xd4   :  { %v206_v50 = vmul.f32 0.03125, %v167_v47  ;;  %v207_v51 = vmul.f32 0.03125, %v170_v48  ;;  %v235_v52 = vmul.f32 %v11871_v44, %v11871_v44  ;;  %v237_v53 = vmul.f32 %v11873_v45, %v11873_v45 }
  0xd6   :  { %v11882_v54 = vsub.f32 %v11780_v6, %v206_v50  ;;  %v11885_v55 = vsub.f32 %v11785_v7, %v207_v51  ;;  %v253_v56 = vsel %vm152_vm0, %v235_v52, 0.0  ;;  %v259_v59 = vsel %vm152_vm0, %v237_v53, 0.0  ;;  %v10718_v53 = vld [vmem:[%s16596_s6 + $0x8] sm:$0xff]  }
  0xd7   :  { %257 = vadd.xlane.f32.xlu0 %v256_v49  ;;  %254 = vadd.xlane.f32.xlu1 %v253_v56  ;;  %v173_v57 = vpop.xlane.xlu0 %172  ;;  %v176_v58 = vpop.xlane.xlu1 %175  ;;  %v10719_v56 = vld [vmem:[%s16700_s29] sm:$0xff]  }
  0xd8   :  { %v208_v60 = vmul.f32 0.03125, %v173_v57  ;;  %v209_v61 = vmul.f32 0.03125, %v176_v58  ;;  %v238_v62 = vmul.f32 %v11882_v54, %v11882_v54  ;;  %v239_v63 = vmul.f32 %v11885_v55, %v11885_v55  ;;  %9697 = vmatprep.subr.bf16.mxu1 %v10718_v53  ;;  %v10720_v57 = vld [vmem:[%s16596_s6] sm:$0xff]   ;;  %v11967_v58 = vld [vmem:[#allocation7 + $0x8] sm:$0xff]  }
  0xd9   :  { %9698 = vmatpush3.bf16.msra.mxu1 %v10718_v53 }
  0xda   :  { %v11894_v0 = vsub.f32 %v11790_v8, %v208_v60  ;;  %v11897_v1 = vsub.f32 %v11795_v9, %v209_v61  ;;  %v262_v2 = vsel %vm152_vm0, %v238_v62, 0.0  ;;  %v265_v5 = vsel %vm152_vm0, %v239_v63, 0.0  ;;  %9699 = vmatprep.subr.bf16.mxu1 %v10720_v57 }
  0xdb   :  { %260 = vadd.xlane.f32.xlu1 %v259_v59  ;;  %263 = vadd.xlane.f32.xlu0 %v262_v2  ;;  %v179_v3 = vpop.xlane.xlu0 %178  ;;  %v182_v4 = vpop.xlane.xlu1 %181 }
  0xdc   :  { %v210_v6 = vmul.f32 0.03125, %v179_v3  ;;  %v211_v7 = vmul.f32 0.03125, %v182_v4  ;;  %v240_v11 = vmul.f32 %v11894_v0, %v11894_v0  ;;  %v241_v8 = vmul.f32 %v11897_v1, %v11897_v1 }
  0xdd   :  { %9700 = vmatpush3.bf16.msra.mxu1 %v10720_v57 }
  0xde   :  { %v11906_v12 = vsub.f32 %v11800_v10, %v210_v6  ;;  %v11909_v9 = vsub.f32 %v11807_v13, %v211_v7  ;;  %v268_v16 = vsel %vm152_vm0, %v240_v11, 0.0  ;;  %v271_v19 = vsel %vm152_vm0, %v241_v8, 0.0 }
  0xdf   :  { %266 = vadd.xlane.f32.xlu1 %v265_v5  ;;  %269 = vadd.xlane.f32.xlu0 %v268_v16  ;;  %v185_v17 = vpop.xlane.xlu0 %184  ;;  %v188_v18 = vpop.xlane.xlu1 %187 }
  0xe0   :  { %v212_v20 = vmul.f32 0.03125, %v185_v17  ;;  %v213_v21 = vmul.f32 0.03125, %v188_v18  ;;  %v242_v22 = vmul.f32 %v11906_v12, %v11906_v12  ;;  %v243_v10 = vmul.f32 %v11909_v9, %v11909_v9 }
  0xe2   :  { %v11918_v23 = vsub.f32 %v11812_v14, %v212_v20  ;;  %v11921_v13 = vsub.f32 %v11817_v15, %v213_v21  ;;  %v274_v26 = vsel %vm152_vm0, %v242_v22, 0.0  ;;  %v277_v31 = vsel %vm152_vm0, %v243_v10, 0.0 }
  0xe3   :  { %272 = vadd.xlane.f32.xlu1 %v271_v19  ;;  %275 = vadd.xlane.f32.xlu0 %v274_v26  ;;  %v191_v27 = vpop.xlane.xlu0 %190  ;;  %v194_v30 = vpop.xlane.xlu1 %193 }
  0xe4   :  { %v214_v32 = vmul.f32 0.03125, %v191_v27  ;;  %v215_v33 = vmul.f32 0.03125, %v194_v30  ;;  %v244_v34 = vmul.f32 %v11918_v23, %v11918_v23  ;;  %v245_v14 = vmul.f32 %v11921_v13, %v11921_v13 }
  0xe6   :  { %v11930_v35 = vsub.f32 %v11838_v24, %v214_v32  ;;  %v11933_v15 = vsub.f32 %v11843_v25, %v215_v33  ;;  %v280_v38 = vsel %vm152_vm0, %v244_v34, 0.0  ;;  %v283_v41 = vsel %vm152_vm0, %v245_v14, 0.0  ;;  %v11970_v14 = vld [vmem:[#allocation2] ss:$0 sm:$0xff] }
  0xe7   :  { %278 = vadd.xlane.f32.xlu1 %v277_v31  ;;  %281 = vadd.xlane.f32.xlu0 %v280_v38  ;;  %v197_v39 = vpop.xlane.xlu0 %196  ;;  %v200_v40 = vpop.xlane.xlu1 %199 }
  0xe8   :  { %v216_v42 = vmul.f32 0.03125, %v197_v39  ;;  %v217_v43 = vmul.f32 0.03125, %v200_v40  ;;  %v246_v46 = vmul.f32 %v11930_v35, %v11930_v35  ;;  %v247_v24 = vmul.f32 %v11933_v15, %v11933_v15 }
  0xea   :  { %v11942_v47 = vsub.f32 %v11852_v28, %v216_v42  ;;  %v11945_v25 = vsub.f32 %v11857_v29, %v217_v43  ;;  %v286_v48 = vsel %vm152_vm0, %v246_v46, 0.0  ;;  %v289_v49 = vsel %vm152_vm0, %v247_v24, 0.0  ;;  %v10717_v29 = vld [vmem:[%s16700_s29 + $0x8] sm:$0xff]  }
  0xeb   :  { %284 = vadd.xlane.f32.xlu1 %v283_v41  ;;  %287 = vadd.xlane.f32.xlu0 %v286_v48 }
  0xec   :  { %v248_v50 = vmul.f32 %v11942_v47, %v11942_v47  ;;  %v249_v51 = vmul.f32 %v11945_v25, %v11945_v25  ;;  %9677 = vmatprep.subr.bf16.mxu0 %v10717_v29 }
  0xed   :  { %9678 = vmatpush3.bf16.msra.mxu0 %v10717_v29 }
  0xee   :  { %v292_v52 = vsel %vm152_vm0, %v248_v50, 0.0  ;;  %v295_v28 = vsel %vm152_vm0, %v249_v51, 0.0  ;;  %9679 = vmatprep.subr.bf16.mxu0 %v10719_v56  ;;  %v11974_v50 = vld [vmem:[#allocation5] ss:$0 sm:$0xff] }
  0xef   :  { %290 = vadd.xlane.f32.xlu1 %v289_v49  ;;  %293 = vadd.xlane.f32.xlu0 %v292_v52 }
  0xf1   :  { %9680 = vmatpush3.bf16.msra.mxu0 %v10719_v56 }
  0xf2   :  { %9717 = vmatprep.subr.bf16.mxu0 %v11967_v58 }
  0xf3   :  { %296 = vadd.xlane.f32.xlu1 %v295_v28 }
 0x15c   :  { %v252_v59 = vpop.xlane.xlu0 %251 }
 0x15d   :  { %v298_v60 = vmul.f32 0.03125, %v252_v59 }
 0x15f   :  { %v314_v61 = vadd.f32 1e-12, %v298_v60 }
 0x160   :  { %v255_v62 = vpop.xlane.xlu1 %254  ;;  %v258_v63 = vpop.xlane.xlu0 %257 }
 0x161   :  { %10741 = vrsqrt.f32 %v314_v61  ;;  %v299_v2 = vmul.f32 0.03125, %v255_v62  ;;  %v300_v3 = vmul.f32 0.03125, %v258_v63 }
 0x163   :  { %v315_v4 = vadd.f32 1e-12, %v299_v2  ;;  %v316_v5 = vadd.f32 1e-12, %v300_v3 }
 0x164   :  { %v261_v6 = vpop.xlane.xlu1 %260  ;;  %v264_v7 = vpop.xlane.xlu0 %263 }
 0x165   :  { %10743 = vrsqrt.f32 %v315_v4  ;;  %v301_v11 = vmul.f32 0.03125, %v261_v6  ;;  %v302_v8 = vmul.f32 0.03125, %v264_v7 }
 0x166   :  { %10745 = vrsqrt.f32 %v316_v5 }
 0x167   :  { %v317_v16 = vadd.f32 1e-12, %v301_v11  ;;  %v318_v17 = vadd.f32 1e-12, %v302_v8 }
 0x168   :  { %v267_v18 = vpop.xlane.xlu1 %266  ;;  %v270_v19 = vpop.xlane.xlu0 %269 }
 0x169   :  { %10747 = vrsqrt.f32 %v317_v16  ;;  %v303_v20 = vmul.f32 0.03125, %v267_v18  ;;  %v304_v21 = vmul.f32 0.03125, %v270_v19 }
 0x16a   :  { %10749 = vrsqrt.f32 %v318_v17 }
 0x16b   :  { %v319_v22 = vadd.f32 1e-12, %v303_v20  ;;  %v320_v10 = vadd.f32 1e-12, %v304_v21 }
 0x16c   :  { %v273_v26 = vpop.xlane.xlu1 %272  ;;  %v276_v27 = vpop.xlane.xlu0 %275 }
 0x16d   :  { %10751 = vrsqrt.f32 %v319_v22  ;;  %v305_v30 = vmul.f32 0.03125, %v273_v26  ;;  %v306_v31 = vmul.f32 0.03125, %v276_v27 }
 0x16e   :  { %v10742_v32 = vpop.eup %10741  ;;  %10753 = vrsqrt.f32 %v320_v10 }
 0x16f   :  { %v321_v33 = vadd.f32 1e-12, %v305_v30  ;;  %v322_v34 = vadd.f32 1e-12, %v306_v31  ;;  %v346_v38 = vmul.f32 %v10742_v32, %v11863_v36  ;;  %v10722_v31 = vld [vmem:[#allocation7] sm:$0xff]  }
 0x170   :  { %v279_v39 = vpop.xlane.xlu1 %278  ;;  %v282_v40 = vpop.xlane.xlu0 %281 }
 0x171   :  { %10755 = vrsqrt.f32 %v321_v33  ;;  %v307_v41 = vmul.f32 0.03125, %v279_v39  ;;  %v308_v42 = vmul.f32 0.03125, %v282_v40  ;;  %v368_v46 = vmul.f32 %v11970_v14, %v346_v38 }
 0x172   :  { %v10744_v43 = vpop.eup %10743  ;;  %10757 = vrsqrt.f32 %v322_v34 }
 0x173   :  { %v10746_v24 = vpop.eup %10745  ;;  %v323_v48 = vadd.f32 1e-12, %v307_v41  ;;  %v324_v49 = vadd.f32 1e-12, %v308_v42  ;;  %v347_v51 = vmul.f32 %v10744_v43, %v11871_v44  ;;  %v11980_v59 = vadd.f32 %v11974_v50, %v368_v46 }
 0x174   :  { %v285_v52 = vpop.xlane.xlu1 %284  ;;  %v288_v28 = vpop.xlane.xlu0 %287  ;;  %v348_v36 = vmul.f32 %v10746_v24, %v11865_v37 }
 0x175   :  { %10759 = vrsqrt.f32 %v323_v48  ;;  %v309_v29 = vmul.f32 0.03125, %v285_v52  ;;  %v310_v53 = vmul.f32 0.03125, %v288_v28  ;;  %v369_v56 = vmul.f32 %v11970_v14, %v347_v51  ;;  %16701 = vst [vmem:[#allocation15_spill] sm:$0xff] %v11980_v59 }
 0x176   :  { %v10748_v57 = vpop.eup %10747  ;;  %10761 = vrsqrt.f32 %v324_v49  ;;  %v370_v3 = vmul.f32 %v11970_v14, %v348_v36 }
 0x177   :  { %v10750_v60 = vpop.eup %10749  ;;  %v325_v61 = vadd.f32 1e-12, %v309_v29  ;;  %v326_v62 = vadd.f32 1e-12, %v310_v53  ;;  %v11983_v63 = vadd.f32 %v11974_v50, %v369_v56  ;;  %v349_v44 = vmul.f32 %v10748_v57, %v11873_v45 }
 0x178   :  { %v291_v2 = vpop.xlane.xlu1 %290  ;;  %v294_v37 = vpop.xlane.xlu0 %293  ;;  %v350_v4 = vmul.f32 %v10750_v60, %v11882_v54  ;;  %v12000_v20 = vadd.f32 %v11974_v50, %v370_v3 }
 0x179   :  { %16702 = vst [vmem:[#allocation16_spill] sm:$0xff] %v11983_v63  ;;  %10763 = vrsqrt.f32 %v325_v61  ;;  %v311_v5 = vmul.f32 0.03125, %v291_v2  ;;  %v312_v6 = vmul.f32 0.03125, %v294_v37  ;;  %v11990_v7 = vpack.c.bf16 %v11983_v63, %v11980_v59 }
 0x17a   :  { %v10752_v11 = vpop.eup %10751  ;;  %10765 = vrsqrt.f32 %v326_v62  ;;  %v371_v8 = vmul.f32 %v11970_v14, %v349_v44  ;;  %v372_v18 = vmul.f32 %v11970_v14, %v350_v4  ;;  %16703 = vst [vmem:[#allocation17_spill] sm:$0xff] %v12000_v20 }
 0x17b   :  { %v10754_v16 = vpop.eup %10753  ;;  %v327_v17 = vadd.f32 1e-12, %v311_v5  ;;  %v328_v45 = vadd.f32 1e-12, %v312_v6  ;;  %9681 = vmatprep.mubr.msk.bf16.mxu0 %vm152_vm0, %v11990_v7  ;;  %9701 = vmatprep.mubr.msk.bf16.mxu1 %vm152_vm0, %v11990_v7  ;;  %v351_v54 = vmul.f32 %v10752_v11, %v11885_v55 }
 0x17c   :  { %v297_v19 = vpop.xlane.xlu1 %296  ;;  %v12003_v21 = vadd.f32 %v11974_v50, %v371_v8  ;;  %v352_v22 = vmul.f32 %v10754_v16, %v11894_v0  ;;  %v12013_v34 = vadd.f32 %v11974_v50, %v372_v18 }
 0x17d   :  { %10767 = vrsqrt.f32 %v327_v17  ;;  %v313_v10 = vmul.f32 0.03125, %v297_v19  ;;  %v373_v26 = vmul.f32 %v11970_v14, %v351_v54 }
 0x17e   :  { %16704 = vst [vmem:[#allocation18_spill] sm:$0xff] %v12003_v21  ;;  %v10756_v27 = vpop.eup %10755  ;;  %10769 = vrsqrt.f32 %v328_v45  ;;  %v12009_v55 = vpack.c.bf16 %v12003_v21, %v12000_v20  ;;  %v374_v30 = vmul.f32 %v11970_v14, %v352_v22  ;;  %16705 = vst [vmem:[#allocation19_spill] sm:$0xff] %v12013_v34  ;;  %v12114_v45 = vld [vmem:[%s16597_s7] ss:$0 sm:$0xff] }
 0x17f   :  { %v10758_v32 = vpop.eup %10757  ;;  %v329_v33 = vadd.f32 1e-12, %v313_v10  ;;  %v12016_v0 = vadd.f32 %v11974_v50, %v373_v26  ;;  %v353_v38 = vmul.f32 %v10756_v27, %v11897_v1 }
 0x180   :  { %9682 = vmatmul.mubr.msk.bf16.vlgmr.msra.gmra.mxu0 %vm152_vm0, %v12009_v55  ;;  %9702 = vmatmul.mubr.msk.bf16.vlgmr.msra.gmra.mxu1 %vm152_vm0, %v12009_v55  ;;  %v354_v39 = vmul.f32 %v10758_v32, %v11906_v12  ;;  %v12029_v43 = vadd.f32 %v11974_v50, %v374_v30 }
 0x181   :  { %16706 = vst [vmem:[#allocation20_spill] sm:$0xff] %v12016_v0  ;;  %10771 = vrsqrt.f32 %v329_v33  ;;  %v408_v40 = vpack.c.bf16 %v12016_v0, %v12013_v34  ;;  %v375_v41 = vmul.f32 %v11970_v14, %v353_v38  ;;  %9718 = vmatpush3.bf16.msra.mxu0 %v11967_v58  ;;  %v12433_v34 = vld [vmem:[%s16728_s8 + $0x78] sm:$0xff] }
 0x182   :  { %v10760_v42 = vpop.eup %10759  ;;  %16707 = vst [vmem:[#allocation21_spill] sm:$0xff] %v12029_v43  ;;  %9719 = vmatprep.subr.bf16.mxu0 %v10722_v31  ;;  %v376_v24 = vmul.f32 %v11970_v14, %v354_v39 }
 0x183   :  { %v10762_v1 = vpop.eup %10761  ;;  %9685 = vmatprep.mubr.msk.bf16.mxu0 %vm152_vm0, %v408_v40  ;;  %9705 = vmatprep.mubr.msk.bf16.mxu1 %vm152_vm0, %v408_v40  ;;  %v12034_v12 = vadd.f32 %v11974_v50, %v375_v41  ;;  %v355_v46 = vmul.f32 %v10760_v42, %v11909_v9 }
 0x184   :  { %v356_v48 = vmul.f32 %v10762_v1, %v11918_v23  ;;  %v12044_v36 = vadd.f32 %v11974_v50, %v376_v24 }
 0x185   :  { %16708 = vst [vmem:[#allocation22_spill] sm:$0xff] %v12034_v12  ;;  %v409_v58 = vpack.c.bf16 %v12034_v12, %v12029_v43  ;;  %v377_v49 = vmul.f32 %v11970_v14, %v355_v46  ;;  %9720 = vmatpush3.bf16.msra.mxu0 %v10722_v31  ;;  %v12418_v12 = vld [vmem:[%s16728_s8 + $0x60] sm:$0xff]  ;;  %v12441_v43 = vld [vmem:[%s16728_s8 + $0x68] sm:$0xff] }
 0x186   :  { %v10764_v51 = vpop.eup %10763  ;;  %v378_v52 = vmul.f32 %v11970_v14, %v356_v48  ;;  %16709 = vst [vmem:[#allocation23_spill] sm:$0xff] %v12044_v36  ;;  %16729 = vst [vmem:[#allocation42_spill] sm:$0xff] %v12418_v12 }
 0x187   :  { %v10766_v28 = vpop.eup %10765  ;;  %v12047_v29 = vadd.f32 %v11974_v50, %v377_v49  ;;  %v357_v9 = vmul.f32 %v10764_v51, %v11921_v13 }
 0x188   :  { %9686 = vmatmul.mubr.msk.bf16.gmra.mxu0 %vm152_vm0, %v409_v58  ;;  %9706 = vmatmul.mubr.msk.bf16.gmra.mxu1 %vm152_vm0, %v409_v58  ;;  %v358_v23 = vmul.f32 %v10766_v28, %v11930_v35  ;;  %v12057_v60 = vadd.f32 %v11974_v50, %v378_v52 }
 0x189   :  { %16710 = vst [vmem:[#allocation24_spill] sm:$0xff] %v12047_v29  ;;  %v410_v53 = vpack.c.bf16 %v12047_v29, %v12044_v36  ;;  %v379_v56 = vmul.f32 %v11970_v14, %v357_v9  ;;  %v12400_v36 = vld [vmem:[%s16728_s8 + $0x48] sm:$0xff] }
 0x18a   :  { %v10768_v57 = vpop.eup %10767  ;;  %16711 = vst [vmem:[#allocation25_spill] sm:$0xff] %v12057_v60  ;;  %v380_v35 = vmul.f32 %v11970_v14, %v358_v23 }
 0x18b   :  { %v10770_v61 = vpop.eup %10769  ;;  %9689 = vmatprep.mubr.msk.bf16.mxu0 %vm152_vm0, %v410_v53  ;;  %9709 = vmatprep.mubr.msk.bf16.mxu1 %vm152_vm0, %v410_v53  ;;  %v12062_v13 = vadd.f32 %v11974_v50, %v379_v56  ;;  %v359_v62 = vmul.f32 %v10768_v57, %v11933_v15 }
 0x18c   :  { %v360_v44 = vmul.f32 %v10770_v61, %v11942_v47  ;;  %v12071_v4 = vadd.f32 %v11974_v50, %v380_v35 }
 0x18d   :  { %16712 = vst [vmem:[#allocation26_spill] sm:$0xff] %v12062_v13  ;;  %v411_v2 = vpack.c.bf16 %v12062_v13, %v12057_v60  ;;  %v381_v37 = vmul.f32 %v11970_v14, %v359_v62 }
 0x18e   :  { %v10772_v3 = vpop.eup %10771  ;;  %16713 = vst [vmem:[#allocation27_spill] sm:$0xff] %v12071_v4  ;;  %v382_v15 = vmul.f32 %v11970_v14, %v360_v44 }
 0x18f   :  { %v12074_v5 = vadd.f32 %v11974_v50, %v381_v37  ;;  %v361_v6 = vmul.f32 %v10772_v3, %v11945_v25 }
 0x190   :  { %9690 = vmatmul.mubr.msk.bf16.gmra.mxu0 %vm152_vm0, %v411_v2  ;;  %9710 = vmatmul.mubr.msk.bf16.gmra.mxu1 %vm152_vm0, %v411_v2  ;;  %v12086_v8 = vadd.f32 %v11974_v50, %v382_v15 }
 0x191   :  { %16714 = vst [vmem:[#allocation28_spill] sm:$0xff] %v12074_v5  ;;  %v412_v47 = vpack.c.bf16 %v12074_v5, %v12071_v4  ;;  %v383_v11 = vmul.f32 %v11970_v14, %v361_v6  ;;  %v12108_v14 = vld [vmem:[%s16595_s5] ss:$0 sm:$0xff]  ;;  %v12382_v4 = vld [vmem:[%s16728_s8 + $0x58] sm:$0xff] }
 0x192   :  { %16715 = vst [vmem:[#allocation29_spill] sm:$0xff] %v12086_v8 }
 0x193   :  { %9693 = vmatprep.mubr.msk.bf16.mxu0 %vm152_vm0, %v412_v47  ;;  %9713 = vmatprep.mubr.msk.bf16.mxu1 %vm152_vm0, %v412_v47  ;;  %v12089_v25 = vadd.f32 %v11974_v50, %v383_v11 }
 0x195   :  { %16716 = vst [vmem:[#allocation30_spill] sm:$0xff] %v12089_v25  ;;  %v413_v16 = vpack.c.bf16 %v12089_v25, %v12086_v8 }
 0x198   :  { %9694 = vmatmul.mubr.msk.bf16.gmra.mxu0 %vm152_vm0, %v413_v16  ;;  %9714 = vmatmul.mubr.msk.bf16.gmra.mxu1 %vm152_vm0, %v413_v16 }
 0x199   :  { %9721 = vmatprep.mubr.msk.bf16.mxu0 %vm152_vm0, %v11990_v7 }
 0x1a0   :  { %9722 = vmatmul.mubr.msk.bf16.vlgmr.msra.gmra.mxu0 %vm152_vm0, %v12009_v55 }
 0x1a1   :  { %9725 = vmatprep.mubr.msk.bf16.mxu0 %vm152_vm0, %v408_v40 }
 0x1a8   :  { %9726 = vmatmul.mubr.msk.bf16.gmra.mxu0 %vm152_vm0, %v409_v58 }
 0x1a9   :  { %9729 = vmatprep.mubr.msk.bf16.mxu0 %vm152_vm0, %v410_v53 }
 0x1b0   :  { %9730 = vmatmul.mubr.msk.bf16.gmra.mxu0 %vm152_vm0, %v411_v2 }
 0x1b1   :  { %9733 = vmatprep.mubr.msk.bf16.mxu0 %vm152_vm0, %v412_v47 }
 0x1b8   :  { %9734 = vmatmul.mubr.msk.bf16.gmra.mxu0 %vm152_vm0, %v413_v16 }
 0x240   :  { %v9683_v50 = vpop.f32.mrf.mxu0  ;;  %v9703_v7 = vpop.f32.mrf.mxu1 }
 0x241   :  { %v504_v17 = vadd.f32 %v9683_v50, %v12108_v14  ;;  %v624_v10 = vadd.f32 %v9703_v7, %v12114_v45 }
 0x242   :  { %v495_v54 = vpop.f32.mrf.mxu0  ;;  %v12116_v18 = vpop.f32.mrf.mxu1 }
 0x243   :  { %v496_v31 = vadd.f32 %v12108_v14, %v495_v54 }
 0x244   :  { %v9684_v19 = vpop.f32.mrf.mxu0  ;;  %v9704_v22 = vpop.f32.mrf.mxu1 }
 0x245   :  { %v507_v26 = vadd.f32 %v9684_v19, %v12108_v14  ;;  %v627_v27 = vadd.f32 %v9704_v22, %v12114_v45 }
 0x246   :  { %v498_v55 = vpop.f32.mrf.mxu0  ;;  %v12121_v30 = vpop.f32.mrf.mxu1 }
 0x247   :  { %v12124_v32 = vpack.c.bf16 %v507_v26, %v504_v17  ;;  %v12126_v33 = vpack.c.bf16 %v627_v27, %v624_v10  ;;  %v499_v38 = vadd.f32 %v12108_v14, %v498_v55 }
 0x248   :  { %v9687_v39 = vpop.f32.mrf.mxu0  ;;  %v12129_v40 = vpop.f32.mrf.mxu1 }
 0x249   :  { %v12131_v41 = vpack.c.bf16 %v499_v38, %v496_v31  ;;  %v520_v42 = vadd.f32 %v9687_v39, %v12108_v14 }
 0x24a   :  { %v511_v1 = vpop.f32.mrf.mxu0  ;;  %v12134_v46 = vpop.f32.mrf.mxu1 }
 0x24b   :  { %v512_v24 = vadd.f32 %v12108_v14, %v511_v1  ;;  %9753 = vmatprep.mubr.msk.bf16.mxu1 %vm826_vm1, %v12131_v41 }
 0x24c   :  { %v9688_v48 = vpop.f32.mrf.mxu0  ;;  %v12139_v58 = vpop.f32.mrf.mxu1 }
 0x24d   :  { %v523_v49 = vadd.f32 %v9688_v48, %v12108_v14 }
 0x24e   :  { %v514_v51 = vpop.f32.mrf.mxu0  ;;  %v12142_v52 = vpop.f32.mrf.mxu1 }
 0x24f   :  { %v12144_v28 = vpack.c.bf16 %v523_v49, %v520_v42  ;;  %v515_v9 = vadd.f32 %v12108_v14, %v514_v51 }
 0x250   :  { %v9691_v23 = vpop.f32.mrf.mxu0  ;;  %v9711_v53 = vpop.f32.mrf.mxu1 }
 0x251   :  { %v12147_v56 = vpack.c.bf16 %v515_v9, %v512_v24  ;;  %v536_v57 = vadd.f32 %v9691_v23, %v12108_v14 }
 0x252   :  { %v527_v61 = vpop.f32.mrf.mxu0  ;;  %v647_v62 = vpop.f32.mrf.mxu1 }
 0x253   :  { %v528_v35 = vadd.f32 %v12108_v14, %v527_v61 }
 0x254   :  { %v9692_v44 = vpop.f32.mrf.mxu0  ;;  %v9712_v2 = vpop.f32.mrf.mxu1 }
 0x255   :  { %v539_v37 = vadd.f32 %v9692_v44, %v12108_v14  ;;  %v659_v61 = vadd.f32 %v9712_v2, %v12114_v45  ;;  %v656_v44 = vadd.f32 %v9711_v53, %v12114_v45  ;;  %v648_v2 = vadd.f32 %v12114_v45, %v647_v62 }
 0x256   :  { %v530_v3 = vpop.f32.mrf.mxu0  ;;  %v650_v6 = vpop.f32.mrf.mxu1 }
 0x257   :  { %v12152_v15 = vpack.c.bf16 %v539_v37, %v536_v57  ;;  %v531_v47 = vadd.f32 %v12108_v14, %v530_v3  ;;  %v12193_v3 = vpack.c.bf16 %v659_v61, %v656_v44  ;;  %v632_v61 = vadd.f32 %v12114_v45, %v12134_v46 }
 0x258   :  { %v9695_v11 = vpop.f32.mrf.mxu0  ;;  %v9715_v16 = vpop.f32.mrf.mxu1 }
 0x259   :  { %v12155_v50 = vpack.c.bf16 %v531_v47, %v528_v35  ;;  %v552_v7 = vadd.f32 %v9695_v11, %v12108_v14  ;;  %v672_v26 = vadd.f32 %v9715_v16, %v12114_v45  ;;  %16719 = vst [vmem:[#allocation33_spill] sm:$0xff] %v12193_v3  ;;  %v867_v53 = vsel %vm826_vm1, %v12193_v3, 0 }
 0x25a   :  { %v543_v17 = vpop.f32.mrf.mxu0  ;;  %v663_v54 = vpop.f32.mrf.mxu1 }
 0x25b   :  { %v544_v19 = vadd.f32 %v12108_v14, %v543_v17  ;;  %v664_v31 = vadd.f32 %v12114_v45, %v663_v54 }
 0x25c   :  { %v9696_v22 = vpop.f32.mrf.mxu0  ;;  %v9716_v10 = vpop.f32.mrf.mxu1 }
 0x25d   :  { %v555_v27 = vadd.f32 %v9696_v22, %v12108_v14  ;;  %v675_v55 = vadd.f32 %v9716_v10, %v12114_v45 }
 0x25e   :  { %v546_v38 = vpop.f32.mrf.mxu0  ;;  %v666_v39 = vpop.f32.mrf.mxu1 }
 0x25f   :  { %v12163_v42 = vpack.c.bf16 %v555_v27, %v552_v7  ;;  %v12165_v1 = vpack.c.bf16 %v675_v55, %v672_v26  ;;  %v547_v24 = vadd.f32 %v12108_v14, %v546_v38  ;;  %v667_v48 = vadd.f32 %v12114_v45, %v666_v39  ;;  %v8838_v39 = vld [vmem:[%s16599_s9] ss:$0 sm:$0xff] }
 0x260   :  { %v12169_v49 = vpop.f32.mrf.mxu0  ;;  %v651_v7 = vadd.f32 %v12114_v45, %v650_v6  ;;  %v643_v26 = vadd.f32 %v12139_v58, %v12114_v45  ;;  %v640_v6 = vadd.f32 %v12129_v40, %v12114_v45 }
 0x261   :  { %16717 = vst [vmem:[#allocation31_spill] sm:$0xff] %v12165_v1  ;;  %v12171_v51 = vpack.c.bf16 %v547_v24, %v544_v19  ;;  %v12173_v9 = vpack.c.bf16 %v667_v48, %v664_v31  ;;  %1299 = vrot.lane.b32.xlu0 %v12165_v1, %s11639_s27  ;;  %10640 = vmatprep.subr.msk.bf16.mxu1 %vm826_vm1, %v12165_v1  ;;  %v873_v23 = vsel %vm826_vm1, %v12165_v1, 0 }
 0x262   :  { %v12181_v57 = vpop.f32.mrf.mxu0  ;;  %9738 = vmatpush3.bf16.xpose.msra.mxu1 %v873_v23  ;;  %v12201_v19 = vpack.c.bf16 %v651_v7, %v648_v2  ;;  %v12211_v55 = vpack.c.bf16 %v643_v26, %v640_v6  ;;  %v635_v24 = vadd.f32 %v12114_v45, %v12142_v52 }
 0x263   :  { %16718 = vst [vmem:[#allocation32_spill] sm:$0xff] %v12173_v9  ;;  %1297 = vrot.lane.b32.xlu1 %v12173_v9, %s11639_s27  ;;  %10641 = vmatprep.subr.msk.bf16.mxu1 %vm826_vm1, %v12173_v9  ;;  %v870_v47 = vsel %vm826_vm1, %v12173_v9, 0 }
 0x264   :  { %v12187_v14 = vpop.f32.mrf.mxu0  ;;  %16720 = vst [vmem:[#allocation34_spill] sm:$0xff] %v12201_v19  ;;  %16721 = vst [vmem:[#allocation35_spill] sm:$0xff] %v12211_v55  ;;  %v864_v31 = vsel %vm826_vm1, %v12201_v19, 0  ;;  %v12226_v2 = vpack.c.bf16 %v635_v24, %v632_v61  ;;  %v861_v52 = vsel %vm826_vm1, %v12211_v55, 0  ;;  %v616_v24 = vadd.f32 %v12114_v45, %v12116_v18 }
 0x266   :  { %v12190_v35 = vpop.f32.mrf.mxu0  ;;  %16722 = vst [vmem:[#allocation36_spill] sm:$0xff] %v12226_v2 }
 0x267   :  { %v739_v18 = vadd.f32 %v8838_v39, %v12190_v35 }
 0x268   :  { %v9727_v37 = vpop.f32.mrf.mxu0 }
 0x26a   :  { %v751_v11 = vpop.f32.mrf.mxu0  ;;  %9740 = vmatpush3.bf16.xpose.msra.mxu1 %v870_v47 }
 0x26b   :  { %10642 = vmatprep.subr.msk.bf16.mxu1 %vm826_vm1, %v12193_v3 }
 0x26c   :  { %v9728_v16 = vpop.f32.mrf.mxu0 }
 0x26e   :  { %v754_v17 = vpop.f32.mrf.mxu0 }
 0x270   :  { %v9731_v54 = vpop.f32.mrf.mxu0 }
 0x271   :  { %v776_v6 = vadd.f32 %v9731_v54, %v8838_v39  ;;  %v760_v54 = vadd.f32 %v9727_v37, %v8838_v39 }
 0x272   :  { %v767_v22 = vpop.f32.mrf.mxu0  ;;  %9742 = vmatpush3.bf16.xpose.msra.mxu1 %v867_v53 }
 0x273   :  { %10643 = vmatprep.subr.msk.bf16.mxu1 %vm826_vm1, %v12201_v19 }
 0x274   :  { %v9732_v10 = vpop.f32.mrf.mxu0 }
 0x275   :  { %v779_v53 = vadd.f32 %v9732_v10, %v8838_v39  ;;  %v768_v10 = vadd.f32 %v8838_v39, %v767_v22  ;;  %v619_v22 = vadd.f32 %v12114_v45, %v12121_v30  ;;  %v855_v30 = vsel %vm826_vm1, %v12126_v33, 0 }
 0x276   :  { %v770_v27 = vpop.f32.mrf.mxu0 }
 0x277   :  { %v12237_v46 = vpack.c.bf16 %v779_v53, %v776_v6  ;;  %v12257_v37 = vpack.c.bf16 %v619_v22, %v616_v24  ;;  %v12311_v6 = vld [vmem:[%s16728_s8 + $0x18] sm:$0xff]  ;;  %v12328_v24 = vld [vmem:[%s16728_s8 + $0x8] sm:$0xff] }
 0x278   :  { %v9735_v62 = vpop.f32.mrf.mxu0 }
 0x279   :  { %v792_v40 = vadd.f32 %v9735_v62, %v8838_v39  ;;  %16723 = vst [vmem:[#allocation37_spill] sm:$0xff] %v12237_v46  ;;  %v771_v62 = vadd.f32 %v8838_v39, %v770_v27 }
 0x27a   :  { %v783_v38 = vpop.f32.mrf.mxu0  ;;  %9744 = vmatpush3.bf16.xpose.msra.mxu1 %v864_v31  ;;  %v763_v31 = vadd.f32 %v9728_v16, %v8838_v39  ;;  %v755_v16 = vadd.f32 %v8838_v39, %v754_v17  ;;  %v744_v17 = vadd.f32 %v12169_v49, %v8838_v39  ;;  %v852_v49 = vsel %vm826_vm1, %v12257_v37, 0 }
 0x27b   :  { %10644 = vmatprep.subr.msk.bf16.mxu1 %vm826_vm1, %v12211_v55  ;;  %v784_v44 = vadd.f32 %v8838_v39, %v783_v38  ;;  %v12241_v38 = vpack.c.bf16 %v771_v62, %v768_v10  ;;  %v12316_v62 = vld [vmem:[%s16728_s8] sm:$0xff] }
 0x27c   :  { %v9736_v58 = vpop.f32.mrf.mxu0  ;;  %v12251_v27 = vpack.c.bf16 %v763_v31, %v760_v54 }
 0x27d   :  { %v795_v48 = vadd.f32 %v9736_v58, %v8838_v39  ;;  %16724 = vst [vmem:[#allocation38_spill] sm:$0xff] %v12241_v38  ;;  %v858_v58 = vsel %vm826_vm1, %v12226_v2, 0 }
 0x27e   :  { %v786_v23 = vpop.f32.mrf.mxu0  ;;  %16725 = vst [vmem:[#allocation39_spill] sm:$0xff] %v12251_v27 }
 0x27f   :  { %v12224_v47 = vpack.c.bf16 %v795_v48, %v792_v40  ;;  %v787_v7 = vadd.f32 %v8838_v39, %v786_v23  ;;  %v752_v40 = vadd.f32 %v8838_v39, %v751_v11  ;;  %v747_v48 = vadd.f32 %v12187_v14, %v8838_v39 }
 0x280   :  { %v736_v14 = vadd.f32 %v8838_v39, %v12181_v57  ;;  %v12303_v39 = vld [vmem:[%s16728_s8 + $0x10] sm:$0xff] }
 0x281   :  { %v12228_v26 = vpack.c.bf16 %v787_v7, %v784_v44  ;;  %9769 = vmatprep.subr.bf16.mxu0 %v12224_v47  ;;  %v12260_v23 = vpack.c.bf16 %v755_v16, %v752_v40  ;;  %v12269_v45 = vpack.c.bf16 %v747_v48, %v744_v17  ;;  %v12333_v40 = vld [vmem:[%s16728_s8 + $0x30] sm:$0xff] }
 0x282   :  { %9746 = vmatpush3.bf16.xpose.msra.mxu1 %v861_v52  ;;  %9770 = vmatpush3.bf16.msra.mxu0 %v12224_v47  ;;  %v12275_v11 = vpack.c.bf16 %v739_v18, %v736_v14 }
 0x283   :  { %10645 = vmatprep.subr.msk.bf16.mxu1 %vm826_vm1, %v12226_v2  ;;  %9771 = vmatprep.subr.bf16.mxu0 %v12228_v26  ;;  %16726 = vst [vmem:[#allocation40_spill] sm:$0xff] %v12269_v45 }
 0x284   :  { %16727 = vst [vmem:[#allocation41_spill] sm:$0xff] %v12275_v11 }
 0x286   :  { %9772 = vmatpush3.bf16.msra.mxu0 %v12228_v26 }
 0x287   :  { %9773 = vmatprep.subr.bf16.mxu0 %v12237_v46 }
 0x28a   :  { %9748 = vmatpush3.bf16.xpose.msra.mxu1 %v858_v58  ;;  %9774 = vmatpush3.bf16.msra.mxu0 %v12237_v46 }
 0x28b   :  { %10646 = vmatprep.subr.msk.bf16.mxu1 %vm826_vm1, %v12126_v33  ;;  %9775 = vmatprep.subr.bf16.mxu0 %v12241_v38 }
 0x28e   :  { %9776 = vmatpush3.bf16.msra.mxu0 %v12241_v38 }
 0x28f   :  { %9777 = vmatprep.subr.bf16.mxu0 %v12251_v27 }
 0x292   :  { %9750 = vmatpush3.bf16.xpose.msra.mxu1 %v855_v30  ;;  %9778 = vmatpush3.bf16.msra.mxu0 %v12251_v27 }
 0x293   :  { %10647 = vmatprep.subr.msk.bf16.mxu1 %vm826_vm1, %v12257_v37  ;;  %9779 = vmatprep.subr.bf16.mxu0 %v12260_v23 }
 0x296   :  { %9780 = vmatpush3.bf16.msra.mxu0 %v12260_v23 }
 0x297   :  { %9781 = vmatprep.subr.bf16.mxu0 %v12269_v45 }
 0x29a   :  { %9752 = vmatpush3.bf16.xpose.msra.mxu1 %v852_v49  ;;  %9782 = vmatpush3.bf16.msra.mxu0 %v12269_v45 }
 0x29b   :  { %9783 = vmatprep.subr.bf16.mxu0 %v12275_v11 }
 0x29e   :  { %9784 = vmatpush3.bf16.msra.mxu0 %v12275_v11 }
 0x2a1   :  { %9754 = vmatmul.mubr.msk.bf16.vlgmr.msra.gmra.mxu1 %vm826_vm1, %v12124_v32 }
 0x2a2   :  { %9757 = vmatprep.mubr.msk.bf16.mxu1 %vm826_vm1, %v12147_v56 }
 0x2a9   :  { %9758 = vmatmul.mubr.msk.bf16.gmra.mxu1 %vm826_vm1, %v12144_v28 }
 0x2aa   :  { %9761 = vmatprep.mubr.msk.bf16.mxu1 %vm826_vm1, %v12155_v50 }
 0x2b1   :  { %9762 = vmatmul.mubr.msk.bf16.gmra.mxu1 %vm826_vm1, %v12152_v15 }
 0x2b2   :  { %9765 = vmatprep.mubr.msk.bf16.mxu1 %vm826_vm1, %v12171_v51 }
 0x2b9   :  { %9766 = vmatmul.mubr.msk.bf16.gmra.mxu1 %vm826_vm1, %v12163_v42 }
 0x2d3   :  { %v12296_v57 = vpop.permute.xlu0 %1299 }
 0x2d4   :  { %10648 = vmatprep.subr.msk.bf16.mxu0 %vm826_vm1, %v12296_v57 }
 0x361   :  { %v9755_v35 = vpop.f32.mrf.mxu1 }
 0x362   :  { %v974_v61 = vmul.f32 0.35355338, %v9755_v35  ;;  %v12346_v35 = vld [vmem:[%s16728_s8 + $0x38] sm:$0xff] }
 0x363   :  { %v909_v44 = vpop.f32.mrf.mxu1 }
 0x364   :  { %v972_v7 = vmul.f32 0.35355338, %v909_v44  ;;  %v12306_v53 = vadd.f32 %v974_v61, %v12303_v39  ;;  %v12351_v61 = vld [vmem:[%s16728_s8 + $0x20] sm:$0xff] }
 0x365   :  { %v9756_v52 = vpop.f32.mrf.mxu1 }
 0x366   :  { %v975_v10 = vmul.f32 0.35355338, %v9756_v52  ;;  %1008 = vmax.xlane.f32.xlu0 %v12306_v53  ;;  %v12323_v22 = vadd.f32 %v972_v7, %v12316_v62 }
 0x367   :  { %v912_v31 = vpop.f32.mrf.mxu1 }
 0x368   :  { %v973_v58 = vmul.f32 0.35355338, %v912_v31  ;;  %v12320_v54 = vadd.f32 %v975_v10, %v12311_v6 }
 0x369   :  { %v9759_v16 = vpop.f32.mrf.mxu1 }
 0x36a   :  { %v978_v48 = vmul.f32 0.35355338, %v9759_v16  ;;  %1010 = vmax.xlane.f32.xlu1 %v12320_v54  ;;  %1004 = vmax.xlane.f32.xlu0 %v12323_v22  ;;  %v12338_v18 = vadd.f32 %v973_v58, %v12328_v24  ;;  %v12364_v16 = vld [vmem:[%s16728_s8 + $0x28] sm:$0xff] }
 0x36b   :  { %v925_v30 = vpop.f32.mrf.mxu1 }
 0x36c   :  { %v976_v17 = vmul.f32 0.35355338, %v925_v30  ;;  %v12341_v14 = vadd.f32 %v978_v48, %v12333_v40  ;;  %v12369_v48 = vld [vmem:[%s16728_s8 + $0x50] sm:$0xff] }
 0x36d   :  { %v9760_v49 = vpop.f32.mrf.mxu1 }
 0x36e   :  { %v979_v44 = vmul.f32 0.35355338, %v9760_v49  ;;  %1006 = vmax.xlane.f32.xlu1 %v12338_v18  ;;  %1016 = vmax.xlane.f32.xlu0 %v12341_v14  ;;  %v12359_v31 = vadd.f32 %v976_v17, %v12351_v61 }
 0x36f   :  { %v928_v7 = vpop.f32.mrf.mxu1 }
 0x370   :  { %v977_v52 = vmul.f32 0.35355338, %v928_v7  ;;  %v12356_v10 = vadd.f32 %v979_v44, %v12346_v35 }
 0x371   :  { %v9763_v58 = vpop.f32.mrf.mxu1 }
 0x372   :  { %v982_v30 = vmul.f32 0.35355338, %v9763_v58  ;;  %1018 = vmax.xlane.f32.xlu1 %v12356_v10  ;;  %1012 = vmax.xlane.f32.xlu0 %v12359_v31  ;;  %v12374_v17 = vadd.f32 %v977_v52, %v12364_v16  ;;  %v12387_v58 = vld [vmem:[%s16728_s8 + $0x40] sm:$0xff] }
 0x373   :  { %v941_v49 = vpop.f32.mrf.mxu1 }
 0x374   :  { %v980_v44 = vmul.f32 0.35355338, %v941_v49  ;;  %v12377_v7 = vadd.f32 %v982_v30, %v12369_v48 }
 0x375   :  { %v9764_v25 = vpop.f32.mrf.mxu1 }
 0x376   :  { %v983_v5 = vmul.f32 0.35355338, %v9764_v25  ;;  %1014 = vmax.xlane.f32.xlu1 %v12374_v17  ;;  %1024 = vmax.xlane.f32.xlu0 %v12377_v7  ;;  %v12395_v60 = vadd.f32 %v980_v44, %v12387_v58  ;;  %v12405_v25 = vld [vmem:[%s16728_s8 + $0x70] sm:$0xff] }
 0x377   :  { %v944_v52 = vpop.f32.mrf.mxu1 }
 0x378   :  { %v981_v49 = vmul.f32 0.35355338, %v944_v52  ;;  %v12392_v30 = vadd.f32 %v983_v5, %v12382_v4 }
 0x379   :  { %v9767_v13 = vpop.f32.mrf.mxu1 }
 0x37a   :  { %v986_v8 = vmul.f32 0.35355338, %v9767_v13  ;;  %1026 = vmax.xlane.f32.xlu1 %v12392_v30  ;;  %1020 = vmax.xlane.f32.xlu0 %v12395_v60  ;;  %v12410_v44 = vadd.f32 %v981_v49, %v12400_v36 }
 0x37b   :  { %v957_v5 = vpop.f32.mrf.mxu1 }
 0x37c   :  { %v984_v52 = vmul.f32 0.35355338, %v957_v5  ;;  %v12413_v29 = vadd.f32 %v986_v8, %v12405_v25 }
 0x37d   :  { %v9768_v8 = vpop.f32.mrf.mxu1 }
 0x37e   :  { %1022 = vmax.xlane.f32.xlu1 %v12410_v44  ;;  %1032 = vmax.xlane.f32.xlu0 %v12413_v29  ;;  %v12423_v13 = vadd.f32 %v984_v52, %v12418_v12  ;;  %v987_v49 = vmul.f32 0.35355338, %v9768_v8  ;;  %v12448_v8 = vpop.permute.xlu1 %1297 }
 0x37f   :  { %v960_v5 = vpop.f32.mrf.mxu1 }
 0x380   :  { %v985_v0 = vmul.f32 0.35355338, %v960_v5  ;;  %v12436_v52 = vadd.f32 %v987_v49, %v12433_v34 }
 0x382   :  { %1028 = vmax.xlane.f32.xlu0 %v12423_v13  ;;  %v12445_v20 = vadd.f32 %v985_v0, %v12441_v43 }
 0x38f   :  { %1293 = vrot.lane.b32.xlu1 %v12201_v19, %s11639_s27 }
 0x398   :  { %1295 = vrot.lane.b32.xlu0 %v12193_v3, %s11639_s27 }
 0x3b3   :  { %1034 = vmax.xlane.f32.xlu1 %v12436_v52 }
 0x3b7   :  { %1030 = vmax.xlane.f32.xlu1 %v12445_v20 }
 0x3ef   :  { %v1009_v21 = vpop.xlane.xlu0 %1008 }
 0x3f0   :  { %v1038_v5 = vsub.f32 %v12306_v53, %v1009_v21 }
 0x3f2   :  { %v1056_v59 = vmul.f32 1.442695, %v1038_v5 }
 0x3f3   :  { %v1011_v49 = vpop.xlane.xlu1 %1010  ;;  %v1005_v63 = vpop.xlane.xlu0 %1004 }
 0x3f4   :  { %10773 = vpow2.f32 %v1056_v59  ;;  %v1039_v1 = vsub.f32 %v12320_v54, %v1011_v49  ;;  %v1036_v19 = vsub.f32 %v12323_v22, %v1005_v63 }
 0x3f6   :  { %v1058_v3 = vmul.f32 1.442695, %v1039_v1  ;;  %v1052_v9 = vmul.f32 1.442695, %v1036_v19 }
 0x3f7   :  { %v1007_v11 = vpop.xlane.xlu1 %1006  ;;  %v1017_v1 = vpop.xlane.xlu0 %1016 }
 0x3f8   :  { %10775 = vpow2.f32 %v1058_v3  ;;  %v1037_v0 = vsub.f32 %v12338_v18, %v1007_v11  ;;  %v1042_v11 = vsub.f32 %v12341_v14, %v1017_v1 }
 0x3f9   :  { %10777 = vpow2.f32 %v1052_v9 }
 0x3fa   :  { %v1054_v45 = vmul.f32 1.442695, %v1037_v0  ;;  %v1064_v18 = vmul.f32 1.442695, %v1042_v11 }
 0x3fb   :  { %v1013_v9 = vpop.xlane.xlu0 %1012  ;;  %v1019_v19 = vpop.xlane.xlu1 %1018 }
 0x3fc   :  { %10779 = vpow2.f32 %v1054_v45  ;;  %v1040_v54 = vsub.f32 %v12359_v31, %v1013_v9  ;;  %v1043_v0 = vsub.f32 %v12356_v10, %v1019_v19 }
 0x3fd   :  { %10781 = vpow2.f32 %v1064_v18 }
 0x3fe   :  { %v1060_v38 = vmul.f32 1.442695, %v1040_v54  ;;  %v1066_v12 = vmul.f32 1.442695, %v1043_v0 }
 0x3ff   :  { %v1025_v3 = vpop.xlane.xlu0 %1024  ;;  %v1015_v53 = vpop.xlane.xlu1 %1014 }
 0x400   :  { %v1041_v5 = vsub.f32 %v12374_v17, %v1015_v53  ;;  %10783 = vpow2.f32 %v1060_v38  ;;  %v1046_v14 = vsub.f32 %v12377_v7, %v1025_v3 }
 0x401   :  { %v12454_v27 = vpop.eup %10773 }
 0x402   :  { %1088 = vadd.xlane.f32.xlu0 %v12454_v27  ;;  %v1072_v17 = vmul.f32 1.442695, %v1046_v14 }
 0x403   :  { %v1021_v45 = vpop.xlane.xlu0 %1020  ;;  %v1027_v49 = vpop.xlane.xlu1 %1026 }
 0x404   :  { %v1044_v11 = vsub.f32 %v12395_v60, %v1021_v45  ;;  %v1047_v19 = vsub.f32 %v12392_v30, %v1027_v49 }
 0x405   :  { %v12457_v21 = vpop.eup %10775 }
 0x406   :  { %v12459_v59 = vpop.eup %10777  ;;  %1090 = vadd.xlane.f32.xlu1 %v12457_v21 }
 0x407   :  { %1084 = vadd.xlane.f32.xlu0 %v12459_v59  ;;  %v1033_v22 = vpop.xlane.xlu0 %1032  ;;  %v1023_v1 = vpop.xlane.xlu1 %1022 }
 0x408   :  { %v1050_v46 = vsub.f32 %v12413_v29, %v1033_v22  ;;  %v1068_v29 = vmul.f32 1.442695, %v1044_v11 }
 0x409   :  { %v12463_v63 = vpop.eup %10779 }
 0x40a   :  { %1086 = vadd.xlane.f32.xlu1 %v12463_v63  ;;  %v1080_v31 = vmul.f32 1.442695, %v1050_v46  ;;  %v12481_v38 = vpop.eup %10781 }
 0x40b   :  { %v12479_v53 = vpop.permute.xlu1 %1293 }
 0x41b   :  { %1289 = vrot.lane.b32.xlu1 %v12226_v2, %s11639_s27  ;;  %v1062_v2 = vmul.f32 1.442695, %v1041_v5 }
 0x41d   :  { %1291 = vrot.lane.b32.xlu0 %v12211_v55, %s11639_s27  ;;  %v1029_v55 = vpop.xlane.xlu0 %1028  ;;  %10785 = vpow2.f32 %v1062_v2  ;;  %v1074_v2 = vmul.f32 1.442695, %v1047_v19 }
 0x41e   :  { %v1048_v9 = vsub.f32 %v12423_v13, %v1029_v55  ;;  %10787 = vpow2.f32 %v1066_v12  ;;  %v1045_v12 = vsub.f32 %v12410_v44, %v1023_v1  ;;  %v12486_v55 = vpop.eup %10783 }
 0x41f   :  { %10789 = vpow2.f32 %v1080_v31 }
 0x420   :  { %v1076_v10 = vmul.f32 1.442695, %v1048_v9  ;;  %10791 = vpow2.f32 %v1072_v17  ;;  %v1070_v3 = vmul.f32 1.442695, %v1045_v12 }
 0x421   :  { %v1296_v1 = vpop.permute.xlu0 %1295 }
 0x422   :  { %10793 = vpow2.f32 %v1076_v10 }
 0x423   :  { %10795 = vpow2.f32 %v1068_v29 }
 0x424   :  { %10797 = vpow2.f32 %v1074_v2 }
 0x42a   :  { %v12488_v7 = vpop.eup %10785 }
 0x42b   :  { %v12493_v54 = vpop.eup %10787 }
 0x42c   :  { %v12495_v44 = vpop.eup %10789 }
 0x42d   :  { %v12499_v22 = vpop.eup %10791 }
 0x42f   :  { %v12501_v18 = vpop.eup %10793 }
 0x43c   :  { %1096 = vadd.xlane.f32.xlu0 %v12481_v38  ;;  %v1035_v46 = vpop.xlane.xlu1 %1034 }
 0x43d   :  { %v1051_v60 = vsub.f32 %v12436_v52, %v1035_v46 }
 0x43f   :  { %v1082_v30 = vmul.f32 1.442695, %v1051_v60  ;;  %1092 = vadd.xlane.f32.xlu1 %v12486_v55 }
 0x440   :  { %1094 = vadd.xlane.f32.xlu0 %v12488_v7  ;;  %v1031_v13 = vpop.xlane.xlu1 %1030 }
 0x441   :  { %10799 = vpow2.f32 %v1082_v30  ;;  %v1049_v45 = vsub.f32 %v12445_v20, %v1031_v13  ;;  %v12505_v20 = vpop.eup %10795 }
 0x442   :  { %10801 = vpow2.f32 %v1070_v3  ;;  %v12508_v5 = vpop.eup %10797 }
 0x443   :  { %1098 = vadd.xlane.f32.xlu1 %v12493_v54  ;;  %v1078_v52 = vmul.f32 1.442695, %v1049_v45  ;;  %v1347_v45 = vsel %vm826_vm1, %v12296_v57, 0 }
 0x444   :  { %1112 = vadd.xlane.f32.xlu0 %v12495_v44 }
 0x445   :  { %10803 = vpow2.f32 %v1078_v52 }
 0x447   :  { %1104 = vadd.xlane.f32.xlu1 %v12499_v22 }
 0x448   :  { %1108 = vadd.xlane.f32.xlu0 %v12501_v18 }
 0x44b   :  { %1100 = vadd.xlane.f32.xlu1 %v12505_v20 }
 0x44e   :  { %v12510_v49 = vpop.eup %10799 }
 0x44f   :  { %1106 = vadd.xlane.f32.xlu1 %v12508_v5  ;;  %1114 = vadd.xlane.f32.xlu0 %v12510_v49  ;;  %v12514_v0 = vpop.eup %10801 }
 0x452   :  { %v12517_v14 = vpop.eup %10803 }
 0x453   :  { %1102 = vadd.xlane.f32.xlu1 %v12514_v0 }
 0x457   :  { %1110 = vadd.xlane.f32.xlu1 %v12517_v14 }
 0x465   :  { %1287 = vrot.lane.b32.xlu0 %v12126_v33, %s11639_s27 }
 0x468   :  { %1285 = vrot.lane.b32.xlu1 %v12257_v37, %s11639_s27 }
 0x469   :  { %1261 = vrot.lane.b32.xlu0 %v12131_v41, %s11639_s27 }
 0x46c   :  { %1263 = vrot.lane.b32.xlu1 %v12124_v32, %s11639_s27 }
 0x46d   :  { %1265 = vrot.lane.b32.xlu0 %v12147_v56, %s11639_s27 }
 0x470   :  { %1267 = vrot.lane.b32.xlu1 %v12144_v28, %s11639_s27 }
 0x471   :  { %1269 = vrot.lane.b32.xlu0 %v12155_v50, %s11639_s27 }
 0x474   :  { %1271 = vrot.lane.b32.xlu1 %v12152_v15, %s11639_s27 }
 0x475   :  { %1273 = vrot.lane.b32.xlu0 %v12171_v51, %s11639_s27 }
 0x478   :  { %1275 = vrot.lane.b32.xlu1 %v12163_v42, %s11639_s27 }
 0x47c   :  { %1650 = vrot.lane.b32.xlu1 %v12228_v26, %s11639_s27 }
 0x48b   :  { %v1089_v31 = vpop.xlane.xlu0 %1088 }
 0x48f   :  { %v1091_v9 = vpop.xlane.xlu1 %1090 }
 0x490   :  { %v1085_v17 = vpop.xlane.xlu0 %1084  ;;  %10805 = vrcp.f32 %v1091_v9 }
 0x491   :  { %10807 = vrcp.f32 %v1085_v17 }
 0x492   :  { %10809 = vrcp.f32 %v1089_v31 }
 0x493   :  { %v1087_v11 = vpop.xlane.xlu1 %1086 }
 0x494   :  { %10811 = vrcp.f32 %v1087_v11  ;;  %v1292_v57 = vpop.permute.xlu0 %1291 }
 0x49d   :  { %v10806_v10 = vpop.eup %10805 }
 0x49e   :  { %v10808_v19 = vpop.eup %10807  ;;  %v1135_v46 = vmul.f32 %v10806_v10, %v12457_v21  ;;  %v1344_v21 = vsel %vm826_vm1, %v12448_v8, 0 }
 0x49f   :  { %v10810_v29 = vpop.eup %10809  ;;  %v1132_v12 = vmul.f32 %v10808_v19, %v12459_v59  ;;  %v1341_v59 = vsel %vm826_vm1, %v1296_v1, 0 }
 0x4a0   :  { %v1134_v30 = vmul.f32 %v10810_v29, %v12454_v27  ;;  %v1338_v27 = vsel %vm826_vm1, %v12479_v53, 0 }
 0x4a1   :  { %v10812_v2 = vpop.eup %10811 }
 0x4a2   :  { %v1133_v60 = vmul.f32 %v10812_v2, %v12463_v63  ;;  %v1149_v3 = vpack.c.bf16 %v1135_v46, %v1134_v30  ;;  %v1290_v63 = vpop.permute.xlu1 %1289 }
 0x4a4   :  { %v1148_v13 = vpack.c.bf16 %v1133_v60, %v1132_v12 }
 0x4a6   :  { %9785 = vmatprep.mubr.bf16.mxu0 %v1148_v13 }
 0x4a7   :  { %9786 = vmatmul.mubr.bf16.vlgmr.msra.gmra.mxu0 %v1149_v3 }
 0x4a8   :  { %9802 = vmatpush3.bf16.xpose.msra.mxu0 %v1347_v45 }
 0x4a9   :  { %10649 = vmatprep.subr.msk.bf16.mxu0 %vm826_vm1, %v12448_v8  ;;  %v1335_v8 = vsel %vm826_vm1, %v1292_v57, 0 }
 0x4b0   :  { %9804 = vmatpush3.bf16.xpose.msra.mxu0 %v1344_v21 }
 0x4b1   :  { %10650 = vmatprep.subr.msk.bf16.mxu0 %vm826_vm1, %v1296_v1 }
 0x4b8   :  { %9806 = vmatpush3.bf16.xpose.msra.mxu0 %v1341_v59 }
 0x4b9   :  { %10651 = vmatprep.subr.msk.bf16.mxu0 %vm826_vm1, %v12479_v53  ;;  %v1332_v53 = vsel %vm826_vm1, %v1290_v63, 0 }
 0x4c0   :  { %9808 = vmatpush3.bf16.xpose.msra.mxu0 %v1338_v27 }
 0x4c1   :  { %10652 = vmatprep.subr.msk.bf16.mxu0 %vm826_vm1, %v1292_v57 }
 0x4c5   :  { %v1097_v52 = vpop.xlane.xlu0 %1096 }
 0x4c8   :  { %9810 = vmatpush3.bf16.xpose.msra.mxu0 %v1335_v8  ;;  %v1093_v31 = vpop.xlane.xlu1 %1092 }
 0x4c9   :  { %10813 = vrcp.f32 %v1093_v31  ;;  %10653 = vmatprep.subr.msk.bf16.mxu0 %vm826_vm1, %v1290_v63  ;;  %v1095_v1 = vpop.xlane.xlu0 %1094 }
 0x4ca   :  { %10815 = vrcp.f32 %v1095_v1 }
 0x4cb   :  { %10817 = vrcp.f32 %v1097_v52 }
 0x4cc   :  { %v1099_v9 = vpop.xlane.xlu1 %1098 }
 0x4cd   :  { %10819 = vrcp.f32 %v1099_v9  ;;  %v1113_v17 = vpop.xlane.xlu0 %1112 }
 0x4d0   :  { %9812 = vmatpush3.bf16.xpose.msra.mxu0 %v1332_v53  ;;  %v1105_v11 = vpop.xlane.xlu1 %1104 }
 0x4d1   :  { %v1109_v10 = vpop.xlane.xlu0 %1108 }
 0x4d4   :  { %v1101_v19 = vpop.xlane.xlu1 %1100 }
 0x4d6   :  { %v10814_v29 = vpop.eup %10813 }
 0x4d7   :  { %v10816_v2 = vpop.eup %10815  ;;  %v1136_v46 = vmul.f32 %v10814_v29, %v12486_v55 }
 0x4d8   :  { %v10818_v12 = vpop.eup %10817  ;;  %v1107_v60 = vpop.xlane.xlu1 %1106  ;;  %v1137_v13 = vmul.f32 %v10816_v2, %v12488_v7 }
 0x4d9   :  { %v1115_v30 = vpop.xlane.xlu0 %1114  ;;  %10821 = vrcp.f32 %v1107_v60  ;;  %v1138_v21 = vmul.f32 %v10818_v12, %v12481_v38 }
 0x4da   :  { %v10820_v3 = vpop.eup %10819  ;;  %v1150_v45 = vpack.c.bf16 %v1137_v13, %v1136_v46  ;;  %10823 = vrcp.f32 %v1101_v19 }
 0x4db   :  { %v1139_v59 = vmul.f32 %v10820_v3, %v12493_v54  ;;  %10825 = vrcp.f32 %v1105_v11 }
 0x4dc   :  { %9789 = vmatprep.mubr.bf16.mxu0 %v1150_v45  ;;  %v1103_v27 = vpop.xlane.xlu1 %1102 }
 0x4dd   :  { %v1288_v57 = vpop.permute.xlu0 %1287  ;;  %10827 = vrcp.f32 %v1103_v27  ;;  %v1151_v63 = vpack.c.bf16 %v1139_v59, %v1138_v21 }
 0x4de   :  { %10654 = vmatprep.subr.msk.bf16.mxu0 %vm826_vm1, %v1288_v57  ;;  %v1329_v55 = vsel %vm826_vm1, %v1288_v57, 0  ;;  %10829 = vrcp.f32 %v1109_v10 }
 0x4df   :  { %9814 = vmatpush3.bf16.xpose.msra.mxu0 %v1329_v55 }
 0x4e0   :  { %9790 = vmatmul.mubr.bf16.gmra.mxu0 %v1151_v63  ;;  %v1111_v7 = vpop.xlane.xlu1 %1110 }
 0x4e1   :  { %10831 = vrcp.f32 %v1111_v7 }
 0x4e2   :  { %10833 = vrcp.f32 %v1115_v30 }
 0x4e3   :  { %10835 = vrcp.f32 %v1113_v17  ;;  %v798_v17 = vld [vmem:[%s16600_s10] sm:$0xff] }
 0x4e4   :  { %v1286_v38 = vpop.permute.xlu1 %1285 }
 0x4e5   :  { %10655 = vmatprep.subr.msk.bf16.mxu0 %vm826_vm1, %v1286_v38  ;;  %v1326_v54 = vsel %vm826_vm1, %v1286_v38, 0 }
 0x4e6   :  { %v10822_v52 = vpop.eup %10821 }
 0x4e7   :  { %9816 = vmatpush3.bf16.xpose.msra.mxu0 %v1326_v54  ;;  %v10824_v8 = vpop.eup %10823  ;;  %v1143_v9 = vmul.f32 %v10822_v52, %v12508_v5 }
 0x4e8   :  { %v10826_v31 = vpop.eup %10825  ;;  %v1140_v53 = vmul.f32 %v10824_v8, %v12505_v20  ;;  %9891 = vmatprep.subr.mxu0 %v798_v17  ;;  %v1264_v45 = vpop.permute.xlu1 %1263 }
 0x4e9   :  { %v1142_v19 = vmul.f32 %v10826_v31, %v12499_v22  ;;  %v1262_v22 = vpop.permute.xlu0 %1261 }
 0x4ea   :  { %v10828_v1 = vpop.eup %10827 }
 0x4eb   :  { %v1141_v11 = vmul.f32 %v10828_v1, %v12514_v0  ;;  %v10830_v10 = vpop.eup %10829  ;;  %v1153_v46 = vpack.c.bf16 %v1143_v9, %v1142_v19 }
 0x4ec   :  { %v1144_v60 = vmul.f32 %v10830_v10, %v12501_v18  ;;  %v1268_v18 = vpop.permute.xlu1 %1267 }
 0x4ed   :  { %v1152_v29 = vpack.c.bf16 %v1141_v11, %v1140_v53  ;;  %v1266_v21 = vpop.permute.xlu0 %1265 }
 0x4ee   :  { %v10832_v2 = vpop.eup %10831 }
 0x4ef   :  { %v10834_v12 = vpop.eup %10833  ;;  %9793 = vmatprep.mubr.bf16.mxu0 %v1152_v29  ;;  %v1145_v5 = vmul.f32 %v10832_v2, %v12517_v14 }
 0x4f0   :  { %9794 = vmatmul.mubr.bf16.gmra.mxu0 %v1153_v46  ;;  %v10836_v20 = vpop.eup %10835  ;;  %v1147_v30 = vmul.f32 %v10834_v12, %v12510_v49  ;;  %v1272_v49 = vpop.permute.xlu1 %1271 }
 0x4f1   :  { %v1154_v0 = vpack.c.bf16 %v1145_v5, %v1144_v60  ;;  %v1146_v13 = vmul.f32 %v10836_v20, %v12495_v44  ;;  %v1270_v14 = vpop.permute.xlu0 %1269 }
 0x4f3   :  { %9797 = vmatprep.mubr.bf16.mxu0 %v1154_v0  ;;  %v1155_v3 = vpack.c.bf16 %v1147_v30, %v1146_v13 }
 0x4f4   :  { %v1276_v59 = vpop.permute.xlu1 %1275 }
 0x4f5   :  { %v1274_v44 = vpop.permute.xlu0 %1273 }
 0x4f8   :  { %9798 = vmatmul.mubr.bf16.gmra.mxu0 %v1155_v3 }
 0x4f9   :  { %9817 = vmatprep.mubr.msk.bf16.mxu0 %vm826_vm1, %v1262_v22 }
 0x500   :  { %9818 = vmatmul.mubr.msk.bf16.vlgmr.msra.gmra.mxu0 %vm826_vm1, %v1264_v45 }
 0x501   :  { %9821 = vmatprep.mubr.msk.bf16.mxu0 %vm826_vm1, %v1266_v21  ;;  %9892 = vmatpush3.msra.mxu0 %v798_v17 }
 0x508   :  { %9822 = vmatmul.mubr.msk.bf16.gmra.mxu0 %vm826_vm1, %v1268_v18 }
 0x509   :  { %9825 = vmatprep.mubr.msk.bf16.mxu0 %vm826_vm1, %v1270_v14 }
 0x510   :  { %9826 = vmatmul.mubr.msk.bf16.gmra.mxu0 %vm826_vm1, %v1272_v49 }
 0x511   :  { %9829 = vmatprep.mubr.msk.bf16.mxu0 %vm826_vm1, %v1274_v44 }
 0x518   :  { %9830 = vmatmul.mubr.msk.bf16.gmra.mxu0 %vm826_vm1, %v1276_v59 }
 0x567   :  { %v9787_v27 = vpop.f32.mrf.mxu0 }
 0x569   :  { %v1190_v57 = vpop.f32.mrf.mxu0 }
 0x56a   :  { %9893 = vmatprep.mubr.msk.f32.mxu0 %vm826_vm1, %v1190_v57 }
 0x56b   :  { %v9788_v55 = vpop.f32.mrf.mxu0 }
 0x56d   :  { %v1193_v63 = vpop.f32.mrf.mxu0 }
 0x56e   :  { %9894 = vmatmul.mubr.msk.f32.vlgmr.msra.gmra.mxu0 %vm826_vm1, %v1193_v63 }
 0x56f   :  { %9896 = vmatprep.mubr.msk.f32.mxu0 %vm826_vm1, %v9787_v27 }
 0x572   :  { %9897 = vmatmul.mubr.msk.f32.gmra.mxu0 %vm826_vm1, %v9788_v55 }
 0x5a0   :  { %v9791_v7 = vpop.f32.mrf.mxu0 }
 0x5a2   :  { %v1206_v38 = vpop.f32.mrf.mxu0 }
 0x5a3   :  { %9899 = vmatprep.mubr.msk.f32.mxu0 %vm826_vm1, %v1206_v38 }
 0x5a4   :  { %v9792_v54 = vpop.f32.mrf.mxu0 }
 0x5a6   :  { %v1209_v52 = vpop.f32.mrf.mxu0 }
 0x5a7   :  { %9900 = vmatmul.mubr.msk.f32.gmra.mxu0 %vm826_vm1, %v1209_v52 }
 0x5a8   :  { %9902 = vmatprep.mubr.msk.f32.mxu0 %vm826_vm1, %v9791_v7 }
 0x5ab   :  { %9903 = vmatmul.mubr.msk.f32.gmra.mxu0 %vm826_vm1, %v9792_v54 }
 0x5b0   :  { %v9795_v8 = vpop.f32.mrf.mxu0 }
 0x5b2   :  { %v1222_v31 = vpop.f32.mrf.mxu0 }
 0x5b3   :  { %9905 = vmatprep.mubr.msk.f32.mxu0 %vm826_vm1, %v1222_v31 }
 0x5b4   :  { %v9796_v1 = vpop.f32.mrf.mxu0 }
 0x5b6   :  { %v1225_v9 = vpop.f32.mrf.mxu0 }
 0x5b7   :  { %9906 = vmatmul.mubr.msk.f32.gmra.mxu0 %vm826_vm1, %v1225_v9 }
 0x5b8   :  { %v9799_v53 = vpop.f32.mrf.mxu0  ;;  %9908 = vmatprep.mubr.msk.f32.mxu0 %vm826_vm1, %v9795_v8 }
 0x5ba   :  { %v1238_v11 = vpop.f32.mrf.mxu0 }
 0x5bb   :  { %9909 = vmatmul.mubr.msk.f32.gmra.mxu0 %vm826_vm1, %v9796_v1 }
 0x5bc   :  { %v9800_v17 = vpop.f32.mrf.mxu0  ;;  %9911 = vmatprep.mubr.msk.f32.mxu0 %vm826_vm1, %v1238_v11 }
 0x5be   :  { %v1241_v10 = vpop.f32.mrf.mxu0 }
 0x5bf   :  { %9912 = vmatmul.mubr.msk.f32.gmra.mxu0 %vm826_vm1, %v1241_v10 }
 0x5c0   :  { %v9819_v19 = vpop.f32.mrf.mxu0  ;;  %9914 = vmatprep.mubr.msk.f32.mxu0 %vm826_vm1, %v9799_v53 }
 0x5c1   :  { %v1448_v29 = vmul.f32 0.35355338, %v9819_v19 }
 0x5c2   :  { %v1383_v2 = vpop.f32.mrf.mxu0 }
 0x5c3   :  { %v1446_v46 = vmul.f32 0.35355338, %v1383_v2  ;;  %9915 = vmatmul.mubr.msk.f32.gmra.mxu0 %vm826_vm1, %v9800_v17  ;;  %v12606_v12 = vadd.f32 %v1448_v29, %v12303_v39  ;;  %v16732_v29 = vld [vmem:[#allocation38_spill] sm:$0xff]  ;;  %v16734_v2 = vld [vmem:[#allocation40_spill] sm:$0xff] }
 0x5c4   :  { %v9820_v60 = vpop.f32.mrf.mxu0 }
 0x5c5   :  { %1482 = vmax.xlane.f32.xlu0 %v12606_v12  ;;  %v1449_v20 = vmul.f32 0.35355338, %v9820_v60  ;;  %v12610_v30 = vadd.f32 %v1446_v46, %v12316_v62  ;;  %v1651_v60 = vpop.permute.xlu1 %1650 }
 0x5c6   :  { %v1386_v5 = vpop.f32.mrf.mxu0 }
 0x5c7   :  { %v1447_v0 = vmul.f32 0.35355338, %v1386_v5  ;;  %v12618_v39 = vadd.f32 %v1449_v20, %v12311_v6 }
 0x5c8   :  { %v9823_v13 = vpop.f32.mrf.mxu0 }
 0x5c9   :  { %1478 = vmax.xlane.f32.xlu0 %v12610_v30  ;;  %v12614_v3 = vadd.f32 %v1447_v0, %v12328_v24 }
 0x5ca   :  { %v1399_v22 = vpop.f32.mrf.mxu0 }
 0x5cb   :  { %1480 = vmax.xlane.f32.xlu1 %v12614_v3  ;;  %v1450_v31 = vmul.f32 0.35355338, %v1399_v22 }
 0x5cc   :  { %v9824_v45 = vpop.f32.mrf.mxu0 }
 0x5cd   :  { %v1453_v21 = vmul.f32 0.35355338, %v9824_v45  ;;  %1484 = vmax.xlane.f32.xlu0 %v12618_v39  ;;  %v1466_v9 = vadd.f32 %v1450_v31, %v12351_v61  ;;  %v16730_v61 = vld [vmem:[#allocation42_spill] sm:$0xff] }
 0x5ce   :  { %v1402_v18 = vpop.f32.mrf.mxu0 }
 0x5cf   :  { %v1451_v14 = vmul.f32 0.35355338, %v1402_v18  ;;  %v12622_v62 = vadd.f32 %v1453_v21, %v12346_v35 }
 0x5d0   :  { %v9827_v49 = vpop.f32.mrf.mxu0 }
 0x5d1   :  { %1492 = vmax.xlane.f32.xlu1 %v12622_v62  ;;  %v12626_v44 = vadd.f32 %v1451_v14, %v12364_v16 }
 0x5d2   :  { %v1415_v24 = vpop.f32.mrf.mxu0 }
 0x5d3   :  { %v1454_v53 = vmul.f32 0.35355338, %v1415_v24 }
 0x5d4   :  { %v9828_v59 = vpop.f32.mrf.mxu0 }
 0x5d5   :  { %v1457_v27 = vmul.f32 0.35355338, %v9828_v59  ;;  %1488 = vmax.xlane.f32.xlu1 %v12626_v44  ;;  %v12659_v17 = vadd.f32 %v1454_v53, %v12387_v58  ;;  %v16733_v58 = vld [vmem:[#allocation39_spill] sm:$0xff] }
 0x5d6   :  { %v1418_v6 = vpop.f32.mrf.mxu0 }
 0x5d7   :  { %v1455_v57 = vmul.f32 0.35355338, %v1418_v6  ;;  %v12630_v55 = vadd.f32 %v1457_v27, %v12382_v4  ;;  %v16735_v6 = vld [vmem:[#allocation41_spill] sm:$0xff] }
 0x5d8   :  { %v9831_v63 = vpop.f32.mrf.mxu0 }
 0x5d9   :  { %1500 = vmax.xlane.f32.xlu1 %v12630_v55  ;;  %v12634_v7 = vadd.f32 %v1455_v57, %v12400_v36  ;;  %v1452_v36 = vmul.f32 0.35355338, %v9823_v13  ;;  %v1460_v11 = vmul.f32 0.35355338, %v9831_v63 }
 0x5da   :  { %v1431_v35 = vpop.f32.mrf.mxu0 }
 0x5db   :  { %v12650_v1 = vadd.f32 %v1452_v36, %v12333_v40  ;;  %v1458_v40 = vmul.f32 0.35355338, %v1431_v35  ;;  %v12663_v10 = vadd.f32 %v1460_v11, %v12405_v25 }
 0x5dc   :  { %v9832_v38 = vpop.f32.mrf.mxu0 }
 0x5dd   :  { %v1461_v54 = vmul.f32 0.35355338, %v9832_v38  ;;  %1496 = vmax.xlane.f32.xlu1 %v12634_v7  ;;  %v12667_v19 = vadd.f32 %v1458_v40, %v16730_v61 }
 0x5de   :  { %v1434_v16 = vpop.f32.mrf.mxu0 }
 0x5df   :  { %v1459_v52 = vmul.f32 0.35355338, %v1434_v16  ;;  %v12638_v8 = vadd.f32 %v1461_v54, %v12433_v34  ;;  %v1456_v34 = vmul.f32 0.35355338, %v9827_v49 }
 0x5e1   :  { %1508 = vmax.xlane.f32.xlu1 %v12638_v8  ;;  %v12644_v4 = vadd.f32 %v1459_v52, %v12441_v43  ;;  %v12655_v43 = vadd.f32 %v1456_v34, %v12369_v48  ;;  %v16731_v48 = vld [vmem:[#allocation37_spill] sm:$0xff] }
 0x5e3   :  { %1652 = vrot.lane.b32.xlu0 %v12224_v47, %s11639_s27 }
 0x5e5   :  { %1504 = vmax.xlane.f32.xlu1 %v12644_v4 }
 0x5f6   :  { %1642 = vrot.lane.b32.xlu1 %v12260_v23, %s11639_s27 }
 0x602   :  { %1490 = vmax.xlane.f32.xlu0 %v12650_v1 }
 0x606   :  { %1486 = vmax.xlane.f32.xlu0 %v1466_v9 }
 0x60a   :  { %1498 = vmax.xlane.f32.xlu0 %v12655_v43 }
 0x60e   :  { %1494 = vmax.xlane.f32.xlu0 %v12659_v17 }
 0x612   :  { %1506 = vmax.xlane.f32.xlu0 %v12663_v10 }
 0x616   :  { %1502 = vmax.xlane.f32.xlu0 %v12667_v19 }
 0x62c   :  { %1648 = vrot.lane.b32.xlu0 %v16731_v48, %s11639_s27 }
 0x630   :  { %1646 = vrot.lane.b32.xlu0 %v16732_v29, %s11639_s27 }
 0x634   :  { %1644 = vrot.lane.b32.xlu0 %v16733_v58, %s11639_s27 }
 0x638   :  { %1640 = vrot.lane.b32.xlu0 %v16734_v2, %s11639_s27 }
 0x64e   :  { %v1483_v25 = vpop.xlane.xlu0 %1482 }
 0x64f   :  { %v1512_v46 = vsub.f32 %v12606_v12, %v1483_v25 }
 0x651   :  { %v1530_v5 = vmul.f32 1.442695, %v1512_v46 }
 0x652   :  { %v1479_v20 = vpop.xlane.xlu0 %1478 }
 0x653   :  { %10837 = vpow2.f32 %v1530_v5  ;;  %v1510_v0 = vsub.f32 %v12610_v30, %v1479_v20 }
 0x654   :  { %v1481_v13 = vpop.xlane.xlu1 %1480 }
 0x655   :  { %v1526_v22 = vmul.f32 1.442695, %v1510_v0  ;;  %v1511_v21 = vsub.f32 %v12614_v3, %v1481_v13 }
 0x656   :  { %v1485_v45 = vpop.xlane.xlu0 %1484 }
 0x657   :  { %10839 = vpow2.f32 %v1526_v22  ;;  %v1513_v18 = vsub.f32 %v12618_v39, %v1485_v45  ;;  %v1528_v24 = vmul.f32 1.442695, %v1511_v21 }
 0x659   :  { %v1532_v14 = vmul.f32 1.442695, %v1513_v18 }
 0x65a   :  { %v1653_v49 = vpop.permute.xlu0 %1652  ;;  %v1493_v59 = vpop.xlane.xlu1 %1492 }
 0x65b   :  { %10841 = vpow2.f32 %v1532_v14  ;;  %9833 = vmatprep.subr.bf16.mxu1 %v1653_v49  ;;  %v1517_v11 = vsub.f32 %v12622_v62, %v1493_v59 }
 0x65c   :  { %9834 = vmatpush3.bf16.msra.mxu1 %v1653_v49  ;;  %10843 = vpow2.f32 %v1528_v24 }
 0x65d   :  { %9835 = vmatprep.subr.bf16.mxu1 %v1651_v60 }
 0x65e   :  { %v1489_v27 = vpop.xlane.xlu1 %1488 }
 0x65f   :  { %v1515_v35 = vsub.f32 %v12626_v44, %v1489_v27  ;;  %v1540_v44 = vmul.f32 1.442695, %v1517_v11  ;;  %v16738_v11 = vld [vmem:[#allocation34_spill] sm:$0xff] }
 0x660   :  { %v12682_v12 = vpop.eup %10837  ;;  %9836 = vmatpush3.bf16.msra.mxu1 %v1651_v60 }
 0x661   :  { %1562 = vadd.xlane.f32.xlu1 %v12682_v12  ;;  %v1536_v16 = vmul.f32 1.442695, %v1515_v35 }
 0x662   :  { %v1501_v57 = vpop.xlane.xlu1 %1500 }
 0x663   :  { %10845 = vpow2.f32 %v1536_v16  ;;  %v1521_v25 = vsub.f32 %v12630_v55, %v1501_v57 }
 0x664   :  { %v12685_v30 = vpop.eup %10839 }
 0x665   :  { %1558 = vadd.xlane.f32.xlu1 %v12685_v30  ;;  %v1548_v20 = vmul.f32 1.442695, %v1521_v25  ;;  %v16741_v25 = vld [vmem:[#allocation35_spill] sm:$0xff] }
 0x666   :  { %v1497_v63 = vpop.xlane.xlu1 %1496 }
 0x667   :  { %v1519_v52 = vsub.f32 %v12634_v7, %v1497_v63 }
 0x668   :  { %v12688_v3 = vpop.eup %10841 }
 0x669   :  { %1564 = vadd.xlane.f32.xlu1 %v12688_v3  ;;  %v12691_v39 = vpop.eup %10843  ;;  %v1544_v40 = vmul.f32 1.442695, %v1519_v52 }
 0x66a   :  { %v1509_v54 = vpop.xlane.xlu1 %1508 }
 0x66b   :  { %v1525_v62 = vsub.f32 %v12638_v8, %v1509_v54 }
 0x66d   :  { %1560 = vadd.xlane.f32.xlu1 %v12691_v39  ;;  %v1556_v22 = vmul.f32 1.442695, %v1525_v62 }
 0x66e   :  { %v1505_v46 = vpop.xlane.xlu1 %1504 }
 0x66f   :  { %v1523_v5 = vsub.f32 %v12644_v4, %v1505_v46 }
 0x670   :  { %v12705_v21 = vpop.eup %10845 }
 0x67e   :  { %1638 = vrot.lane.b32.xlu1 %v16735_v6, %s11639_s27 }
 0x68b   :  { %v1491_v38 = vpop.xlane.xlu0 %1490 }
 0x68c   :  { %v1516_v31 = vsub.f32 %v12650_v1, %v1491_v38  ;;  %v1643_v38 = vpop.permute.xlu1 %1642 }
 0x68e   :  { %v1538_v60 = vmul.f32 1.442695, %v1516_v31 }
 0x68f   :  { %v1487_v36 = vpop.xlane.xlu0 %1486 }
 0x690   :  { %v1514_v34 = vsub.f32 %v1466_v9, %v1487_v36  ;;  %v1552_v9 = vmul.f32 1.442695, %v1523_v5 }
 0x692   :  { %v1534_v53 = vmul.f32 1.442695, %v1514_v34  ;;  %v16736_v34 = vld [vmem:[#allocation32_spill] sm:$0xff] }
 0x693   :  { %v1499_v61 = vpop.xlane.xlu0 %1498 }
 0x694   :  { %10847 = vpow2.f32 %v1534_v53  ;;  %v1520_v55 = vsub.f32 %v12655_v43, %v1499_v61  ;;  %v16737_v53 = vld [vmem:[#allocation33_spill] sm:$0xff]  ;;  %v16740_v61 = vld [vmem:[#allocation31_spill] sm:$0xff] }
 0x695   :  { %10849 = vpow2.f32 %v1544_v40  ;;  %v16739_v40 = vld [vmem:[#allocation36_spill] sm:$0xff] }
 0x696   :  { %10851 = vpow2.f32 %v1538_v60  ;;  %v1546_v4 = vmul.f32 1.442695, %v1520_v55 }
 0x697   :  { %v1495_v7 = vpop.xlane.xlu0 %1494  ;;  %10853 = vpow2.f32 %v1540_v44 }
 0x698   :  { %v1518_v1 = vsub.f32 %v12659_v17, %v1495_v7  ;;  %10855 = vpow2.f32 %v1548_v20  ;;  %v799_v20 = vld [vmem:[%s16600_s10 + $0x8] sm:$0xff] }
 0x699   :  { %10857 = vpow2.f32 %v1552_v9 }
 0x69a   :  { %v1542_v13 = vmul.f32 1.442695, %v1518_v1 }
 0x69b   :  { %v1507_v0 = vpop.xlane.xlu0 %1506 }
 0x69c   :  { %10859 = vpow2.f32 %v1542_v13  ;;  %v1524_v43 = vsub.f32 %v12663_v10, %v1507_v0 }
 0x69d   :  { %10861 = vpow2.f32 %v1556_v22 }
 0x69e   :  { %10863 = vpow2.f32 %v1546_v4  ;;  %v1554_v27 = vmul.f32 1.442695, %v1524_v43 }
 0x69f   :  { %v1503_v45 = vpop.xlane.xlu0 %1502 }
 0x6a0   :  { %v1522_v18 = vsub.f32 %v12667_v19, %v1503_v45 }
 0x6a1   :  { %v12708_v14 = vpop.eup %10847 }
 0x6a2   :  { %1568 = vadd.xlane.f32.xlu1 %v12705_v21  ;;  %1566 = vadd.xlane.f32.xlu0 %v12708_v14  ;;  %v12712_v17 = vpop.eup %10849  ;;  %v1550_v49 = vmul.f32 1.442695, %v1522_v18 }
 0x6a3   :  { %v1649_v8 = vpop.permute.xlu0 %1648  ;;  %v12715_v24 = vpop.eup %10851 }
 0x6a4   :  { %9837 = vmatprep.subr.bf16.mxu1 %v1649_v8  ;;  %v12719_v59 = vpop.eup %10853  ;;  %10865 = vpow2.f32 %v1550_v49 }
 0x6a5   :  { %9838 = vmatpush3.bf16.msra.mxu1 %v1649_v8  ;;  %v12721_v57 = vpop.eup %10855  ;;  %10867 = vpow2.f32 %v1554_v27 }
 0x6a6   :  { %1576 = vadd.xlane.f32.xlu1 %v12712_v17  ;;  %1570 = vadd.xlane.f32.xlu0 %v12715_v24  ;;  %v12725_v63 = vpop.eup %10857 }
 0x6a7   :  { %v1647_v19 = vpop.permute.xlu0 %1646 }
 0x6a8   :  { %9839 = vmatprep.subr.bf16.mxu1 %v1647_v19 }
 0x6a9   :  { %9840 = vmatpush3.bf16.msra.mxu1 %v1647_v19  ;;  %v12727_v35 = vpop.eup %10859 }
 0x6aa   :  { %1580 = vadd.xlane.f32.xlu1 %v12721_v57  ;;  %1572 = vadd.xlane.f32.xlu0 %v12719_v59  ;;  %v12731_v54 = vpop.eup %10861 }
 0x6ab   :  { %v1645_v10 = vpop.permute.xlu0 %1644  ;;  %v12733_v16 = vpop.eup %10863 }
 0x6ac   :  { %9841 = vmatprep.subr.bf16.mxu1 %v1645_v10 }
 0x6ad   :  { %9842 = vmatpush3.bf16.msra.mxu1 %v1645_v10 }
 0x6ae   :  { %1584 = vadd.xlane.f32.xlu1 %v12725_v63  ;;  %1574 = vadd.xlane.f32.xlu0 %v12727_v35 }
 0x6af   :  { %9843 = vmatprep.subr.bf16.mxu1 %v1643_v38  ;;  %v1641_v52 = vpop.permute.xlu0 %1640 }
 0x6b1   :  { %9844 = vmatpush3.bf16.msra.mxu1 %v1643_v38  ;;  %v12737_v36 = vpop.eup %10865 }
 0x6b2   :  { %1588 = vadd.xlane.f32.xlu1 %v12731_v54  ;;  %1578 = vadd.xlane.f32.xlu0 %v12733_v16  ;;  %v12740_v31 = vpop.eup %10867 }
 0x6b3   :  { %9845 = vmatprep.subr.bf16.mxu1 %v1641_v52 }
 0x6b5   :  { %9846 = vmatpush3.bf16.msra.mxu1 %v1641_v52 }
 0x6b6   :  { %1582 = vadd.xlane.f32.xlu0 %v12737_v36 }
 0x6ba   :  { %1586 = vadd.xlane.f32.xlu0 %v12740_v31 }
 0x6c3   :  { %2173 = vrot.lane.b32.xlu1 %v16736_v34, %s11640_s14 }
 0x6c7   :  { %2171 = vrot.lane.b32.xlu1 %v16737_v53, %s11640_s14 }
 0x6cb   :  { %2169 = vrot.lane.b32.xlu1 %v16738_v11, %s11640_s14 }
 0x6cf   :  { %2165 = vrot.lane.b32.xlu1 %v16739_v40, %s11640_s14 }
 0x6d0   :  { %2175 = vrot.lane.b32.xlu0 %v16740_v61, %s11640_s14 }
 0x6d3   :  { %2161 = vrot.lane.b32.xlu1 %v12257_v37, %s11640_s14 }
 0x6d4   :  { %2167 = vrot.lane.b32.xlu0 %v16741_v25, %s11640_s14 }
 0x6d7   :  { %2147 = vrot.lane.b32.xlu1 %v12124_v32, %s11640_s14 }
 0x6d8   :  { %2163 = vrot.lane.b32.xlu0 %v12126_v33, %s11640_s14 }
 0x6db   :  { %2151 = vrot.lane.b32.xlu1 %v12144_v28, %s11640_s14 }
 0x6dc   :  { %2145 = vrot.lane.b32.xlu0 %v12131_v41, %s11640_s14 }
 0x6df   :  { %2155 = vrot.lane.b32.xlu1 %v12152_v15, %s11640_s14 }
 0x6e0   :  { %2149 = vrot.lane.b32.xlu0 %v12147_v56, %s11640_s14 }
 0x6e3   :  { %2159 = vrot.lane.b32.xlu1 %v12163_v42, %s11640_s14 }
 0x6e4   :  { %2153 = vrot.lane.b32.xlu0 %v12155_v50, %s11640_s14 }
 0x6e7   :  { %2864 = vrot.lane.b32.xlu1 %v16736_v34, %s11641_s22 }
 0x6e8   :  { %2157 = vrot.lane.b32.xlu0 %v12171_v51, %s11640_s14 }
 0x6ea   :  { %v1563_v46 = vpop.xlane.xlu1 %1562 }
 0x6eb   :  { %2860 = vrot.lane.b32.xlu1 %v16738_v11, %s11641_s22 }
 0x6ec   :  { %2866 = vrot.lane.b32.xlu0 %v16740_v61, %s11641_s22 }
 0x6ee   :  { %v1559_v60 = vpop.xlane.xlu1 %1558 }
 0x6ef   :  { %2856 = vrot.lane.b32.xlu1 %v16739_v40, %s11641_s22 }
 0x6f0   :  { %2862 = vrot.lane.b32.xlu0 %v16737_v53, %s11641_s22 }
 0x6f2   :  { %v1565_v44 = vpop.xlane.xlu1 %1564 }
 0x6f3   :  { %2852 = vrot.lane.b32.xlu1 %v12257_v37, %s11641_s22  ;;  %10869 = vrcp.f32 %v1565_v44 }
 0x6f4   :  { %2858 = vrot.lane.b32.xlu0 %v16741_v25, %s11641_s22  ;;  %10871 = vrcp.f32 %v1559_v60 }
 0x6f5   :  { %10873 = vrcp.f32 %v1563_v46 }
 0x6f6   :  { %v1561_v5 = vpop.xlane.xlu1 %1560 }
 0x6f7   :  { %10875 = vrcp.f32 %v1561_v5  ;;  %2838 = vrot.lane.b32.xlu1 %v12124_v32, %s11641_s22 }
 0x6f8   :  { %2854 = vrot.lane.b32.xlu0 %v12126_v33, %s11641_s22 }
 0x6fa   :  { %v1639_v7 = vpop.permute.xlu1 %1638 }
 0x6fb   :  { %2842 = vrot.lane.b32.xlu1 %v12144_v28, %s11641_s22  ;;  %9847 = vmatprep.subr.bf16.mxu1 %v1639_v7 }
 0x6fc   :  { %2836 = vrot.lane.b32.xlu0 %v12131_v41, %s11641_s22  ;;  %9848 = vmatpush3.bf16.msra.mxu1 %v1639_v7 }
 0x6fd   :  { %9865 = vmatprep.subr.mxu1 %v799_v20 }
 0x6ff   :  { %2846 = vrot.lane.b32.xlu1 %v12152_v15, %s11641_s22 }
 0x700   :  { %2840 = vrot.lane.b32.xlu0 %v12147_v56, %s11641_s22  ;;  %v10870_v32 = vpop.eup %10869 }
 0x701   :  { %v10872_v33 = vpop.eup %10871  ;;  %v1609_v41 = vmul.f32 %v10870_v32, %v12688_v3 }
 0x702   :  { %v10874_v37 = vpop.eup %10873  ;;  %v1606_v28 = vmul.f32 %v10872_v33, %v12685_v30 }
 0x703   :  { %2850 = vrot.lane.b32.xlu1 %v12163_v42, %s11641_s22  ;;  %v1608_v15 = vmul.f32 %v10874_v37, %v12682_v12 }
 0x704   :  { %v10876_v1 = vpop.eup %10875  ;;  %2844 = vrot.lane.b32.xlu0 %v12155_v50, %s11641_s22 }
 0x705   :  { %v1607_v62 = vmul.f32 %v10876_v1, %v12691_v39  ;;  %v1623_v42 = vpack.c.bf16 %v1609_v41, %v1608_v15 }
 0x707   :  { %2518 = vrot.lane.b32.xlu1 %v12228_v26, %s11640_s14  ;;  %v1622_v56 = vpack.c.bf16 %v1607_v62, %v1606_v28 }
 0x708   :  { %2848 = vrot.lane.b32.xlu0 %v12171_v51, %s11641_s22 }
 0x709   :  { %9849 = vmatprep.mubr.bf16.mxu1 %v1622_v56 }
 0x70a   :  { %9850 = vmatmul.mubr.bf16.vlgmr.msra.gmra.mxu1 %v1623_v42 }
 0x70b   :  { %9866 = vmatpush3.msra.mxu1 %v799_v20 }
 0x70c   :  { %2520 = vrot.lane.b32.xlu0 %v12224_v47, %s11640_s14 }
 0x710   :  { %2516 = vrot.lane.b32.xlu0 %v16731_v48, %s11640_s14 }
 0x72b   :  { %v1569_v50 = vpop.xlane.xlu1 %1568  ;;  %v1567_v30 = vpop.xlane.xlu0 %1566 }
 0x72c   :  { %10877 = vrcp.f32 %v1569_v50 }
 0x72d   :  { %10879 = vrcp.f32 %v1567_v30 }
 0x72f   :  { %v1577_v12 = vpop.xlane.xlu1 %1576  ;;  %v1571_v3 = vpop.xlane.xlu0 %1570 }
 0x730   :  { %10881 = vrcp.f32 %v1571_v3 }
 0x733   :  { %v1581_v39 = vpop.xlane.xlu1 %1580  ;;  %v1573_v9 = vpop.xlane.xlu0 %1572 }
 0x734   :  { %10883 = vrcp.f32 %v1573_v9 }
 0x735   :  { %10885 = vrcp.f32 %v1577_v12 }
 0x737   :  { %v1585_v51 = vpop.xlane.xlu1 %1584  ;;  %v1575_v0 = vpop.xlane.xlu0 %1574 }
 0x738   :  { %10887 = vrcp.f32 %v1575_v0 }
 0x739   :  { %v10878_v55 = vpop.eup %10877  ;;  %10889 = vrcp.f32 %v1581_v39 }
 0x73a   :  { %v10880_v13 = vpop.eup %10879  ;;  %v1611_v22 = vmul.f32 %v10878_v55, %v12705_v21 }
 0x73b   :  { %v1589_v45 = vpop.xlane.xlu1 %1588  ;;  %v1579_v4 = vpop.xlane.xlu0 %1578  ;;  %v1610_v18 = vmul.f32 %v10880_v13, %v12708_v14 }
 0x73c   :  { %10891 = vrcp.f32 %v1579_v4 }
 0x73d   :  { %v1624_v8 = vpack.c.bf16 %v1611_v22, %v1610_v18  ;;  %10893 = vrcp.f32 %v1585_v51  ;;  %v10882_v19 = vpop.eup %10881 }
 0x73e   :  { %v1612_v21 = vmul.f32 %v10882_v19, %v12715_v24 }
 0x73f   :  { %9853 = vmatprep.mubr.bf16.mxu1 %v1624_v8  ;;  %v12822_v43 = vpop.permute.xlu1 %2173  ;;  %v1583_v49 = vpop.xlane.xlu0 %1582 }
 0x740   :  { %10895 = vrcp.f32 %v1583_v49 }
 0x741   :  { %v10884_v27 = vpop.eup %10883  ;;  %10897 = vrcp.f32 %v1589_v45 }
 0x742   :  { %v1613_v52 = vmul.f32 %v10884_v27, %v12719_v59  ;;  %v10886_v34 = vpop.eup %10885 }
 0x743   :  { %v12824_v10 = vpop.permute.xlu1 %2171  ;;  %v1587_v38 = vpop.xlane.xlu0 %1586  ;;  %v1615_v25 = vmul.f32 %v10886_v34, %v12712_v17 }
 0x744   :  { %10899 = vrcp.f32 %v1587_v38  ;;  %v1625_v14 = vpack.c.bf16 %v1613_v52, %v1612_v21 }
 0x745   :  { %v10888_v53 = vpop.eup %10887 }
 0x746   :  { %9854 = vmatmul.mubr.bf16.gmra.mxu1 %v1625_v14  ;;  %v1614_v61 = vmul.f32 %v10888_v53, %v12727_v35  ;;  %v10890_v46 = vpop.eup %10889 }
 0x747   :  { %v12828_v11 = vpop.permute.xlu1 %2169  ;;  %v12830_v40 = vpop.permute.xlu0 %2175  ;;  %v1617_v20 = vmul.f32 %v10890_v46, %v12721_v57  ;;  %v2220_v46 = vsel %vm826_vm1, %v12822_v43, 0 }
 0x748   :  { %10656 = vmatprep.subr.msk.bf16.mxu1 %vm826_vm1, %v12830_v40  ;;  %v1626_v24 = vpack.c.bf16 %v1615_v25, %v1614_v61  ;;  %v2223_v25 = vsel %vm826_vm1, %v12830_v40, 0  ;;  %v2214_v40 = vsel %vm826_vm1, %v12828_v11, 0 }
 0x749   :  { %v10892_v60 = vpop.eup %10891 }
 0x74a   :  { %v10894_v59 = vpop.eup %10893  ;;  %9857 = vmatprep.mubr.bf16.mxu1 %v1626_v24  ;;  %v1616_v7 = vmul.f32 %v10892_v60, %v12733_v16  ;;  %v2217_v24 = vsel %vm826_vm1, %v12824_v10, 0 }
 0x74b   :  { %v12836_v44 = vpop.permute.xlu1 %2165  ;;  %v12838_v5 = vpop.permute.xlu0 %2167  ;;  %v1619_v33 = vmul.f32 %v10894_v59, %v12725_v63 }
 0x74c   :  { %v1627_v35 = vpack.c.bf16 %v1617_v20, %v1616_v7 }
 0x74d   :  { %v10896_v32 = vpop.eup %10895 }
 0x74e   :  { %v1618_v17 = vmul.f32 %v10896_v32, %v12737_v36  ;;  %v10898_v37 = vpop.eup %10897  ;;  %9858 = vmatmul.mubr.bf16.gmra.mxu1 %v1627_v35 }
 0x74f   :  { %v12844_v1 = vpop.permute.xlu1 %2161  ;;  %v12846_v41 = vpop.permute.xlu0 %2163  ;;  %v1621_v16 = vmul.f32 %v10898_v37, %v12731_v54 }
 0x750   :  { %v1628_v28 = vpack.c.bf16 %v1619_v33, %v1618_v17 }
 0x751   :  { %v10900_v62 = vpop.eup %10899 }
 0x752   :  { %9861 = vmatprep.mubr.bf16.mxu1 %v1628_v28  ;;  %v1620_v15 = vmul.f32 %v10900_v62, %v12740_v31 }
 0x753   :  { %v12850_v57 = vpop.permute.xlu1 %2147  ;;  %v12852_v56 = vpop.permute.xlu0 %2145 }
 0x754   :  { %v1629_v36 = vpack.c.bf16 %v1621_v16, %v1620_v15 }
 0x756   :  { %9862 = vmatmul.mubr.bf16.gmra.mxu1 %v1629_v36 }
 0x757   :  { %v12854_v63 = vpop.permute.xlu1 %2151  ;;  %v12856_v42 = vpop.permute.xlu0 %2149 }
 0x75b   :  { %v12858_v50 = vpop.permute.xlu1 %2155  ;;  %v12860_v30 = vpop.permute.xlu0 %2153 }
 0x75f   :  { %v12862_v12 = vpop.permute.xlu1 %2159  ;;  %v12864_v3 = vpop.permute.xlu0 %2157 }
 0x763   :  { %v12866_v31 = vpop.permute.xlu1 %2864  ;;  %v12868_v54 = vpop.permute.xlu0 %2866 }
 0x764   :  { %v2914_v28 = vsel %vm826_vm1, %v12868_v54, 0  ;;  %v2911_v62 = vsel %vm826_vm1, %v12866_v31, 0 }
 0x767   :  { %v12870_v39 = vpop.permute.xlu1 %2860  ;;  %v12872_v9 = vpop.permute.xlu0 %2862 }
 0x768   :  { %v2908_v15 = vsel %vm826_vm1, %v12872_v9, 0  ;;  %v2905_v16 = vsel %vm826_vm1, %v12870_v39, 0 }
 0x76b   :  { %v12874_v51 = vpop.permute.xlu1 %2856  ;;  %v12876_v0 = vpop.permute.xlu0 %2858 }
 0x76f   :  { %v12878_v55 = vpop.permute.xlu1 %2852  ;;  %v12880_v13 = vpop.permute.xlu0 %2854 }
 0x770   :  { %v2896_v36 = vsel %vm826_vm1, %v12880_v13, 0 }
 0x773   :  { %v12882_v22 = vpop.permute.xlu1 %2838  ;;  %v12884_v45 = vpop.permute.xlu0 %2836 }
 0x777   :  { %v12886_v4 = vpop.permute.xlu1 %2842  ;;  %v12888_v18 = vpop.permute.xlu0 %2840 }
 0x77b   :  { %v12890_v8 = vpop.permute.xlu1 %2846  ;;  %v12892_v49 = vpop.permute.xlu0 %2844 }
 0x77f   :  { %v12894_v19 = vpop.permute.xlu1 %2850  ;;  %v12896_v27 = vpop.permute.xlu0 %2848 }
 0x783   :  { %v2521_v38 = vpop.permute.xlu0 %2520  ;;  %v2519_v21 = vpop.permute.xlu1 %2518 }
 0x784   :  { %9949 = vmatprep.subr.bf16.mxu0 %v2521_v38 }
 0x785   :  { %9950 = vmatpush3.bf16.msra.mxu0 %v2521_v38 }
 0x786   :  { %9951 = vmatprep.subr.bf16.mxu0 %v2519_v21 }
 0x787   :  { %v2517_v52 = vpop.permute.xlu0 %2516 }
 0x789   :  { %9952 = vmatpush3.bf16.msra.mxu0 %v2519_v21 }
 0x78a   :  { %9953 = vmatprep.subr.bf16.mxu0 %v2517_v52 }
 0x78d   :  { %9954 = vmatpush3.bf16.msra.mxu0 %v2517_v52 }
 0x7ca   :  { %v9851_v34 = vpop.f32.mrf.mxu1 }
 0x7cc   :  { %v1696_v14 = vpop.f32.mrf.mxu1 }
 0x7cd   :  { %9867 = vmatprep.mubr.msk.f32.mxu1 %vm826_vm1, %v1696_v14 }
 0x7ce   :  { %v9852_v53 = vpop.f32.mrf.mxu1 }
 0x7d0   :  { %v1699_v61 = vpop.f32.mrf.mxu1 }
 0x7d1   :  { %9868 = vmatmul.mubr.msk.f32.vlgmr.msra.gmra.mxu1 %vm826_vm1, %v1699_v61 }
 0x7d2   :  { %9918 = vmatpush3.bf16.xpose.msra.mxu1 %v2223_v25  ;;  %9870 = vmatprep.mubr.msk.f32.mxu1 %vm826_vm1, %v9851_v34  ;;  %v13052_v34 = vld [vmem:[%s16728_s8] sm:$0xff] }
 0x7d3   :  { %10657 = vmatprep.subr.msk.bf16.mxu1 %vm826_vm1, %v12822_v43  ;;  %v2211_v43 = vsel %vm826_vm1, %v12838_v5, 0 }
 0x7d5   :  { %9871 = vmatmul.mubr.msk.f32.gmra.mxu1 %vm826_vm1, %v9852_v53 }
 0x7da   :  { %9920 = vmatpush3.bf16.xpose.msra.mxu1 %v2220_v46  ;;  %v13060_v46 = vld [vmem:[%s16728_s8 + $0x8] sm:$0xff] }
 0x7db   :  { %10658 = vmatprep.subr.msk.bf16.mxu1 %vm826_vm1, %v12824_v10  ;;  %v2208_v10 = vsel %vm826_vm1, %v12836_v44, 0 }
 0x7e2   :  { %9922 = vmatpush3.bf16.xpose.msra.mxu1 %v2217_v24 }
 0x7e3   :  { %10659 = vmatprep.subr.msk.bf16.mxu1 %vm826_vm1, %v12828_v11  ;;  %v2205_v11 = vsel %vm826_vm1, %v12846_v41, 0 }
 0x7ea   :  { %9924 = vmatpush3.bf16.xpose.msra.mxu1 %v2214_v40 }
 0x7eb   :  { %10660 = vmatprep.subr.msk.bf16.mxu1 %vm826_vm1, %v12838_v5  ;;  %v2202_v5 = vsel %vm826_vm1, %v12844_v1, 0 }
 0x7f2   :  { %9926 = vmatpush3.bf16.xpose.msra.mxu1 %v2211_v43  ;;  %v13069_v43 = vld [vmem:[%s16728_s8 + $0x18] sm:$0xff] }
 0x7f3   :  { %10661 = vmatprep.subr.msk.bf16.mxu1 %vm826_vm1, %v12836_v44 }
 0x7fa   :  { %9928 = vmatpush3.bf16.xpose.msra.mxu1 %v2208_v10 }
 0x7fb   :  { %10662 = vmatprep.subr.msk.bf16.mxu1 %vm826_vm1, %v12846_v41 }
 0x802   :  { %9930 = vmatpush3.bf16.xpose.msra.mxu1 %v2205_v11 }
 0x803   :  { %10663 = vmatprep.subr.msk.bf16.mxu1 %vm826_vm1, %v12844_v1 }
 0x806   :  { %v9855_v60 = vpop.f32.mrf.mxu1 }
 0x808   :  { %v1712_v59 = vpop.f32.mrf.mxu1 }
 0x809   :  { %9873 = vmatprep.mubr.msk.f32.mxu1 %vm826_vm1, %v1712_v59 }
 0x80a   :  { %9932 = vmatpush3.bf16.xpose.msra.mxu1 %v2202_v5  ;;  %v9856_v44 = vpop.f32.mrf.mxu1 }
 0x80b   :  { %10664 = vmatprep.subr.msk.bf16.mxu1 %vm826_vm1, %v12868_v54 }
 0x80c   :  { %v1715_v7 = vpop.f32.mrf.mxu1 }
 0x80d   :  { %9874 = vmatmul.mubr.msk.f32.gmra.mxu1 %vm826_vm1, %v1715_v7 }
 0x80e   :  { %v9859_v20 = vpop.f32.mrf.mxu1  ;;  %9876 = vmatprep.mubr.msk.f32.mxu1 %vm826_vm1, %v9855_v60 }
 0x810   :  { %v1728_v32 = vpop.f32.mrf.mxu1 }
 0x811   :  { %9877 = vmatmul.mubr.msk.f32.gmra.mxu1 %vm826_vm1, %v9856_v44  ;;  %v13079_v44 = vld [vmem:[%s16728_s8 + $0x30] sm:$0xff] }
 0x812   :  { %v9860_v35 = vpop.f32.mrf.mxu1  ;;  %9879 = vmatprep.mubr.msk.f32.mxu1 %vm826_vm1, %v1728_v32  ;;  %v13087_v32 = vld [vmem:[%s16728_s8 + $0x38] sm:$0xff] }
 0x814   :  { %v1731_v17 = vpop.f32.mrf.mxu1 }
 0x815   :  { %9880 = vmatmul.mubr.msk.f32.gmra.mxu1 %vm826_vm1, %v1731_v17 }
 0x816   :  { %v9863_v33 = vpop.f32.mrf.mxu1  ;;  %9882 = vmatprep.mubr.msk.f32.mxu1 %vm826_vm1, %v9859_v20 }
 0x818   :  { %v1744_v37 = vpop.f32.mrf.mxu1 }
 0x819   :  { %9883 = vmatmul.mubr.msk.f32.gmra.mxu1 %vm826_vm1, %v9860_v35 }
 0x81a   :  { %v9864_v1 = vpop.f32.mrf.mxu1  ;;  %9885 = vmatprep.mubr.msk.f32.mxu1 %vm826_vm1, %v1744_v37 }
 0x81c   :  { %v1747_v41 = vpop.f32.mrf.mxu1 }
 0x81d   :  { %9886 = vmatmul.mubr.msk.f32.gmra.mxu1 %vm826_vm1, %v1747_v41 }
 0x81e   :  { %9888 = vmatprep.mubr.msk.f32.mxu1 %vm826_vm1, %v9863_v33 }
 0x821   :  { %9889 = vmatmul.mubr.msk.f32.gmra.mxu1 %vm826_vm1, %v9864_v1  ;;  %v13097_v1 = vld [vmem:[%s16728_s8 + $0x20] sm:$0xff] }
 0x822   :  { %9933 = vmatprep.mubr.msk.bf16.mxu1 %vm826_vm1, %v12852_v56  ;;  %v2899_v56 = vsel %vm826_vm1, %v12874_v51, 0 }
 0x825   :  { %9934 = vmatmul.mubr.msk.bf16.vlgmr.msra.gmra.mxu1 %vm826_vm1, %v12850_v57  ;;  %v2902_v57 = vsel %vm826_vm1, %v12876_v0, 0 }
 0x826   :  { %10008 = vmatpush3.bf16.xpose.msra.mxu1 %v2914_v28  ;;  %9937 = vmatprep.mubr.msk.bf16.mxu1 %vm826_vm1, %v12856_v42  ;;  %v13105_v28 = vld [vmem:[%s16728_s8 + $0x28] sm:$0xff] }
 0x827   :  { %10665 = vmatprep.subr.msk.bf16.mxu1 %vm826_vm1, %v12866_v31 }
 0x82d   :  { %9938 = vmatmul.mubr.msk.bf16.gmra.mxu1 %vm826_vm1, %v12854_v63  ;;  %v2893_v63 = vsel %vm826_vm1, %v12878_v55, 0 }
 0x82e   :  { %10010 = vmatpush3.bf16.xpose.msra.mxu1 %v2911_v62  ;;  %9941 = vmatprep.mubr.msk.bf16.mxu1 %vm826_vm1, %v12860_v30 }
 0x82f   :  { %10666 = vmatprep.subr.msk.bf16.mxu1 %vm826_vm1, %v12872_v9 }
 0x835   :  { %9942 = vmatmul.mubr.msk.bf16.gmra.mxu1 %vm826_vm1, %v12858_v50 }
 0x836   :  { %10012 = vmatpush3.bf16.xpose.msra.mxu1 %v2908_v15  ;;  %9945 = vmatprep.mubr.msk.bf16.mxu1 %vm826_vm1, %v12864_v3 }
 0x837   :  { %10667 = vmatprep.subr.msk.bf16.mxu1 %vm826_vm1, %v12870_v39 }
 0x83d   :  { %9946 = vmatmul.mubr.msk.bf16.gmra.mxu1 %vm826_vm1, %v12862_v12 }
 0x83e   :  { %10014 = vmatpush3.bf16.xpose.msra.mxu1 %v2905_v16  ;;  %10023 = vmatprep.mubr.msk.bf16.mxu1 %vm826_vm1, %v12884_v45 }
 0x83f   :  { %10668 = vmatprep.subr.msk.bf16.mxu1 %vm826_vm1, %v12876_v0 }
 0x846   :  { %10016 = vmatpush3.bf16.xpose.msra.mxu1 %v2902_v57 }
 0x847   :  { %10669 = vmatprep.subr.msk.bf16.mxu1 %vm826_vm1, %v12874_v51 }
 0x84e   :  { %10018 = vmatpush3.bf16.xpose.msra.mxu1 %v2899_v56 }
 0x84f   :  { %10670 = vmatprep.subr.msk.bf16.mxu1 %vm826_vm1, %v12880_v13 }
 0x856   :  { %10020 = vmatpush3.bf16.xpose.msra.mxu1 %v2896_v36  ;;  %v13115_v36 = vld [vmem:[%s16728_s8 + $0x50] sm:$0xff] }
 0x857   :  { %10671 = vmatprep.subr.msk.bf16.mxu1 %vm826_vm1, %v12878_v55 }
 0x85e   :  { %10022 = vmatpush3.bf16.xpose.msra.mxu1 %v2893_v63 }
 0x865   :  { %10024 = vmatmul.mubr.msk.bf16.vlgmr.msra.gmra.mxu1 %vm826_vm1, %v12882_v22 }
 0x866   :  { %10027 = vmatprep.mubr.msk.bf16.mxu1 %vm826_vm1, %v12888_v18 }
 0x86d   :  { %10028 = vmatmul.mubr.msk.bf16.gmra.mxu1 %vm826_vm1, %v12886_v4 }
 0x86e   :  { %10031 = vmatprep.mubr.msk.bf16.mxu1 %vm826_vm1, %v12892_v49 }
 0x875   :  { %10032 = vmatmul.mubr.msk.bf16.gmra.mxu1 %vm826_vm1, %v12890_v8 }
 0x876   :  { %10035 = vmatprep.mubr.msk.bf16.mxu1 %vm826_vm1, %v12896_v27 }
 0x87d   :  { %10036 = vmatmul.mubr.msk.bf16.gmra.mxu1 %vm826_vm1, %v12894_v19  ;;  %v13043_v19 = vld [vmem:[%s16728_s8 + $0x10] sm:$0xff] }
 0x891   :  { %v13008_v42 = vpop.f32.mrf.mxu1 }
 0x893   :  { %v13010_v50 = vpop.f32.mrf.mxu1 }
 0x894   :  { %16742 = vst [vmem:[#allocation42_spill] sm:$0xff] %v13010_v50 }
 0x895   :  { %v13012_v30 = vpop.f32.mrf.mxu1 }
 0x896   :  { %16743 = vst [vmem:[#allocation37_spill] sm:$0xff] %v13012_v30 }
 0x897   :  { %v13014_v12 = vpop.f32.mrf.mxu1 }
 0x898   :  { %16744 = vst [vmem:[#allocation38_spill] sm:$0xff] %v13014_v12 }
 0x8cd   :  { %v13016_v3 = vpop.f32.mrf.mxu1 }
 0x8ce   :  { %16745 = vst [vmem:[#allocation39_spill] sm:$0xff] %v13016_v3 }
 0x8cf   :  { %v13018_v31 = vpop.f32.mrf.mxu1 }
 0x8d0   :  { %16746 = vst [vmem:[#allocation40_spill] sm:$0xff] %v13018_v31 }
 0x8d1   :  { %v13020_v54 = vpop.f32.mrf.mxu1 }
 0x8d2   :  { %16747 = vst [vmem:[#allocation41_spill] sm:$0xff] %v13020_v54 }
 0x8d3   :  { %v13022_v39 = vpop.f32.mrf.mxu1 }
 0x8d4   :  { %16748 = vst [vmem:[#allocation32_spill] sm:$0xff] %v13022_v39 }
 0x8d5   :  { %v13024_v9 = vpop.f32.mrf.mxu1 }
 0x8d6   :  { %16749 = vst [vmem:[#allocation33_spill] sm:$0xff] %v13024_v9 }
 0x8d7   :  { %v13026_v51 = vpop.f32.mrf.mxu1 }
 0x8d8   :  { %16750 = vst [vmem:[#allocation34_spill] sm:$0xff] %v13026_v51 }
 0x8d9   :  { %v13028_v0 = vpop.f32.mrf.mxu1 }
 0x8da   :  { %16751 = vst [vmem:[#allocation36_spill] sm:$0xff] %v13028_v0 }
 0x8db   :  { %v13030_v55 = vpop.f32.mrf.mxu1 }
 0x8dc   :  { %16752 = vst [vmem:[#allocation31_spill] sm:$0xff] %v13030_v55 }
 0x8dd   :  { %v13032_v13 = vpop.f32.mrf.mxu1 }
 0x8de   :  { %16753 = vst [vmem:[#allocation35_spill] sm:$0xff] %v13032_v13 }
 0x8df   :  { %v13034_v22 = vpop.f32.mrf.mxu1 }
 0x8e0   :  { %16754 = vst [vmem:[#allocation43_spill] sm:$0xff] %v13034_v22 }
 0x8e1   :  { %v13036_v45 = vpop.f32.mrf.mxu1 }
 0x8e2   :  { %16755 = vst [vmem:[#allocation44_spill] sm:$0xff] %v13036_v45 }
 0x8e3   :  { %v13038_v4 = vpop.f32.mrf.mxu1 }
 0x8e4   :  { %16756 = vst [vmem:[#allocation45_spill] sm:$0xff] %v13038_v4 }
 0x8e5   :  { %v9935_v18 = vpop.f32.mrf.mxu1 }
 0x8e6   :  { %v2324_v8 = vmul.f32 0.35355338, %v9935_v18 }
 0x8e7   :  { %v2259_v49 = vpop.f32.mrf.mxu1 }
 0x8e8   :  { %v13046_v27 = vadd.f32 %v13043_v19, %v2324_v8  ;;  %v2322_v38 = vmul.f32 0.35355338, %v2259_v49  ;;  %v13123_v8 = vld [vmem:[%s16728_s8 + $0x58] sm:$0xff] }
 0x8e9   :  { %v9936_v21 = vpop.f32.mrf.mxu1 }
 0x8ea   :  { %2358 = vmax.xlane.f32.xlu0 %v13046_v27  ;;  %v13055_v14 = vadd.f32 %v13052_v34, %v2322_v38  ;;  %v2325_v53 = vmul.f32 0.35355338, %v9936_v21 }
 0x8eb   :  { %v2262_v52 = vpop.f32.mrf.mxu1 }
 0x8ec   :  { %v2323_v61 = vmul.f32 0.35355338, %v2262_v52  ;;  %v13072_v10 = vadd.f32 %v13069_v43, %v2325_v53  ;;  %v13133_v52 = vld [vmem:[%s16728_s8 + $0x40] sm:$0xff] }
 0x8ed   :  { %v9939_v25 = vpop.f32.mrf.mxu1 }
 0x8ee   :  { %v13063_v24 = vadd.f32 %v13060_v46, %v2323_v61  ;;  %2354 = vmax.xlane.f32.xlu0 %v13055_v14  ;;  %v2328_v11 = vmul.f32 0.35355338, %v9939_v25  ;;  %v13141_v61 = vld [vmem:[%s16728_s8 + $0x48] sm:$0xff] }
 0x8ef   :  { %v2275_v40 = vpop.f32.mrf.mxu1 }
 0x8f0   :  { %2356 = vmax.xlane.f32.xlu1 %v13063_v24  ;;  %v13082_v7 = vadd.f32 %v13079_v44, %v2328_v11  ;;  %v2326_v20 = vmul.f32 0.35355338, %v2275_v40 }
 0x8f1   :  { %v9940_v60 = vpop.f32.mrf.mxu1 }
 0x8f2   :  { %v2329_v59 = vmul.f32 0.35355338, %v9940_v60  ;;  %2360 = vmax.xlane.f32.xlu0 %v13072_v10  ;;  %v13100_v41 = vadd.f32 %v13097_v1, %v2326_v20  ;;  %v13151_v60 = vld [vmem:[%s16728_s8 + $0x70] sm:$0xff]  ;;  %v13160_v20 = vld [vmem:[%s16728_s8 + $0x60] sm:$0xff] }
 0x8f3   :  { %v2278_v5 = vpop.f32.mrf.mxu1 }
 0x8f4   :  { %v13090_v35 = vadd.f32 %v13087_v32, %v2329_v59  ;;  %v2327_v17 = vmul.f32 0.35355338, %v2278_v5 }
 0x8f5   :  { %v9943_v33 = vpop.f32.mrf.mxu1 }
 0x8f6   :  { %2366 = vmax.xlane.f32.xlu0 %v13082_v7  ;;  %2368 = vmax.xlane.f32.xlu1 %v13090_v35  ;;  %v13108_v62 = vadd.f32 %v13105_v28, %v2327_v17  ;;  %v2332_v15 = vmul.f32 0.35355338, %v9943_v33 }
 0x8f7   :  { %v2291_v37 = vpop.f32.mrf.mxu1 }
 0x8f8   :  { %v13118_v63 = vadd.f32 %v13115_v36, %v2332_v15  ;;  %v2330_v18 = vmul.f32 0.35355338, %v2291_v37 }
 0x8f9   :  { %v9944_v16 = vpop.f32.mrf.mxu1 }
 0x8fa   :  { %v2333_v57 = vmul.f32 0.35355338, %v9944_v16  ;;  %2362 = vmax.xlane.f32.xlu0 %v13100_v41  ;;  %2364 = vmax.xlane.f32.xlu1 %v13108_v62  ;;  %v13136_v53 = vadd.f32 %v13133_v52, %v2330_v18  ;;  %v13173_v16 = vld [vmem:[%s16728_s8 + $0x78] sm:$0xff]  ;;  %v13182_v18 = vld [vmem:[%s16728_s8 + $0x68] sm:$0xff] }
 0x8fb   :  { %v2294_v56 = vpop.f32.mrf.mxu1 }
 0x8fc   :  { %v13126_v49 = vadd.f32 %v13123_v8, %v2333_v57  ;;  %v2331_v38 = vmul.f32 0.35355338, %v2294_v56 }
 0x8fd   :  { %v9947_v21 = vpop.f32.mrf.mxu1 }
 0x8fe   :  { %2374 = vmax.xlane.f32.xlu0 %v13118_v63  ;;  %2376 = vmax.xlane.f32.xlu1 %v13126_v49  ;;  %v13144_v25 = vadd.f32 %v13141_v61, %v2331_v38  ;;  %v2336_v40 = vmul.f32 0.35355338, %v9947_v21 }
 0x8ff   :  { %v2307_v11 = vpop.f32.mrf.mxu1 }
 0x900   :  { %v13154_v59 = vadd.f32 %v13151_v60, %v2336_v40  ;;  %v2334_v5 = vmul.f32 0.35355338, %v2307_v11 }
 0x901   :  { %v9948_v33 = vpop.f32.mrf.mxu1 }
 0x902   :  { %2370 = vmax.xlane.f32.xlu0 %v13136_v53  ;;  %2372 = vmax.xlane.f32.xlu1 %v13144_v25  ;;  %v13163_v17 = vadd.f32 %v13160_v20, %v2334_v5  ;;  %v2337_v37 = vmul.f32 0.35355338, %v9948_v33 }
 0x903   :  { %v2310_v15 = vpop.f32.mrf.mxu1 }
 0x904   :  { %v13176_v57 = vadd.f32 %v13173_v16, %v2337_v37  ;;  %v2335_v56 = vmul.f32 0.35355338, %v2310_v15 }
 0x906   :  { %2382 = vmax.xlane.f32.xlu0 %v13154_v59  ;;  %v13185_v38 = vadd.f32 %v13182_v18, %v2335_v56 }
 0x90a   :  { %2378 = vmax.xlane.f32.xlu0 %v13163_v17 }
 0x913   :  { %2512 = vrot.lane.b32.xlu1 %v16733_v58, %s11640_s14 }
 0x920   :  { %2514 = vrot.lane.b32.xlu0 %v16732_v29, %s11640_s14 }
 0x937   :  { %2384 = vmax.xlane.f32.xlu1 %v13176_v57 }
 0x93b   :  { %2380 = vmax.xlane.f32.xlu1 %v13185_v38 }
 0x94c   :  { %2510 = vrot.lane.b32.xlu1 %v12260_v23, %s11640_s14 }
 0x973   :  { %v2359_v21 = vpop.xlane.xlu0 %2358 }
 0x974   :  { %v2388_v40 = vsub.f32 %v13046_v27, %v2359_v21 }
 0x976   :  { %v2406_v11 = vmul.f32 1.442695, %v2388_v40 }
 0x977   :  { %v2355_v5 = vpop.xlane.xlu0 %2354 }
 0x978   :  { %10901 = vpow2.f32 %v2406_v11  ;;  %v2386_v33 = vsub.f32 %v13055_v14, %v2355_v5 }
 0x979   :  { %v2357_v37 = vpop.xlane.xlu1 %2356 }
 0x97a   :  { %v2402_v15 = vmul.f32 1.442695, %v2386_v33  ;;  %v2387_v56 = vsub.f32 %v13063_v24, %v2357_v37 }
 0x97b   :  { %v2361_v22 = vpop.xlane.xlu0 %2360 }
 0x97c   :  { %10903 = vpow2.f32 %v2402_v15  ;;  %v2389_v55 = vsub.f32 %v13072_v10, %v2361_v22  ;;  %v2404_v31 = vmul.f32 1.442695, %v2387_v56 }
 0x97e   :  { %v2408_v4 = vmul.f32 1.442695, %v2389_v55 }
 0x97f   :  { %v2369_v51 = vpop.xlane.xlu1 %2368  ;;  %v2367_v39 = vpop.xlane.xlu0 %2366 }
 0x980   :  { %10905 = vpow2.f32 %v2408_v4  ;;  %v2392_v27 = vsub.f32 %v13082_v7, %v2367_v39  ;;  %v2393_v24 = vsub.f32 %v13090_v35, %v2369_v51 }
 0x981   :  { %10907 = vpow2.f32 %v2404_v31 }
 0x982   :  { %v2414_v21 = vmul.f32 1.442695, %v2392_v27  ;;  %v2416_v31 = vmul.f32 1.442695, %v2393_v24 }
 0x983   :  { %v2365_v40 = vpop.xlane.xlu1 %2364  ;;  %v2363_v11 = vpop.xlane.xlu0 %2362 }
 0x984   :  { %v2391_v14 = vsub.f32 %v13108_v62, %v2365_v40  ;;  %v2390_v5 = vsub.f32 %v13100_v41, %v2363_v11  ;;  %10909 = vpow2.f32 %v2414_v21 }
 0x985   :  { %v13197_v33 = vpop.eup %10901 }
 0x986   :  { %v2412_v55 = vmul.f32 1.442695, %v2391_v14  ;;  %v2410_v22 = vmul.f32 1.442695, %v2390_v5  ;;  %2438 = vadd.xlane.f32.xlu1 %v13197_v33 }
 0x987   :  { %v2375_v4 = vpop.xlane.xlu0 %2374  ;;  %v2377_v39 = vpop.xlane.xlu1 %2376 }
 0x988   :  { %10911 = vpow2.f32 %v2412_v55  ;;  %v2396_v10 = vsub.f32 %v13118_v63, %v2375_v4  ;;  %v2397_v37 = vsub.f32 %v13126_v49, %v2377_v39 }
 0x989   :  { %v13202_v7 = vpop.eup %10903  ;;  %10913 = vpow2.f32 %v2410_v22 }
 0x98a   :  { %2434 = vadd.xlane.f32.xlu1 %v13202_v7  ;;  %v2422_v62 = vmul.f32 1.442695, %v2396_v10  ;;  %10915 = vpow2.f32 %v2416_v31  ;;  %v2424_v40 = vmul.f32 1.442695, %v2397_v37  ;;  %v10025_v37 = vpop.f32.mrf.mxu1 }
 0x98b   :  { %v2371_v41 = vpop.xlane.xlu0 %2370  ;;  %v2373_v15 = vpop.xlane.xlu1 %2372 }
 0x98c   :  { %v2394_v51 = vsub.f32 %v13136_v53, %v2371_v41  ;;  %10917 = vpow2.f32 %v2422_v62  ;;  %v2395_v11 = vsub.f32 %v13144_v25, %v2373_v15  ;;  %v2950_v15 = vpop.f32.mrf.mxu1 }
 0x98d   :  { %v13206_v35 = vpop.eup %10905 }
 0x98e   :  { %v2418_v56 = vmul.f32 1.442695, %v2394_v51  ;;  %2440 = vadd.xlane.f32.xlu1 %v13206_v35  ;;  %v13211_v21 = vpop.eup %10907 }
 0x98f   :  { %v2383_v63 = vpop.xlane.xlu0 %2382  ;;  %v2513_v4 = vpop.permute.xlu1 %2512 }
 0x990   :  { %v2400_v27 = vsub.f32 %v13154_v59, %v2383_v63  ;;  %10919 = vpow2.f32 %v2418_v56  ;;  %v2420_v59 = vmul.f32 1.442695, %v2395_v11  ;;  %v10026_v56 = vpop.f32.mrf.mxu1 }
 0x991   :  { %v13214_v53 = vpop.eup %10909 }
 0x992   :  { %v2430_v14 = vmul.f32 1.442695, %v2400_v27  ;;  %2436 = vadd.xlane.f32.xlu1 %v13211_v21  ;;  %2446 = vadd.xlane.f32.xlu0 %v13214_v53  ;;  %v2953_v63 = vpop.f32.mrf.mxu1 }
 0x993   :  { %v2379_v49 = vpop.xlane.xlu0 %2378 }
 0x994   :  { %10921 = vpow2.f32 %v2430_v14  ;;  %v2398_v5 = vsub.f32 %v13163_v17, %v2379_v49  ;;  %v10029_v27 = vpop.f32.mrf.mxu1 }
 0x995   :  { %v13219_v24 = vpop.eup %10911  ;;  %10923 = vpow2.f32 %v2424_v40 }
 0x996   :  { %v13221_v55 = vpop.eup %10913  ;;  %v2426_v22 = vmul.f32 1.442695, %v2398_v5  ;;  %2444 = vadd.xlane.f32.xlu1 %v13219_v24  ;;  %v2966_v40 = vpop.f32.mrf.mxu1 }
 0x997   :  { %2442 = vadd.xlane.f32.xlu0 %v13221_v55  ;;  %v2515_v25 = vpop.permute.xlu0 %2514  ;;  %v13225_v39 = vpop.eup %10915  ;;  %v3017_v9 = vmul.f32 0.35355338, %v2966_v40 }
 0x998   :  { %10925 = vpow2.f32 %v2426_v22  ;;  %9955 = vmatprep.subr.bf16.mxu0 %v2515_v25  ;;  %v10030_v11 = vpop.f32.mrf.mxu1 }
 0x999   :  { %10927 = vpow2.f32 %v2420_v59  ;;  %9956 = vmatpush3.bf16.msra.mxu0 %v2515_v25  ;;  %v13228_v17 = vpop.eup %10917  ;;  %v13253_v3 = vadd.f32 %v13097_v1, %v3017_v9 }
 0x99a   :  { %9957 = vmatprep.subr.bf16.mxu0 %v2513_v4  ;;  %v2969_v49 = vpop.f32.mrf.mxu1 }
 0x99b   :  { %2448 = vadd.xlane.f32.xlu0 %v13225_v39 }
 0x99c   :  { %v10033_v22 = vpop.f32.mrf.mxu1 }
 0x99d   :  { %9958 = vmatpush3.bf16.msra.mxu0 %v2513_v4  ;;  %v13230_v10 = vpop.eup %10919 }
 0x99e   :  { %2450 = vadd.xlane.f32.xlu1 %v13230_v10  ;;  %v2982_v50 = vpop.f32.mrf.mxu1 }
 0x99f   :  { %2454 = vadd.xlane.f32.xlu0 %v13228_v17 }
 0x9a0   :  { %v10034_v13 = vpop.f32.mrf.mxu1 }
 0x9a1   :  { %v13234_v31 = vpop.eup %10921 }
 0x9a2   :  { %v13236_v41 = vpop.eup %10923  ;;  %2462 = vadd.xlane.f32.xlu1 %v13234_v31  ;;  %v2985_v0 = vpop.f32.mrf.mxu1 }
 0x9a3   :  { %2456 = vadd.xlane.f32.xlu0 %v13236_v41 }
 0x9a4   :  { %v10037_v54 = vpop.f32.mrf.mxu1 }
 0x9a5   :  { %v13240_v62 = vpop.eup %10925  ;;  %v3027_v30 = vmul.f32 0.35355338, %v10037_v54  ;;  %v3014_v54 = vmul.f32 0.35355338, %v2953_v63 }
 0x9a6   :  { %v13242_v51 = vpop.eup %10927  ;;  %2458 = vadd.xlane.f32.xlu1 %v13240_v62 }
 0x9a7   :  { %2452 = vadd.xlane.f32.xlu0 %v13242_v51  ;;  %v13271_v1 = vadd.f32 %v13060_v46, %v3014_v54 }
 0x9b7   :  { %2506 = vrot.lane.b32.xlu1 %v16735_v6, %s11640_s14 }
 0x9bd   :  { %2508 = vrot.lane.b32.xlu0 %v16734_v2, %s11640_s14 }
 0x9c0   :  { %v2385_v14 = vpop.xlane.xlu1 %2384 }
 0x9c1   :  { %v2401_v4 = vsub.f32 %v13176_v57, %v2385_v14  ;;  %v3013_v57 = vmul.f32 0.35355338, %v2950_v15  ;;  %v13260_v14 = vadd.f32 %v13151_v60, %v3027_v30  ;;  %v3016_v60 = vmul.f32 0.35355338, %v10026_v56 }
 0x9c2   :  { %v3021_v56 = vmul.f32 0.35355338, %v2982_v50 }
 0x9c3   :  { %v2432_v45 = vmul.f32 1.442695, %v2401_v4  ;;  %v13267_v9 = vadd.f32 %v13052_v34, %v3013_v57  ;;  %v13279_v15 = vadd.f32 %v13069_v43, %v3016_v60  ;;  %v3018_v34 = vmul.f32 0.35355338, %v2969_v49 }
 0x9c4   :  { %v2381_v5 = vpop.xlane.xlu1 %2380  ;;  %v3020_v43 = vmul.f32 0.35355338, %v10030_v11 }
 0x9c5   :  { %v2399_v59 = vsub.f32 %v13185_v38, %v2381_v5  ;;  %v13285_v46 = vadd.f32 %v13105_v28, %v3018_v34  ;;  %v3023_v28 = vmul.f32 0.35355338, %v10033_v22 }
 0x9c7   :  { %v2428_v12 = vmul.f32 1.442695, %v2399_v59  ;;  %v13311_v50 = vadd.f32 %v13115_v36, %v3023_v28 }
 0x9c8   :  { %v2511_v25 = vpop.permute.xlu1 %2510 }
 0x9c9   :  { %9959 = vmatprep.subr.bf16.mxu0 %v2511_v25  ;;  %10929 = vpow2.f32 %v2428_v12 }
 0x9ca   :  { %9960 = vmatpush3.bf16.msra.mxu0 %v2511_v25  ;;  %10931 = vpow2.f32 %v2432_v45  ;;  %v3015_v45 = vmul.f32 0.35355338, %v10025_v37  ;;  %v3019_v37 = vmul.f32 0.35355338, %v10029_v27 }
 0x9cc   :  { %v13275_v30 = vadd.f32 %v13043_v19, %v3015_v45  ;;  %v13291_v19 = vadd.f32 %v13079_v44, %v3019_v37  ;;  %v3022_v44 = vmul.f32 0.35355338, %v2985_v0 }
 0x9ce   :  { %v13307_v63 = vadd.f32 %v13141_v61, %v3022_v44 }
 0x9d6   :  { %v13255_v38 = vpop.eup %10929 }
 0x9d7   :  { %v13262_v12 = vpop.eup %10931 }
 0x9db   :  { %3053 = vmax.xlane.f32.xlu1 %v13253_v3 }
 0x9dc   :  { %2460 = vadd.xlane.f32.xlu0 %v13255_v38 }
 0x9df   :  { %3073 = vmax.xlane.f32.xlu1 %v13260_v14 }
 0x9e0   :  { %2464 = vadd.xlane.f32.xlu0 %v13262_v12 }
 0x9e4   :  { %3045 = vmax.xlane.f32.xlu0 %v13267_v9 }
 0x9e8   :  { %3047 = vmax.xlane.f32.xlu0 %v13271_v1 }
 0x9ec   :  { %3049 = vmax.xlane.f32.xlu0 %v13275_v30 }
 0x9f0   :  { %3051 = vmax.xlane.f32.xlu0 %v13279_v15  ;;  %3211 = vrot.lane.b32.xlu1 %v12224_v47, %s11641_s22  ;;  %v13297_v47 = vadd.f32 %v13087_v32, %v3020_v43  ;;  %v3024_v32 = vmul.f32 0.35355338, %v10034_v13 }
 0x9f4   :  { %3055 = vmax.xlane.f32.xlu0 %v13285_v46  ;;  %3209 = vrot.lane.b32.xlu1 %v12228_v26, %s11641_s22  ;;  %v13303_v26 = vadd.f32 %v13133_v52, %v3021_v56 }
 0x9f8   :  { %3057 = vmax.xlane.f32.xlu0 %v13291_v19  ;;  %3205 = vrot.lane.b32.xlu1 %v16732_v29, %s11641_s22  ;;  %v2998_v29 = vpop.f32.mrf.mxu1 }
 0x9f9   :  { %v3025_v0 = vmul.f32 0.35355338, %v2998_v29 }
 0x9fa   :  { %v10038_v27 = vpop.f32.mrf.mxu1 }
 0x9fb   :  { %v13319_v61 = vadd.f32 %v13160_v20, %v3025_v0  ;;  %v3028_v36 = vmul.f32 0.35355338, %v10038_v27 }
 0x9fc   :  { %3059 = vmax.xlane.f32.xlu0 %v13297_v47  ;;  %3199 = vrot.lane.b32.xlu1 %v16734_v2, %s11641_s22  ;;  %v13315_v2 = vadd.f32 %v13123_v8, %v3024_v32  ;;  %v3001_v52 = vpop.f32.mrf.mxu1 }
 0x9fd   :  { %v3026_v40 = vmul.f32 0.35355338, %v3001_v52  ;;  %v13327_v8 = vadd.f32 %v13173_v16, %v3028_v36 }
 0x9ff   :  { %v13323_v13 = vadd.f32 %v13182_v18, %v3026_v40 }
 0xa00   :  { %3061 = vmax.xlane.f32.xlu0 %v13303_v26 }
 0xa04   :  { %3063 = vmax.xlane.f32.xlu0 %v13307_v63 }
 0xa08   :  { %3065 = vmax.xlane.f32.xlu0 %v13311_v50 }
 0xa0c   :  { %3067 = vmax.xlane.f32.xlu0 %v13315_v2 }
 0xa0f   :  { %v2439_v11 = vpop.xlane.xlu1 %2438 }
 0xa10   :  { %3069 = vmax.xlane.f32.xlu0 %v13319_v61 }
 0xa13   :  { %v2435_v49 = vpop.xlane.xlu1 %2434 }
 0xa14   :  { %3071 = vmax.xlane.f32.xlu0 %v13323_v13  ;;  %10933 = vrcp.f32 %v2435_v49 }
 0xa17   :  { %v2441_v5 = vpop.xlane.xlu1 %2440 }
 0xa18   :  { %3075 = vmax.xlane.f32.xlu0 %v13327_v8 }
 0xa1b   :  { %v2437_v20 = vpop.xlane.xlu1 %2436  ;;  %v2447_v59 = vpop.xlane.xlu0 %2446 }
 0xa1c   :  { %10935 = vrcp.f32 %v2437_v20 }
 0xa1d   :  { %10937 = vrcp.f32 %v2441_v5 }
 0xa1f   :  { %v2445_v25 = vpop.xlane.xlu1 %2444 }
 0xa20   :  { %v2443_v22 = vpop.xlane.xlu0 %2442  ;;  %10939 = vrcp.f32 %v2445_v25 }
 0xa21   :  { %v10934_v57 = vpop.eup %10933  ;;  %10941 = vrcp.f32 %v2443_v22 }
 0xa22   :  { %10943 = vrcp.f32 %v2439_v11  ;;  %v2482_v16 = vmul.f32 %v10934_v57, %v13202_v7 }
 0xa24   :  { %v2449_v4 = vpop.xlane.xlu0 %2448 }
 0xa25   :  { %10945 = vrcp.f32 %v2449_v4 }
 0xa26   :  { %10947 = vrcp.f32 %v2447_v59 }
 0xa27   :  { %v2451_v18 = vpop.xlane.xlu1 %2450 }
 0xa28   :  { %v2455_v54 = vpop.xlane.xlu0 %2454  ;;  %10949 = vrcp.f32 %v2451_v18 }
 0xa29   :  { %v10936_v45 = vpop.eup %10935 }
 0xa2a   :  { %v2483_v60 = vmul.f32 %v10936_v45, %v13211_v21  ;;  %v10938_v28 = vpop.eup %10937 }
 0xa2b   :  { %v2463_v34 = vpop.xlane.xlu1 %2462 }
 0xa2c   :  { %v2457_v37 = vpop.xlane.xlu0 %2456  ;;  %v2498_v43 = vpack.c.bf16 %v2483_v60, %v2482_v16 }
 0xa2d   :  { %v10940_v7 = vpop.eup %10939 }
 0xa2e   :  { %3207 = vrot.lane.b32.xlu0 %v16731_v48, %s11641_s22  ;;  %9965 = vmatprep.mubr.bf16.mxu0 %v2498_v43  ;;  %v10942_v21 = vpop.eup %10941  ;;  %v2485_v48 = vmul.f32 %v10938_v28, %v13206_v35  ;;  %v2487_v52 = vmul.f32 %v10940_v7, %v13219_v24 }
 0xa2f   :  { %v2459_v56 = vpop.xlane.xlu1 %2458  ;;  %v10944_v32 = vpop.eup %10943  ;;  %v2486_v0 = vmul.f32 %v10942_v21, %v13221_v55 }
 0xa30   :  { %v2453_v44 = vpop.xlane.xlu0 %2452  ;;  %v2484_v40 = vmul.f32 %v10944_v32, %v13197_v33 }
 0xa31   :  { %10951 = vrcp.f32 %v2453_v44  ;;  %v2500_v36 = vpack.c.bf16 %v2487_v52, %v2486_v0 }
 0xa32   :  { %3203 = vrot.lane.b32.xlu0 %v16733_v58, %s11641_s22  ;;  %10953 = vrcp.f32 %v2457_v37  ;;  %v800_v58 = vld [vmem:[%s16600_s10 + $0x10] sm:$0xff]  ;;  %v2499_v11 = vpack.c.bf16 %v2485_v48, %v2484_v40 }
 0xa33   :  { %v2507_v27 = vpop.permute.xlu1 %2506  ;;  %10955 = vrcp.f32 %v2455_v54 }
 0xa34   :  { %v2509_v29 = vpop.permute.xlu0 %2508  ;;  %10957 = vrcp.f32 %v2459_v56 }
 0xa35   :  { %9961 = vmatprep.subr.bf16.mxu0 %v2509_v29 }
 0xa36   :  { %3201 = vrot.lane.b32.xlu0 %v12260_v23, %s11641_s22  ;;  %9962 = vmatpush3.bf16.msra.mxu0 %v2509_v29  ;;  %v10946_v23 = vpop.eup %10945 }
 0xa37   :  { %9963 = vmatprep.subr.bf16.mxu0 %v2507_v27  ;;  %v10948_v49 = vpop.eup %10947  ;;  %v2489_v24 = vmul.f32 %v10946_v23, %v13225_v39 }
 0xa38   :  { %v10950_v5 = vpop.eup %10949  ;;  %v2488_v20 = vmul.f32 %v10948_v49, %v13214_v53 }
 0xa39   :  { %v2490_v59 = vmul.f32 %v10950_v5, %v13230_v10 }
 0xa3a   :  { %9964 = vmatpush3.bf16.msra.mxu0 %v2507_v27  ;;  %v2501_v33 = vpack.c.bf16 %v2489_v24, %v2488_v20 }
 0xa3b   :  { %9981 = vmatprep.subr.mxu0 %v800_v58 }
 0xa3d   :  { %9966 = vmatmul.mubr.bf16.vlgmr.msra.gmra.mxu0 %v2499_v11 }
 0xa3e   :  { %9969 = vmatprep.mubr.bf16.mxu0 %v2500_v36  ;;  %9982 = vmatpush3.msra.mxu0 %v800_v58  ;;  %v10952_v35 = vpop.eup %10951 }
 0xa3f   :  { %v2491_v55 = vmul.f32 %v10952_v35, %v13242_v51  ;;  %v10954_v22 = vpop.eup %10953 }
 0xa40   :  { %v10956_v4 = vpop.eup %10955  ;;  %v2493_v57 = vmul.f32 %v10954_v22, %v13236_v41 }
 0xa41   :  { %v2502_v25 = vpack.c.bf16 %v2491_v55, %v2490_v59  ;;  %v2492_v18 = vmul.f32 %v10956_v4, %v13228_v17  ;;  %v10958_v60 = vpop.eup %10957 }
 0xa42   :  { %v2494_v17 = vmul.f32 %v10958_v60, %v13240_v62 }
 0xa43   :  { %v2503_v54 = vpack.c.bf16 %v2493_v57, %v2492_v18 }
 0xa45   :  { %9970 = vmatmul.mubr.bf16.gmra.mxu0 %v2501_v33 }
 0xa46   :  { %9973 = vmatprep.mubr.bf16.mxu0 %v2502_v25 }
 0xa4d   :  { %9974 = vmatmul.mubr.bf16.gmra.mxu0 %v2503_v54 }
 0xa64   :  { %v3054_v39 = vpop.xlane.xlu1 %3053 }
 0xa65   :  { %v2461_v45 = vpop.xlane.xlu0 %2460  ;;  %v3081_v58 = vsub.f32 %v13253_v3, %v3054_v39 }
 0xa66   :  { %10959 = vrcp.f32 %v2461_v45 }
 0xa67   :  { %10961 = vrcp.f32 %v2463_v34  ;;  %v3101_v36 = vmul.f32 1.442695, %v3081_v58 }
 0xa68   :  { %v3074_v53 = vpop.xlane.xlu1 %3073 }
 0xa69   :  { %v2465_v51 = vpop.xlane.xlu0 %2464 }
 0xa6a   :  { %10963 = vrcp.f32 %v2465_v51 }
 0xa6c   :  { %v13351_v10 = vpop.permute.xlu1 %3211 }
 0xa6d   :  { %v3046_v16 = vpop.xlane.xlu0 %3045  ;;  %10039 = vmatprep.subr.bf16.mxu0 %v13351_v10 }
 0xa6e   :  { %v3077_v28 = vsub.f32 %v13267_v9, %v3046_v16 }
 0xa70   :  { %v3093_v0 = vmul.f32 1.442695, %v3077_v28 }
 0xa71   :  { %v3048_v37 = vpop.xlane.xlu0 %3047 }
 0xa72   :  { %v3078_v52 = vsub.f32 %v13271_v1, %v3048_v37 }
 0xa73   :  { %v10960_v41 = vpop.eup %10959 }
 0xa74   :  { %v2495_v43 = vmul.f32 %v10960_v41, %v13255_v38  ;;  %v10962_v44 = vpop.eup %10961  ;;  %v3095_v40 = vmul.f32 1.442695, %v3078_v52 }
 0xa75   :  { %v3050_v56 = vpop.xlane.xlu0 %3049  ;;  %v2496_v27 = vmul.f32 %v10962_v44, %v13234_v31 }
 0xa76   :  { %v3079_v34 = vsub.f32 %v13275_v30, %v3050_v56  ;;  %v2504_v7 = vpack.c.bf16 %v2495_v43, %v2494_v17 }
 0xa77   :  { %v10964_v29 = vpop.eup %10963 }
 0xa78   :  { %v3097_v21 = vmul.f32 1.442695, %v3079_v34  ;;  %9977 = vmatprep.mubr.bf16.mxu0 %v2504_v7  ;;  %v2497_v48 = vmul.f32 %v10964_v29, %v13262_v12  ;;  %v13422_v29 = vpop.f32.mrf.mxu0 }
 0xa79   :  { %v3052_v32 = vpop.xlane.xlu0 %3051 }
 0xa7a   :  { %10965 = vpow2.f32 %v3097_v21  ;;  %v3080_v62 = vsub.f32 %v13279_v15, %v3052_v32  ;;  %v2505_v38 = vpack.c.bf16 %v2497_v48, %v2496_v27  ;;  %v13426_v21 = vpop.f32.mrf.mxu0 }
 0xa7b   :  { %10967 = vpow2.f32 %v3093_v0 }
 0xa7c   :  { %9978 = vmatmul.mubr.bf16.gmra.mxu0 %v2505_v38  ;;  %v3099_v30 = vmul.f32 1.442695, %v3080_v62  ;;  %v13428_v32 = vpop.f32.mrf.mxu0 }
 0xa7d   :  { %v3056_v9 = vpop.xlane.xlu0 %3055 }
 0xa7e   :  { %10969 = vpow2.f32 %v3099_v30  ;;  %v3082_v31 = vsub.f32 %v13285_v46, %v3056_v9  ;;  %v3091_v46 = vsub.f32 %v13260_v14, %v3074_v53  ;;  %v13430_v27 = vpop.f32.mrf.mxu0 }
 0xa7f   :  { %10971 = vpow2.f32 %v3095_v40 }
 0xa80   :  { %v3103_v49 = vmul.f32 1.442695, %v3082_v31  ;;  %v3121_v59 = vmul.f32 1.442695, %v3091_v46  ;;  %v13432_v48 = vpop.f32.mrf.mxu0 }
 0xa81   :  { %v3058_v11 = vpop.xlane.xlu0 %3057 }
 0xa82   :  { %v3083_v12 = vsub.f32 %v13291_v19, %v3058_v11  ;;  %v13434_v0 = vpop.f32.mrf.mxu0 }
 0xa84   :  { %v3105_v23 = vmul.f32 1.442695, %v3083_v12  ;;  %v13436_v62 = vpop.f32.mrf.mxu0 }
 0xa85   :  { %v3060_v15 = vpop.xlane.xlu0 %3059 }
 0xa86   :  { %10973 = vpow2.f32 %v3105_v23  ;;  %v3084_v1 = vsub.f32 %v13297_v47, %v3060_v15  ;;  %v13438_v38 = vpop.f32.mrf.mxu0 }
 0xa87   :  { %v13366_v5 = vpop.eup %10965  ;;  %10975 = vpow2.f32 %v3101_v36 }
 0xa88   :  { %3129 = vadd.xlane.f32.xlu0 %v13366_v5  ;;  %10977 = vpow2.f32 %v3103_v49  ;;  %v3107_v35 = vmul.f32 1.442695, %v3084_v1  ;;  %v13369_v24 = vpop.eup %10967  ;;  %v13440_v52 = vpop.f32.mrf.mxu0 }
 0xa89   :  { %v3062_v3 = vpop.xlane.xlu0 %3061  ;;  %v3210_v1 = vpop.permute.xlu1 %3209 }
 0xa8a   :  { %10979 = vpow2.f32 %v3107_v35  ;;  %v3085_v25 = vsub.f32 %v13303_v26, %v3062_v3  ;;  %v13442_v9 = vpop.f32.mrf.mxu0 }
 0xa8b   :  { %v13374_v20 = vpop.eup %10969 }
 0xa8c   :  { %3125 = vadd.xlane.f32.xlu0 %v13369_v24  ;;  %v13377_v22 = vpop.eup %10971  ;;  %v3109_v54 = vmul.f32 1.442695, %v3085_v25  ;;  %v13444_v30 = vpop.f32.mrf.mxu0 }
 0xa8d   :  { %v3064_v19 = vpop.xlane.xlu0 %3063 }
 0xa8e   :  { %v3086_v55 = vsub.f32 %v13307_v63, %v3064_v19 }
 0xa90   :  { %v3111_v47 = vmul.f32 1.442695, %v3086_v55  ;;  %3131 = vadd.xlane.f32.xlu0 %v13374_v20 }
 0xa91   :  { %v3066_v33 = vpop.xlane.xlu0 %3065 }
 0xa92   :  { %10981 = vpow2.f32 %v3111_v47  ;;  %v3087_v4 = vsub.f32 %v13311_v50, %v3066_v33  ;;  %v3206_v47 = vpop.permute.xlu1 %3205 }
 0xa93   :  { %v13381_v57 = vpop.eup %10973  ;;  %10983 = vpow2.f32 %v3121_v59 }
 0xa94   :  { %v3113_v14 = vmul.f32 1.442695, %v3087_v4  ;;  %3127 = vadd.xlane.f32.xlu0 %v13377_v22  ;;  %3137 = vadd.xlane.f32.xlu1 %v13381_v57  ;;  %v13385_v18 = vpop.eup %10975 }
 0xa95   :  { %v3068_v63 = vpop.xlane.xlu0 %3067  ;;  %v13388_v45 = vpop.eup %10977 }
 0xa96   :  { %10985 = vpow2.f32 %v3113_v14  ;;  %v3088_v39 = vsub.f32 %v13315_v2, %v3068_v63  ;;  %v3200_v63 = vpop.permute.xlu1 %3199 }
 0xa97   :  { %10987 = vpow2.f32 %v3109_v54  ;;  %v13393_v51 = vpop.eup %10979 }
 0xa98   :  { %3135 = vadd.xlane.f32.xlu0 %v13388_v45  ;;  %3133 = vadd.xlane.f32.xlu1 %v13385_v18  ;;  %v3115_v50 = vmul.f32 1.442695, %v3088_v39 }
 0xa99   :  { %v3070_v26 = vpop.xlane.xlu0 %3069 }
 0xa9a   :  { %v3089_v53 = vsub.f32 %v13319_v61, %v3070_v26  ;;  %10989 = vpow2.f32 %v3115_v50 }
 0xa9c   :  { %3139 = vadd.xlane.f32.xlu1 %v13393_v51  ;;  %v3117_v16 = vmul.f32 1.442695, %v3089_v53 }
 0xa9d   :  { %v3072_v60 = vpop.xlane.xlu0 %3071 }
 0xa9e   :  { %v3090_v2 = vsub.f32 %v13323_v13, %v3072_v60  ;;  %10991 = vpow2.f32 %v3117_v16 }
 0xa9f   :  { %v13397_v37 = vpop.eup %10981 }
 0xaa0   :  { %v3119_v41 = vmul.f32 1.442695, %v3090_v2  ;;  %3143 = vadd.xlane.f32.xlu0 %v13397_v37  ;;  %v13400_v43 = vpop.eup %10983 }
 0xaa1   :  { %v3076_v17 = vpop.xlane.xlu0 %3075 }
 0xaa2   :  { %10993 = vpow2.f32 %v3119_v41  ;;  %v3092_v61 = vsub.f32 %v13327_v8, %v3076_v17 }
 0xaa3   :  { %v13403_v56 = vpop.eup %10985 }
 0xaa4   :  { %v3123_v44 = vmul.f32 1.442695, %v3092_v61  ;;  %3153 = vadd.xlane.f32.xlu0 %v13400_v43  ;;  %3145 = vadd.xlane.f32.xlu1 %v13403_v56  ;;  %v13407_v13 = vpop.eup %10987 }
 0xaa5   :  { %v3208_v15 = vpop.permute.xlu0 %3207 }
 0xaa6   :  { %10995 = vpow2.f32 %v3123_v44 }
 0xaa7   :  { %v13410_v28 = vpop.eup %10989 }
 0xaa8   :  { %3141 = vadd.xlane.f32.xlu1 %v13407_v13 }
 0xaa9   :  { %v3204_v46 = vpop.permute.xlu0 %3203 }
 0xaab   :  { %v13413_v34 = vpop.eup %10991 }
 0xaac   :  { %3147 = vadd.xlane.f32.xlu1 %v13410_v28 }
 0xaaf   :  { %v13415_v7 = vpop.eup %10993 }
 0xab0   :  { %3149 = vadd.xlane.f32.xlu1 %v13413_v34  ;;  %3151 = vadd.xlane.f32.xlu0 %v13415_v7 }
 0xab3   :  { %v13419_v8 = vpop.eup %10995 }
 0xab4   :  { %3155 = vadd.xlane.f32.xlu1 %v13419_v8 }
 0xac6   :  { %3197 = vrot.lane.b32.xlu0 %v16735_v6, %s11641_s22  ;;  %v13446_v6 = vpop.f32.mrf.mxu0 }
 0xac8   :  { %v13448_v58 = vpop.f32.mrf.mxu0 }
 0xaca   :  { %v13450_v40 = vpop.f32.mrf.mxu0 }
 0xacc   :  { %v13452_v11 = vpop.f32.mrf.mxu0 }
 0xace   :  { %v13454_v31 = vpop.f32.mrf.mxu0 }
 0xafd   :  { %v9967_v12 = vpop.f32.mrf.mxu0 }
 0xaff   :  { %v2564_v23 = vpop.f32.mrf.mxu0 }
 0xb00   :  { %9983 = vmatprep.mubr.msk.f32.mxu0 %vm826_vm1, %v2564_v23 }
 0xb01   :  { %v9968_v36 = vpop.f32.mrf.mxu0 }
 0xb03   :  { %v2567_v49 = vpop.f32.mrf.mxu0 }
 0xb04   :  { %9984 = vmatmul.mubr.msk.f32.vlgmr.msra.gmra.mxu0 %vm826_vm1, %v2567_v49 }
 0xb05   :  { %10040 = vmatpush3.bf16.msra.mxu0 %v13351_v10  ;;  %v9971_v3 = vpop.f32.mrf.mxu0  ;;  %9986 = vmatprep.mubr.msk.f32.mxu0 %vm826_vm1, %v9967_v12  ;;  %v3202_v10 = vpop.permute.xlu0 %3201 }
 0xb06   :  { %10041 = vmatprep.subr.bf16.mxu0 %v3210_v1 }
 0xb07   :  { %v2580_v35 = vpop.f32.mrf.mxu0 }
 0xb08   :  { %9987 = vmatmul.mubr.msk.f32.gmra.mxu0 %vm826_vm1, %v9968_v36 }
 0xb09   :  { %10042 = vmatpush3.bf16.msra.mxu0 %v3210_v1  ;;  %v9972_v19 = vpop.f32.mrf.mxu0  ;;  %9989 = vmatprep.mubr.msk.f32.mxu0 %vm826_vm1, %v2580_v35 }
 0xb0a   :  { %10043 = vmatprep.subr.bf16.mxu0 %v3208_v15 }
 0xb0b   :  { %v2583_v55 = vpop.f32.mrf.mxu0 }
 0xb0c   :  { %9990 = vmatmul.mubr.msk.f32.gmra.mxu0 %vm826_vm1, %v2583_v55 }
 0xb0d   :  { %10044 = vmatpush3.bf16.msra.mxu0 %v3208_v15  ;;  %v9975_v59 = vpop.f32.mrf.mxu0  ;;  %9992 = vmatprep.mubr.msk.f32.mxu0 %vm826_vm1, %v9971_v3 }
 0xb0e   :  { %10045 = vmatprep.subr.bf16.mxu0 %v3206_v47 }
 0xb0f   :  { %v2596_v33 = vpop.f32.mrf.mxu0 }
 0xb10   :  { %9993 = vmatmul.mubr.msk.f32.gmra.mxu0 %vm826_vm1, %v9972_v19 }
 0xb11   :  { %10046 = vmatpush3.bf16.msra.mxu0 %v3206_v47  ;;  %v9976_v25 = vpop.f32.mrf.mxu0  ;;  %9995 = vmatprep.mubr.msk.f32.mxu0 %vm826_vm1, %v2596_v33  ;;  %v3130_v4 = vpop.xlane.xlu0 %3129 }
 0xb12   :  { %10047 = vmatprep.subr.bf16.mxu0 %v3204_v46 }
 0xb13   :  { %v2599_v14 = vpop.f32.mrf.mxu0 }
 0xb14   :  { %9996 = vmatmul.mubr.msk.f32.gmra.mxu0 %vm826_vm1, %v2599_v14 }
 0xb15   :  { %10048 = vmatpush3.bf16.msra.mxu0 %v3204_v46  ;;  %9998 = vmatprep.mubr.msk.f32.mxu0 %vm826_vm1, %v9975_v59  ;;  %v3126_v54 = vpop.xlane.xlu0 %3125 }
 0xb16   :  { %10049 = vmatprep.subr.bf16.mxu0 %v3202_v10 }
 0xb18   :  { %9999 = vmatmul.mubr.msk.f32.gmra.mxu0 %vm826_vm1, %v9976_v25 }
 0xb19   :  { %10050 = vmatpush3.bf16.msra.mxu0 %v3202_v10  ;;  %v3132_v39 = vpop.xlane.xlu0 %3131 }
 0xb1a   :  { %10051 = vmatprep.subr.bf16.mxu0 %v3200_v63 }
 0xb1d   :  { %10052 = vmatpush3.bf16.msra.mxu0 %v3200_v63  ;;  %v3138_v26 = vpop.xlane.xlu1 %3137  ;;  %v3128_v50 = vpop.xlane.xlu0 %3127 }
 0xb1e   :  { %10997 = vrcp.f32 %v3128_v50 }
 0xb1f   :  { %10999 = vrcp.f32 %v3126_v54 }
 0xb20   :  { %11001 = vrcp.f32 %v3132_v39 }
 0xb21   :  { %v3134_v53 = vpop.xlane.xlu1 %3133  ;;  %v3136_v16 = vpop.xlane.xlu0 %3135 }
 0xb22   :  { %11003 = vrcp.f32 %v3134_v53 }
 0xb23   :  { %11005 = vrcp.f32 %v3136_v16 }
 0xb24   :  { %11007 = vrcp.f32 %v3130_v4 }
 0xb25   :  { %v3140_v60 = vpop.xlane.xlu1 %3139 }
 0xb26   :  { %11009 = vrcp.f32 %v3140_v60 }
 0xb29   :  { %v3144_v2 = vpop.xlane.xlu0 %3143 }
 0xb2b   :  { %v10998_v49 = vpop.eup %10997 }
 0xb2c   :  { %v11000_v1 = vpop.eup %10999  ;;  %v3174_v47 = vmul.f32 %v10998_v49, %v13377_v22 }
 0xb2d   :  { %v3146_v41 = vpop.xlane.xlu1 %3145  ;;  %v3154_v17 = vpop.xlane.xlu0 %3153  ;;  %v3173_v33 = vmul.f32 %v11000_v1, %v13369_v24 }
 0xb2e   :  { %v11002_v35 = vpop.eup %11001 }
 0xb2f   :  { %v11004_v46 = vpop.eup %11003  ;;  %v3176_v25 = vmul.f32 %v11002_v35, %v13374_v20  ;;  %v3189_v4 = vpack.c.bf16 %v3174_v47, %v3173_v33 }
 0xb30   :  { %v11006_v59 = vpop.eup %11005  ;;  %v3177_v14 = vmul.f32 %v11004_v46, %v13385_v18  ;;  %v16757_v46 = vld [vmem:[#allocation37_spill] sm:$0xff] }
 0xb31   :  { %v3142_v61 = vpop.xlane.xlu1 %3141  ;;  %v11008_v10 = vpop.eup %11007  ;;  %v3178_v63 = vmul.f32 %v11006_v59, %v13388_v45 }
 0xb32   :  { %11011 = vrcp.f32 %v3142_v61  ;;  %v3175_v22 = vmul.f32 %v11008_v10, %v13366_v5 }
 0xb33   :  { %11013 = vrcp.f32 %v3138_v26  ;;  %v11010_v39 = vpop.eup %11009  ;;  %v3191_v50 = vpack.c.bf16 %v3178_v63, %v3177_v14  ;;  %v16760_v63 = vld [vmem:[#allocation33_spill] sm:$0xff] }
 0xb34   :  { %11015 = vrcp.f32 %v3144_v2  ;;  %v3190_v54 = vpack.c.bf16 %v3176_v25, %v3175_v22  ;;  %v3180_v18 = vmul.f32 %v11010_v39, %v13393_v51  ;;  %v2112_v22 = vadd.f32 %v13440_v52, %v16760_v63 }
 0xb35   :  { %v3148_v12 = vpop.xlane.xlu1 %3147 }
 0xb36   :  { %11017 = vrcp.f32 %v3148_v12 }
 0xb39   :  { %v3152_v44 = vpop.xlane.xlu0 %3151  ;;  %v3150_v19 = vpop.xlane.xlu1 %3149 }
 0xb3a   :  { %11019 = vrcp.f32 %v3150_v19  ;;  %v2082_v19 = vadd.f32 %v13428_v32, %v16757_v46  ;;  %v13561_v46 = vld [vmem:[%s16601_s11] ss:$0 sm:$0xff] }
 0xb3b   :  { %11021 = vrcp.f32 %v3152_v44 }
 0xb3c   :  { %v9979_v23 = vpop.f32.mrf.mxu0  ;;  %11023 = vrcp.f32 %v3146_v41 }
 0xb3d   :  { %v3198_v36 = vpop.permute.xlu0 %3197  ;;  %v3156_v26 = vpop.xlane.xlu1 %3155 }
 0xb3e   :  { %v2612_v15 = vpop.f32.mrf.mxu0  ;;  %10053 = vmatprep.subr.bf16.mxu0 %v3198_v36  ;;  %11025 = vrcp.f32 %v3156_v26  ;;  %v16761_v26 = vld [vmem:[#allocation36_spill] sm:$0xff] }
 0xb3f   :  { %10001 = vmatprep.mubr.msk.f32.mxu0 %vm826_vm1, %v2612_v15  ;;  %10054 = vmatpush3.bf16.msra.mxu0 %v3198_v36  ;;  %v11012_v24 = vpop.eup %11011  ;;  %11027 = vrcp.f32 %v3154_v17 }
 0xb40   :  { %v9980_v3 = vpop.f32.mrf.mxu0  ;;  %v11014_v20 = vpop.eup %11013  ;;  %v3181_v45 = vmul.f32 %v11012_v24, %v13407_v13 }
 0xb41   :  { %v11016_v53 = vpop.eup %11015  ;;  %v3179_v5 = vmul.f32 %v11014_v20, %v13381_v57 }
 0xb42   :  { %v2615_v55 = vpop.f32.mrf.mxu0  ;;  %v3182_v16 = vmul.f32 %v11016_v53, %v13397_v37  ;;  %v801_v37 = vld [vmem:[%s16600_s10 + $0x18] sm:$0xff]  ;;  %v16762_v53 = vld [vmem:[#allocation35_spill] sm:$0xff] }
 0xb43   :  { %10002 = vmatmul.mubr.msk.f32.gmra.mxu0 %vm826_vm1, %v2615_v55  ;;  %v11018_v60 = vpop.eup %11017  ;;  %v3192_v2 = vpack.c.bf16 %v3180_v18, %v3179_v5  ;;  %10071 = vmatprep.subr.mxu0 %v801_v37  ;;  %v2132_v18 = vadd.f32 %v13448_v58, %v16762_v53 }
 0xb44   :  { %10004 = vmatprep.mubr.msk.f32.mxu0 %vm826_vm1, %v9979_v23  ;;  %v3193_v61 = vpack.c.bf16 %v3182_v16, %v3181_v45  ;;  %v3184_v23 = vmul.f32 %v11018_v60, %v13410_v28  ;;  %v16763_v16 = vld [vmem:[#allocation44_spill] sm:$0xff] }
 0xb45   :  { %v2142_v60 = vadd.f32 %v13452_v11, %v16763_v16  ;;  %v16769_v16 = vld [vmem:[#allocation32_spill] sm:$0xff] }
 0xb47   :  { %10005 = vmatmul.mubr.msk.f32.gmra.mxu0 %vm826_vm1, %v9980_v3  ;;  %v11020_v41 = vpop.eup %11019 }
 0xb48   :  { %10055 = vmatprep.mubr.bf16.mxu0 %v3189_v4  ;;  %v11022_v44 = vpop.eup %11021  ;;  %v3185_v36 = vmul.f32 %v11020_v41, %v13413_v34 }
 0xb49   :  { %v11024_v12 = vpop.eup %11023  ;;  %v3186_v51 = vmul.f32 %v11022_v44, %v13415_v7 }
 0xb4a   :  { %v3183_v13 = vmul.f32 %v11024_v12, %v13403_v56  ;;  %v2072_v56 = vadd.f32 %v13422_v29, %v13008_v42  ;;  %v16759_v29 = vld [vmem:[#allocation41_spill] sm:$0xff] }
 0xb4b   :  { %10056 = vmatmul.mubr.bf16.vlgmr.msra.gmra.mxu0 %v3190_v54  ;;  %v11026_v57 = vpop.eup %11025  ;;  %v3195_v15 = vpack.c.bf16 %v3186_v51, %v3185_v36  ;;  %v2102_v25 = vadd.f32 %v13436_v62, %v16759_v29 }
 0xb4c   :  { %10059 = vmatprep.mubr.bf16.mxu0 %v3191_v50  ;;  %v3194_v17 = vpack.c.bf16 %v3184_v23, %v3183_v13  ;;  %v11028_v49 = vpop.eup %11027  ;;  %10072 = vmatpush3.msra.mxu0 %v801_v37  ;;  %v3188_v28 = vmul.f32 %v11026_v57, %v13419_v8  ;;  %v16758_v8 = vld [vmem:[#allocation39_spill] sm:$0xff]  ;;  %v2122_v50 = vadd.f32 %v13444_v30, %v16761_v26 }
 0xb4d   :  { %v3187_v34 = vmul.f32 %v11028_v49, %v13400_v43  ;;  %v2092_v43 = vadd.f32 %v13432_v48, %v16758_v8 }
 0xb4f   :  { %v3196_v1 = vpack.c.bf16 %v3188_v28, %v3187_v34 }
 0xb53   :  { %10060 = vmatmul.mubr.bf16.gmra.mxu0 %v3192_v2 }
 0xb54   :  { %10063 = vmatprep.mubr.bf16.mxu0 %v3193_v61 }
 0xb5b   :  { %10064 = vmatmul.mubr.bf16.gmra.mxu0 %v3194_v17 }
 0xb5c   :  { %10067 = vmatprep.mubr.bf16.mxu0 %v3195_v15 }
 0xb63   :  { %10068 = vmatmul.mubr.bf16.gmra.mxu0 %v3196_v1  ;;  %v16764_v1 = vld [vmem:[#allocation42_spill] sm:$0xff] }
 0xbc4   :  { %v9985_v7 = vpop.f32.mrf.mxu0 }
 0xbc5   :  { %v13494_v3 = vadd.f32 %v9985_v7, %v2072_v56  ;;  %v2067_v56 = vadd.f32 %v13426_v21, %v16764_v1 }
 0xbc6   :  { %v13496_v35 = vpop.f32.mrf.mxu0 }
 0xbc8   :  { %v9988_v55 = vpop.f32.mrf.mxu0 }
 0xbc9   :  { %v13500_v47 = vadd.f32 %v9988_v55, %v2082_v19  ;;  %v2820_v19 = vadd.f32 %v13496_v35, %v2067_v56  ;;  %v16773_v56 = vld [vmem:[#allocation20_spill] sm:$0xff] }
 0xbca   :  { %v13502_v59 = vpop.f32.mrf.mxu0 }
 0xbcc   :  { %v9991_v10 = vpop.f32.mrf.mxu0 }
 0xbcd   :  { %v13506_v33 = vadd.f32 %v9991_v10, %v2092_v43  ;;  %v16765_v43 = vld [vmem:[#allocation38_spill] sm:$0xff] }
 0xbce   :  { %v13508_v42 = vpop.f32.mrf.mxu0  ;;  %v2077_v10 = vadd.f32 %v13430_v27, %v16765_v43 }
 0xbd0   :  { %v9994_v4 = vpop.f32.mrf.mxu0  ;;  %v2822_v21 = vadd.f32 %v13502_v59, %v2077_v10  ;;  %v16768_v59 = vld [vmem:[#allocation40_spill] sm:$0xff] }
 0xbd1   :  { %v13512_v14 = vadd.f32 %v9994_v4, %v2102_v25 }
 0xbd2   :  { %v13514_v32 = vpop.f32.mrf.mxu0 }
 0xbd4   :  { %v9997_v54 = vpop.f32.mrf.mxu0 }
 0xbd5   :  { %v13518_v39 = vadd.f32 %v9997_v54, %v2112_v22  ;;  %v16766_v54 = vld [vmem:[#allocation16_spill] sm:$0xff] }
 0xbd6   :  { %v13520_v48 = vpop.f32.mrf.mxu0 }
 0xbd8   :  { %v10000_v24 = vpop.f32.mrf.mxu0 }
 0xbd9   :  { %v13524_v20 = vadd.f32 %v10000_v24, %v2122_v50  ;;  %v16767_v24 = vld [vmem:[#allocation15_spill] sm:$0xff] }
 0xbda   :  { %v13526_v62 = vpop.f32.mrf.mxu0 }
 0xc03   :  { %v10003_v45 = vpop.f32.mrf.mxu0 }
 0xc04   :  { %v13530_v5 = vadd.f32 %v10003_v45, %v2132_v18  ;;  %v2087_v45 = vadd.f32 %v13434_v0, %v16768_v59 }
 0xc05   :  { %v13532_v52 = vpop.f32.mrf.mxu0 }
 0xc07   :  { %v10006_v2 = vpop.f32.mrf.mxu0 }
 0xc08   :  { %v13536_v41 = vadd.f32 %v10006_v2, %v2142_v60 }
 0xc09   :  { %v13538_v30 = vpop.f32.mrf.mxu0 }
 0xc0b   :  { %v10057_v61 = vpop.f32.mrf.mxu0 }
 0xc0d   :  { %v3255_v44 = vpop.f32.mrf.mxu0 }
 0xc0e   :  { %10073 = vmatprep.mubr.msk.f32.mxu0 %vm826_vm1, %v3255_v44 }
 0xc0f   :  { %v10058_v12 = vpop.f32.mrf.mxu0 }
 0xc11   :  { %v3258_v23 = vpop.f32.mrf.mxu0 }
 0xc12   :  { %10074 = vmatmul.mubr.msk.f32.vlgmr.msra.gmra.mxu0 %vm826_vm1, %v3258_v23 }
 0xc13   :  { %v10061_v58 = vpop.f32.mrf.mxu0  ;;  %10076 = vmatprep.mubr.msk.f32.mxu0 %vm826_vm1, %v10057_v61 }
 0xc15   :  { %v3271_v36 = vpop.f32.mrf.mxu0 }
 0xc16   :  { %10077 = vmatmul.mubr.msk.f32.gmra.mxu0 %vm826_vm1, %v10058_v12  ;;  %v16770_v12 = vld [vmem:[#allocation18_spill] sm:$0xff] }
 0xc17   :  { %v10062_v11 = vpop.f32.mrf.mxu0  ;;  %10079 = vmatprep.mubr.msk.f32.mxu0 %vm826_vm1, %v3271_v36 }
 0xc19   :  { %v3274_v51 = vpop.f32.mrf.mxu0 }
 0xc1a   :  { %10080 = vmatmul.mubr.msk.f32.gmra.mxu0 %vm826_vm1, %v3274_v51 }
 0xc1b   :  { %v10065_v13 = vpop.f32.mrf.mxu0  ;;  %10082 = vmatprep.mubr.msk.f32.mxu0 %vm826_vm1, %v10061_v58  ;;  %v2824_v58 = vadd.f32 %v13508_v42, %v2087_v45  ;;  %v16778_v45 = vld [vmem:[#allocation31_spill] sm:$0xff] }
 0xc1d   :  { %v3287_v17 = vpop.f32.mrf.mxu0 }
 0xc1e   :  { %10083 = vmatmul.mubr.msk.f32.gmra.mxu0 %vm826_vm1, %v10062_v11 }
 0xc1f   :  { %v10066_v57 = vpop.f32.mrf.mxu0  ;;  %10085 = vmatprep.mubr.msk.f32.mxu0 %vm826_vm1, %v3287_v17  ;;  %v16771_v17 = vld [vmem:[#allocation17_spill] sm:$0xff] }
 0xc21   :  { %v3290_v15 = vpop.f32.mrf.mxu0 }
 0xc22   :  { %10086 = vmatmul.mubr.msk.f32.gmra.mxu0 %vm826_vm1, %v3290_v15 }
 0xc23   :  { %v10069_v37 = vpop.f32.mrf.mxu0  ;;  %10088 = vmatprep.mubr.msk.f32.mxu0 %vm826_vm1, %v10065_v13 }
 0xc25   :  { %v3303_v49 = vpop.f32.mrf.mxu0 }
 0xc26   :  { %10089 = vmatmul.mubr.msk.f32.gmra.mxu0 %vm826_vm1, %v10066_v57 }
 0xc27   :  { %v10070_v28 = vpop.f32.mrf.mxu0  ;;  %10091 = vmatprep.mubr.msk.f32.mxu0 %vm826_vm1, %v3303_v49 }
 0xc29   :  { %v3306_v34 = vpop.f32.mrf.mxu0 }
 0xc2a   :  { %10092 = vmatmul.mubr.msk.f32.gmra.mxu0 %vm826_vm1, %v3306_v34  ;;  %v16772_v34 = vld [vmem:[#allocation21_spill] sm:$0xff] }
 0xc2b   :  { %10094 = vmatprep.mubr.msk.f32.mxu0 %vm826_vm1, %v10069_v37 }
 0xc2e   :  { %10095 = vmatmul.mubr.msk.f32.gmra.mxu0 %vm826_vm1, %v10070_v28 }
 0xcd2   :  { %v10075_v7 = vpop.f32.mrf.mxu0 }
 0xcd3   :  { %v3512_v55 = vadd.f32 %v10075_v7, %v13494_v3 }
 0xcd4   :  { %v3432_v8 = vpop.f32.mrf.mxu0 }
 0xcd5   :  { %v3535_v29 = vadd.f32 %v13561_v46, %v3512_v55  ;;  %v3511_v25 = vadd.f32 %v3432_v8, %v2820_v19  ;;  %v16774_v8 = vld [vmem:[#allocation34_spill] sm:$0xff] }
 0xcd6   :  { %v10078_v4 = vpop.f32.mrf.mxu0  ;;  %v2107_v43 = vadd.f32 %v13442_v9, %v16774_v8  ;;  %v16785_v8 = vld [vmem:[#allocation28_spill] sm:$0xff] }
 0xcd7   :  { %v3534_v63 = vadd.f32 %v13561_v46, %v3511_v25  ;;  %v3514_v22 = vadd.f32 %v10078_v4, %v13500_v47  ;;  %v13572_v26 = vadd.f32 %v3535_v29, %v16766_v54  ;;  %v2097_v47 = vadd.f32 %v13438_v38, %v16769_v16  ;;  %v16775_v4 = vld [vmem:[#allocation19_spill] sm:$0xff]  ;;  %v16776_v54 = vld [vmem:[#allocation45_spill] sm:$0xff] }
 0xcd8   :  { %v3442_v35 = vpop.f32.mrf.mxu0 }
 0xcd9   :  { %v3537_v3 = vadd.f32 %v13561_v46, %v3514_v22  ;;  %v3513_v50 = vadd.f32 %v3442_v35, %v2822_v21  ;;  %v3571_v27 = vsel %vm152_vm0, %v13572_v26, 0.0  ;;  %v13578_v53 = vadd.f32 %v3534_v63, %v16767_v24 }
 0xcda   :  { %3572 = vadd.xlane.f32.xlu1 %v3571_v27  ;;  %v10081_v18 = vpop.f32.mrf.mxu0  ;;  %v2826_v0 = vadd.f32 %v13514_v32, %v2097_v47  ;;  %v2828_v22 = vadd.f32 %v13520_v48, %v2107_v43  ;;  %v2137_v35 = vadd.f32 %v13454_v31, %v16776_v54  ;;  %v16777_v27 = vld [vmem:[#allocation22_spill] sm:$0xff]  ;;  %v2117_v48 = vadd.f32 %v13446_v6, %v16778_v45 }
 0xcdb   :  { %v3536_v2 = vadd.f32 %v13561_v46, %v3513_v50  ;;  %v3516_v61 = vadd.f32 %v10081_v18, %v13506_v33  ;;  %v3568_v44 = vsel %vm152_vm0, %v13578_v53, 0.0  ;;  %v13589_v23 = vadd.f32 %v3537_v3, %v16770_v12 }
 0xcdc   :  { %v3452_v60 = vpop.f32.mrf.mxu0  ;;  %v2834_v59 = vadd.f32 %v13538_v30, %v2137_v35  ;;  %v2830_v12 = vadd.f32 %v13526_v62, %v2117_v48 }
 0xcdd   :  { %v3515_v11 = vadd.f32 %v3452_v60, %v2824_v58  ;;  %v3539_v38 = vadd.f32 %v13561_v46, %v3516_v61  ;;  %v3577_v33 = vsel %vm152_vm0, %v13589_v23, 0.0  ;;  %v13597_v57 = vadd.f32 %v3536_v2, %v16771_v17  ;;  %v16779_v61 = vld [vmem:[#allocation24_spill] sm:$0xff] }
 0xcde   :  { %3569 = vadd.xlane.f32.xlu1 %v3568_v44  ;;  %v10084_v36 = vpop.f32.mrf.mxu0 }
 0xcdf   :  { %v3538_v42 = vadd.f32 %v13561_v46, %v3515_v11  ;;  %v3518_v32 = vadd.f32 %v10084_v36, %v13512_v14  ;;  %v3574_v28 = vsel %vm152_vm0, %v13597_v57, 0.0  ;;  %v13608_v7 = vadd.f32 %v3539_v38, %v16773_v56  ;;  %v16780_v36 = vld [vmem:[#allocation29_spill] sm:$0xff]  ;;  %v16781_v11 = vld [vmem:[#allocation23_spill] sm:$0xff] }
 0xce0   :  { %v3462_v51 = vpop.f32.mrf.mxu0 }
 0xce1   :  { %v3517_v13 = vadd.f32 %v3462_v51, %v2826_v0  ;;  %v3541_v14 = vadd.f32 %v13561_v46, %v3518_v32  ;;  %v3583_v25 = vsel %vm152_vm0, %v13608_v7, 0.0  ;;  %v13619_v21 = vadd.f32 %v3538_v42, %v16775_v4 }
 0xce2   :  { %3578 = vadd.xlane.f32.xlu1 %v3577_v33  ;;  %v10087_v15 = vpop.f32.mrf.mxu0 }
 0xce3   :  { %v3540_v37 = vadd.f32 %v13561_v46, %v3517_v13  ;;  %v3520_v29 = vadd.f32 %v10087_v15, %v13518_v39  ;;  %v3580_v39 = vsel %vm152_vm0, %v13619_v21, 0.0  ;;  %v13628_v24 = vadd.f32 %v3541_v14, %v16777_v27  ;;  %v16782_v13 = vld [vmem:[#allocation43_spill] sm:$0xff] }
 0xce4   :  { %v3472_v49 = vpop.f32.mrf.mxu0  ;;  %v2127_v62 = vadd.f32 %v13450_v40, %v16782_v13  ;;  %v16786_v14 = vld [vmem:[#allocation27_spill] sm:$0xff] }
 0xce5   :  { %v13605_v1 = vadd.f32 %v3540_v37, %v16772_v34  ;;  %v3543_v3 = vadd.f32 %v13561_v46, %v3520_v29  ;;  %v3519_v50 = vadd.f32 %v3472_v49, %v2828_v22  ;;  %v3589_v2 = vsel %vm152_vm0, %v13628_v24, 0.0  ;;  %v16783_v37 = vld [vmem:[#allocation26_spill] sm:$0xff]  ;;  %v16784_v34 = vld [vmem:[#allocation25_spill] sm:$0xff] }
 0xce6   :  { %3575 = vadd.xlane.f32.xlu1 %v3574_v28  ;;  %v10090_v19 = vpop.f32.mrf.mxu0  ;;  %v2832_v49 = vadd.f32 %v13532_v52, %v2127_v62 }
 0xce7   :  { %v3586_v55 = vsel %vm152_vm0, %v13605_v1, 0.0  ;;  %v3522_v16 = vadd.f32 %v10090_v19, %v13524_v20  ;;  %v3542_v47 = vadd.f32 %v13561_v46, %v3519_v50  ;;  %v13638_v44 = vadd.f32 %v3543_v3, %v16779_v61 }
 0xce8   :  { %3587 = vadd.xlane.f32.xlu0 %v3586_v55  ;;  %v3482_v10 = vpop.f32.mrf.mxu0 }
 0xce9   :  { %v3545_v58 = vadd.f32 %v13561_v46, %v3522_v16  ;;  %v3521_v6 = vadd.f32 %v3482_v10, %v2830_v12  ;;  %v3595_v20 = vsel %vm152_vm0, %v13638_v44, 0.0  ;;  %v13649_v51 = vadd.f32 %v3542_v47, %v16781_v11 }
 0xcea   :  { %3584 = vadd.xlane.f32.xlu1 %v3583_v25  ;;  %v10093_v63 = vpop.f32.mrf.mxu0 }
 0xceb   :  { %v3544_v33 = vadd.f32 %v13561_v46, %v3521_v6  ;;  %v3524_v17 = vadd.f32 %v10093_v63, %v13530_v5  ;;  %v3592_v15 = vsel %vm152_vm0, %v13649_v51, 0.0  ;;  %v13660_v42 = vadd.f32 %v3545_v58, %v16783_v37 }
 0xcec   :  { %v3492_v9 = vpop.f32.mrf.mxu0 }
 0xced   :  { %v3547_v32 = vadd.f32 %v13561_v46, %v3524_v17  ;;  %v3523_v28 = vadd.f32 %v3492_v9, %v2832_v49  ;;  %v3601_v40 = vsel %vm152_vm0, %v13660_v42, 0.0  ;;  %v13667_v56 = vadd.f32 %v3544_v33, %v16784_v34 }
 0xcee   :  { %3581 = vadd.xlane.f32.xlu1 %v3580_v39  ;;  %v10096_v18 = vpop.f32.mrf.mxu0 }
 0xcef   :  { %v3546_v5 = vadd.f32 %v13561_v46, %v3523_v28  ;;  %v3526_v19 = vadd.f32 %v10096_v18, %v13536_v41  ;;  %v3598_v55 = vsel %vm152_vm0, %v13667_v56, 0.0  ;;  %v13674_v43 = vadd.f32 %v3547_v32, %v16785_v8  ;;  %v16787_v41 = vld [vmem:[#allocation30_spill] sm:$0xff] }
 0xcf0   :  { %v3502_v31 = vpop.f32.mrf.mxu0 }
 0xcf1   :  { %v3525_v60 = vadd.f32 %v3502_v31, %v2834_v59  ;;  %v3549_v52 = vadd.f32 %v13561_v46, %v3526_v19  ;;  %v3607_v10 = vsel %vm152_vm0, %v13674_v43, 0.0  ;;  %v13680_v29 = vadd.f32 %v3546_v5, %v16786_v14 }
 0xcf2   :  { %3590 = vadd.xlane.f32.xlu1 %v3589_v2 }
 0xcf3   :  { %v3548_v30 = vadd.f32 %v13561_v46, %v3525_v60  ;;  %v3604_v25 = vsel %vm152_vm0, %v13680_v29, 0.0  ;;  %v13685_v4 = vadd.f32 %v3549_v52, %v16787_v41 }
 0xcf5   :  { %v13646_v0 = vadd.f32 %v3548_v30, %v16780_v36  ;;  %v3613_v63 = vsel %vm152_vm0, %v13685_v4, 0.0 }
 0xcf6   :  { %3596 = vadd.xlane.f32.xlu1 %v3595_v20 }
 0xcf7   :  { %v3610_v38 = vsel %vm152_vm0, %v13646_v0, 0.0 }
 0xcf8   :  { %3611 = vadd.xlane.f32.xlu0 %v3610_v38 }
 0xcfa   :  { %3593 = vadd.xlane.f32.xlu1 %v3592_v15 }
 0xcfe   :  { %3602 = vadd.xlane.f32.xlu1 %v3601_v40 }
 0xd02   :  { %3599 = vadd.xlane.f32.xlu1 %v3598_v55 }
 0xd06   :  { %3608 = vadd.xlane.f32.xlu1 %v3607_v10 }
 0xd0a   :  { %3605 = vadd.xlane.f32.xlu1 %v3604_v25 }
 0xd0e   :  { %3614 = vadd.xlane.f32.xlu1 %v3613_v63 }
 0xd63   :  { %v3573_v22 = vpop.xlane.xlu1 %3572 }
 0xd64   :  { %v3617_v46 = vmul.f32 0.03125, %v3573_v22 }
 0xd66   :  { %v13690_v54 = vsub.f32 %v13572_v26, %v3617_v46 }
 0xd67   :  { %v3570_v35 = vpop.xlane.xlu1 %3569 }
 0xd68   :  { %v3616_v9 = vmul.f32 0.03125, %v3570_v35  ;;  %v3649_v3 = vmul.f32 %v13690_v54, %v13690_v54 }
 0xd6a   :  { %v13695_v50 = vsub.f32 %v13578_v53, %v3616_v9  ;;  %v3667_v39 = vsel %vm152_vm0, %v3649_v3, 0.0  ;;  %v10723_v9 = vld [vmem:[#allocation8 + $0x8] sm:$0xff]  }
 0xd6b   :  { %v3579_v27 = vpop.xlane.xlu1 %3578  ;;  %3668 = vadd.xlane.f32.xlu1 %v3667_v39  ;;  %10097 = vmatprep.subr.bf16.mxu1 %v10723_v9 }
 0xd6c   :  { %v3619_v18 = vmul.f32 0.03125, %v3579_v27  ;;  %v3648_v59 = vmul.f32 %v13695_v50, %v13695_v50  ;;  %10098 = vmatpush3.bf16.msra.mxu1 %v10723_v9 }
 0xd6e   :  { %v13701_v45 = vsub.f32 %v13589_v23, %v3619_v18  ;;  %v3664_v26 = vsel %vm152_vm0, %v3648_v59, 0.0 }
 0xd6f   :  { %v3576_v48 = vpop.xlane.xlu1 %3575  ;;  %3665 = vadd.xlane.f32.xlu0 %v3664_v26 }
 0xd70   :  { %v3618_v16 = vmul.f32 0.03125, %v3576_v48  ;;  %v3651_v53 = vmul.f32 %v13701_v45, %v13701_v45 }
 0xd71   :  { %v3588_v60 = vpop.xlane.xlu0 %3587 }
 0xd72   :  { %v13707_v31 = vsub.f32 %v13597_v57, %v3618_v16  ;;  %v3673_v47 = vsel %vm152_vm0, %v3651_v53, 0.0  ;;  %v3622_v12 = vmul.f32 0.03125, %v3588_v60 }
 0xd73   :  { %v3585_v2 = vpop.xlane.xlu1 %3584  ;;  %3674 = vadd.xlane.f32.xlu1 %v3673_v47 }
 0xd74   :  { %v3621_v61 = vmul.f32 0.03125, %v3585_v2  ;;  %v3650_v23 = vmul.f32 %v13707_v31, %v13707_v31  ;;  %v13719_v36 = vsub.f32 %v13605_v1, %v3622_v12 }
 0xd76   :  { %v13713_v30 = vsub.f32 %v13608_v7, %v3621_v61  ;;  %v3670_v58 = vsel %vm152_vm0, %v3650_v23, 0.0  ;;  %v3654_v1 = vmul.f32 %v13719_v36, %v13719_v36 }
 0xd77   :  { %v3582_v6 = vpop.xlane.xlu1 %3581  ;;  %3671 = vadd.xlane.f32.xlu0 %v3670_v58 }
 0xd78   :  { %v3620_v20 = vmul.f32 0.03125, %v3582_v6  ;;  %v3653_v57 = vmul.f32 %v13713_v30, %v13713_v30  ;;  %v3682_v28 = vsel %vm152_vm0, %v3654_v1, 0.0 }
 0xd7a   :  { %v13722_v11 = vsub.f32 %v13619_v21, %v3620_v20  ;;  %v3679_v38 = vsel %vm152_vm0, %v3653_v57, 0.0 }
 0xd7b   :  { %v3591_v13 = vpop.xlane.xlu1 %3590  ;;  %3680 = vadd.xlane.f32.xlu1 %v3679_v38 }
 0xd7c   :  { %v3623_v7 = vmul.f32 0.03125, %v3591_v13  ;;  %v3652_v62 = vmul.f32 %v13722_v11, %v13722_v11 }
 0xd7e   :  { %v13728_v33 = vsub.f32 %v13628_v24, %v3623_v7  ;;  %v3676_v17 = vsel %vm152_vm0, %v3652_v62, 0.0 }
 0xd7f   :  { %v3597_v15 = vpop.xlane.xlu1 %3596  ;;  %3677 = vadd.xlane.f32.xlu0 %v3676_v17 }
 0xd80   :  { %v3625_v21 = vmul.f32 0.03125, %v3597_v15  ;;  %v3655_v37 = vmul.f32 %v13728_v33, %v13728_v33 }
 0xd81   :  { %v3612_v22 = vpop.xlane.xlu0 %3611 }
 0xd82   :  { %v13736_v49 = vsub.f32 %v13638_v44, %v3625_v21  ;;  %v3685_v32 = vsel %vm152_vm0, %v3655_v37, 0.0  ;;  %v3630_v3 = vmul.f32 0.03125, %v3612_v22 }
 0xd83   :  { %v3594_v24 = vpop.xlane.xlu1 %3593  ;;  %3686 = vadd.xlane.f32.xlu1 %v3685_v32  ;;  %3683 = vadd.xlane.f32.xlu0 %v3682_v28  ;;  %v13788_v28 = vld [vmem:[%s16602_s12] ss:$0 sm:$0xff] }
 0xd84   :  { %v3624_v40 = vmul.f32 0.03125, %v3594_v24  ;;  %v3657_v34 = vmul.f32 %v13736_v49, %v13736_v49  ;;  %v13767_v26 = vsub.f32 %v13646_v0, %v3630_v3 }
 0xd86   :  { %v13743_v5 = vsub.f32 %v13649_v51, %v3624_v40  ;;  %v3691_v19 = vsel %vm152_vm0, %v3657_v34, 0.0 }
 0xd87   :  { %v3603_v55 = vpop.xlane.xlu1 %3602  ;;  %3692 = vadd.xlane.f32.xlu1 %v3691_v19 }
 0xd88   :  { %v3627_v44 = vmul.f32 0.03125, %v3603_v55  ;;  %v3656_v8 = vmul.f32 %v13743_v5, %v13743_v5 }
 0xd8a   :  { %v13749_v52 = vsub.f32 %v13660_v42, %v3627_v44  ;;  %v3688_v10 = vsel %vm152_vm0, %v3656_v8, 0.0 }
 0xd8b   :  { %v3600_v14 = vpop.xlane.xlu1 %3599  ;;  %3689 = vadd.xlane.f32.xlu0 %v3688_v10  ;;  %v13795_v10 = vld [vmem:[%s16603_s13] ss:$0 sm:$0xff] }
 0xd8c   :  { %v3626_v25 = vmul.f32 0.03125, %v3600_v14  ;;  %v3659_v51 = vmul.f32 %v13749_v52, %v13749_v52 }
 0xd8e   :  { %v13755_v41 = vsub.f32 %v13667_v56, %v3626_v25  ;;  %v3697_v63 = vsel %vm152_vm0, %v3659_v51, 0.0 }
 0xd8f   :  { %v3609_v46 = vpop.xlane.xlu1 %3608  ;;  %3698 = vadd.xlane.f32.xlu1 %v3697_v63 }
 0xd90   :  { %v3629_v35 = vmul.f32 0.03125, %v3609_v46  ;;  %v3658_v42 = vmul.f32 %v13755_v41, %v13755_v41 }
 0xd92   :  { %v13761_v39 = vsub.f32 %v13674_v43, %v3629_v35  ;;  %v3694_v27 = vsel %vm152_vm0, %v3658_v42, 0.0  ;;  %v10724_v43 = vld [vmem:[#allocation8] sm:$0xff]  }
 0xd93   :  { %v3606_v18 = vpop.xlane.xlu1 %3605  ;;  %3695 = vadd.xlane.f32.xlu0 %v3694_v27  ;;  %10099 = vmatprep.subr.bf16.mxu1 %v10724_v43 }
 0xd94   :  { %v3628_v56 = vmul.f32 0.03125, %v3606_v18  ;;  %v3661_v59 = vmul.f32 %v13761_v39, %v13761_v39  ;;  %10100 = vmatpush3.bf16.msra.mxu1 %v10724_v43 }
 0xd96   :  { %v13770_v48 = vsub.f32 %v13680_v29, %v3628_v56  ;;  %v3703_v16 = vsel %vm152_vm0, %v3661_v59, 0.0  ;;  %v3662_v29 = vmul.f32 %v13767_v26, %v13767_v26 }
 0xd97   :  { %3704 = vadd.xlane.f32.xlu1 %v3703_v16  ;;  %v3615_v53 = vpop.xlane.xlu1 %3614 }
 0xd98   :  { %v3631_v47 = vmul.f32 0.03125, %v3615_v53  ;;  %v3660_v60 = vmul.f32 %v13770_v48, %v13770_v48  ;;  %v3706_v12 = vsel %vm152_vm0, %v3662_v29, 0.0 }
 0xd9a   :  { %v13776_v2 = vsub.f32 %v13685_v4, %v3631_v47  ;;  %v3700_v0 = vsel %vm152_vm0, %v3660_v60, 0.0 }
 0xd9b   :  { %3701 = vadd.xlane.f32.xlu0 %v3700_v0 }
 0xd9c   :  { %v3663_v61 = vmul.f32 %v13776_v2, %v13776_v2 }
 0xd9e   :  { %v3709_v23 = vsel %vm152_vm0, %v3663_v61, 0.0 }
 0xd9f   :  { %3710 = vadd.xlane.f32.xlu1 %v3709_v23  ;;  %3707 = vadd.xlane.f32.xlu0 %v3706_v12 }
 0xdf4   :  { %v3669_v58 = vpop.xlane.xlu1 %3668 }
 0xdf5   :  { %v3713_v6 = vmul.f32 0.03125, %v3669_v58 }
 0xdf7   :  { %v3729_v20 = vadd.f32 1e-12, %v3713_v6 }
 0xdf8   :  { %v3666_v4 = vpop.xlane.xlu0 %3665 }
 0xdf9   :  { %11029 = vrsqrt.f32 %v3729_v20  ;;  %v3712_v57 = vmul.f32 0.03125, %v3666_v4 }
 0xdfb   :  { %v3728_v38 = vadd.f32 1e-12, %v3712_v57 }
 0xdfc   :  { %v3675_v13 = vpop.xlane.xlu1 %3674 }
 0xdfd   :  { %11031 = vrsqrt.f32 %v3728_v38  ;;  %v3715_v7 = vmul.f32 0.03125, %v3675_v13 }
 0xdff   :  { %v3731_v62 = vadd.f32 1e-12, %v3715_v7 }
 0xe00   :  { %v3672_v17 = vpop.xlane.xlu0 %3671 }
 0xe01   :  { %11033 = vrsqrt.f32 %v3731_v62  ;;  %v3714_v1 = vmul.f32 0.03125, %v3672_v17 }
 0xe03   :  { %v3730_v15 = vadd.f32 1e-12, %v3714_v1 }
 0xe04   :  { %v3681_v21 = vpop.xlane.xlu1 %3680 }
 0xe05   :  { %11035 = vrsqrt.f32 %v3730_v15  ;;  %v3717_v37 = vmul.f32 0.03125, %v3681_v21 }
 0xe06   :  { %v11030_v32 = vpop.eup %11029 }
 0xe07   :  { %v3733_v24 = vadd.f32 1e-12, %v3717_v37  ;;  %v3761_v40 = vmul.f32 %v11030_v32, %v13690_v54 }
 0xe08   :  { %v3678_v34 = vpop.xlane.xlu0 %3677 }
 0xe09   :  { %11037 = vrsqrt.f32 %v3733_v24  ;;  %v3716_v19 = vmul.f32 0.03125, %v3678_v34  ;;  %v3783_v44 = vmul.f32 %v13788_v28, %v3761_v40 }
 0xe0a   :  { %v11032_v55 = vpop.eup %11031 }
 0xe0b   :  { %v3732_v8 = vadd.f32 1e-12, %v3716_v19  ;;  %v3760_v14 = vmul.f32 %v11032_v55, %v13695_v50  ;;  %v13800_v35 = vadd.f32 %v13795_v10, %v3783_v44 }
 0xe0c   :  { %v3687_v25 = vpop.xlane.xlu1 %3686  ;;  %v3684_v51 = vpop.xlane.xlu0 %3683 }
 0xe0d   :  { %11039 = vrsqrt.f32 %v3732_v8  ;;  %v3719_v63 = vmul.f32 0.03125, %v3687_v25  ;;  %v3718_v22 = vmul.f32 0.03125, %v3684_v51  ;;  %v3782_v54 = vmul.f32 %v13788_v28, %v3760_v14 }
 0xe0e   :  { %v11034_v46 = vpop.eup %11033 }
 0xe0f   :  { %v3763_v42 = vmul.f32 %v11034_v46, %v13701_v45  ;;  %v3735_v9 = vadd.f32 1e-12, %v3719_v63  ;;  %v3734_v3 = vadd.f32 1e-12, %v3718_v22  ;;  %v13804_v27 = vadd.f32 %v13795_v10, %v3782_v54 }
 0xe10   :  { %v3693_v18 = vpop.xlane.xlu1 %3692 }
 0xe11   :  { %11041 = vrsqrt.f32 %v3735_v9  ;;  %v3721_v50 = vmul.f32 0.03125, %v3693_v18  ;;  %v3820_v56 = vpack.c.bf16 %v13800_v35, %v13804_v27  ;;  %v3785_v16 = vmul.f32 %v13788_v28, %v3763_v42 }
 0xe12   :  { %v11036_v59 = vpop.eup %11035  ;;  %11043 = vrsqrt.f32 %v3734_v3 }
 0xe13   :  { %v3762_v43 = vmul.f32 %v11036_v59, %v13707_v31  ;;  %v3737_v53 = vadd.f32 1e-12, %v3721_v50  ;;  %10101 = vmatprep.mubr.msk.bf16.mxu1 %vm152_vm0, %v3820_v56  ;;  %v13816_v23 = vadd.f32 %v13795_v10, %v3785_v16 }
 0xe14   :  { %v3690_v45 = vpop.xlane.xlu0 %3689 }
 0xe15   :  { %v3784_v47 = vmul.f32 %v13788_v28, %v3762_v43  ;;  %11045 = vrsqrt.f32 %v3737_v53  ;;  %v3720_v60 = vmul.f32 0.03125, %v3690_v45 }
 0xe16   :  { %v11038_v0 = vpop.eup %11037 }
 0xe17   :  { %v3736_v29 = vadd.f32 1e-12, %v3720_v60  ;;  %v13813_v61 = vadd.f32 %v13795_v10, %v3784_v47  ;;  %v3765_v12 = vmul.f32 %v11038_v0, %v13713_v30 }
 0xe18   :  { %v3699_v58 = vpop.xlane.xlu1 %3698 }
 0xe19   :  { %11047 = vrsqrt.f32 %v3736_v29  ;;  %v3723_v31 = vmul.f32 0.03125, %v3699_v58  ;;  %v3821_v6 = vpack.c.bf16 %v13816_v23, %v13813_v61  ;;  %v3787_v38 = vmul.f32 %v13788_v28, %v3765_v12 }
 0xe1a   :  { %v11040_v20 = vpop.eup %11039 }
 0xe1b   :  { %v3739_v4 = vadd.f32 1e-12, %v3723_v31  ;;  %10102 = vmatmul.mubr.msk.bf16.vlgmr.msra.gmra.mxu1 %vm152_vm0, %v3821_v6  ;;  %v3764_v57 = vmul.f32 %v11040_v20, %v13722_v11  ;;  %v13829_v21 = vadd.f32 %v13795_v10, %v3787_v38 }
 0xe1c   :  { %v3696_v13 = vpop.xlane.xlu0 %3695 }
 0xe1d   :  { %11049 = vrsqrt.f32 %v3739_v4  ;;  %v3722_v7 = vmul.f32 0.03125, %v3696_v13  ;;  %v3786_v62 = vmul.f32 %v13788_v28, %v3764_v57 }
 0xe1e   :  { %v11042_v30 = vpop.eup %11041 }
 0xe1f   :  { %v11044_v17 = vpop.eup %11043  ;;  %v3738_v1 = vadd.f32 1e-12, %v3722_v7  ;;  %v13826_v15 = vadd.f32 %v13795_v10, %v3786_v62  ;;  %v3767_v37 = vmul.f32 %v11042_v30, %v13728_v33 }
 0xe20   :  { %v3705_v32 = vpop.xlane.xlu1 %3704  ;;  %v3766_v11 = vmul.f32 %v11044_v17, %v13719_v36 }
 0xe21   :  { %11051 = vrsqrt.f32 %v3738_v1  ;;  %v3725_v24 = vmul.f32 0.03125, %v3705_v32  ;;  %v3822_v40 = vpack.c.bf16 %v13829_v21, %v13826_v15  ;;  %v3789_v34 = vmul.f32 %v13788_v28, %v3767_v37  ;;  %v10728_v32 = vld [vmem:[%s16606_s16] sm:$0xff]  }
 0xe22   :  { %v11046_v19 = vpop.eup %11045  ;;  %v3788_v55 = vmul.f32 %v13788_v28, %v3766_v11  ;;  %v13914_v11 = vld [vmem:[%s16605_s15] ss:$0 sm:$0xff] }
 0xe23   :  { %v3741_v44 = vadd.f32 1e-12, %v3725_v24  ;;  %10105 = vmatprep.mubr.msk.bf16.mxu1 %vm152_vm0, %v3822_v40  ;;  %v13839_v8 = vadd.f32 %v13795_v10, %v3789_v34  ;;  %v3769_v33 = vmul.f32 %v11046_v19, %v13736_v49 }
 0xe24   :  { %v3702_v14 = vpop.xlane.xlu0 %3701  ;;  %v13843_v36 = vadd.f32 %v13795_v10, %v3788_v55 }
 0xe25   :  { %11053 = vrsqrt.f32 %v3741_v44  ;;  %v3724_v25 = vmul.f32 0.03125, %v3702_v14  ;;  %v3791_v22 = vmul.f32 %v13788_v28, %v3769_v33 }
 0xe26   :  { %v11048_v51 = vpop.eup %11047  ;;  %v3823_v63 = vpack.c.bf16 %v13839_v8, %v13843_v36 }
 0xe27   :  { %v3740_v54 = vadd.f32 1e-12, %v3724_v25  ;;  %v3768_v46 = vmul.f32 %v11048_v51, %v13743_v5  ;;  %v13852_v56 = vadd.f32 %v13795_v10, %v3791_v22 }
 0xe28   :  { %10106 = vmatmul.mubr.msk.bf16.gmra.mxu1 %vm152_vm0, %v3823_v63  ;;  %v3711_v42 = vpop.xlane.xlu1 %3710  ;;  %v3708_v9 = vpop.xlane.xlu0 %3707 }
 0xe29   :  { %11055 = vrsqrt.f32 %v3740_v54  ;;  %v3727_v49 = vmul.f32 0.03125, %v3711_v42  ;;  %v3726_v3 = vmul.f32 0.03125, %v3708_v9  ;;  %v3790_v18 = vmul.f32 %v13788_v28, %v3768_v46 }
 0xe2a   :  { %v11050_v50 = vpop.eup %11049 }
 0xe2b   :  { %v3743_v59 = vadd.f32 1e-12, %v3727_v49  ;;  %v3742_v16 = vadd.f32 1e-12, %v3726_v3  ;;  %v13855_v43 = vadd.f32 %v13795_v10, %v3790_v18  ;;  %v3771_v5 = vmul.f32 %v11050_v50, %v13749_v52 }
 0xe2d   :  { %11057 = vrsqrt.f32 %v3743_v59  ;;  %v3824_v53 = vpack.c.bf16 %v13852_v56, %v13855_v43  ;;  %v3793_v60 = vmul.f32 %v13788_v28, %v3771_v5 }
 0xe2e   :  { %v11052_v45 = vpop.eup %11051  ;;  %11059 = vrsqrt.f32 %v3742_v16 }
 0xe2f   :  { %10109 = vmatprep.mubr.msk.bf16.mxu1 %vm152_vm0, %v3824_v53  ;;  %v3770_v47 = vmul.f32 %v11052_v45, %v13755_v41  ;;  %v13868_v52 = vadd.f32 %v13795_v10, %v3793_v60 }
 0xe31   :  { %v3792_v0 = vmul.f32 %v13788_v28, %v3770_v47 }
 0xe32   :  { %v11054_v29 = vpop.eup %11053 }
 0xe33   :  { %v13865_v12 = vadd.f32 %v13795_v10, %v3792_v0  ;;  %v3773_v58 = vmul.f32 %v11054_v29, %v13761_v39 }
 0xe35   :  { %v3825_v31 = vpack.c.bf16 %v13868_v52, %v13865_v12  ;;  %v3795_v20 = vmul.f32 %v13788_v28, %v3773_v58 }
 0xe36   :  { %v11056_v6 = vpop.eup %11055 }
 0xe37   :  { %10110 = vmatmul.mubr.msk.bf16.gmra.mxu1 %vm152_vm0, %v3825_v31  ;;  %v3772_v41 = vmul.f32 %v11056_v6, %v13770_v48  ;;  %v13881_v7 = vadd.f32 %v13795_v10, %v3795_v20 }
 0xe39   :  { %v3794_v4 = vmul.f32 %v13788_v28, %v3772_v41 }
 0xe3a   :  { %v11058_v57 = vpop.eup %11057 }
 0xe3b   :  { %v11060_v38 = vpop.eup %11059  ;;  %v13878_v13 = vadd.f32 %v13795_v10, %v3794_v4  ;;  %v3775_v39 = vmul.f32 %v11058_v57, %v13776_v2 }
 0xe3c   :  { %v3774_v62 = vmul.f32 %v11060_v38, %v13767_v26  ;;  %v10725_v26 = vld [vmem:[%s16606_s16 + $0x18] sm:$0xff]  }
 0xe3d   :  { %v3826_v30 = vpack.c.bf16 %v13881_v7, %v13878_v13  ;;  %v3797_v48 = vmul.f32 %v13788_v28, %v3775_v39  ;;  %10117 = vmatprep.subr.bf16.mxu0 %v10725_v26 }
 0xe3e   :  { %v3796_v17 = vmul.f32 %v13788_v28, %v3774_v62  ;;  %10118 = vmatpush3.bf16.msra.mxu0 %v10725_v26  ;;  %v10726_v28 = vld [vmem:[%s16606_s16 + $0x10] sm:$0xff]  }
 0xe3f   :  { %10113 = vmatprep.mubr.msk.bf16.mxu1 %vm152_vm0, %v3826_v30  ;;  %v13891_v1 = vadd.f32 %v13795_v10, %v3797_v48  ;;  %10119 = vmatprep.subr.bf16.mxu0 %v10726_v28 }
 0xe40   :  { %v13894_v37 = vadd.f32 %v13795_v10, %v3796_v17  ;;  %v10727_v10 = vld [vmem:[%s16606_s16 + $0x8] sm:$0xff]  }
 0xe42   :  { %v3827_v2 = vpack.c.bf16 %v13891_v1, %v13894_v37  ;;  %10120 = vmatpush3.bf16.msra.mxu0 %v10726_v28 }
 0xe43   :  { %10121 = vmatprep.subr.bf16.mxu0 %v10727_v10 }
 0xe44   :  { %10114 = vmatmul.mubr.msk.bf16.gmra.mxu1 %vm152_vm0, %v3827_v2 }
 0xe46   :  { %10122 = vmatpush3.bf16.msra.mxu0 %v10727_v10 }
 0xe47   :  { %10123 = vmatprep.subr.bf16.mxu0 %v10728_v32 }
 0xe4a   :  { %10124 = vmatpush3.bf16.msra.mxu0 %v10728_v32 }
 0xedb   :  { %v10103_v24 = vpop.f32.mrf.mxu1 }
 0xedc   :  { %v13917_v40 = vadd.f32 %v10103_v24, %v13914_v11 }
 0xedd   :  { %v3909_v34 = vpop.f32.mrf.mxu1 }
 0xede   :  { %v3990_v19 = vmul.f32 0.044715, %v13917_v40  ;;  %v13921_v55 = vadd.f32 %v13914_v11, %v3909_v34 }
 0xedf   :  { %v10104_v44 = vpop.f32.mrf.mxu1 }
 0xee0   :  { %v4006_v33 = vmul.f32 %v3990_v19, %v13917_v40  ;;  %v3988_v14 = vmul.f32 0.044715, %v13921_v55  ;;  %v13926_v25 = vadd.f32 %v10104_v44, %v13914_v11 }
 0xee1   :  { %v3912_v51 = vpop.f32.mrf.mxu1 }
 0xee2   :  { %v4022_v63 = vmul.f32 %v4006_v33, %v13917_v40  ;;  %v4004_v22 = vmul.f32 %v3988_v14, %v13921_v55  ;;  %v3991_v54 = vmul.f32 0.044715, %v13926_v25  ;;  %v13932_v46 = vadd.f32 %v13914_v11, %v3912_v51 }
 0xee4   :  { %v4020_v42 = vmul.f32 %v4004_v22, %v13921_v55  ;;  %v4007_v9 = vmul.f32 %v3991_v54, %v13926_v25  ;;  %v3989_v49 = vmul.f32 0.044715, %v13932_v46  ;;  %v4038_v3 = vadd.f32 %v4022_v63, %v13917_v40 }
 0xee6   :  { %v4036_v18 = vadd.f32 %v4020_v42, %v13921_v55  ;;  %v4023_v50 = vmul.f32 %v4007_v9, %v13926_v25  ;;  %v4005_v59 = vmul.f32 %v3989_v49, %v13932_v46  ;;  %v4054_v60 = vmul.f32 0.7978846, %v4038_v3 }
 0xee8   :  { %v4052_v16 = vmul.f32 0.7978846, %v4036_v18  ;;  %v4039_v5 = vadd.f32 %v4023_v50, %v13926_v25  ;;  %v10107_v53 = vpop.f32.mrf.mxu1  ;;  %v4021_v45 = vmul.f32 %v4005_v59, %v13932_v46 }
 0xee9   :  { %v13944_v47 = vadd.f32 %v10107_v53, %v13914_v11 }
 0xeea   :  { %v4055_v0 = vmul.f32 0.7978846, %v4039_v5  ;;  %v3925_v29 = vpop.f32.mrf.mxu1  ;;  %v4037_v58 = vadd.f32 %v4021_v45, %v13932_v46  ;;  %11061 = vtanh.f32 %v4052_v16 }
 0xeeb   :  { %v3994_v31 = vmul.f32 0.044715, %v13944_v47  ;;  %v13949_v6 = vadd.f32 %v13914_v11, %v3925_v29 }
 0xeec   :  { %11063 = vtanh.f32 %v4055_v0  ;;  %v10108_v41 = vpop.f32.mrf.mxu1  ;;  %v4053_v20 = vmul.f32 0.7978846, %v4037_v58  ;;  %v3972_v58 = vmul.f32 0.5, %v13921_v55 }
 0xeed   :  { %v4010_v4 = vmul.f32 %v3994_v31, %v13944_v47  ;;  %v3992_v57 = vmul.f32 0.044715, %v13949_v6  ;;  %v13954_v38 = vadd.f32 %v10108_v41, %v13914_v11  ;;  %11065 = vtanh.f32 %v4054_v60 }
 0xeee   :  { %v3928_v39 = vpop.f32.mrf.mxu1  ;;  %11067 = vtanh.f32 %v4053_v20  ;;  %v3975_v20 = vmul.f32 0.5, %v13926_v25 }
 0xeef   :  { %v4026_v62 = vmul.f32 %v4010_v4, %v13944_v47  ;;  %v4008_v30 = vmul.f32 %v3992_v57, %v13949_v6  ;;  %v3995_v48 = vmul.f32 0.044715, %v13954_v38  ;;  %v13960_v17 = vadd.f32 %v13914_v11, %v3928_v39 }
 0xef1   :  { %v4042_v2 = vadd.f32 %v4026_v62, %v13944_v47  ;;  %v4024_v26 = vmul.f32 %v4008_v30, %v13949_v6  ;;  %v4011_v28 = vmul.f32 %v3995_v48, %v13954_v38  ;;  %v3993_v10 = vmul.f32 0.044715, %v13960_v17 }
 0xef2   :  { %v3973_v30 = vmul.f32 0.5, %v13932_v46 }
 0xef3   :  { %v4058_v32 = vmul.f32 0.7978846, %v4042_v2  ;;  %v4040_v24 = vadd.f32 %v4024_v26, %v13949_v6  ;;  %v4027_v34 = vmul.f32 %v4011_v28, %v13954_v38  ;;  %v4009_v19 = vmul.f32 %v3993_v10, %v13960_v17 }
 0xef4   :  { %v3974_v2 = vmul.f32 0.5, %v13917_v40 }
 0xef5   :  { %v4056_v44 = vmul.f32 0.7978846, %v4040_v24  ;;  %v4043_v33 = vadd.f32 %v4027_v34, %v13954_v38  ;;  %v4025_v14 = vmul.f32 %v4009_v19, %v13960_v17  ;;  %11069 = vtanh.f32 %v4058_v32 }
 0xef7   :  { %v4059_v51 = vmul.f32 0.7978846, %v4043_v33  ;;  %v10111_v63 = vpop.f32.mrf.mxu1  ;;  %v11062_v22 = vpop.eup %11061  ;;  %v4041_v54 = vadd.f32 %v4025_v14, %v13960_v17  ;;  %11071 = vtanh.f32 %v4056_v44 }
 0xef8   :  { %v13973_v42 = vadd.f32 %v10111_v63, %v13914_v11  ;;  %v4084_v31 = vadd.f32 1.0, %v11062_v22 }
 0xef9   :  { %v11064_v9 = vpop.eup %11063  ;;  %11073 = vtanh.f32 %v4059_v51  ;;  %v3941_v49 = vpop.f32.mrf.mxu1  ;;  %v4057_v3 = vmul.f32 0.7978846, %v4041_v54 }
 0xefa   :  { %v3998_v18 = vmul.f32 0.044715, %v13973_v42  ;;  %v11066_v50 = vpop.eup %11065  ;;  %v13977_v59 = vadd.f32 %v13914_v11, %v3941_v49  ;;  %v4087_v5 = vadd.f32 1.0, %v11064_v9  ;;  %v4100_v32 = vmul.f32 %v4084_v31, %v3972_v58 }
 0xefb   :  { %v10112_v16 = vpop.f32.mrf.mxu1  ;;  %11075 = vtanh.f32 %v4057_v3  ;;  %v11068_v60 = vpop.eup %11067  ;;  %v4086_v41 = vadd.f32 1.0, %v11066_v50  ;;  %v3979_v50 = vmul.f32 0.5, %v13954_v38 }
 0xefc   :  { %v4014_v53 = vmul.f32 %v3998_v18, %v13973_v42  ;;  %v13981_v45 = vadd.f32 %v10112_v16, %v13914_v11  ;;  %v3996_v0 = vmul.f32 0.044715, %v13977_v59  ;;  %v4085_v48 = vadd.f32 1.0, %v11068_v60 }
 0xefd   :  { %v3944_v29 = vpop.f32.mrf.mxu1  ;;  %v4103_v26 = vmul.f32 %v4087_v5, %v3975_v20  ;;  %v4102_v34 = vmul.f32 %v4086_v41, %v3974_v2  ;;  %v3978_v18 = vmul.f32 0.5, %v13944_v47  ;;  %v3977_v2 = vmul.f32 0.5, %v13960_v17 }
 0xefe   :  { %v4030_v4 = vmul.f32 %v4014_v53, %v13973_v42  ;;  %v3999_v57 = vmul.f32 0.044715, %v13981_v45  ;;  %v4012_v39 = vmul.f32 %v3996_v0, %v13977_v59  ;;  %v13990_v62 = vadd.f32 %v13914_v11, %v3944_v29 }
 0xeff   :  { %v4101_v24 = vmul.f32 %v4085_v48, %v3973_v30  ;;  %v4117_v51 = vpack.c.bf16 %v4103_v26, %v4102_v34  ;;  %v3976_v48 = vmul.f32 0.5, %v13949_v6 }
 0xf00   :  { %v4046_v55 = vadd.f32 %v4030_v4, %v13973_v42  ;;  %v4015_v28 = vmul.f32 %v3999_v57, %v13981_v45  ;;  %v4028_v25 = vmul.f32 %v4012_v39, %v13977_v59  ;;  %v3997_v10 = vmul.f32 0.044715, %v13990_v62 }
 0xf01   :  { %v4116_v33 = vpack.c.bf16 %v4101_v24, %v4100_v32 }
 0xf02   :  { %v4031_v19 = vmul.f32 %v4015_v28, %v13981_v45  ;;  %v4062_v44 = vmul.f32 0.7978846, %v4046_v55  ;;  %v4044_v46 = vadd.f32 %v4028_v25, %v13977_v59  ;;  %v4013_v40 = vmul.f32 %v3997_v10, %v13990_v62  ;;  %v11070_v14 = vpop.eup %11069 }
 0xf03   :  { %10125 = vmatprep.mubr.msk.bf16.mxu0 %vm4163_vm2, %v4116_v33  ;;  %v4090_v41 = vadd.f32 1.0, %v11070_v14 }
 0xf04   :  { %v4047_v63 = vadd.f32 %v4031_v19, %v13981_v45  ;;  %v10115_v22 = vpop.f32.mrf.mxu1  ;;  %v11072_v54 = vpop.eup %11071  ;;  %v4029_v9 = vmul.f32 %v4013_v40, %v13990_v62  ;;  %v4060_v16 = vmul.f32 0.7978846, %v4044_v46  ;;  %10126 = vmatmul.mubr.msk.bf16.vlgmr.msra.gmra.mxu0 %vm4163_vm2, %v4117_v51  ;;  %11077 = vtanh.f32 %v4062_v44 }
 0xf05   :  { %v14005_v49 = vadd.f32 %v10115_v22, %v13914_v11  ;;  %v4088_v31 = vadd.f32 1.0, %v11072_v54  ;;  %v4106_v46 = vmul.f32 %v4090_v41, %v3978_v18 }
 0xf06   :  { %v11074_v3 = vpop.eup %11073  ;;  %v4063_v5 = vmul.f32 0.7978846, %v4047_v63  ;;  %v3957_v53 = vpop.f32.mrf.mxu1  ;;  %v4045_v60 = vadd.f32 %v4029_v9, %v13990_v62 }
 0xf07   :  { %v4002_v0 = vmul.f32 0.044715, %v14005_v49  ;;  %v14013_v29 = vadd.f32 %v13914_v11, %v3957_v53  ;;  %v4091_v47 = vadd.f32 1.0, %v11074_v3  ;;  %v4104_v24 = vmul.f32 %v4088_v31, %v3976_v48 }
 0xf08   :  { %11079 = vtanh.f32 %v4063_v5  ;;  %v10116_v58 = vpop.f32.mrf.mxu1  ;;  %v11076_v20 = vpop.eup %11075  ;;  %v4061_v38 = vmul.f32 0.7978846, %v4045_v60  ;;  %v3983_v31 = vmul.f32 0.5, %v13981_v45 }
 0xf09   :  { %v4018_v4 = vmul.f32 %v4002_v0, %v14005_v49  ;;  %v4000_v57 = vmul.f32 0.044715, %v14013_v29  ;;  %v3969_v39 = vadd.f32 %v10116_v58, %v13914_v11  ;;  %v4089_v26 = vadd.f32 1.0, %v11076_v20 }
 0xf0a   :  { %v3960_v30 = vpop.f32.mrf.mxu1  ;;  %11081 = vtanh.f32 %v4060_v16  ;;  %v4107_v10 = vmul.f32 %v4091_v47, %v3979_v50  ;;  %v3980_v47 = vmul.f32 0.5, %v13977_v59  ;;  %v3981_v20 = vmul.f32 0.5, %v13990_v62 }
 0xf0b   :  { %v4034_v55 = vmul.f32 %v4018_v4, %v14005_v49  ;;  %v4016_v28 = vmul.f32 %v4000_v57, %v14013_v29  ;;  %v4003_v25 = vmul.f32 0.044715, %v3969_v39  ;;  %v3961_v32 = vadd.f32 %v13914_v11, %v3960_v30 }
 0xf0c   :  { %v4105_v34 = vmul.f32 %v4089_v26, %v3977_v2  ;;  %11083 = vtanh.f32 %v4061_v38  ;;  %v4119_v63 = vpack.c.bf16 %v4107_v10, %v4106_v46  ;;  %v3982_v4 = vmul.f32 0.5, %v13973_v42 }
 0xf0d   :  { %v4050_v19 = vadd.f32 %v4034_v55, %v14005_v49  ;;  %v4032_v44 = vmul.f32 %v4016_v28, %v14013_v29  ;;  %v4019_v6 = vmul.f32 %v4003_v25, %v3969_v39  ;;  %v4001_v17 = vmul.f32 0.044715, %v3961_v32 }
 0xf0e   :  { %v4118_v40 = vpack.c.bf16 %v4105_v34, %v4104_v24  ;;  %v3987_v62 = vmul.f32 0.5, %v3969_v39  ;;  %v3984_v42 = vmul.f32 0.5, %v14013_v29 }
 0xf0f   :  { %v4066_v33 = vmul.f32 0.7978846, %v4050_v19  ;;  %v4048_v14 = vadd.f32 %v4032_v44, %v14013_v29  ;;  %v4035_v51 = vmul.f32 %v4019_v6, %v3969_v39  ;;  %v4017_v22 = vmul.f32 %v4001_v17, %v3961_v32 }
 0xf10   :  { %10129 = vmatprep.mubr.msk.bf16.mxu0 %vm4163_vm2, %v4118_v40  ;;  %v3985_v19 = vmul.f32 0.5, %v3961_v32  ;;  %v3986_v6 = vmul.f32 0.5, %v14005_v49 }
 0xf11   :  { %v4064_v11 = vmul.f32 0.7978846, %v4048_v14  ;;  %v4051_v54 = vadd.f32 %v4035_v51, %v3969_v39  ;;  %10130 = vmatmul.mubr.msk.bf16.gmra.mxu0 %vm4163_vm2, %v4119_v63  ;;  %v4033_v9 = vmul.f32 %v4017_v22, %v3961_v32  ;;  %11085 = vtanh.f32 %v4066_v33  ;;  %v11078_v50 = vpop.eup %11077  ;;  %v14041_v39 = vld [vmem:[%s16607_s17] ss:$0 sm:$0xff] }
 0xf12   :  { %v4094_v41 = vadd.f32 1.0, %v11078_v50 }
 0xf13   :  { %v4067_v3 = vmul.f32 0.7978846, %v4051_v54  ;;  %v4049_v16 = vadd.f32 %v4033_v9, %v3961_v32  ;;  %11087 = vtanh.f32 %v4064_v11 }
 0xf14   :  { %v4110_v2 = vmul.f32 %v4094_v41, %v3982_v4 }
 0xf15   :  { %v11080_v18 = vpop.eup %11079  ;;  %11089 = vtanh.f32 %v4067_v3  ;;  %v4065_v5 = vmul.f32 0.7978846, %v4049_v16 }
 0xf16   :  { %v4095_v60 = vadd.f32 1.0, %v11080_v18 }
 0xf17   :  { %v11082_v53 = vpop.eup %11081  ;;  %11091 = vtanh.f32 %v4065_v5 }
 0xf18   :  { %v4092_v0 = vadd.f32 1.0, %v11082_v53  ;;  %v4111_v57 = vmul.f32 %v4095_v60, %v3983_v31 }
 0xf19   :  { %v11084_v58 = vpop.eup %11083 }
 0xf1a   :  { %v4093_v38 = vadd.f32 1.0, %v11084_v58  ;;  %v4108_v30 = vmul.f32 %v4092_v0, %v3980_v47  ;;  %v4121_v55 = vpack.c.bf16 %v4111_v57, %v4110_v2 }
 0xf1c   :  { %v4109_v48 = vmul.f32 %v4093_v38, %v3981_v20 }
 0xf1e   :  { %v4120_v26 = vpack.c.bf16 %v4109_v48, %v4108_v30  ;;  %v11086_v28 = vpop.eup %11085 }
 0xf1f   :  { %v4098_v34 = vadd.f32 1.0, %v11086_v28 }
 0xf20   :  { %10133 = vmatprep.mubr.msk.bf16.mxu0 %vm4163_vm2, %v4120_v26  ;;  %v11088_v25 = vpop.eup %11087 }
 0xf21   :  { %10134 = vmatmul.mubr.msk.bf16.gmra.mxu0 %vm4163_vm2, %v4121_v55  ;;  %v4096_v59 = vadd.f32 1.0, %v11088_v25  ;;  %v4114_v33 = vmul.f32 %v4098_v34, %v3986_v6 }
 0xf22   :  { %v11090_v45 = vpop.eup %11089 }
 0xf23   :  { %v4099_v10 = vadd.f32 1.0, %v11090_v45  ;;  %v4112_v17 = vmul.f32 %v4096_v59, %v3984_v42 }
 0xf24   :  { %v11092_v24 = vpop.eup %11091 }
 0xf25   :  { %v4097_v44 = vadd.f32 1.0, %v11092_v24  ;;  %v4115_v46 = vmul.f32 %v4099_v10, %v3987_v62 }
 0xf27   :  { %v4113_v40 = vmul.f32 %v4097_v44, %v3985_v19  ;;  %v4123_v51 = vpack.c.bf16 %v4115_v46, %v4114_v33 }
 0xf29   :  { %v4122_v14 = vpack.c.bf16 %v4113_v40, %v4112_v17 }
 0xf2b   :  { %10137 = vmatprep.mubr.msk.bf16.mxu0 %vm4163_vm2, %v4122_v14 }
 0xf2c   :  { %10138 = vmatmul.mubr.msk.bf16.gmra.mxu0 %vm4163_vm2, %v4123_v51 }
 0xfc4   :  { %v10127_v63 = vpop.f32.mrf.mxu0 }
 0xfc5   :  { %v4231_v32 = vadd.f32 %v10127_v63, %v14041_v39 }
 0xfc6   :  { %v4222_v29 = vpop.f32.mrf.mxu0 }
 0xfc7   :  { %v4223_v49 = vadd.f32 %v14041_v39, %v4222_v29  ;;  %v14049_v9 = vadd.f32 %v4231_v32, %v13813_v61 }
 0xfc8   :  { %v10128_v22 = vpop.f32.mrf.mxu0 }
 0xfc9   :  { %v14046_v11 = vadd.f32 %v4223_v49, %v13804_v27  ;;  %v4234_v3 = vadd.f32 %v10128_v22, %v14041_v39  ;;  %v4309_v61 = vsel %vm152_vm0, %v14049_v9, 0.0 }
 0xfca   :  { %v4225_v54 = vpop.f32.mrf.mxu0 }
 0xfcb   :  { %v4226_v50 = vadd.f32 %v14041_v39, %v4225_v54  ;;  %v4303_v16 = vsel %vm152_vm0, %v14046_v11, 0.0  ;;  %v14059_v5 = vadd.f32 %v4234_v3, %v13816_v23 }
 0xfcc   :  { %4304 = vadd.xlane.f32.xlu0 %v4303_v16 }
 0xfcd   :  { %v14056_v18 = vadd.f32 %v4226_v50, %v13800_v35  ;;  %v4312_v35 = vsel %vm152_vm0, %v14059_v5, 0.0 }
 0xfcf   :  { %v4306_v27 = vsel %vm152_vm0, %v14056_v18, 0.0 }
 0xfd0   :  { %4307 = vadd.xlane.f32.xlu1 %v4306_v27  ;;  %4310 = vadd.xlane.f32.xlu0 %v4309_v61 }
 0xfd1   :  { %v10131_v53 = vpop.f32.mrf.mxu0 }
 0xfd2   :  { %v4247_v0 = vadd.f32 %v10131_v53, %v14041_v39 }
 0xfd3   :  { %v4238_v60 = vpop.f32.mrf.mxu0 }
 0xfd4   :  { %v4239_v58 = vadd.f32 %v14041_v39, %v4238_v60  ;;  %4313 = vadd.xlane.f32.xlu1 %v4312_v35  ;;  %v14073_v47 = vadd.f32 %v4247_v0, %v13843_v36 }
 0xfd5   :  { %v10132_v31 = vpop.f32.mrf.mxu0 }
 0xfd6   :  { %v14070_v23 = vadd.f32 %v4239_v58, %v13826_v15  ;;  %v4250_v20 = vadd.f32 %v10132_v31, %v14041_v39  ;;  %v4321_v36 = vsel %vm152_vm0, %v14073_v47, 0.0 }
 0xfd7   :  { %v4241_v41 = vpop.f32.mrf.mxu0 }
 0xfd8   :  { %v4242_v38 = vadd.f32 %v14041_v39, %v4241_v41  ;;  %v4315_v4 = vsel %vm152_vm0, %v14070_v23, 0.0  ;;  %v14083_v30 = vadd.f32 %v4250_v20, %v13839_v8 }
 0xfd9   :  { %4316 = vadd.xlane.f32.xlu0 %v4315_v4 }
 0xfda   :  { %v14080_v57 = vadd.f32 %v4242_v38, %v13829_v21  ;;  %v4324_v48 = vsel %vm152_vm0, %v14083_v30, 0.0 }
 0xfdc   :  { %v4318_v15 = vsel %vm152_vm0, %v14080_v57, 0.0 }
 0xfdd   :  { %4319 = vadd.xlane.f32.xlu1 %v4318_v15  ;;  %4322 = vadd.xlane.f32.xlu0 %v4321_v36 }
 0xfe1   :  { %4325 = vadd.xlane.f32.xlu1 %v4324_v48  ;;  %v10135_v2 = vpop.f32.mrf.mxu0 }
 0xfe2   :  { %v4263_v21 = vadd.f32 %v10135_v2, %v14041_v39 }
 0xfe3   :  { %v4254_v26 = vpop.f32.mrf.mxu0 }
 0xfe4   :  { %v4255_v55 = vadd.f32 %v14041_v39, %v4254_v26  ;;  %v14097_v45 = vadd.f32 %v4263_v21, %v13865_v12 }
 0xfe5   :  { %v10136_v8 = vpop.f32.mrf.mxu0 }
 0xfe6   :  { %v14094_v28 = vadd.f32 %v4255_v55, %v13855_v43  ;;  %v4266_v10 = vadd.f32 %v10136_v8, %v14041_v39  ;;  %v4333_v12 = vsel %vm152_vm0, %v14097_v45, 0.0 }
 0xfe7   :  { %v4257_v25 = vpop.f32.mrf.mxu0 }
 0xfe8   :  { %v4258_v59 = vadd.f32 %v14041_v39, %v4257_v25  ;;  %v4327_v24 = vsel %vm152_vm0, %v14094_v28, 0.0  ;;  %v14107_v34 = vadd.f32 %v4266_v10, %v13868_v52 }
 0xfe9   :  { %4328 = vadd.xlane.f32.xlu0 %v4327_v24 }
 0xfea   :  { %v14104_v62 = vadd.f32 %v4258_v59, %v13852_v56  ;;  %v4336_v56 = vsel %vm152_vm0, %v14107_v34, 0.0 }
 0xfec   :  { %v4330_v43 = vsel %vm152_vm0, %v14104_v62, 0.0  ;;  %v10139_v42 = vpop.f32.mrf.mxu0 }
 0xfed   :  { %4331 = vadd.xlane.f32.xlu1 %v4330_v43  ;;  %4334 = vadd.xlane.f32.xlu0 %v4333_v12  ;;  %v4279_v44 = vadd.f32 %v10139_v42, %v14041_v39 }
 0xfee   :  { %v4270_v19 = vpop.f32.mrf.mxu0 }
 0xfef   :  { %v4271_v6 = vadd.f32 %v14041_v39, %v4270_v19  ;;  %v14121_v40 = vadd.f32 %v4279_v44, %v13894_v37 }
 0xff0   :  { %v10140_v52 = vpop.f32.mrf.mxu0 }
 0xff1   :  { %4337 = vadd.xlane.f32.xlu1 %v4336_v56  ;;  %v14118_v46 = vadd.f32 %v4271_v6, %v13878_v13  ;;  %v4282_v33 = vadd.f32 %v10140_v52, %v14041_v39  ;;  %v4345_v37 = vsel %vm152_vm0, %v14121_v40, 0.0 }
 0xff2   :  { %v4273_v17 = vpop.f32.mrf.mxu0 }
 0xff3   :  { %v4274_v14 = vadd.f32 %v14041_v39, %v4273_v17  ;;  %v4339_v51 = vsel %vm152_vm0, %v14118_v46, 0.0  ;;  %v14131_v29 = vadd.f32 %v4282_v33, %v13891_v1 }
 0xff4   :  { %4340 = vadd.xlane.f32.xlu0 %v4339_v51 }
 0xff5   :  { %v14128_v63 = vadd.f32 %v4274_v14, %v13881_v7  ;;  %v4348_v39 = vsel %vm152_vm0, %v14131_v29, 0.0 }
 0xff7   :  { %v4342_v13 = vsel %vm152_vm0, %v14128_v63, 0.0 }
 0xff8   :  { %4343 = vadd.xlane.f32.xlu1 %v4342_v13  ;;  %4346 = vadd.xlane.f32.xlu0 %v4345_v37 }
 0xffc   :  { %4349 = vadd.xlane.f32.xlu1 %v4348_v39 }
0x1055   :  { %v4305_v32 = vpop.xlane.xlu0 %4304 }
0x1056   :  { %v4351_v49 = vmul.f32 0.03125, %v4305_v32 }
0x1058   :  { %v14140_v7 = vsub.f32 %v14046_v11, %v4351_v49 }
0x1059   :  { %v4308_v22 = vpop.xlane.xlu1 %4307  ;;  %v4311_v1 = vpop.xlane.xlu0 %4310 }
0x105a   :  { %v4352_v54 = vmul.f32 0.03125, %v4308_v22  ;;  %v4353_v3 = vmul.f32 0.03125, %v4311_v1  ;;  %v4383_v50 = vmul.f32 %v14140_v7, %v14140_v7 }
0x105c   :  { %v14145_v16 = vsub.f32 %v14056_v18, %v4352_v54  ;;  %v14148_v27 = vsub.f32 %v14049_v9, %v4353_v3  ;;  %v4399_v61 = vsel %vm152_vm0, %v4383_v50, 0.0  ;;  %v10729_v3 = vld [vmem:[%s16596_s6 + $0x18] sm:$0xff]  }
0x105d   :  { %v4314_v53 = vpop.xlane.xlu1 %4313  ;;  %4400 = vadd.xlane.f32.xlu0 %v4399_v61  ;;  %v10730_v50 = vld [vmem:[%s16700_s29 + $0x18] sm:$0xff]   ;;  %10161 = vmatprep.subr.bf16.mxu0 %v10729_v3 }
0x105e   :  { %v4354_v60 = vmul.f32 0.03125, %v4314_v53  ;;  %v4384_v11 = vmul.f32 %v14145_v16, %v14145_v16  ;;  %v4385_v0 = vmul.f32 %v14148_v27, %v14148_v27  ;;  %10141 = vmatprep.subr.bf16.mxu1 %v10730_v50  ;;  %10162 = vmatpush3.bf16.msra.mxu0 %v10729_v3  ;;  %v14261_v3 = vld [vmem:[%s16609_s19] ss:$0 sm:$0xff] }
0x105f   :  { %10142 = vmatpush3.bf16.msra.mxu1 %v10730_v50 }
0x1060   :  { %v14156_v58 = vsub.f32 %v14059_v5, %v4354_v60  ;;  %v4402_v18 = vsel %vm152_vm0, %v4384_v11, 0.0  ;;  %v4405_v35 = vsel %vm152_vm0, %v4385_v0, 0.0 }
0x1061   :  { %4403 = vadd.xlane.f32.xlu1 %v4402_v18  ;;  %4406 = vadd.xlane.f32.xlu0 %v4405_v35  ;;  %v10731_v35 = vld [vmem:[%s16700_s29 + $0x10] sm:$0xff]  }
0x1062   :  { %v4317_v9 = vpop.xlane.xlu0 %4316  ;;  %v4386_v41 = vmul.f32 %v14156_v58, %v14156_v58  ;;  %10143 = vmatprep.subr.bf16.mxu1 %v10731_v35 }
0x1063   :  { %v4355_v31 = vmul.f32 0.03125, %v4317_v9  ;;  %v10732_v9 = vld [vmem:[%s16596_s6 + $0x10] sm:$0xff]   ;;  %10144 = vmatpush3.bf16.msra.mxu1 %v10731_v35 }
0x1064   :  { %v4408_v4 = vsel %vm152_vm0, %v4386_v41, 0.0  ;;  %10163 = vmatprep.subr.bf16.mxu0 %v10732_v9 }
0x1065   :  { %v14163_v20 = vsub.f32 %v14070_v23, %v4355_v31  ;;  %4409 = vadd.xlane.f32.xlu1 %v4408_v4  ;;  %10164 = vmatpush3.bf16.msra.mxu0 %v10732_v9 }
0x1066   :  { %v4320_v38 = vpop.xlane.xlu1 %4319  ;;  %v4323_v15 = vpop.xlane.xlu0 %4322 }
0x1067   :  { %v4356_v5 = vmul.f32 0.03125, %v4320_v38  ;;  %v4357_v36 = vmul.f32 0.03125, %v4323_v15  ;;  %v4387_v48 = vmul.f32 %v14163_v20, %v14163_v20 }
0x1069   :  { %v14169_v2 = vsub.f32 %v14080_v57, %v4356_v5  ;;  %v14172_v26 = vsub.f32 %v14073_v47, %v4357_v36  ;;  %v4411_v21 = vsel %vm152_vm0, %v4387_v48, 0.0  ;;  %v14247_v36 = vld [vmem:[#allocation7 + $0x18] sm:$0xff]  }
0x106a   :  { %v4326_v23 = vpop.xlane.xlu1 %4325  ;;  %4412 = vadd.xlane.f32.xlu0 %v4411_v21  ;;  %10181 = vmatprep.subr.bf16.mxu1 %v14247_v36 }
0x106b   :  { %v4358_v55 = vmul.f32 0.03125, %v4326_v23  ;;  %v4388_v8 = vmul.f32 %v14169_v2, %v14169_v2  ;;  %v4389_v25 = vmul.f32 %v14172_v26, %v14172_v26 }
0x106d   :  { %v14180_v10 = vsub.f32 %v14083_v30, %v4358_v55  ;;  %v4414_v57 = vsel %vm152_vm0, %v4388_v8, 0.0  ;;  %v4417_v59 = vsel %vm152_vm0, %v4389_v25, 0.0 }
0x106e   :  { %4415 = vadd.xlane.f32.xlu1 %v4414_v57  ;;  %4418 = vadd.xlane.f32.xlu0 %v4417_v59 }
0x106f   :  { %v4390_v47 = vmul.f32 %v14180_v10, %v14180_v10 }
0x1071   :  { %v4420_v24 = vsel %vm152_vm0, %v4390_v47, 0.0 }
0x1072   :  { %4421 = vadd.xlane.f32.xlu1 %v4420_v24  ;;  %v4329_v43 = vpop.xlane.xlu0 %4328 }
0x1073   :  { %v4359_v12 = vmul.f32 0.03125, %v4329_v43 }
0x1075   :  { %v14188_v42 = vsub.f32 %v14094_v28, %v4359_v12 }
0x1076   :  { %v4332_v19 = vpop.xlane.xlu1 %4331  ;;  %v4335_v30 = vpop.xlane.xlu0 %4334 }
0x1077   :  { %v4360_v44 = vmul.f32 0.03125, %v4332_v19  ;;  %v4361_v6 = vmul.f32 0.03125, %v4335_v30  ;;  %v4391_v56 = vmul.f32 %v14188_v42, %v14188_v42 }
0x1079   :  { %v14193_v52 = vsub.f32 %v14104_v62, %v4360_v44  ;;  %v14196_v17 = vsub.f32 %v14097_v45, %v4361_v6  ;;  %v4423_v33 = vsel %vm152_vm0, %v4391_v56, 0.0 }
0x107a   :  { %v4338_v14 = vpop.xlane.xlu1 %4337  ;;  %4424 = vadd.xlane.f32.xlu0 %v4423_v33 }
0x107b   :  { %v4362_v51 = vmul.f32 0.03125, %v4338_v14  ;;  %v4392_v28 = vmul.f32 %v14193_v52, %v14193_v52  ;;  %v4393_v13 = vmul.f32 %v14196_v17, %v14196_v17 }
0x107d   :  { %v14204_v37 = vsub.f32 %v14107_v34, %v4362_v51  ;;  %v4426_v62 = vsel %vm152_vm0, %v4392_v28, 0.0  ;;  %v4429_v39 = vsel %vm152_vm0, %v4393_v13, 0.0  ;;  %v4341_v45 = vpop.xlane.xlu0 %4340 }
0x107e   :  { %4427 = vadd.xlane.f32.xlu1 %v4426_v62  ;;  %4430 = vadd.xlane.f32.xlu0 %v4429_v39  ;;  %v4363_v32 = vmul.f32 0.03125, %v4341_v45  ;;  %v14254_v39 = vld [vmem:[%s16608_s18] ss:$0 sm:$0xff] }
0x107f   :  { %v4394_v49 = vmul.f32 %v14204_v37, %v14204_v37 }
0x1080   :  { %v14211_v22 = vsub.f32 %v14118_v46, %v4363_v32 }
0x1081   :  { %v4432_v1 = vsel %vm152_vm0, %v4394_v49, 0.0  ;;  %v4344_v54 = vpop.xlane.xlu1 %4343  ;;  %v4347_v34 = vpop.xlane.xlu0 %4346 }
0x1082   :  { %4433 = vadd.xlane.f32.xlu1 %v4432_v1  ;;  %v4364_v61 = vmul.f32 0.03125, %v4344_v54  ;;  %v4365_v53 = vmul.f32 0.03125, %v4347_v34  ;;  %v4395_v60 = vmul.f32 %v14211_v22, %v14211_v22 }
0x1084   :  { %v14223_v46 = vsub.f32 %v14128_v63, %v4364_v61  ;;  %v14226_v11 = vsub.f32 %v14121_v40, %v4365_v53  ;;  %v4435_v0 = vsel %vm152_vm0, %v4395_v60, 0.0 }
0x1085   :  { %v4350_v18 = vpop.xlane.xlu1 %4349  ;;  %4436 = vadd.xlane.f32.xlu0 %v4435_v0 }
0x1086   :  { %v4366_v31 = vmul.f32 0.03125, %v4350_v18  ;;  %v4396_v63 = vmul.f32 %v14223_v46, %v14223_v46  ;;  %v4397_v40 = vmul.f32 %v14226_v11, %v14226_v11 }
0x1088   :  { %v14240_v41 = vsub.f32 %v14131_v29, %v4366_v31  ;;  %v4438_v38 = vsel %vm152_vm0, %v4396_v63, 0.0  ;;  %v4441_v4 = vsel %vm152_vm0, %v4397_v40, 0.0 }
0x1089   :  { %4439 = vadd.xlane.f32.xlu1 %v4438_v38  ;;  %4442 = vadd.xlane.f32.xlu0 %v4441_v4 }
0x108a   :  { %v4398_v15 = vmul.f32 %v14240_v41, %v14240_v41 }
0x108c   :  { %v4444_v5 = vsel %vm152_vm0, %v4398_v15, 0.0 }
0x108d   :  { %4445 = vadd.xlane.f32.xlu1 %v4444_v5 }
0x10e6   :  { %v4401_v29 = vpop.xlane.xlu0 %4400 }
0x10e7   :  { %v4447_v48 = vmul.f32 0.03125, %v4401_v29 }
0x10e9   :  { %v4463_v21 = vadd.f32 1e-12, %v4447_v48 }
0x10ea   :  { %v4404_v23 = vpop.xlane.xlu1 %4403  ;;  %v4407_v55 = vpop.xlane.xlu0 %4406 }
0x10eb   :  { %11093 = vrsqrt.f32 %v4463_v21  ;;  %v4448_v8 = vmul.f32 0.03125, %v4404_v23  ;;  %v4449_v25 = vmul.f32 0.03125, %v4407_v55  ;;  %v10734_v23 = vld [vmem:[#allocation7 + $0x10] sm:$0xff]  }
0x10ed   :  { %v4464_v57 = vadd.f32 1e-12, %v4448_v8  ;;  %v4465_v59 = vadd.f32 1e-12, %v4449_v25 }
0x10ee   :  { %v4410_v47 = vpop.xlane.xlu1 %4409 }
0x10ef   :  { %11095 = vrsqrt.f32 %v4464_v57  ;;  %v4450_v24 = vmul.f32 0.03125, %v4410_v47 }
0x10f0   :  { %11097 = vrsqrt.f32 %v4465_v59 }
0x10f1   :  { %v4466_v43 = vadd.f32 1e-12, %v4450_v24 }
0x10f3   :  { %v4413_v12 = vpop.xlane.xlu0 %4412  ;;  %11099 = vrsqrt.f32 %v4466_v43 }
0x10f4   :  { %v4451_v19 = vmul.f32 0.03125, %v4413_v12 }
0x10f6   :  { %v4467_v30 = vadd.f32 1e-12, %v4451_v19 }
0x10f7   :  { %v4416_v44 = vpop.xlane.xlu1 %4415  ;;  %v4419_v6 = vpop.xlane.xlu0 %4418 }
0x10f8   :  { %11101 = vrsqrt.f32 %v4467_v30  ;;  %v4452_v56 = vmul.f32 0.03125, %v4416_v44  ;;  %v4453_v33 = vmul.f32 0.03125, %v4419_v6  ;;  %v11094_v14 = vpop.eup %11093 }
0x10f9   :  { %v4495_v62 = vmul.f32 %v11094_v14, %v14140_v7 }
0x10fa   :  { %v4468_v51 = vadd.f32 1e-12, %v4452_v56  ;;  %v4469_v28 = vadd.f32 1e-12, %v4453_v33 }
0x10fb   :  { %v4422_v13 = vpop.xlane.xlu1 %4421  ;;  %v4517_v34 = vmul.f32 %v14254_v39, %v4495_v62 }
0x10fc   :  { %11103 = vrsqrt.f32 %v4468_v51  ;;  %v4454_v45 = vmul.f32 0.03125, %v4422_v13  ;;  %v11096_v32 = vpop.eup %11095 }
0x10fd   :  { %11105 = vrsqrt.f32 %v4469_v28  ;;  %v11098_v1 = vpop.eup %11097  ;;  %v4496_v54 = vmul.f32 %v11096_v32, %v14145_v16  ;;  %v14268_v16 = vadd.f32 %v14261_v3, %v4517_v34 }
0x10fe   :  { %v4470_v49 = vadd.f32 1e-12, %v4454_v45  ;;  %v4497_v7 = vmul.f32 %v11098_v1, %v14148_v27 }
0x10ff   :  { %v4518_v50 = vmul.f32 %v14254_v39, %v4496_v54  ;;  %16788 = vst [vmem:[#allocation37_spill] sm:$0xff] %v14268_v16 }
0x1100   :  { %11107 = vrsqrt.f32 %v4470_v49  ;;  %v11100_v61 = vpop.eup %11099  ;;  %v4519_v53 = vmul.f32 %v14254_v39, %v4497_v7 }
0x1101   :  { %v4498_v60 = vmul.f32 %v11100_v61, %v14156_v58  ;;  %v14271_v18 = vadd.f32 %v14261_v3, %v4518_v50 }
0x1102   :  { %v14280_v58 = vadd.f32 %v14261_v3, %v4519_v53 }
0x1103   :  { %v4425_v0 = vpop.xlane.xlu0 %4424  ;;  %16789 = vst [vmem:[#allocation39_spill] sm:$0xff] %v14271_v18  ;;  %v4520_v31 = vmul.f32 %v14254_v39, %v4498_v60  ;;  %v14276_v27 = vpack.c.bf16 %v14271_v18, %v14268_v16 }
0x1104   :  { %v4455_v35 = vmul.f32 0.03125, %v4425_v0  ;;  %16790 = vst [vmem:[#allocation41_spill] sm:$0xff] %v14280_v58 }
0x1105   :  { %v11102_v9 = vpop.eup %11101  ;;  %v14283_v38 = vadd.f32 %v14261_v3, %v4520_v31  ;;  %10145 = vmatprep.mubr.msk.bf16.mxu1 %vm152_vm0, %v14276_v27  ;;  %10165 = vmatprep.mubr.msk.bf16.mxu0 %vm152_vm0, %v14276_v27 }
0x1106   :  { %v4471_v63 = vadd.f32 1e-12, %v4455_v35  ;;  %v4499_v40 = vmul.f32 %v11102_v9, %v14163_v20 }
0x1107   :  { %16791 = vst [vmem:[#allocation33_spill] sm:$0xff] %v14283_v38  ;;  %v4428_v4 = vpop.xlane.xlu1 %4427  ;;  %v4431_v15 = vpop.xlane.xlu0 %4430  ;;  %v14291_v20 = vpack.c.bf16 %v14283_v38, %v14280_v58 }
0x1108   :  { %11109 = vrsqrt.f32 %v4471_v63  ;;  %v4456_v5 = vmul.f32 0.03125, %v4428_v4  ;;  %v4457_v29 = vmul.f32 0.03125, %v4431_v15  ;;  %v4521_v21 = vmul.f32 %v14254_v39, %v4499_v40 }
0x1109   :  { %v11104_v48 = vpop.eup %11103  ;;  %10146 = vmatmul.mubr.msk.bf16.vlgmr.msra.gmra.mxu1 %vm152_vm0, %v14291_v20  ;;  %10166 = vmatmul.mubr.msk.bf16.vlgmr.msra.gmra.mxu0 %vm152_vm0, %v14291_v20 }
0x110a   :  { %v11106_v55 = vpop.eup %11105  ;;  %v4472_v8 = vadd.f32 1e-12, %v4456_v5  ;;  %v4473_v25 = vadd.f32 1e-12, %v4457_v29  ;;  %v4500_v57 = vmul.f32 %v11104_v48, %v14169_v2  ;;  %10182 = vmatpush3.bf16.msra.mxu1 %v14247_v36  ;;  %v14303_v19 = vadd.f32 %v14261_v3, %v4521_v21 }
0x110b   :  { %v4501_v59 = vmul.f32 %v11106_v55, %v14172_v26  ;;  %v4434_v47 = vpop.xlane.xlu1 %4433  ;;  %10183 = vmatprep.subr.bf16.mxu1 %v10734_v23 }
0x110c   :  { %11111 = vrsqrt.f32 %v4472_v8  ;;  %v4458_v24 = vmul.f32 0.03125, %v4434_v47  ;;  %v4522_v43 = vmul.f32 %v14254_v39, %v4500_v57  ;;  %16792 = vst [vmem:[#allocation36_spill] sm:$0xff] %v14303_v19 }
0x110d   :  { %v11108_v12 = vpop.eup %11107  ;;  %11113 = vrsqrt.f32 %v4473_v25  ;;  %v4523_v44 = vmul.f32 %v14254_v39, %v4501_v59 }
0x110e   :  { %v4502_v2 = vmul.f32 %v11108_v12, %v14180_v10  ;;  %v4474_v26 = vadd.f32 1e-12, %v4458_v24  ;;  %v14307_v30 = vadd.f32 %v14261_v3, %v4522_v43  ;;  %v4437_v6 = vpop.xlane.xlu0 %4436  ;;  %10184 = vmatpush3.bf16.msra.mxu1 %v10734_v23 }
0x110f   :  { %v4459_v56 = vmul.f32 0.03125, %v4437_v6  ;;  %v14320_v10 = vadd.f32 %v14261_v3, %v4523_v44  ;;  %v14405_v44 = vld [vmem:[%s16597_s7 + $0x1] ss:$0 sm:$0xff] }
0x1110   :  { %16793 = vst [vmem:[#allocation35_spill] sm:$0xff] %v14307_v30  ;;  %11115 = vrsqrt.f32 %v4474_v26  ;;  %v14312_v36 = vpack.c.bf16 %v14307_v30, %v14303_v19  ;;  %v4524_v33 = vmul.f32 %v14254_v39, %v4502_v2  ;;  %v14724_v19 = vld [vmem:[%s16728_s8 + $0x78] sm:$0xff] }
0x1111   :  { %v4475_v14 = vadd.f32 1e-12, %v4459_v56  ;;  %16794 = vst [vmem:[#allocation44_spill] sm:$0xff] %v14320_v10 }
0x1112   :  { %10149 = vmatprep.mubr.msk.bf16.mxu1 %vm152_vm0, %v14312_v36  ;;  %10169 = vmatprep.mubr.msk.bf16.mxu0 %vm152_vm0, %v14312_v36  ;;  %v14323_v51 = vadd.f32 %v14261_v3, %v4524_v33  ;;  %v4440_v28 = vpop.xlane.xlu1 %4439  ;;  %v4443_v13 = vpop.xlane.xlu0 %4442 }
0x1113   :  { %11117 = vrsqrt.f32 %v4475_v14  ;;  %v4460_v62 = vmul.f32 0.03125, %v4440_v28  ;;  %v4461_v45 = vmul.f32 0.03125, %v4443_v13 }
0x1114   :  { %16795 = vst [vmem:[#allocation42_spill] sm:$0xff] %v14323_v51  ;;  %v4558_v32 = vpack.c.bf16 %v14323_v51, %v14320_v10  ;;  %v14733_v10 = vld [vmem:[%s16728_s8 + $0x68] sm:$0xff] }
0x1115   :  { %v11110_v49 = vpop.eup %11109  ;;  %v4476_v1 = vadd.f32 1e-12, %v4460_v62  ;;  %v4477_v54 = vadd.f32 1e-12, %v4461_v45 }
0x1116   :  { %10150 = vmatmul.mubr.msk.bf16.gmra.mxu1 %vm152_vm0, %v4558_v32  ;;  %10170 = vmatmul.mubr.msk.bf16.gmra.mxu0 %vm152_vm0, %v4558_v32  ;;  %v4503_v34 = vmul.f32 %v11110_v49, %v14188_v42  ;;  %v4446_v7 = vpop.xlane.xlu1 %4445 }
0x1117   :  { %11119 = vrsqrt.f32 %v4476_v1  ;;  %v4462_v50 = vmul.f32 0.03125, %v4446_v7 }
0x1118   :  { %11121 = vrsqrt.f32 %v4477_v54  ;;  %v4525_v35 = vmul.f32 %v14254_v39, %v4503_v34 }
0x1119   :  { %v11112_v61 = vpop.eup %11111  ;;  %v4478_v60 = vadd.f32 1e-12, %v4462_v50 }
0x111a   :  { %v11114_v53 = vpop.eup %11113  ;;  %v4504_v0 = vmul.f32 %v11112_v61, %v14193_v52  ;;  %v14336_v42 = vadd.f32 %v14261_v3, %v4525_v35 }
0x111b   :  { %v4505_v9 = vmul.f32 %v11114_v53, %v14196_v17  ;;  %11123 = vrsqrt.f32 %v4478_v60 }
0x111c   :  { %v4526_v31 = vmul.f32 %v14254_v39, %v4504_v0  ;;  %16796 = vst [vmem:[#allocation38_spill] sm:$0xff] %v14336_v42 }
0x111d   :  { %v11116_v63 = vpop.eup %11115  ;;  %v4527_v15 = vmul.f32 %v14254_v39, %v4505_v9 }
0x111e   :  { %v4506_v40 = vmul.f32 %v11116_v63, %v14204_v37  ;;  %v14339_v4 = vadd.f32 %v14261_v3, %v4526_v31 }
0x111f   :  { %v14348_v37 = vadd.f32 %v14261_v3, %v4527_v15 }
0x1120   :  { %16797 = vst [vmem:[#allocation16_spill] sm:$0xff] %v14339_v4  ;;  %v4559_v52 = vpack.c.bf16 %v14339_v4, %v14336_v42  ;;  %v4528_v5 = vmul.f32 %v14254_v39, %v4506_v40  ;;  %v11118_v17 = vpop.eup %11117  ;;  %v14711_v4 = vld [vmem:[%s16728_s8 + $0x60] sm:$0xff] }
0x1121   :  { %16798 = vst [vmem:[#allocation15_spill] sm:$0xff] %v14348_v37  ;;  %v4507_v48 = vmul.f32 %v11118_v17, %v14211_v22  ;;  %16815 = vst [vmem:[#allocation25_spill] sm:$0xff] %v14711_v4 }
0x1122   :  { %10153 = vmatprep.mubr.msk.bf16.mxu1 %vm152_vm0, %v4559_v52  ;;  %10173 = vmatprep.mubr.msk.bf16.mxu0 %vm152_vm0, %v4559_v52  ;;  %v14351_v29 = vadd.f32 %v14261_v3, %v4528_v5 }
0x1123   :  { %v4529_v25 = vmul.f32 %v14254_v39, %v4507_v48 }
0x1124   :  { %16799 = vst [vmem:[#allocation40_spill] sm:$0xff] %v14351_v29  ;;  %v4560_v21 = vpack.c.bf16 %v14351_v29, %v14348_v37  ;;  %v11120_v23 = vpop.eup %11119 }
0x1125   :  { %v11122_v55 = vpop.eup %11121  ;;  %v4508_v8 = vmul.f32 %v11120_v23, %v14223_v46  ;;  %v14364_v24 = vadd.f32 %v14261_v3, %v4529_v25 }
0x1126   :  { %10154 = vmatmul.mubr.msk.bf16.gmra.mxu1 %vm152_vm0, %v4560_v21  ;;  %10174 = vmatmul.mubr.msk.bf16.gmra.mxu0 %vm152_vm0, %v4560_v21  ;;  %v4509_v57 = vmul.f32 %v11122_v55, %v14226_v11 }
0x1127   :  { %v4530_v59 = vmul.f32 %v14254_v39, %v4508_v8  ;;  %16800 = vst [vmem:[#allocation32_spill] sm:$0xff] %v14364_v24 }
0x1128   :  { %v11124_v47 = vpop.eup %11123  ;;  %v4531_v12 = vmul.f32 %v14254_v39, %v4509_v57 }
0x1129   :  { %v4510_v22 = vmul.f32 %v11124_v47, %v14240_v41  ;;  %v14367_v43 = vadd.f32 %v14261_v3, %v4530_v59 }
0x112a   :  { %v14376_v11 = vadd.f32 %v14261_v3, %v4531_v12 }
0x112b   :  { %16801 = vst [vmem:[#allocation18_spill] sm:$0xff] %v14367_v43  ;;  %v4561_v46 = vpack.c.bf16 %v14367_v43, %v14364_v24  ;;  %v4532_v2 = vmul.f32 %v14254_v39, %v4510_v22  ;;  %v14399_v39 = vld [vmem:[%s16595_s5 + $0x1] ss:$0 sm:$0xff] }
0x112c   :  { %16802 = vst [vmem:[#allocation17_spill] sm:$0xff] %v14376_v11 }
0x112d   :  { %10157 = vmatprep.mubr.msk.bf16.mxu1 %vm152_vm0, %v4561_v46  ;;  %10177 = vmatprep.mubr.msk.bf16.mxu0 %vm152_vm0, %v4561_v46  ;;  %v14379_v41 = vadd.f32 %v14261_v3, %v4532_v2 }
0x112f   :  { %16803 = vst [vmem:[#allocation21_spill] sm:$0xff] %v14379_v41  ;;  %v4562_v26 = vpack.c.bf16 %v14379_v41, %v14376_v11 }
0x1131   :  { %10158 = vmatmul.mubr.msk.bf16.gmra.mxu1 %vm152_vm0, %v4562_v26  ;;  %10178 = vmatmul.mubr.msk.bf16.gmra.mxu0 %vm152_vm0, %v4562_v26 }
0x1132   :  { %10185 = vmatprep.mubr.msk.bf16.mxu1 %vm152_vm0, %v14276_v27 }
0x1139   :  { %10186 = vmatmul.mubr.msk.bf16.vlgmr.msra.gmra.mxu1 %vm152_vm0, %v14291_v20 }
0x113a   :  { %10189 = vmatprep.mubr.msk.bf16.mxu1 %vm152_vm0, %v14312_v36 }
0x1141   :  { %10190 = vmatmul.mubr.msk.bf16.gmra.mxu1 %vm152_vm0, %v4558_v32 }
0x1142   :  { %10193 = vmatprep.mubr.msk.bf16.mxu1 %vm152_vm0, %v4559_v52 }
0x1149   :  { %10194 = vmatmul.mubr.msk.bf16.gmra.mxu1 %vm152_vm0, %v4560_v21 }
0x114a   :  { %10197 = vmatprep.mubr.msk.bf16.mxu1 %vm152_vm0, %v4561_v46 }
0x1151   :  { %10198 = vmatmul.mubr.msk.bf16.gmra.mxu1 %vm152_vm0, %v4562_v26 }
0x11c9   :  { %v10147_v3 = vpop.f32.mrf.mxu1  ;;  %v10167_v27 = vpop.f32.mrf.mxu0 }
0x11ca   :  { %v4655_v20 = vadd.f32 %v10147_v3, %v14399_v39  ;;  %v4777_v14 = vadd.f32 %v10167_v27, %v14405_v44 }
0x11cb   :  { %v4646_v6 = vpop.f32.mrf.mxu1  ;;  %v14407_v56 = vpop.f32.mrf.mxu0 }
0x11cc   :  { %v4647_v45 = vadd.f32 %v14399_v39, %v4646_v6 }
0x11cd   :  { %v10148_v36 = vpop.f32.mrf.mxu1  ;;  %v10168_v33 = vpop.f32.mrf.mxu0 }
0x11ce   :  { %v4658_v28 = vadd.f32 %v10148_v36, %v14399_v39  ;;  %v4780_v13 = vadd.f32 %v10168_v33, %v14405_v44 }
0x11cf   :  { %v4649_v62 = vpop.f32.mrf.mxu1  ;;  %v14420_v34 = vpop.f32.mrf.mxu0 }
0x11d0   :  { %v14413_v32 = vpack.c.bf16 %v4658_v28, %v4655_v20  ;;  %v14415_v49 = vpack.c.bf16 %v4780_v13, %v4777_v14  ;;  %v4650_v1 = vadd.f32 %v14399_v39, %v4649_v62 }
0x11d2   :  { %v14418_v54 = vpack.c.bf16 %v4650_v1, %v4647_v45 }
0x11d4   :  { %10217 = vmatprep.mubr.msk.bf16.mxu0 %vm826_vm1, %v14418_v54 }
0x11d6   :  { %v10151_v7 = vpop.f32.mrf.mxu1  ;;  %v14425_v61 = vpop.f32.mrf.mxu0 }
0x11d7   :  { %v4671_v50 = vadd.f32 %v10151_v7, %v14399_v39 }
0x11d8   :  { %v4662_v53 = vpop.f32.mrf.mxu1  ;;  %v14429_v9 = vpop.f32.mrf.mxu0 }
0x11d9   :  { %v4663_v60 = vadd.f32 %v14399_v39, %v4662_v53 }
0x11da   :  { %v10152_v0 = vpop.f32.mrf.mxu1  ;;  %v14436_v52 = vpop.f32.mrf.mxu0 }
0x11db   :  { %v4674_v35 = vadd.f32 %v10152_v0, %v14399_v39 }
0x11dc   :  { %v4665_v31 = vpop.f32.mrf.mxu1  ;;  %v14438_v5 = vpop.f32.mrf.mxu0 }
0x11dd   :  { %v14431_v63 = vpack.c.bf16 %v4674_v35, %v4671_v50  ;;  %v4666_v40 = vadd.f32 %v14399_v39, %v4665_v31 }
0x11df   :  { %v14434_v15 = vpack.c.bf16 %v4666_v40, %v4663_v60 }
0x11e6   :  { %v10155_v17 = vpop.f32.mrf.mxu1  ;;  %v10175_v48 = vpop.f32.mrf.mxu0 }
0x11e7   :  { %v4687_v21 = vadd.f32 %v10155_v17, %v14399_v39 }
0x11e8   :  { %v4678_v23 = vpop.f32.mrf.mxu1  ;;  %v4800_v55 = vpop.f32.mrf.mxu0 }
0x11e9   :  { %v4679_v8 = vadd.f32 %v14399_v39, %v4678_v23 }
0x11ea   :  { %v10156_v25 = vpop.f32.mrf.mxu1  ;;  %v10176_v59 = vpop.f32.mrf.mxu0 }
0x11eb   :  { %v4690_v57 = vadd.f32 %v10156_v25, %v14399_v39  ;;  %v4812_v23 = vadd.f32 %v10176_v59, %v14405_v44  ;;  %v4809_v25 = vadd.f32 %v10175_v48, %v14405_v44  ;;  %v4801_v59 = vadd.f32 %v14405_v44, %v4800_v55 }
0x11ec   :  { %v4681_v47 = vpop.f32.mrf.mxu1  ;;  %v4803_v2 = vpop.f32.mrf.mxu0 }
0x11ed   :  { %v14443_v22 = vpack.c.bf16 %v4690_v57, %v4687_v21  ;;  %v4682_v12 = vadd.f32 %v14399_v39, %v4681_v47  ;;  %v14484_v47 = vpack.c.bf16 %v4812_v23, %v4809_v25  ;;  %v4785_v23 = vadd.f32 %v14405_v44, %v14429_v9 }
0x11ef   :  { %v14446_v46 = vpack.c.bf16 %v4682_v12, %v4679_v8  ;;  %16806 = vst [vmem:[#allocation19_spill] sm:$0xff] %v14484_v47  ;;  %v5022_v48 = vsel %vm826_vm1, %v14484_v47, 0 }
0x11f1   :  { %v10159_v26 = vpop.f32.mrf.mxu1  ;;  %v10179_v3 = vpop.f32.mrf.mxu0 }
0x11f2   :  { %v4703_v27 = vadd.f32 %v10159_v26, %v14399_v39  ;;  %v4825_v28 = vadd.f32 %v10179_v3, %v14405_v44 }
0x11f3   :  { %v4694_v20 = vpop.f32.mrf.mxu1  ;;  %v4816_v6 = vpop.f32.mrf.mxu0 }
0x11f4   :  { %v4695_v36 = vadd.f32 %v14399_v39, %v4694_v20  ;;  %v4817_v45 = vadd.f32 %v14405_v44, %v4816_v6 }
0x11f5   :  { %v10160_v33 = vpop.f32.mrf.mxu1  ;;  %v10180_v14 = vpop.f32.mrf.mxu0 }
0x11f6   :  { %v4706_v13 = vadd.f32 %v10160_v33, %v14399_v39  ;;  %v4828_v62 = vadd.f32 %v10180_v14, %v14405_v44 }
0x11f7   :  { %v4697_v1 = vpop.f32.mrf.mxu1  ;;  %v4819_v7 = vpop.f32.mrf.mxu0 }
0x11f8   :  { %v14454_v50 = vpack.c.bf16 %v4706_v13, %v4703_v27  ;;  %v14456_v53 = vpack.c.bf16 %v4828_v62, %v4825_v28  ;;  %v4698_v60 = vadd.f32 %v14399_v39, %v4697_v1  ;;  %v4820_v0 = vadd.f32 %v14405_v44, %v4819_v7  ;;  %v9007_v7 = vld [vmem:[%s16599_s9 + $0x1] ss:$0 sm:$0xff] }
0x11f9   :  { %v14460_v35 = vpop.f32.mrf.mxu1  ;;  %v4804_v27 = vadd.f32 %v14405_v44, %v4803_v2  ;;  %v4796_v28 = vadd.f32 %v14436_v52, %v14405_v44  ;;  %v4793_v2 = vadd.f32 %v14425_v61, %v14405_v44 }
0x11fa   :  { %16804 = vst [vmem:[#allocation20_spill] sm:$0xff] %v14456_v53  ;;  %v14462_v31 = vpack.c.bf16 %v4698_v60, %v4695_v36  ;;  %v14464_v40 = vpack.c.bf16 %v4820_v0, %v4817_v45  ;;  %5454 = vrot.lane.b32.xlu0 %v14456_v53, %s11639_s27  ;;  %10672 = vmatprep.subr.msk.bf16.mxu0 %vm826_vm1, %v14456_v53  ;;  %v5028_v17 = vsel %vm826_vm1, %v14456_v53, 0 }
0x11fb   :  { %v14472_v21 = vpop.f32.mrf.mxu1  ;;  %10202 = vmatpush3.bf16.xpose.msra.mxu0 %v5028_v17  ;;  %v14492_v36 = vpack.c.bf16 %v4804_v27, %v4801_v59  ;;  %v14502_v62 = vpack.c.bf16 %v4796_v28, %v4793_v2  ;;  %v4788_v60 = vadd.f32 %v14405_v44, %v14438_v5 }
0x11fc   :  { %16805 = vst [vmem:[#allocation34_spill] sm:$0xff] %v14464_v40  ;;  %5452 = vrot.lane.b32.xlu1 %v14464_v40, %s11639_s27  ;;  %10673 = vmatprep.subr.msk.bf16.mxu0 %vm826_vm1, %v14464_v40  ;;  %v5025_v12 = vsel %vm826_vm1, %v14464_v40, 0 }
0x11fd   :  { %v14478_v39 = vpop.f32.mrf.mxu1  ;;  %16807 = vst [vmem:[#allocation45_spill] sm:$0xff] %v14492_v36  ;;  %16808 = vst [vmem:[#allocation22_spill] sm:$0xff] %v14502_v62  ;;  %v5019_v45 = vsel %vm826_vm1, %v14492_v36, 0  ;;  %v14517_v59 = vpack.c.bf16 %v4788_v60, %v4785_v23  ;;  %v5016_v5 = vsel %vm826_vm1, %v14502_v62, 0  ;;  %v4769_v60 = vadd.f32 %v14405_v44, %v14407_v56 }
0x11ff   :  { %v14481_v8 = vpop.f32.mrf.mxu1  ;;  %16809 = vst [vmem:[#allocation31_spill] sm:$0xff] %v14517_v59 }
0x1200   :  { %v4894_v56 = vadd.f32 %v9007_v7, %v14481_v8 }
0x1201   :  { %v10191_v57 = vpop.f32.mrf.mxu1 }
0x1203   :  { %v4906_v26 = vpop.f32.mrf.mxu1  ;;  %10204 = vmatpush3.bf16.xpose.msra.mxu0 %v5025_v12 }
0x1204   :  { %10674 = vmatprep.subr.msk.bf16.mxu0 %vm826_vm1, %v14484_v47 }
0x1205   :  { %v10192_v3 = vpop.f32.mrf.mxu1 }
0x1207   :  { %v4909_v20 = vpop.f32.mrf.mxu1 }
0x1209   :  { %v10195_v6 = vpop.f32.mrf.mxu1 }
0x120a   :  { %v4931_v2 = vadd.f32 %v10195_v6, %v9007_v7  ;;  %v4915_v6 = vadd.f32 %v10191_v57, %v9007_v7 }
0x120b   :  { %v4922_v33 = vpop.f32.mrf.mxu1  ;;  %10206 = vmatpush3.bf16.xpose.msra.mxu0 %v5022_v48 }
0x120c   :  { %10675 = vmatprep.subr.msk.bf16.mxu0 %vm826_vm1, %v14492_v36 }
0x120d   :  { %v10196_v14 = vpop.f32.mrf.mxu1 }
0x120e   :  { %v4934_v48 = vadd.f32 %v10196_v14, %v9007_v7  ;;  %v4923_v14 = vadd.f32 %v9007_v7, %v4922_v33  ;;  %v4772_v33 = vadd.f32 %v14405_v44, %v14420_v34  ;;  %v5010_v34 = vsel %vm826_vm1, %v14415_v49, 0 }
0x120f   :  { %v4925_v13 = vpop.f32.mrf.mxu1 }
0x1210   :  { %v14528_v9 = vpack.c.bf16 %v4934_v48, %v4931_v2  ;;  %v14548_v57 = vpack.c.bf16 %v4772_v33, %v4769_v60 }
0x1211   :  { %v10199_v55 = vpop.f32.mrf.mxu1 }
0x1212   :  { %v4947_v61 = vadd.f32 %v10199_v55, %v9007_v7  ;;  %16810 = vst [vmem:[#allocation24_spill] sm:$0xff] %v14528_v9  ;;  %v4926_v55 = vadd.f32 %v9007_v7, %v4925_v13 }
0x1213   :  { %v4938_v1 = vpop.f32.mrf.mxu1  ;;  %10208 = vmatpush3.bf16.xpose.msra.mxu0 %v5019_v45  ;;  %v4918_v45 = vadd.f32 %v10192_v3, %v9007_v7  ;;  %v4910_v3 = vadd.f32 %v9007_v7, %v4909_v20  ;;  %v4899_v20 = vadd.f32 %v14460_v35, %v9007_v7  ;;  %v5007_v35 = vsel %vm826_vm1, %v14548_v57, 0 }
0x1214   :  { %10676 = vmatprep.subr.msk.bf16.mxu0 %vm826_vm1, %v14502_v62  ;;  %v4939_v25 = vadd.f32 %v9007_v7, %v4938_v1  ;;  %v14532_v1 = vpack.c.bf16 %v4926_v55, %v4923_v14  ;;  %v14603_v14 = vld [vmem:[%s16728_s8] sm:$0xff] }
0x1215   :  { %v10200_v52 = vpop.f32.mrf.mxu1  ;;  %v14542_v13 = vpack.c.bf16 %v4918_v45, %v4915_v6 }
0x1216   :  { %v4950_v0 = vadd.f32 %v10200_v52, %v9007_v7  ;;  %16811 = vst [vmem:[#allocation29_spill] sm:$0xff] %v14532_v1  ;;  %v5013_v52 = vsel %vm826_vm1, %v14517_v59, 0 }
0x1217   :  { %v4941_v17 = vpop.f32.mrf.mxu1  ;;  %16812 = vst [vmem:[#allocation23_spill] sm:$0xff] %v14542_v13 }
0x1218   :  { %v14515_v12 = vpack.c.bf16 %v4950_v0, %v4947_v61  ;;  %v4942_v27 = vadd.f32 %v9007_v7, %v4941_v17  ;;  %v4907_v61 = vadd.f32 %v9007_v7, %v4906_v26  ;;  %v4902_v0 = vadd.f32 %v14478_v39, %v9007_v7 }
0x1219   :  { %v4891_v39 = vadd.f32 %v9007_v7, %v14472_v21 }
0x121a   :  { %v14519_v28 = vpack.c.bf16 %v4942_v27, %v4939_v25  ;;  %10233 = vmatprep.subr.bf16.mxu1 %v14515_v12  ;;  %v14551_v17 = vpack.c.bf16 %v4910_v3, %v4907_v61  ;;  %v14560_v44 = vpack.c.bf16 %v4902_v0, %v4899_v20  ;;  %v14594_v25 = vld [vmem:[%s16728_s8 + $0x10] sm:$0xff]  ;;  %v14621_v0 = vld [vmem:[%s16728_s8 + $0x8] sm:$0xff] }
0x121b   :  { %10210 = vmatpush3.bf16.xpose.msra.mxu0 %v5016_v5  ;;  %10234 = vmatpush3.bf16.msra.mxu1 %v14515_v12  ;;  %v14566_v26 = vpack.c.bf16 %v4894_v56, %v4891_v39  ;;  %v14629_v20 = vld [vmem:[%s16728_s8 + $0x30] sm:$0xff] }
0x121c   :  { %10677 = vmatprep.subr.msk.bf16.mxu0 %vm826_vm1, %v14517_v59  ;;  %10235 = vmatprep.subr.bf16.mxu1 %v14519_v28  ;;  %16813 = vst [vmem:[#allocation43_spill] sm:$0xff] %v14560_v44 }
0x121d   :  { %16814 = vst [vmem:[#allocation26_spill] sm:$0xff] %v14566_v26 }
0x121f   :  { %10236 = vmatpush3.bf16.msra.mxu1 %v14519_v28 }
0x1220   :  { %10237 = vmatprep.subr.bf16.mxu1 %v14528_v9 }
0x1223   :  { %10212 = vmatpush3.bf16.xpose.msra.mxu0 %v5013_v52  ;;  %10238 = vmatpush3.bf16.msra.mxu1 %v14528_v9  ;;  %v14611_v52 = vld [vmem:[%s16728_s8 + $0x18] sm:$0xff] }
0x1224   :  { %10678 = vmatprep.subr.msk.bf16.mxu0 %vm826_vm1, %v14415_v49  ;;  %10239 = vmatprep.subr.bf16.mxu1 %v14532_v1 }
0x1227   :  { %10240 = vmatpush3.bf16.msra.mxu1 %v14532_v1 }
0x1228   :  { %10241 = vmatprep.subr.bf16.mxu1 %v14542_v13 }
0x122b   :  { %10214 = vmatpush3.bf16.xpose.msra.mxu0 %v5010_v34  ;;  %10242 = vmatpush3.bf16.msra.mxu1 %v14542_v13 }
0x122c   :  { %10679 = vmatprep.subr.msk.bf16.mxu0 %vm826_vm1, %v14548_v57  ;;  %10243 = vmatprep.subr.bf16.mxu1 %v14551_v17 }
0x122f   :  { %10244 = vmatpush3.bf16.msra.mxu1 %v14551_v17 }
0x1230   :  { %10245 = vmatprep.subr.bf16.mxu1 %v14560_v44 }
0x1233   :  { %10216 = vmatpush3.bf16.xpose.msra.mxu0 %v5007_v35  ;;  %10246 = vmatpush3.bf16.msra.mxu1 %v14560_v44 }
0x1234   :  { %10247 = vmatprep.subr.bf16.mxu1 %v14566_v26 }
0x1237   :  { %10248 = vmatpush3.bf16.msra.mxu1 %v14566_v26 }
0x123a   :  { %10218 = vmatmul.mubr.msk.bf16.vlgmr.msra.gmra.mxu0 %vm826_vm1, %v14413_v32 }
0x123b   :  { %10221 = vmatprep.mubr.msk.bf16.mxu0 %vm826_vm1, %v14434_v15 }
0x1242   :  { %10222 = vmatmul.mubr.msk.bf16.gmra.mxu0 %vm826_vm1, %v14431_v63 }
0x1243   :  { %10225 = vmatprep.mubr.msk.bf16.mxu0 %vm826_vm1, %v14446_v46 }
0x124a   :  { %10226 = vmatmul.mubr.msk.bf16.gmra.mxu0 %vm826_vm1, %v14443_v22 }
0x124b   :  { %10229 = vmatprep.mubr.msk.bf16.mxu0 %vm826_vm1, %v14462_v31 }
0x1252   :  { %10230 = vmatmul.mubr.msk.bf16.gmra.mxu0 %vm826_vm1, %v14454_v50 }
0x126c   :  { %v14587_v21 = vpop.permute.xlu0 %5454 }
0x126d   :  { %10680 = vmatprep.subr.msk.bf16.mxu1 %vm826_vm1, %v14587_v21 }
0x12fa   :  { %v10219_v8 = vpop.f32.mrf.mxu0 }
0x12fb   :  { %v5129_v7 = vmul.f32 0.35355338, %v10219_v8 }
0x12fc   :  { %v5064_v23 = vpop.f32.mrf.mxu0 }
0x12fd   :  { %v14597_v27 = vadd.f32 %v14594_v25, %v5129_v7  ;;  %v5127_v48 = vmul.f32 0.35355338, %v5064_v23  ;;  %v14639_v23 = vld [vmem:[%s16728_s8 + $0x20] sm:$0xff] }
0x12fe   :  { %v10220_v5 = vpop.f32.mrf.mxu0 }
0x12ff   :  { %v5130_v2 = vmul.f32 0.35355338, %v10220_v5  ;;  %5163 = vmax.xlane.f32.xlu0 %v14597_v27  ;;  %v14606_v45 = vadd.f32 %v14603_v14, %v5127_v48  ;;  %v14647_v5 = vld [vmem:[%s16728_s8 + $0x38] sm:$0xff] }
0x1300   :  { %v5067_v55 = vpop.f32.mrf.mxu0 }
0x1301   :  { %v14614_v6 = vadd.f32 %v14611_v52, %v5130_v2  ;;  %v5128_v33 = vmul.f32 0.35355338, %v5067_v55 }
0x1302   :  { %v10223_v3 = vpop.f32.mrf.mxu0 }
0x1303   :  { %v5133_v60 = vmul.f32 0.35355338, %v10223_v3  ;;  %5159 = vmax.xlane.f32.xlu0 %v14606_v45  ;;  %5165 = vmax.xlane.f32.xlu1 %v14614_v6  ;;  %v14624_v34 = vadd.f32 %v14621_v0, %v5128_v33 }
0x1304   :  { %v5080_v61 = vpop.f32.mrf.mxu0 }
0x1305   :  { %v14632_v56 = vadd.f32 %v14629_v20, %v5133_v60  ;;  %v5131_v39 = vmul.f32 0.35355338, %v5080_v61  ;;  %v14657_v61 = vld [vmem:[%s16728_s8 + $0x28] sm:$0xff] }
0x1306   :  { %v10224_v35 = vpop.f32.mrf.mxu0 }
0x1307   :  { %v5134_v8 = vmul.f32 0.35355338, %v10224_v35  ;;  %5161 = vmax.xlane.f32.xlu1 %v14624_v34  ;;  %5171 = vmax.xlane.f32.xlu0 %v14632_v56  ;;  %v14642_v48 = vadd.f32 %v14639_v23, %v5131_v39  ;;  %v14665_v35 = vld [vmem:[%s16728_s8 + $0x50] sm:$0xff] }
0x1308   :  { %v5083_v7 = vpop.f32.mrf.mxu0 }
0x1309   :  { %v14650_v2 = vadd.f32 %v14647_v5, %v5134_v8  ;;  %v5132_v55 = vmul.f32 0.35355338, %v5083_v7 }
0x130a   :  { %v10227_v33 = vpop.f32.mrf.mxu0 }
0x130b   :  { %v5137_v3 = vmul.f32 0.35355338, %v10227_v33  ;;  %5167 = vmax.xlane.f32.xlu0 %v14642_v48  ;;  %5173 = vmax.xlane.f32.xlu1 %v14650_v2  ;;  %v14660_v39 = vadd.f32 %v14657_v61, %v5132_v55  ;;  %v14675_v55 = vld [vmem:[%s16728_s8 + $0x40] sm:$0xff] }
0x130c   :  { %v5096_v60 = vpop.f32.mrf.mxu0 }
0x130d   :  { %v14668_v8 = vadd.f32 %v14665_v35, %v5137_v3  ;;  %v5135_v7 = vmul.f32 0.35355338, %v5096_v60  ;;  %v14683_v3 = vld [vmem:[%s16728_s8 + $0x58] sm:$0xff] }
0x130e   :  { %v10228_v33 = vpop.f32.mrf.mxu0 }
0x130f   :  { %v5138_v41 = vmul.f32 0.35355338, %v10228_v33  ;;  %5169 = vmax.xlane.f32.xlu1 %v14660_v39  ;;  %5179 = vmax.xlane.f32.xlu0 %v14668_v8  ;;  %v14678_v43 = vadd.f32 %v14675_v55, %v5135_v7  ;;  %v14693_v7 = vld [vmem:[%s16728_s8 + $0x48] sm:$0xff] }
0x1310   :  { %v5099_v24 = vpop.f32.mrf.mxu0 }
0x1311   :  { %v14686_v60 = vadd.f32 %v14683_v3, %v5138_v41  ;;  %v5136_v33 = vmul.f32 0.35355338, %v5099_v24  ;;  %v14701_v41 = vld [vmem:[%s16728_s8 + $0x70] sm:$0xff] }
0x1312   :  { %v10231_v37 = vpop.f32.mrf.mxu0 }
0x1313   :  { %v5141_v29 = vmul.f32 0.35355338, %v10231_v37  ;;  %5175 = vmax.xlane.f32.xlu0 %v14678_v43  ;;  %5181 = vmax.xlane.f32.xlu1 %v14686_v60  ;;  %v14696_v11 = vadd.f32 %v14693_v7, %v5136_v33 }
0x1314   :  { %v5112_v42 = vpop.f32.mrf.mxu0 }
0x1315   :  { %v14704_v37 = vadd.f32 %v14701_v41, %v5141_v29  ;;  %v5139_v24 = vmul.f32 0.35355338, %v5112_v42 }
0x1316   :  { %v10232_v42 = vpop.f32.mrf.mxu0 }
0x1317   :  { %5177 = vmax.xlane.f32.xlu1 %v14696_v11  ;;  %5187 = vmax.xlane.f32.xlu0 %v14704_v37  ;;  %v14714_v33 = vadd.f32 %v14711_v4, %v5139_v24  ;;  %v5142_v29 = vmul.f32 0.35355338, %v10232_v42  ;;  %v14739_v42 = vpop.permute.xlu1 %5452 }
0x1318   :  { %v5115_v51 = vpop.f32.mrf.mxu0 }
0x1319   :  { %v14727_v30 = vadd.f32 %v14724_v19, %v5142_v29  ;;  %v5140_v24 = vmul.f32 0.35355338, %v5115_v51 }
0x131b   :  { %5183 = vmax.xlane.f32.xlu0 %v14714_v33  ;;  %v14736_v58 = vadd.f32 %v14733_v10, %v5140_v24 }
0x1328   :  { %5448 = vrot.lane.b32.xlu1 %v14492_v36, %s11639_s27 }
0x1331   :  { %5450 = vrot.lane.b32.xlu0 %v14484_v47, %s11639_s27 }
0x134c   :  { %5189 = vmax.xlane.f32.xlu1 %v14727_v30 }
0x1350   :  { %5185 = vmax.xlane.f32.xlu1 %v14736_v58 }
0x1388   :  { %v5164_v38 = vpop.xlane.xlu0 %5163 }
0x1389   :  { %v5193_v16 = vsub.f32 %v14597_v27, %v5164_v38 }
0x138b   :  { %v5211_v29 = vmul.f32 1.442695, %v5193_v16 }
0x138c   :  { %v5160_v18 = vpop.xlane.xlu0 %5159  ;;  %v5166_v51 = vpop.xlane.xlu1 %5165 }
0x138d   :  { %11125 = vpow2.f32 %v5211_v29  ;;  %v5191_v53 = vsub.f32 %v14606_v45, %v5160_v18  ;;  %v5194_v36 = vsub.f32 %v14614_v6, %v5166_v51 }
0x138f   :  { %v5207_v47 = vmul.f32 1.442695, %v5191_v53  ;;  %v5213_v40 = vmul.f32 1.442695, %v5194_v36 }
0x1390   :  { %v5162_v26 = vpop.xlane.xlu1 %5161  ;;  %v5172_v53 = vpop.xlane.xlu0 %5171 }
0x1391   :  { %11127 = vpow2.f32 %v5207_v47  ;;  %v5192_v24 = vsub.f32 %v14624_v34, %v5162_v26  ;;  %v5197_v26 = vsub.f32 %v14632_v56, %v5172_v53 }
0x1392   :  { %11129 = vpow2.f32 %v5213_v40 }
0x1393   :  { %v5209_v44 = vmul.f32 1.442695, %v5192_v24  ;;  %v5219_v6 = vmul.f32 1.442695, %v5197_v26 }
0x1394   :  { %v5168_v40 = vpop.xlane.xlu0 %5167  ;;  %v5174_v36 = vpop.xlane.xlu1 %5173 }
0x1395   :  { %11131 = vpow2.f32 %v5209_v44  ;;  %v5195_v29 = vsub.f32 %v14642_v48, %v5168_v40  ;;  %v5198_v9 = vsub.f32 %v14650_v2, %v5174_v36 }
0x1396   :  { %11133 = vpow2.f32 %v5219_v6 }
0x1397   :  { %v5221_v53 = vmul.f32 1.442695, %v5198_v9 }
0x1398   :  { %v5180_v47 = vpop.xlane.xlu0 %5179  ;;  %v5170_v27 = vpop.xlane.xlu1 %5169 }
0x1399   :  { %v5196_v34 = vsub.f32 %v14660_v39, %v5170_v27  ;;  %v5201_v26 = vsub.f32 %v14668_v8, %v5180_v47 }
0x139a   :  { %v14745_v13 = vpop.eup %11125 }
0x139b   :  { %5243 = vadd.xlane.f32.xlu0 %v14745_v13  ;;  %v5217_v24 = vmul.f32 1.442695, %v5196_v34  ;;  %v5227_v40 = vmul.f32 1.442695, %v5201_v26 }
0x139c   :  { %v5176_v44 = vpop.xlane.xlu0 %5175  ;;  %v5182_v51 = vpop.xlane.xlu1 %5181 }
0x139d   :  { %11135 = vpow2.f32 %v5217_v24  ;;  %v5199_v27 = vsub.f32 %v14678_v43, %v5176_v44 }
0x139e   :  { %v14748_v16 = vpop.eup %11127 }
0x139f   :  { %v14750_v38 = vpop.eup %11129  ;;  %5239 = vadd.xlane.f32.xlu0 %v14748_v16 }
0x13a0   :  { %5245 = vadd.xlane.f32.xlu1 %v14750_v38  ;;  %v5188_v45 = vpop.xlane.xlu0 %5187  ;;  %v5178_v39 = vpop.xlane.xlu1 %5177 }
0x13a1   :  { %v5205_v1 = vsub.f32 %v14704_v37, %v5188_v45  ;;  %v5200_v43 = vsub.f32 %v14696_v11, %v5178_v39 }
0x13a2   :  { %v14754_v18 = vpop.eup %11131 }
0x13a3   :  { %v5235_v4 = vmul.f32 1.442695, %v5205_v1  ;;  %v14771_v2 = vpop.eup %11133  ;;  %v5223_v1 = vmul.f32 1.442695, %v5199_v27  ;;  %v5225_v44 = vmul.f32 1.442695, %v5200_v43 }
0x13a4   :  { %5241 = vadd.xlane.f32.xlu1 %v14754_v18  ;;  %v14769_v37 = vpop.permute.xlu1 %5448 }
0x13b5   :  { %5444 = vrot.lane.b32.xlu1 %v14517_v59, %s11639_s27  ;;  %5446 = vrot.lane.b32.xlu0 %v14502_v62, %s11639_s27  ;;  %v5215_v59 = vmul.f32 1.442695, %v5195_v29  ;;  %v5184_v62 = vpop.xlane.xlu0 %5183 }
0x13b6   :  { %v5203_v56 = vsub.f32 %v14714_v33, %v5184_v62  ;;  %v5202_v62 = vsub.f32 %v14686_v60, %v5182_v51 }
0x13b7   :  { %11137 = vpow2.f32 %v5215_v59 }
0x13b8   :  { %11139 = vpow2.f32 %v5235_v4  ;;  %v5231_v48 = vmul.f32 1.442695, %v5203_v56  ;;  %v14776_v4 = vpop.eup %11135  ;;  %v5229_v8 = vmul.f32 1.442695, %v5202_v62 }
0x13b9   :  { %11141 = vpow2.f32 %v5221_v53  ;;  %v5451_v53 = vpop.permute.xlu0 %5450 }
0x13ba   :  { %11143 = vpow2.f32 %v5231_v48 }
0x13bb   :  { %11145 = vpow2.f32 %v5227_v40 }
0x13bc   :  { %11147 = vpow2.f32 %v5223_v1 }
0x13c4   :  { %v14779_v33 = vpop.eup %11137 }
0x13c5   :  { %v14783_v60 = vpop.eup %11139 }
0x13c6   :  { %v14786_v45 = vpop.eup %11141 }
0x13c7   :  { %v14790_v11 = vpop.eup %11143 }
0x13c8   :  { %v14792_v34 = vpop.eup %11145 }
0x13c9   :  { %v14796_v29 = vpop.eup %11147 }
0x13d4   :  { %5251 = vadd.xlane.f32.xlu0 %v14771_v2 }
0x13d5   :  { %v5190_v59 = vpop.xlane.xlu1 %5189 }
0x13d6   :  { %v5206_v9 = vsub.f32 %v14727_v30, %v5190_v59 }
0x13d8   :  { %v5237_v47 = vmul.f32 1.442695, %v5206_v9  ;;  %5249 = vadd.xlane.f32.xlu0 %v14776_v4 }
0x13d9   :  { %5247 = vadd.xlane.f32.xlu1 %v14779_v33  ;;  %v5186_v36 = vpop.xlane.xlu1 %5185 }
0x13da   :  { %11149 = vpow2.f32 %v5237_v47  ;;  %v5204_v30 = vsub.f32 %v14736_v58, %v5186_v36 }
0x13db   :  { %11151 = vpow2.f32 %v5229_v8 }
0x13dc   :  { %5267 = vadd.xlane.f32.xlu0 %v14783_v60  ;;  %11153 = vpow2.f32 %v5225_v44  ;;  %v5233_v6 = vmul.f32 1.442695, %v5204_v30  ;;  %v5502_v30 = vsel %vm826_vm1, %v14587_v21, 0  ;;  %v5493_v21 = vsel %vm826_vm1, %v14769_v37, 0 }
0x13dd   :  { %5253 = vadd.xlane.f32.xlu1 %v14786_v45 }
0x13de   :  { %11155 = vpow2.f32 %v5233_v6 }
0x13e0   :  { %5263 = vadd.xlane.f32.xlu0 %v14790_v11 }
0x13e1   :  { %5259 = vadd.xlane.f32.xlu1 %v14792_v34 }
0x13e5   :  { %5255 = vadd.xlane.f32.xlu1 %v14796_v29 }
0x13e7   :  { %v14799_v58 = vpop.eup %11149 }
0x13e8   :  { %v14801_v51 = vpop.eup %11151  ;;  %5269 = vadd.xlane.f32.xlu0 %v14799_v58 }
0x13e9   :  { %5261 = vadd.xlane.f32.xlu1 %v14801_v51  ;;  %v14805_v24 = vpop.eup %11153 }
0x13eb   :  { %v14808_v56 = vpop.eup %11155 }
0x13ed   :  { %5257 = vadd.xlane.f32.xlu1 %v14805_v24 }
0x13f1   :  { %5265 = vadd.xlane.f32.xlu1 %v14808_v56 }
0x13fe   :  { %5442 = vrot.lane.b32.xlu0 %v14415_v49, %s11639_s27 }
0x1402   :  { %5440 = vrot.lane.b32.xlu1 %v14548_v57, %s11639_s27  ;;  %5416 = vrot.lane.b32.xlu0 %v14418_v54, %s11639_s27 }
0x1406   :  { %5418 = vrot.lane.b32.xlu1 %v14413_v32, %s11639_s27  ;;  %5420 = vrot.lane.b32.xlu0 %v14434_v15, %s11639_s27 }
0x140a   :  { %5422 = vrot.lane.b32.xlu1 %v14431_v63, %s11639_s27  ;;  %5424 = vrot.lane.b32.xlu0 %v14446_v46, %s11639_s27 }
0x140e   :  { %5426 = vrot.lane.b32.xlu1 %v14443_v22, %s11639_s27  ;;  %5428 = vrot.lane.b32.xlu0 %v14462_v31, %s11639_s27 }
0x1412   :  { %5430 = vrot.lane.b32.xlu1 %v14454_v50, %s11639_s27 }
0x1416   :  { %5805 = vrot.lane.b32.xlu1 %v14519_v28, %s11639_s27 }
0x1424   :  { %v5244_v26 = vpop.xlane.xlu0 %5243 }
0x1428   :  { %v5240_v39 = vpop.xlane.xlu0 %5239 }
0x1429   :  { %v5246_v48 = vpop.xlane.xlu1 %5245 }
0x142a   :  { %11157 = vrcp.f32 %v5246_v48 }
0x142b   :  { %11159 = vrcp.f32 %v5240_v39 }
0x142c   :  { %11161 = vrcp.f32 %v5244_v26 }
0x142d   :  { %v5242_v40 = vpop.xlane.xlu1 %5241 }
0x142e   :  { %11163 = vrcp.f32 %v5242_v40 }
0x1431   :  { %v5445_v6 = vpop.permute.xlu1 %5444 }
0x1437   :  { %v11158_v27 = vpop.eup %11157 }
0x1438   :  { %v11160_v1 = vpop.eup %11159  ;;  %v5290_v9 = vmul.f32 %v11158_v27, %v14750_v38  ;;  %v5499_v38 = vsel %vm826_vm1, %v14739_v42, 0 }
0x1439   :  { %v11162_v62 = vpop.eup %11161  ;;  %v5287_v8 = vmul.f32 %v11160_v1, %v14748_v16  ;;  %v5496_v16 = vsel %vm826_vm1, %v5451_v53, 0 }
0x143a   :  { %v5289_v47 = vmul.f32 %v11162_v62, %v14745_v13  ;;  %v5447_v13 = vpop.permute.xlu0 %5446 }
0x143b   :  { %v11164_v59 = vpop.eup %11163 }
0x143c   :  { %v5288_v43 = vmul.f32 %v11164_v59, %v14754_v18  ;;  %v5304_v44 = vpack.c.bf16 %v5290_v9, %v5289_v47 }
0x143e   :  { %v5303_v36 = vpack.c.bf16 %v5288_v43, %v5287_v8 }
0x1440   :  { %10249 = vmatprep.mubr.bf16.mxu1 %v5303_v36 }
0x1441   :  { %10250 = vmatmul.mubr.bf16.vlgmr.msra.gmra.mxu1 %v5304_v44 }
0x1442   :  { %10266 = vmatpush3.bf16.xpose.msra.mxu1 %v5502_v30 }
0x1443   :  { %10681 = vmatprep.subr.msk.bf16.mxu1 %vm826_vm1, %v14739_v42  ;;  %v5490_v42 = vsel %vm826_vm1, %v5447_v13, 0 }
0x144a   :  { %10268 = vmatpush3.bf16.xpose.msra.mxu1 %v5499_v38 }
0x144b   :  { %10682 = vmatprep.subr.msk.bf16.mxu1 %vm826_vm1, %v5451_v53 }
0x1452   :  { %10270 = vmatpush3.bf16.xpose.msra.mxu1 %v5496_v16 }
0x1453   :  { %10683 = vmatprep.subr.msk.bf16.mxu1 %vm826_vm1, %v14769_v37  ;;  %v5487_v37 = vsel %vm826_vm1, %v5445_v6, 0 }
0x145a   :  { %10272 = vmatpush3.bf16.xpose.msra.mxu1 %v5493_v21 }
0x145b   :  { %10684 = vmatprep.subr.msk.bf16.mxu1 %vm826_vm1, %v5447_v13 }
0x145d   :  { %v5252_v18 = vpop.xlane.xlu0 %5251 }
0x1461   :  { %v5250_v26 = vpop.xlane.xlu0 %5249 }
0x1462   :  { %10274 = vmatpush3.bf16.xpose.msra.mxu1 %v5490_v42  ;;  %11165 = vrcp.f32 %v5250_v26  ;;  %v5248_v39 = vpop.xlane.xlu1 %5247 }
0x1463   :  { %10685 = vmatprep.subr.msk.bf16.mxu1 %vm826_vm1, %v5445_v6  ;;  %11167 = vrcp.f32 %v5248_v39 }
0x1464   :  { %11169 = vrcp.f32 %v5252_v18 }
0x1465   :  { %v5268_v48 = vpop.xlane.xlu0 %5267 }
0x1466   :  { %v5254_v53 = vpop.xlane.xlu1 %5253 }
0x1467   :  { %11171 = vrcp.f32 %v5254_v53 }
0x1469   :  { %v5264_v27 = vpop.xlane.xlu0 %5263 }
0x146a   :  { %10276 = vmatpush3.bf16.xpose.msra.mxu1 %v5487_v37  ;;  %v5260_v40 = vpop.xlane.xlu1 %5259 }
0x146e   :  { %v5256_v1 = vpop.xlane.xlu1 %5255 }
0x146f   :  { %v11166_v62 = vpop.eup %11165 }
0x1470   :  { %v11168_v59 = vpop.eup %11167  ;;  %v5292_v9 = vmul.f32 %v11166_v62, %v14776_v4 }
0x1471   :  { %v5270_v8 = vpop.xlane.xlu0 %5269  ;;  %v5291_v43 = vmul.f32 %v11168_v59, %v14779_v33  ;;  %v11170_v47 = vpop.eup %11169 }
0x1472   :  { %v5262_v36 = vpop.xlane.xlu1 %5261  ;;  %v5293_v16 = vmul.f32 %v11170_v47, %v14771_v2 }
0x1473   :  { %v5305_v44 = vpack.c.bf16 %v5292_v9, %v5291_v43  ;;  %11173 = vrcp.f32 %v5262_v36 }
0x1474   :  { %v11172_v30 = vpop.eup %11171  ;;  %11175 = vrcp.f32 %v5256_v1 }
0x1475   :  { %10253 = vmatprep.mubr.bf16.mxu1 %v5305_v44  ;;  %v5443_v38 = vpop.permute.xlu0 %5442  ;;  %v5294_v13 = vmul.f32 %v11172_v30, %v14786_v45  ;;  %11177 = vrcp.f32 %v5260_v40 }
0x1476   :  { %v5258_v21 = vpop.xlane.xlu1 %5257  ;;  %10686 = vmatprep.subr.msk.bf16.mxu1 %vm826_vm1, %v5443_v38  ;;  %v5484_v4 = vsel %vm826_vm1, %v5443_v38, 0 }
0x1477   :  { %11179 = vrcp.f32 %v5258_v21  ;;  %10278 = vmatpush3.bf16.xpose.msra.mxu1 %v5484_v4  ;;  %v5306_v33 = vpack.c.bf16 %v5294_v13, %v5293_v16 }
0x1478   :  { %11181 = vrcp.f32 %v5264_v27 }
0x1479   :  { %10254 = vmatmul.mubr.bf16.gmra.mxu1 %v5306_v33 }
0x147a   :  { %v5266_v18 = vpop.xlane.xlu1 %5265 }
0x147b   :  { %11183 = vrcp.f32 %v5266_v18 }
0x147c   :  { %11185 = vrcp.f32 %v5270_v8 }
0x147d   :  { %11187 = vrcp.f32 %v5268_v48  ;;  %v9018_v48 = vld [vmem:[%s16600_s10 + $0x20] sm:$0xff] }
0x147e   :  { %v5441_v6 = vpop.permute.xlu1 %5440 }
0x147f   :  { %10687 = vmatprep.subr.msk.bf16.mxu1 %vm826_vm1, %v5441_v6  ;;  %v5481_v2 = vsel %vm826_vm1, %v5441_v6, 0 }
0x1480   :  { %10280 = vmatpush3.bf16.xpose.msra.mxu1 %v5481_v2  ;;  %v11174_v45 = vpop.eup %11173 }
0x1481   :  { %v11176_v42 = vpop.eup %11175  ;;  %v5298_v53 = vmul.f32 %v11174_v45, %v14801_v51  ;;  %10355 = vmatprep.subr.mxu1 %v9018_v48 }
0x1482   :  { %v11178_v26 = vpop.eup %11177  ;;  %v5295_v37 = vmul.f32 %v11176_v42, %v14796_v29  ;;  %v5419_v30 = vpop.permute.xlu1 %5418 }
0x1483   :  { %v5297_v1 = vmul.f32 %v11178_v26, %v14792_v34  ;;  %v5417_v34 = vpop.permute.xlu0 %5416 }
0x1484   :  { %v11180_v39 = vpop.eup %11179 }
0x1485   :  { %v5296_v40 = vmul.f32 %v11180_v39, %v14805_v24  ;;  %v11182_v27 = vpop.eup %11181  ;;  %v5308_v9 = vpack.c.bf16 %v5298_v53, %v5297_v1 }
0x1486   :  { %v5299_v43 = vmul.f32 %v11182_v27, %v14790_v11  ;;  %v5423_v11 = vpop.permute.xlu1 %5422 }
0x1487   :  { %v5307_v62 = vpack.c.bf16 %v5296_v40, %v5295_v37  ;;  %v5421_v38 = vpop.permute.xlu0 %5420 }
0x1488   :  { %v11184_v59 = vpop.eup %11183 }
0x1489   :  { %v11186_v8 = vpop.eup %11185  ;;  %10257 = vmatprep.mubr.bf16.mxu1 %v5307_v62  ;;  %v5300_v51 = vmul.f32 %v11184_v59, %v14808_v56 }
0x148a   :  { %10258 = vmatmul.mubr.bf16.gmra.mxu1 %v5308_v9  ;;  %v11188_v29 = vpop.eup %11187  ;;  %v5302_v47 = vmul.f32 %v11186_v8, %v14799_v58  ;;  %v5427_v58 = vpop.permute.xlu1 %5426 }
0x148b   :  { %v5309_v24 = vpack.c.bf16 %v5300_v51, %v5299_v43  ;;  %v5301_v36 = vmul.f32 %v11188_v29, %v14783_v60  ;;  %v5425_v56 = vpop.permute.xlu0 %5424 }
0x148d   :  { %10261 = vmatprep.mubr.bf16.mxu1 %v5309_v24  ;;  %v5310_v44 = vpack.c.bf16 %v5302_v47, %v5301_v36 }
0x148e   :  { %v5431_v16 = vpop.permute.xlu1 %5430 }
0x148f   :  { %v5429_v60 = vpop.permute.xlu0 %5428 }
0x1492   :  { %10262 = vmatmul.mubr.bf16.gmra.mxu1 %v5310_v44 }
0x1493   :  { %10281 = vmatprep.mubr.msk.bf16.mxu1 %vm826_vm1, %v5417_v34 }
0x149a   :  { %10282 = vmatmul.mubr.msk.bf16.vlgmr.msra.gmra.mxu1 %vm826_vm1, %v5419_v30 }
0x149b   :  { %10285 = vmatprep.mubr.msk.bf16.mxu1 %vm826_vm1, %v5421_v38  ;;  %10356 = vmatpush3.msra.mxu1 %v9018_v48 }
0x14a2   :  { %10286 = vmatmul.mubr.msk.bf16.gmra.mxu1 %vm826_vm1, %v5423_v11 }
0x14a3   :  { %10289 = vmatprep.mubr.msk.bf16.mxu1 %vm826_vm1, %v5425_v56 }
0x14aa   :  { %10290 = vmatmul.mubr.msk.bf16.gmra.mxu1 %vm826_vm1, %v5427_v58 }
0x14ab   :  { %10293 = vmatprep.mubr.msk.bf16.mxu1 %vm826_vm1, %v5429_v60 }
0x14b2   :  { %10294 = vmatmul.mubr.msk.bf16.gmra.mxu1 %vm826_vm1, %v5431_v16 }
0x1501   :  { %v10251_v13 = vpop.f32.mrf.mxu1 }
0x1503   :  { %v5345_v21 = vpop.f32.mrf.mxu1 }
0x1504   :  { %10357 = vmatprep.mubr.msk.f32.mxu1 %vm826_vm1, %v5345_v21 }
0x1505   :  { %v10252_v4 = vpop.f32.mrf.mxu1 }
0x1507   :  { %v5348_v33 = vpop.f32.mrf.mxu1 }
0x1508   :  { %10358 = vmatmul.mubr.msk.f32.vlgmr.msra.gmra.mxu1 %vm826_vm1, %v5348_v33 }
0x1509   :  { %10360 = vmatprep.mubr.msk.f32.mxu1 %vm826_vm1, %v10251_v13 }
0x150c   :  { %10361 = vmatmul.mubr.msk.f32.gmra.mxu1 %vm826_vm1, %v10252_v4 }
0x1539   :  { %v10255_v18 = vpop.f32.mrf.mxu1 }
0x153b   :  { %v5361_v6 = vpop.f32.mrf.mxu1 }
0x153c   :  { %10363 = vmatprep.mubr.msk.f32.mxu1 %vm826_vm1, %v5361_v6 }
0x153d   :  { %v10256_v2 = vpop.f32.mrf.mxu1 }
0x153f   :  { %v5364_v45 = vpop.f32.mrf.mxu1 }
0x1540   :  { %10364 = vmatmul.mubr.msk.f32.gmra.mxu1 %vm826_vm1, %v5364_v45 }
0x1541   :  { %10366 = vmatprep.mubr.msk.f32.mxu1 %vm826_vm1, %v10255_v18 }
0x1544   :  { %10367 = vmatmul.mubr.msk.f32.gmra.mxu1 %vm826_vm1, %v10256_v2 }
0x154a   :  { %v10259_v42 = vpop.f32.mrf.mxu1 }
0x154c   :  { %v5377_v26 = vpop.f32.mrf.mxu1 }
0x154d   :  { %10369 = vmatprep.mubr.msk.f32.mxu1 %vm826_vm1, %v5377_v26 }
0x154e   :  { %v10260_v39 = vpop.f32.mrf.mxu1 }
0x1550   :  { %v5380_v53 = vpop.f32.mrf.mxu1 }
0x1551   :  { %10370 = vmatmul.mubr.msk.f32.gmra.mxu1 %vm826_vm1, %v5380_v53 }
0x1552   :  { %v10263_v37 = vpop.f32.mrf.mxu1  ;;  %10372 = vmatprep.mubr.msk.f32.mxu1 %vm826_vm1, %v10259_v42 }
0x1554   :  { %v5393_v40 = vpop.f32.mrf.mxu1 }
0x1555   :  { %10373 = vmatmul.mubr.msk.f32.gmra.mxu1 %vm826_vm1, %v10260_v39 }
0x1556   :  { %v10264_v48 = vpop.f32.mrf.mxu1  ;;  %10375 = vmatprep.mubr.msk.f32.mxu1 %vm826_vm1, %v5393_v40 }
0x1558   :  { %v5396_v27 = vpop.f32.mrf.mxu1 }
0x1559   :  { %10376 = vmatmul.mubr.msk.f32.gmra.mxu1 %vm826_vm1, %v5396_v27 }
0x155a   :  { %v10283_v1 = vpop.f32.mrf.mxu1  ;;  %10378 = vmatprep.mubr.msk.f32.mxu1 %vm826_vm1, %v10263_v37 }
0x155b   :  { %v5603_v62 = vmul.f32 0.35355338, %v10283_v1 }
0x155c   :  { %v5538_v59 = vpop.f32.mrf.mxu1 }
0x155d   :  { %v14896_v9 = vadd.f32 %v14594_v25, %v5603_v62  ;;  %v5601_v8 = vmul.f32 0.35355338, %v5538_v59  ;;  %10379 = vmatmul.mubr.msk.f32.gmra.mxu1 %vm826_vm1, %v10264_v48  ;;  %v16819_v62 = vld [vmem:[#allocation23_spill] sm:$0xff] }
0x155e   :  { %v10284_v43 = vpop.f32.mrf.mxu1 }
0x155f   :  { %5637 = vmax.xlane.f32.xlu0 %v14896_v9  ;;  %v14901_v29 = vadd.f32 %v14603_v14, %v5601_v8  ;;  %v5604_v24 = vmul.f32 0.35355338, %v10284_v43  ;;  %v5806_v43 = vpop.permute.xlu1 %5805 }
0x1560   :  { %v5541_v51 = vpop.f32.mrf.mxu1 }
0x1561   :  { %v5602_v47 = vmul.f32 0.35355338, %v5541_v51  ;;  %v14908_v34 = vadd.f32 %v14611_v52, %v5604_v24 }
0x1562   :  { %v10287_v36 = vpop.f32.mrf.mxu1 }
0x1563   :  { %v14904_v44 = vadd.f32 %v14621_v0, %v5602_v47  ;;  %5633 = vmax.xlane.f32.xlu0 %v14901_v29 }
0x1564   :  { %v5554_v25 = vpop.f32.mrf.mxu1 }
0x1565   :  { %5635 = vmax.xlane.f32.xlu1 %v14904_v44 }
0x1566   :  { %v10288_v30 = vpop.f32.mrf.mxu1 }
0x1567   :  { %v5608_v38 = vmul.f32 0.35355338, %v10288_v30  ;;  %5639 = vmax.xlane.f32.xlu0 %v14908_v34 }
0x1568   :  { %v5557_v14 = vpop.f32.mrf.mxu1 }
0x1569   :  { %v14913_v11 = vadd.f32 %v14647_v5, %v5608_v38  ;;  %v5606_v56 = vmul.f32 0.35355338, %v5557_v14 }
0x156a   :  { %v10291_v58 = vpop.f32.mrf.mxu1 }
0x156b   :  { %5647 = vmax.xlane.f32.xlu1 %v14913_v11  ;;  %v14917_v60 = vadd.f32 %v14657_v61, %v5606_v56  ;;  %v5611_v53 = vmul.f32 0.35355338, %v10291_v58 }
0x156c   :  { %v5570_v0 = vpop.f32.mrf.mxu1 }
0x156d   :  { %v5609_v37 = vmul.f32 0.35355338, %v5570_v0 }
0x156e   :  { %v10292_v52 = vpop.f32.mrf.mxu1 }
0x156f   :  { %v5612_v16 = vmul.f32 0.35355338, %v10292_v52  ;;  %5643 = vmax.xlane.f32.xlu1 %v14917_v60  ;;  %v14950_v40 = vadd.f32 %v14675_v55, %v5609_v37  ;;  %v16818_v55 = vld [vmem:[#allocation29_spill] sm:$0xff] }
0x1570   :  { %v5573_v13 = vpop.f32.mrf.mxu1 }
0x1571   :  { %v14921_v21 = vadd.f32 %v14683_v3, %v5612_v16  ;;  %v5610_v4 = vmul.f32 0.35355338, %v5573_v13  ;;  %v16821_v13 = vld [vmem:[#allocation26_spill] sm:$0xff] }
0x1572   :  { %v10295_v33 = vpop.f32.mrf.mxu1 }
0x1573   :  { %5655 = vmax.xlane.f32.xlu1 %v14921_v21  ;;  %v14925_v18 = vadd.f32 %v14693_v7, %v5610_v4  ;;  %v5607_v7 = vmul.f32 0.35355338, %v10287_v36  ;;  %v5615_v48 = vmul.f32 0.35355338, %v10295_v33 }
0x1574   :  { %v5586_v5 = vpop.f32.mrf.mxu1 }
0x1575   :  { %v14941_v26 = vadd.f32 %v14629_v20, %v5607_v7  ;;  %v14954_v20 = vadd.f32 %v14701_v41, %v5615_v48  ;;  %v5613_v27 = vmul.f32 0.35355338, %v5586_v5  ;;  %v16820_v41 = vld [vmem:[#allocation43_spill] sm:$0xff] }
0x1576   :  { %v10296_v6 = vpop.f32.mrf.mxu1 }
0x1577   :  { %v5616_v2 = vmul.f32 0.35355338, %v10296_v6  ;;  %5651 = vmax.xlane.f32.xlu1 %v14925_v18 }
0x1578   :  { %v5589_v61 = vpop.f32.mrf.mxu1 }
0x1579   :  { %v14929_v45 = vadd.f32 %v14724_v19, %v5616_v2  ;;  %v5614_v42 = vmul.f32 0.35355338, %v5589_v61  ;;  %v5605_v19 = vmul.f32 0.35355338, %v5554_v25 }
0x157b   :  { %5663 = vmax.xlane.f32.xlu1 %v14929_v45  ;;  %v14933_v3 = vadd.f32 %v14733_v10, %v5614_v42  ;;  %v5621_v39 = vadd.f32 %v14639_v23, %v5605_v19  ;;  %v14946_v10 = vadd.f32 %v14665_v35, %v5611_v53  ;;  %v16816_v23 = vld [vmem:[#allocation25_spill] sm:$0xff]  ;;  %v16817_v35 = vld [vmem:[#allocation24_spill] sm:$0xff] }
0x157c   :  { %v14958_v1 = vadd.f32 %v16816_v23, %v5613_v27 }
0x157d   :  { %5807 = vrot.lane.b32.xlu0 %v14515_v12, %s11639_s27 }
0x157f   :  { %5659 = vmax.xlane.f32.xlu1 %v14933_v3 }
0x1590   :  { %5797 = vrot.lane.b32.xlu1 %v14551_v17, %s11639_s27 }
0x159c   :  { %5645 = vmax.xlane.f32.xlu0 %v14941_v26 }
0x15a0   :  { %5641 = vmax.xlane.f32.xlu0 %v5621_v39 }
0x15a4   :  { %5653 = vmax.xlane.f32.xlu0 %v14946_v10 }
0x15a8   :  { %5649 = vmax.xlane.f32.xlu0 %v14950_v40 }
0x15ac   :  { %5661 = vmax.xlane.f32.xlu0 %v14954_v20 }
0x15b0   :  { %5657 = vmax.xlane.f32.xlu0 %v14958_v1 }
0x15c6   :  { %5803 = vrot.lane.b32.xlu0 %v16817_v35, %s11639_s27 }
0x15ca   :  { %5801 = vrot.lane.b32.xlu0 %v16818_v55, %s11639_s27 }
0x15ce   :  { %5799 = vrot.lane.b32.xlu0 %v16819_v62, %s11639_s27 }
0x15d2   :  { %5795 = vrot.lane.b32.xlu0 %v16820_v41, %s11639_s27 }
0x15e8   :  { %v5638_v59 = vpop.xlane.xlu0 %5637 }
0x15e9   :  { %v5667_v8 = vsub.f32 %v14896_v9, %v5638_v59 }
0x15eb   :  { %v5685_v51 = vmul.f32 1.442695, %v5667_v8 }
0x15ec   :  { %v5634_v24 = vpop.xlane.xlu0 %5633 }
0x15ed   :  { %11189 = vpow2.f32 %v5685_v51  ;;  %v5665_v47 = vsub.f32 %v14901_v29, %v5634_v24 }
0x15ee   :  { %v5636_v36 = vpop.xlane.xlu1 %5635 }
0x15ef   :  { %v5681_v25 = vmul.f32 1.442695, %v5665_v47  ;;  %v5666_v38 = vsub.f32 %v14904_v44, %v5636_v36 }
0x15f0   :  { %v5640_v30 = vpop.xlane.xlu0 %5639 }
0x15f1   :  { %11191 = vpow2.f32 %v5681_v25  ;;  %v5668_v14 = vsub.f32 %v14908_v34, %v5640_v30  ;;  %v5683_v0 = vmul.f32 1.442695, %v5666_v38 }
0x15f3   :  { %v5687_v56 = vmul.f32 1.442695, %v5668_v14 }
0x15f4   :  { %v5808_v58 = vpop.permute.xlu0 %5807  ;;  %v5648_v52 = vpop.xlane.xlu1 %5647 }
0x15f5   :  { %11193 = vpow2.f32 %v5687_v56  ;;  %10297 = vmatprep.subr.bf16.mxu0 %v5808_v58  ;;  %v5672_v48 = vsub.f32 %v14913_v11, %v5648_v52 }
0x15f6   :  { %10298 = vmatpush3.bf16.msra.mxu0 %v5808_v58  ;;  %11195 = vpow2.f32 %v5683_v0 }
0x15f7   :  { %10299 = vmatprep.subr.bf16.mxu0 %v5806_v43 }
0x15f8   :  { %v5644_v16 = vpop.xlane.xlu1 %5643 }
0x15f9   :  { %v5670_v5 = vsub.f32 %v14917_v60, %v5644_v16  ;;  %v5695_v60 = vmul.f32 1.442695, %v5672_v48  ;;  %v16824_v48 = vld [vmem:[#allocation45_spill] sm:$0xff] }
0x15fa   :  { %v14973_v9 = vpop.eup %11189  ;;  %10300 = vmatpush3.bf16.msra.mxu0 %v5806_v43 }
0x15fb   :  { %5717 = vadd.xlane.f32.xlu1 %v14973_v9  ;;  %v5691_v61 = vmul.f32 1.442695, %v5670_v5 }
0x15fc   :  { %v5656_v4 = vpop.xlane.xlu1 %5655 }
0x15fd   :  { %11197 = vpow2.f32 %v5691_v61  ;;  %v5676_v59 = vsub.f32 %v14921_v21, %v5656_v4 }
0x15fe   :  { %v14976_v29 = vpop.eup %11191 }
0x15ff   :  { %5713 = vadd.xlane.f32.xlu1 %v14976_v29  ;;  %v5703_v24 = vmul.f32 1.442695, %v5676_v59  ;;  %v16827_v59 = vld [vmem:[#allocation22_spill] sm:$0xff] }
0x1600   :  { %v5652_v33 = vpop.xlane.xlu1 %5651 }
0x1601   :  { %v5674_v42 = vsub.f32 %v14925_v18, %v5652_v33 }
0x1602   :  { %v14979_v44 = vpop.eup %11193 }
0x1603   :  { %5719 = vadd.xlane.f32.xlu1 %v14979_v44  ;;  %v14982_v34 = vpop.eup %11195  ;;  %v5699_v27 = vmul.f32 1.442695, %v5674_v42 }
0x1604   :  { %v5664_v2 = vpop.xlane.xlu1 %5663 }
0x1605   :  { %v5680_v11 = vsub.f32 %v14929_v45, %v5664_v2 }
0x1607   :  { %5715 = vadd.xlane.f32.xlu1 %v14982_v34  ;;  %v5711_v25 = vmul.f32 1.442695, %v5680_v11 }
0x1608   :  { %v5660_v8 = vpop.xlane.xlu1 %5659 }
0x1609   :  { %v5678_v51 = vsub.f32 %v14933_v3, %v5660_v8 }
0x160a   :  { %v14996_v38 = vpop.eup %11197 }
0x1618   :  { %5793 = vrot.lane.b32.xlu1 %v16821_v13, %s11639_s27 }
0x1625   :  { %v5646_v6 = vpop.xlane.xlu0 %5645 }
0x1626   :  { %v5671_v19 = vsub.f32 %v14941_v26, %v5646_v6  ;;  %v5798_v6 = vpop.permute.xlu1 %5797 }
0x1628   :  { %v5693_v43 = vmul.f32 1.442695, %v5671_v19 }
0x1629   :  { %v5642_v7 = vpop.xlane.xlu0 %5641 }
0x162a   :  { %v5669_v53 = vsub.f32 %v5621_v39, %v5642_v7  ;;  %v5707_v39 = vmul.f32 1.442695, %v5678_v51 }
0x162c   :  { %v5689_v37 = vmul.f32 1.442695, %v5669_v53  ;;  %v16822_v53 = vld [vmem:[#allocation34_spill] sm:$0xff] }
0x162d   :  { %v5654_v23 = vpop.xlane.xlu0 %5653 }
0x162e   :  { %11199 = vpow2.f32 %v5689_v37  ;;  %v5675_v21 = vsub.f32 %v14946_v10, %v5654_v23  ;;  %v16823_v37 = vld [vmem:[#allocation19_spill] sm:$0xff]  ;;  %v16826_v23 = vld [vmem:[#allocation20_spill] sm:$0xff] }
0x162f   :  { %11201 = vpow2.f32 %v5699_v27  ;;  %v16825_v27 = vld [vmem:[#allocation31_spill] sm:$0xff] }
0x1630   :  { %11203 = vpow2.f32 %v5693_v43  ;;  %v5701_v3 = vmul.f32 1.442695, %v5675_v21 }
0x1631   :  { %v5650_v18 = vpop.xlane.xlu0 %5649  ;;  %11205 = vpow2.f32 %v5695_v60 }
0x1632   :  { %v5673_v26 = vsub.f32 %v14950_v40, %v5650_v18  ;;  %11207 = vpow2.f32 %v5703_v24  ;;  %v9019_v24 = vld [vmem:[%s16600_s10 + $0x28] sm:$0xff] }
0x1633   :  { %11209 = vpow2.f32 %v5707_v39 }
0x1634   :  { %v5697_v36 = vmul.f32 1.442695, %v5673_v26 }
0x1635   :  { %v5662_v47 = vpop.xlane.xlu0 %5661 }
0x1636   :  { %11211 = vpow2.f32 %v5697_v36  ;;  %v5679_v10 = vsub.f32 %v14954_v20, %v5662_v47 }
0x1637   :  { %11213 = vpow2.f32 %v5711_v25 }
0x1638   :  { %11215 = vpow2.f32 %v5701_v3  ;;  %v5709_v16 = vmul.f32 1.442695, %v5679_v10 }
0x1639   :  { %v5658_v30 = vpop.xlane.xlu0 %5657 }
0x163a   :  { %v5677_v14 = vsub.f32 %v14958_v1, %v5658_v30 }
0x163b   :  { %v14999_v56 = vpop.eup %11199 }
0x163c   :  { %5721 = vadd.xlane.f32.xlu0 %v14999_v56  ;;  %5723 = vadd.xlane.f32.xlu1 %v14996_v38  ;;  %v15003_v40 = vpop.eup %11201  ;;  %v5705_v58 = vmul.f32 1.442695, %v5677_v14 }
0x163d   :  { %v5804_v45 = vpop.permute.xlu0 %5803  ;;  %v15006_v0 = vpop.eup %11203 }
0x163e   :  { %10301 = vmatprep.subr.bf16.mxu0 %v5804_v45  ;;  %v15010_v52 = vpop.eup %11205  ;;  %11217 = vpow2.f32 %v5705_v58 }
0x163f   :  { %10302 = vmatpush3.bf16.msra.mxu0 %v5804_v45  ;;  %v15012_v4 = vpop.eup %11207  ;;  %11219 = vpow2.f32 %v5709_v16 }
0x1640   :  { %5725 = vadd.xlane.f32.xlu0 %v15006_v0  ;;  %5731 = vadd.xlane.f32.xlu1 %v15003_v40  ;;  %v15016_v33 = vpop.eup %11209 }
0x1641   :  { %v5802_v1 = vpop.permute.xlu0 %5801 }
0x1642   :  { %10303 = vmatprep.subr.bf16.mxu0 %v5802_v1 }
0x1643   :  { %10304 = vmatpush3.bf16.msra.mxu0 %v5802_v1  ;;  %v15018_v5 = vpop.eup %11211 }
0x1644   :  { %5727 = vadd.xlane.f32.xlu0 %v15010_v52  ;;  %5735 = vadd.xlane.f32.xlu1 %v15012_v4  ;;  %v15022_v2 = vpop.eup %11213 }
0x1645   :  { %v5800_v20 = vpop.permute.xlu0 %5799  ;;  %v15024_v61 = vpop.eup %11215 }
0x1646   :  { %10305 = vmatprep.subr.bf16.mxu0 %v5800_v20 }
0x1647   :  { %10306 = vmatpush3.bf16.msra.mxu0 %v5800_v20 }
0x1648   :  { %5729 = vadd.xlane.f32.xlu0 %v15018_v5  ;;  %5739 = vadd.xlane.f32.xlu1 %v15016_v33 }
0x1649   :  { %10307 = vmatprep.subr.bf16.mxu0 %v5798_v6  ;;  %v5796_v42 = vpop.permute.xlu0 %5795 }
0x164b   :  { %10308 = vmatpush3.bf16.msra.mxu0 %v5798_v6  ;;  %v15028_v7 = vpop.eup %11217 }
0x164c   :  { %5733 = vadd.xlane.f32.xlu0 %v15024_v61  ;;  %5743 = vadd.xlane.f32.xlu1 %v15022_v2  ;;  %v15031_v19 = vpop.eup %11219 }
0x164d   :  { %10309 = vmatprep.subr.bf16.mxu0 %v5796_v42 }
0x164f   :  { %10310 = vmatpush3.bf16.msra.mxu0 %v5796_v42 }
0x1650   :  { %5737 = vadd.xlane.f32.xlu0 %v15028_v7 }
0x1654   :  { %5741 = vadd.xlane.f32.xlu0 %v15031_v19 }
0x165d   :  { %6328 = vrot.lane.b32.xlu1 %v16822_v53, %s11640_s14 }
0x1661   :  { %6326 = vrot.lane.b32.xlu1 %v16823_v37, %s11640_s14 }
0x1665   :  { %6324 = vrot.lane.b32.xlu1 %v16824_v48, %s11640_s14 }
0x1669   :  { %6320 = vrot.lane.b32.xlu1 %v16825_v27, %s11640_s14 }
0x166a   :  { %6330 = vrot.lane.b32.xlu0 %v16826_v23, %s11640_s14 }
0x166d   :  { %6316 = vrot.lane.b32.xlu1 %v14548_v57, %s11640_s14 }
0x166e   :  { %6322 = vrot.lane.b32.xlu0 %v16827_v59, %s11640_s14 }
0x1671   :  { %6302 = vrot.lane.b32.xlu1 %v14413_v32, %s11640_s14 }
0x1672   :  { %6318 = vrot.lane.b32.xlu0 %v14415_v49, %s11640_s14 }
0x1675   :  { %6306 = vrot.lane.b32.xlu1 %v14431_v63, %s11640_s14 }
0x1676   :  { %6300 = vrot.lane.b32.xlu0 %v14418_v54, %s11640_s14 }
0x1679   :  { %6310 = vrot.lane.b32.xlu1 %v14443_v22, %s11640_s14 }
0x167a   :  { %6304 = vrot.lane.b32.xlu0 %v14434_v15, %s11640_s14 }
0x167d   :  { %6314 = vrot.lane.b32.xlu1 %v14454_v50, %s11640_s14 }
0x167e   :  { %6308 = vrot.lane.b32.xlu0 %v14446_v46, %s11640_s14 }
0x1681   :  { %7019 = vrot.lane.b32.xlu1 %v16822_v53, %s11641_s22 }
0x1682   :  { %6312 = vrot.lane.b32.xlu0 %v14462_v31, %s11640_s14 }
0x1684   :  { %v5718_v8 = vpop.xlane.xlu1 %5717 }
0x1685   :  { %7015 = vrot.lane.b32.xlu1 %v16824_v48, %s11641_s22 }
0x1686   :  { %7021 = vrot.lane.b32.xlu0 %v16826_v23, %s11641_s22 }
0x1688   :  { %v5714_v43 = vpop.xlane.xlu1 %5713 }
0x1689   :  { %7011 = vrot.lane.b32.xlu1 %v16825_v27, %s11641_s22 }
0x168a   :  { %7017 = vrot.lane.b32.xlu0 %v16823_v37, %s11641_s22 }
0x168c   :  { %v5720_v60 = vpop.xlane.xlu1 %5719 }
0x168d   :  { %7007 = vrot.lane.b32.xlu1 %v14548_v57, %s11641_s22  ;;  %11221 = vrcp.f32 %v5720_v60 }
0x168e   :  { %7013 = vrot.lane.b32.xlu0 %v16827_v59, %s11641_s22  ;;  %11223 = vrcp.f32 %v5714_v43 }
0x168f   :  { %11225 = vrcp.f32 %v5718_v8 }
0x1690   :  { %v5716_v51 = vpop.xlane.xlu1 %5715 }
0x1691   :  { %11227 = vrcp.f32 %v5716_v51  ;;  %6993 = vrot.lane.b32.xlu1 %v14413_v32, %s11641_s22 }
0x1692   :  { %7009 = vrot.lane.b32.xlu0 %v14415_v49, %s11641_s22 }
0x1694   :  { %v5794_v18 = vpop.permute.xlu1 %5793 }
0x1695   :  { %6997 = vrot.lane.b32.xlu1 %v14431_v63, %s11641_s22  ;;  %10311 = vmatprep.subr.bf16.mxu0 %v5794_v18 }
0x1696   :  { %6991 = vrot.lane.b32.xlu0 %v14418_v54, %s11641_s22  ;;  %10312 = vmatpush3.bf16.msra.mxu0 %v5794_v18 }
0x1697   :  { %10329 = vmatprep.subr.mxu0 %v9019_v24 }
0x1699   :  { %7001 = vrot.lane.b32.xlu1 %v14443_v22, %s11641_s22 }
0x169a   :  { %6995 = vrot.lane.b32.xlu0 %v14434_v15, %s11641_s22  ;;  %v11222_v32 = vpop.eup %11221 }
0x169b   :  { %v11224_v49 = vpop.eup %11223  ;;  %v5764_v63 = vmul.f32 %v11222_v32, %v14979_v44 }
0x169c   :  { %v11226_v57 = vpop.eup %11225  ;;  %v5761_v54 = vmul.f32 %v11224_v49, %v14976_v29 }
0x169d   :  { %7005 = vrot.lane.b32.xlu1 %v14454_v50, %s11641_s22  ;;  %v5763_v22 = vmul.f32 %v11226_v57, %v14973_v9 }
0x169e   :  { %v11228_v26 = vpop.eup %11227  ;;  %6999 = vrot.lane.b32.xlu0 %v14446_v46, %s11641_s22 }
0x169f   :  { %v5762_v11 = vmul.f32 %v11228_v26, %v14982_v34  ;;  %v5778_v50 = vpack.c.bf16 %v5764_v63, %v5763_v22 }
0x16a1   :  { %6673 = vrot.lane.b32.xlu1 %v14519_v28, %s11640_s14  ;;  %v5777_v15 = vpack.c.bf16 %v5762_v11, %v5761_v54 }
0x16a2   :  { %7003 = vrot.lane.b32.xlu0 %v14462_v31, %s11641_s22 }
0x16a3   :  { %10313 = vmatprep.mubr.bf16.mxu0 %v5777_v15 }
0x16a4   :  { %10314 = vmatmul.mubr.bf16.vlgmr.msra.gmra.mxu0 %v5778_v50 }
0x16a5   :  { %10330 = vmatpush3.msra.mxu0 %v9019_v24 }
0x16a6   :  { %6675 = vrot.lane.b32.xlu0 %v14515_v12, %s11640_s14 }
0x16aa   :  { %6671 = vrot.lane.b32.xlu0 %v16817_v35, %s11640_s14 }
0x16c5   :  { %v5722_v46 = vpop.xlane.xlu0 %5721  ;;  %v5724_v29 = vpop.xlane.xlu1 %5723 }
0x16c6   :  { %11229 = vrcp.f32 %v5722_v46 }
0x16c7   :  { %11231 = vrcp.f32 %v5724_v29 }
0x16c9   :  { %v5726_v9 = vpop.xlane.xlu0 %5725  ;;  %v5732_v44 = vpop.xlane.xlu1 %5731 }
0x16ca   :  { %11233 = vrcp.f32 %v5726_v9 }
0x16cd   :  { %v5728_v34 = vpop.xlane.xlu0 %5727  ;;  %v5736_v39 = vpop.xlane.xlu1 %5735 }
0x16ce   :  { %11235 = vrcp.f32 %v5728_v34 }
0x16cf   :  { %11237 = vrcp.f32 %v5732_v44 }
0x16d1   :  { %v5730_v31 = vpop.xlane.xlu0 %5729  ;;  %v5740_v47 = vpop.xlane.xlu1 %5739 }
0x16d2   :  { %11239 = vrcp.f32 %v5730_v31 }
0x16d3   :  { %v11230_v21 = vpop.eup %11229  ;;  %11241 = vrcp.f32 %v5736_v39 }
0x16d4   :  { %v11232_v36 = vpop.eup %11231  ;;  %v5765_v25 = vmul.f32 %v11230_v21, %v14999_v56 }
0x16d5   :  { %v5734_v30 = vpop.xlane.xlu0 %5733  ;;  %v5744_v3 = vpop.xlane.xlu1 %5743  ;;  %v5766_v14 = vmul.f32 %v11232_v36, %v14996_v38 }
0x16d6   :  { %11243 = vrcp.f32 %v5734_v30 }
0x16d7   :  { %v5779_v45 = vpack.c.bf16 %v5766_v14, %v5765_v25  ;;  %11245 = vrcp.f32 %v5740_v47  ;;  %v11234_v10 = vpop.eup %11233 }
0x16d8   :  { %v5767_v20 = vmul.f32 %v11234_v10, %v15006_v0 }
0x16d9   :  { %10317 = vmatprep.mubr.bf16.mxu0 %v5779_v45  ;;  %v5738_v58 = vpop.xlane.xlu0 %5737  ;;  %v15113_v1 = vpop.permute.xlu1 %6328 }
0x16da   :  { %11247 = vrcp.f32 %v5738_v58 }
0x16db   :  { %v11236_v16 = vpop.eup %11235  ;;  %11249 = vrcp.f32 %v5744_v3 }
0x16dc   :  { %v5768_v6 = vmul.f32 %v11236_v16, %v15010_v52  ;;  %v11238_v56 = vpop.eup %11237 }
0x16dd   :  { %v5742_v42 = vpop.xlane.xlu0 %5741  ;;  %v15117_v53 = vpop.permute.xlu1 %6326  ;;  %v5770_v27 = vmul.f32 %v11238_v56, %v15003_v40 }
0x16de   :  { %11251 = vrcp.f32 %v5742_v42  ;;  %v5780_v38 = vpack.c.bf16 %v5768_v6, %v5767_v20 }
0x16df   :  { %v11240_v37 = vpop.eup %11239 }
0x16e0   :  { %10318 = vmatmul.mubr.bf16.gmra.mxu0 %v5780_v38  ;;  %v5769_v48 = vmul.f32 %v11240_v37, %v15018_v5  ;;  %v11242_v23 = vpop.eup %11241 }
0x16e1   :  { %v15121_v59 = vpop.permute.xlu0 %6330  ;;  %v15123_v8 = vpop.permute.xlu1 %6324  ;;  %v5772_v60 = vmul.f32 %v11242_v23, %v15012_v4  ;;  %v6375_v23 = vsel %vm826_vm1, %v15113_v1, 0 }
0x16e2   :  { %10688 = vmatprep.subr.msk.bf16.mxu0 %vm826_vm1, %v15121_v59  ;;  %v5781_v0 = vpack.c.bf16 %v5770_v27, %v5769_v48  ;;  %v6378_v27 = vsel %vm826_vm1, %v15121_v59, 0  ;;  %v6369_v59 = vsel %vm826_vm1, %v15123_v8, 0 }
0x16e3   :  { %v11244_v52 = vpop.eup %11243 }
0x16e4   :  { %10321 = vmatprep.mubr.bf16.mxu0 %v5781_v0  ;;  %v5771_v43 = vmul.f32 %v11244_v52, %v15024_v61  ;;  %v11246_v51 = vpop.eup %11245  ;;  %v6372_v0 = vsel %vm826_vm1, %v15117_v53, 0 }
0x16e5   :  { %v15129_v18 = vpop.permute.xlu0 %6322  ;;  %v15131_v5 = vpop.permute.xlu1 %6320  ;;  %v5774_v49 = vmul.f32 %v11246_v51, %v15016_v33 }
0x16e6   :  { %v5782_v40 = vpack.c.bf16 %v5772_v60, %v5771_v43 }
0x16e7   :  { %v11248_v24 = vpop.eup %11247 }
0x16e8   :  { %10322 = vmatmul.mubr.bf16.gmra.mxu0 %v5782_v40  ;;  %v5773_v32 = vmul.f32 %v11248_v24, %v15028_v7  ;;  %v11250_v57 = vpop.eup %11249 }
0x16e9   :  { %v15135_v26 = vpop.permute.xlu0 %6318  ;;  %v15137_v63 = vpop.permute.xlu1 %6316  ;;  %v5776_v11 = vmul.f32 %v11250_v57, %v15022_v2 }
0x16ea   :  { %v5783_v61 = vpack.c.bf16 %v5774_v49, %v5773_v32  ;;  %v6357_v60 = vsel %vm826_vm1, %v15137_v63, 0 }
0x16eb   :  { %v11252_v54 = vpop.eup %11251 }
0x16ec   :  { %10325 = vmatprep.mubr.bf16.mxu0 %v5783_v61  ;;  %v5775_v4 = vmul.f32 %v11252_v54, %v15031_v19 }
0x16ed   :  { %v15141_v22 = vpop.permute.xlu0 %6300  ;;  %v15143_v15 = vpop.permute.xlu1 %6302 }
0x16ee   :  { %v5784_v50 = vpack.c.bf16 %v5776_v11, %v5775_v4 }
0x16f0   :  { %10326 = vmatmul.mubr.bf16.gmra.mxu0 %v5784_v50 }
0x16f1   :  { %v15145_v7 = vpop.permute.xlu0 %6304  ;;  %v15147_v33 = vpop.permute.xlu1 %6306 }
0x16f5   :  { %v15149_v46 = vpop.permute.xlu0 %6308  ;;  %v15151_v29 = vpop.permute.xlu1 %6310 }
0x16f9   :  { %v15153_v9 = vpop.permute.xlu0 %6312  ;;  %v15155_v44 = vpop.permute.xlu1 %6314 }
0x16fd   :  { %v15157_v19 = vpop.permute.xlu0 %7021  ;;  %v15159_v2 = vpop.permute.xlu1 %7019 }
0x16fe   :  { %v7069_v61 = vsel %vm826_vm1, %v15157_v19, 0  ;;  %v7066_v54 = vsel %vm826_vm1, %v15159_v2, 0 }
0x1701   :  { %v15161_v34 = vpop.permute.xlu0 %7017  ;;  %v15163_v39 = vpop.permute.xlu1 %7015 }
0x1702   :  { %v7063_v4 = vsel %vm826_vm1, %v15161_v34, 0  ;;  %v7060_v11 = vsel %vm826_vm1, %v15163_v39, 0 }
0x1705   :  { %v15165_v31 = vpop.permute.xlu0 %7013  ;;  %v15167_v47 = vpop.permute.xlu1 %7011 }
0x1709   :  { %v15169_v21 = vpop.permute.xlu0 %7009  ;;  %v15171_v36 = vpop.permute.xlu1 %7007 }
0x170a   :  { %v7051_v50 = vsel %vm826_vm1, %v15169_v21, 0 }
0x170d   :  { %v15173_v25 = vpop.permute.xlu0 %6991  ;;  %v15175_v30 = vpop.permute.xlu1 %6993 }
0x1711   :  { %v15177_v3 = vpop.permute.xlu0 %6995  ;;  %v15179_v14 = vpop.permute.xlu1 %6997 }
0x1715   :  { %v15181_v45 = vpop.permute.xlu0 %6999  ;;  %v15183_v10 = vpop.permute.xlu1 %7001 }
0x1719   :  { %v15185_v58 = vpop.permute.xlu0 %7003  ;;  %v15187_v16 = vpop.permute.xlu1 %7005 }
0x171d   :  { %v6676_v20 = vpop.permute.xlu0 %6675  ;;  %v6674_v6 = vpop.permute.xlu1 %6673 }
0x171e   :  { %10413 = vmatprep.subr.bf16.mxu1 %v6676_v20 }
0x171f   :  { %10414 = vmatpush3.bf16.msra.mxu1 %v6676_v20 }
0x1720   :  { %10415 = vmatprep.subr.bf16.mxu1 %v6674_v6 }
0x1721   :  { %v6672_v56 = vpop.permute.xlu0 %6671 }
0x1723   :  { %10416 = vmatpush3.bf16.msra.mxu1 %v6674_v6 }
0x1724   :  { %10417 = vmatprep.subr.bf16.mxu1 %v6672_v56 }
0x1727   :  { %10418 = vmatpush3.bf16.msra.mxu1 %v6672_v56 }
0x1764   :  { %v10315_v42 = vpop.f32.mrf.mxu0 }
0x1766   :  { %v5851_v38 = vpop.f32.mrf.mxu0 }
0x1767   :  { %10331 = vmatprep.mubr.msk.f32.mxu0 %vm826_vm1, %v5851_v38 }
0x1768   :  { %v10316_v37 = vpop.f32.mrf.mxu0 }
0x176a   :  { %v5854_v48 = vpop.f32.mrf.mxu0 }
0x176b   :  { %10332 = vmatmul.mubr.msk.f32.vlgmr.msra.gmra.mxu0 %vm826_vm1, %v5854_v48 }
0x176c   :  { %10382 = vmatpush3.bf16.xpose.msra.mxu0 %v6378_v27  ;;  %10334 = vmatprep.mubr.msk.f32.mxu0 %vm826_vm1, %v10315_v42  ;;  %v15343_v42 = vld [vmem:[%s16728_s8] sm:$0xff] }
0x176d   :  { %10689 = vmatprep.subr.msk.bf16.mxu0 %vm826_vm1, %v15113_v1  ;;  %v6366_v1 = vsel %vm826_vm1, %v15129_v18, 0 }
0x176f   :  { %10335 = vmatmul.mubr.msk.f32.gmra.mxu0 %vm826_vm1, %v10316_v37 }
0x1774   :  { %10384 = vmatpush3.bf16.xpose.msra.mxu0 %v6375_v23  ;;  %v15351_v23 = vld [vmem:[%s16728_s8 + $0x8] sm:$0xff] }
0x1775   :  { %10690 = vmatprep.subr.msk.bf16.mxu0 %vm826_vm1, %v15117_v53  ;;  %v6363_v53 = vsel %vm826_vm1, %v15131_v5, 0 }
0x177c   :  { %10386 = vmatpush3.bf16.xpose.msra.mxu0 %v6372_v0 }
0x177d   :  { %10691 = vmatprep.subr.msk.bf16.mxu0 %vm826_vm1, %v15123_v8  ;;  %v6360_v8 = vsel %vm826_vm1, %v15135_v26, 0 }
0x1784   :  { %10388 = vmatpush3.bf16.xpose.msra.mxu0 %v6369_v59 }
0x1785   :  { %10692 = vmatprep.subr.msk.bf16.mxu0 %vm826_vm1, %v15129_v18 }
0x178c   :  { %10390 = vmatpush3.bf16.xpose.msra.mxu0 %v6366_v1  ;;  %v15360_v1 = vld [vmem:[%s16728_s8 + $0x18] sm:$0xff] }
0x178d   :  { %10693 = vmatprep.subr.msk.bf16.mxu0 %vm826_vm1, %v15131_v5 }
0x1794   :  { %10392 = vmatpush3.bf16.xpose.msra.mxu0 %v6363_v53 }
0x1795   :  { %10694 = vmatprep.subr.msk.bf16.mxu0 %vm826_vm1, %v15135_v26 }
0x179c   :  { %10394 = vmatpush3.bf16.xpose.msra.mxu0 %v6360_v8 }
0x179d   :  { %10695 = vmatprep.subr.msk.bf16.mxu0 %vm826_vm1, %v15137_v63 }
0x17a0   :  { %v10319_v52 = vpop.f32.mrf.mxu0 }
0x17a2   :  { %v5867_v43 = vpop.f32.mrf.mxu0 }
0x17a3   :  { %10337 = vmatprep.mubr.msk.f32.mxu0 %vm826_vm1, %v5867_v43 }
0x17a4   :  { %10396 = vmatpush3.bf16.xpose.msra.mxu0 %v6357_v60  ;;  %v10320_v51 = vpop.f32.mrf.mxu0 }
0x17a5   :  { %10696 = vmatprep.subr.msk.bf16.mxu0 %vm826_vm1, %v15157_v19 }
0x17a6   :  { %v5870_v18 = vpop.f32.mrf.mxu0 }
0x17a7   :  { %10338 = vmatmul.mubr.msk.f32.gmra.mxu0 %vm826_vm1, %v5870_v18 }
0x17a8   :  { %v10323_v5 = vpop.f32.mrf.mxu0  ;;  %10340 = vmatprep.mubr.msk.f32.mxu0 %vm826_vm1, %v10319_v52 }
0x17aa   :  { %v5883_v40 = vpop.f32.mrf.mxu0 }
0x17ab   :  { %10341 = vmatmul.mubr.msk.f32.gmra.mxu0 %vm826_vm1, %v10320_v51  ;;  %v15370_v51 = vld [vmem:[%s16728_s8 + $0x30] sm:$0xff] }
0x17ac   :  { %v10324_v24 = vpop.f32.mrf.mxu0  ;;  %10343 = vmatprep.mubr.msk.f32.mxu0 %vm826_vm1, %v5883_v40  ;;  %v15378_v40 = vld [vmem:[%s16728_s8 + $0x38] sm:$0xff] }
0x17ae   :  { %v5886_v32 = vpop.f32.mrf.mxu0 }
0x17af   :  { %10344 = vmatmul.mubr.msk.f32.gmra.mxu0 %vm826_vm1, %v5886_v32 }
0x17b0   :  { %v10327_v49 = vpop.f32.mrf.mxu0  ;;  %10346 = vmatprep.mubr.msk.f32.mxu0 %vm826_vm1, %v10323_v5 }
0x17b2   :  { %v5899_v57 = vpop.f32.mrf.mxu0 }
0x17b3   :  { %10347 = vmatmul.mubr.msk.f32.gmra.mxu0 %vm826_vm1, %v10324_v24 }
0x17b4   :  { %v10328_v26 = vpop.f32.mrf.mxu0  ;;  %10349 = vmatprep.mubr.msk.f32.mxu0 %vm826_vm1, %v5899_v57 }
0x17b6   :  { %v5902_v63 = vpop.f32.mrf.mxu0 }
0x17b7   :  { %10350 = vmatmul.mubr.msk.f32.gmra.mxu0 %vm826_vm1, %v5902_v63 }
0x17b8   :  { %10352 = vmatprep.mubr.msk.f32.mxu0 %vm826_vm1, %v10327_v49 }
0x17bb   :  { %10353 = vmatmul.mubr.msk.f32.gmra.mxu0 %vm826_vm1, %v10328_v26  ;;  %v15388_v26 = vld [vmem:[%s16728_s8 + $0x20] sm:$0xff] }
0x17bc   :  { %10397 = vmatprep.mubr.msk.bf16.mxu0 %vm826_vm1, %v15141_v22  ;;  %v7057_v22 = vsel %vm826_vm1, %v15165_v31, 0 }
0x17bf   :  { %10398 = vmatmul.mubr.msk.bf16.vlgmr.msra.gmra.mxu0 %vm826_vm1, %v15143_v15  ;;  %v7054_v15 = vsel %vm826_vm1, %v15167_v47, 0 }
0x17c0   :  { %10472 = vmatpush3.bf16.xpose.msra.mxu0 %v7069_v61  ;;  %10401 = vmatprep.mubr.msk.bf16.mxu0 %vm826_vm1, %v15145_v7  ;;  %v7048_v7 = vsel %vm826_vm1, %v15171_v36, 0  ;;  %v15396_v61 = vld [vmem:[%s16728_s8 + $0x28] sm:$0xff] }
0x17c1   :  { %10697 = vmatprep.subr.msk.bf16.mxu0 %vm826_vm1, %v15159_v2 }
0x17c7   :  { %10402 = vmatmul.mubr.msk.bf16.gmra.mxu0 %vm826_vm1, %v15147_v33 }
0x17c8   :  { %10474 = vmatpush3.bf16.xpose.msra.mxu0 %v7066_v54  ;;  %10405 = vmatprep.mubr.msk.bf16.mxu0 %vm826_vm1, %v15149_v46 }
0x17c9   :  { %10698 = vmatprep.subr.msk.bf16.mxu0 %vm826_vm1, %v15161_v34 }
0x17cf   :  { %10406 = vmatmul.mubr.msk.bf16.gmra.mxu0 %vm826_vm1, %v15151_v29 }
0x17d0   :  { %10476 = vmatpush3.bf16.xpose.msra.mxu0 %v7063_v4  ;;  %10409 = vmatprep.mubr.msk.bf16.mxu0 %vm826_vm1, %v15153_v9 }
0x17d1   :  { %10699 = vmatprep.subr.msk.bf16.mxu0 %vm826_vm1, %v15163_v39 }
0x17d7   :  { %10410 = vmatmul.mubr.msk.bf16.gmra.mxu0 %vm826_vm1, %v15155_v44 }
0x17d8   :  { %10478 = vmatpush3.bf16.xpose.msra.mxu0 %v7060_v11  ;;  %10487 = vmatprep.mubr.msk.bf16.mxu0 %vm826_vm1, %v15173_v25 }
0x17d9   :  { %10700 = vmatprep.subr.msk.bf16.mxu0 %vm826_vm1, %v15165_v31 }
0x17e0   :  { %10480 = vmatpush3.bf16.xpose.msra.mxu0 %v7057_v22 }
0x17e1   :  { %10701 = vmatprep.subr.msk.bf16.mxu0 %vm826_vm1, %v15167_v47 }
0x17e8   :  { %10482 = vmatpush3.bf16.xpose.msra.mxu0 %v7054_v15 }
0x17e9   :  { %10702 = vmatprep.subr.msk.bf16.mxu0 %vm826_vm1, %v15169_v21 }
0x17f0   :  { %10484 = vmatpush3.bf16.xpose.msra.mxu0 %v7051_v50  ;;  %v15406_v50 = vld [vmem:[%s16728_s8 + $0x50] sm:$0xff] }
0x17f1   :  { %10703 = vmatprep.subr.msk.bf16.mxu0 %vm826_vm1, %v15171_v36 }
0x17f8   :  { %10486 = vmatpush3.bf16.xpose.msra.mxu0 %v7048_v7 }
0x17ff   :  { %10488 = vmatmul.mubr.msk.bf16.vlgmr.msra.gmra.mxu0 %vm826_vm1, %v15175_v30 }
0x1800   :  { %10491 = vmatprep.mubr.msk.bf16.mxu0 %vm826_vm1, %v15177_v3 }
0x1807   :  { %10492 = vmatmul.mubr.msk.bf16.gmra.mxu0 %vm826_vm1, %v15179_v14 }
0x1808   :  { %10495 = vmatprep.mubr.msk.bf16.mxu0 %vm826_vm1, %v15181_v45 }
0x180f   :  { %10496 = vmatmul.mubr.msk.bf16.gmra.mxu0 %vm826_vm1, %v15183_v10 }
0x1810   :  { %10499 = vmatprep.mubr.msk.bf16.mxu0 %vm826_vm1, %v15185_v58  ;;  %v15334_v58 = vld [vmem:[%s16728_s8 + $0x10] sm:$0xff] }
0x1817   :  { %10500 = vmatmul.mubr.msk.bf16.gmra.mxu0 %vm826_vm1, %v15187_v16 }
0x182b   :  { %v15299_v33 = vpop.f32.mrf.mxu0 }
0x182d   :  { %v15301_v46 = vpop.f32.mrf.mxu0 }
0x182e   :  { %16828 = vst [vmem:[#allocation28_spill] sm:$0xff] %v15301_v46 }
0x182f   :  { %v15303_v29 = vpop.f32.mrf.mxu0 }
0x1830   :  { %16829 = vst [vmem:[#allocation27_spill] sm:$0xff] %v15303_v29 }
0x1831   :  { %v15305_v9 = vpop.f32.mrf.mxu0 }
0x1832   :  { %16830 = vst [vmem:[#allocation30_spill] sm:$0xff] %v15305_v9 }
0x1867   :  { %v15307_v44 = vpop.f32.mrf.mxu0 }
0x1868   :  { %16831 = vst [vmem:[#allocation25_spill] sm:$0xff] %v15307_v44 }
0x1869   :  { %v15309_v19 = vpop.f32.mrf.mxu0 }
0x186a   :  { %16832 = vst [vmem:[#allocation24_spill] sm:$0xff] %v15309_v19 }
0x186b   :  { %v15311_v2 = vpop.f32.mrf.mxu0 }
0x186c   :  { %16833 = vst [vmem:[#allocation29_spill] sm:$0xff] %v15311_v2 }
0x186d   :  { %v15313_v34 = vpop.f32.mrf.mxu0 }
0x186e   :  { %16834 = vst [vmem:[#allocation23_spill] sm:$0xff] %v15313_v34 }
0x186f   :  { %v15315_v39 = vpop.f32.mrf.mxu0 }
0x1870   :  { %16835 = vst [vmem:[#allocation43_spill] sm:$0xff] %v15315_v39 }
0x1871   :  { %v15317_v31 = vpop.f32.mrf.mxu0 }
0x1872   :  { %16836 = vst [vmem:[#allocation26_spill] sm:$0xff] %v15317_v31 }
0x1873   :  { %v15319_v47 = vpop.f32.mrf.mxu0 }
0x1874   :  { %16837 = vst [vmem:[#allocation34_spill] sm:$0xff] %v15319_v47 }
0x1875   :  { %v15321_v21 = vpop.f32.mrf.mxu0 }
0x1876   :  { %16838 = vst [vmem:[#allocation19_spill] sm:$0xff] %v15321_v21 }
0x1877   :  { %v15323_v36 = vpop.f32.mrf.mxu0 }
0x1878   :  { %16839 = vst [vmem:[#allocation45_spill] sm:$0xff] %v15323_v36 }
0x1879   :  { %v15325_v25 = vpop.f32.mrf.mxu0 }
0x187a   :  { %16840 = vst [vmem:[#allocation31_spill] sm:$0xff] %v15325_v25 }
0x187b   :  { %v15327_v30 = vpop.f32.mrf.mxu0 }
0x187c   :  { %16841 = vst [vmem:[#allocation20_spill] sm:$0xff] %v15327_v30 }
0x187d   :  { %v15329_v3 = vpop.f32.mrf.mxu0 }
0x187e   :  { %16842 = vst [vmem:[#allocation22_spill] sm:$0xff] %v15329_v3 }
0x187f   :  { %v10399_v14 = vpop.f32.mrf.mxu0 }
0x1880   :  { %v6479_v45 = vmul.f32 0.35355338, %v10399_v14 }
0x1881   :  { %v6414_v10 = vpop.f32.mrf.mxu0 }
0x1882   :  { %v15337_v16 = vadd.f32 %v15334_v58, %v6479_v45  ;;  %v6477_v20 = vmul.f32 0.35355338, %v6414_v10  ;;  %v15414_v45 = vld [vmem:[%s16728_s8 + $0x58] sm:$0xff] }
0x1883   :  { %v10400_v6 = vpop.f32.mrf.mxu0 }
0x1884   :  { %6513 = vmax.xlane.f32.xlu0 %v15337_v16  ;;  %v15346_v38 = vadd.f32 %v15343_v42, %v6477_v20  ;;  %v6480_v37 = vmul.f32 0.35355338, %v10400_v6 }
0x1885   :  { %v6417_v56 = vpop.f32.mrf.mxu0 }
0x1886   :  { %v6478_v48 = vmul.f32 0.35355338, %v6417_v56  ;;  %v15363_v53 = vadd.f32 %v15360_v1, %v6480_v37  ;;  %v15424_v56 = vld [vmem:[%s16728_s8 + $0x40] sm:$0xff] }
0x1887   :  { %v10403_v27 = vpop.f32.mrf.mxu0 }
0x1888   :  { %v15354_v0 = vadd.f32 %v15351_v23, %v6478_v48  ;;  %6509 = vmax.xlane.f32.xlu0 %v15346_v38  ;;  %v6483_v8 = vmul.f32 0.35355338, %v10403_v27  ;;  %v15432_v48 = vld [vmem:[%s16728_s8 + $0x48] sm:$0xff] }
0x1889   :  { %v6430_v59 = vpop.f32.mrf.mxu0 }
0x188a   :  { %6511 = vmax.xlane.f32.xlu1 %v15354_v0  ;;  %v15373_v18 = vadd.f32 %v15370_v51, %v6483_v8  ;;  %v6481_v5 = vmul.f32 0.35355338, %v6430_v59 }
0x188b   :  { %v10404_v52 = vpop.f32.mrf.mxu0 }
0x188c   :  { %v6484_v43 = vmul.f32 0.35355338, %v10404_v52  ;;  %6515 = vmax.xlane.f32.xlu0 %v15363_v53  ;;  %v15391_v63 = vadd.f32 %v15388_v26, %v6481_v5  ;;  %v15442_v52 = vld [vmem:[%s16728_s8 + $0x70] sm:$0xff]  ;;  %v15451_v5 = vld [vmem:[%s16728_s8 + $0x60] sm:$0xff] }
0x188d   :  { %v6433_v60 = vpop.f32.mrf.mxu0 }
0x188e   :  { %v15381_v24 = vadd.f32 %v15378_v40, %v6484_v43  ;;  %v6482_v32 = vmul.f32 0.35355338, %v6433_v60 }
0x188f   :  { %v10407_v49 = vpop.f32.mrf.mxu0 }
0x1890   :  { %6521 = vmax.xlane.f32.xlu0 %v15373_v18  ;;  %6523 = vmax.xlane.f32.xlu1 %v15381_v24  ;;  %v15399_v54 = vadd.f32 %v15396_v61, %v6482_v32  ;;  %v6487_v4 = vmul.f32 0.35355338, %v10407_v49 }
0x1891   :  { %v6446_v57 = vpop.f32.mrf.mxu0 }
0x1892   :  { %v15409_v7 = vadd.f32 %v15406_v50, %v6487_v4  ;;  %v6485_v14 = vmul.f32 0.35355338, %v6446_v57 }
0x1893   :  { %v10408_v11 = vpop.f32.mrf.mxu0 }
0x1894   :  { %v6488_v22 = vmul.f32 0.35355338, %v10408_v11  ;;  %6517 = vmax.xlane.f32.xlu0 %v15391_v63  ;;  %6519 = vmax.xlane.f32.xlu1 %v15399_v54  ;;  %v15427_v37 = vadd.f32 %v15424_v56, %v6485_v14  ;;  %v15464_v11 = vld [vmem:[%s16728_s8 + $0x78] sm:$0xff]  ;;  %v15473_v14 = vld [vmem:[%s16728_s8 + $0x68] sm:$0xff] }
0x1895   :  { %v6449_v15 = vpop.f32.mrf.mxu0 }
0x1896   :  { %v15417_v10 = vadd.f32 %v15414_v45, %v6488_v22  ;;  %v6486_v20 = vmul.f32 0.35355338, %v6449_v15 }
0x1897   :  { %v10411_v6 = vpop.f32.mrf.mxu0 }
0x1898   :  { %6529 = vmax.xlane.f32.xlu0 %v15409_v7  ;;  %6531 = vmax.xlane.f32.xlu1 %v15417_v10  ;;  %v15435_v27 = vadd.f32 %v15432_v48, %v6486_v20  ;;  %v6491_v59 = vmul.f32 0.35355338, %v10411_v6 }
0x1899   :  { %v6462_v8 = vpop.f32.mrf.mxu0 }
0x189a   :  { %v15445_v43 = vadd.f32 %v15442_v52, %v6491_v59  ;;  %v6489_v60 = vmul.f32 0.35355338, %v6462_v8 }
0x189b   :  { %v10412_v49 = vpop.f32.mrf.mxu0 }
0x189c   :  { %6525 = vmax.xlane.f32.xlu0 %v15427_v37  ;;  %6527 = vmax.xlane.f32.xlu1 %v15435_v27  ;;  %v15454_v32 = vadd.f32 %v15451_v5, %v6489_v60  ;;  %v6492_v57 = vmul.f32 0.35355338, %v10412_v49 }
0x189d   :  { %v6465_v4 = vpop.f32.mrf.mxu0 }
0x189e   :  { %v15467_v22 = vadd.f32 %v15464_v11, %v6492_v57  ;;  %v6490_v15 = vmul.f32 0.35355338, %v6465_v4 }
0x18a0   :  { %6537 = vmax.xlane.f32.xlu0 %v15445_v43  ;;  %v15476_v20 = vadd.f32 %v15473_v14, %v6490_v15 }
0x18a4   :  { %6533 = vmax.xlane.f32.xlu0 %v15454_v32 }
0x18ad   :  { %6667 = vrot.lane.b32.xlu1 %v16819_v62, %s11640_s14 }
0x18ba   :  { %6669 = vrot.lane.b32.xlu0 %v16818_v55, %s11640_s14 }
0x18d1   :  { %6539 = vmax.xlane.f32.xlu1 %v15467_v22 }
0x18d5   :  { %6535 = vmax.xlane.f32.xlu1 %v15476_v20 }
0x18e6   :  { %6665 = vrot.lane.b32.xlu1 %v14551_v17, %s11640_s14 }
0x190d   :  { %v6514_v6 = vpop.xlane.xlu0 %6513 }
0x190e   :  { %v6543_v59 = vsub.f32 %v15337_v16, %v6514_v6 }
0x1910   :  { %v6561_v8 = vmul.f32 1.442695, %v6543_v59 }
0x1911   :  { %v6510_v60 = vpop.xlane.xlu0 %6509 }
0x1912   :  { %11253 = vpow2.f32 %v6561_v8  ;;  %v6541_v49 = vsub.f32 %v15346_v38, %v6510_v60 }
0x1913   :  { %v6512_v57 = vpop.xlane.xlu1 %6511 }
0x1914   :  { %v6557_v4 = vmul.f32 1.442695, %v6541_v49  ;;  %v6542_v3 = vsub.f32 %v15354_v0, %v6512_v57 }
0x1915   :  { %v6516_v30 = vpop.xlane.xlu0 %6515 }
0x1916   :  { %11255 = vpow2.f32 %v6557_v4  ;;  %v6544_v15 = vsub.f32 %v15363_v53, %v6516_v30  ;;  %v6559_v36 = vmul.f32 1.442695, %v6542_v3 }
0x1918   :  { %v6563_v25 = vmul.f32 1.442695, %v6544_v15 }
0x1919   :  { %v6522_v21 = vpop.xlane.xlu0 %6521  ;;  %v6524_v47 = vpop.xlane.xlu1 %6523 }
0x191a   :  { %11257 = vpow2.f32 %v6563_v25  ;;  %v6547_v16 = vsub.f32 %v15373_v18, %v6522_v21  ;;  %v6548_v38 = vsub.f32 %v15381_v24, %v6524_v47 }
0x191b   :  { %11259 = vpow2.f32 %v6559_v36 }
0x191c   :  { %v6569_v6 = vmul.f32 1.442695, %v6547_v16  ;;  %v6571_v21 = vmul.f32 1.442695, %v6548_v38 }
0x191d   :  { %v6518_v59 = vpop.xlane.xlu0 %6517  ;;  %v6520_v8 = vpop.xlane.xlu1 %6519 }
0x191e   :  { %11261 = vpow2.f32 %v6569_v6  ;;  %v6545_v0 = vsub.f32 %v15391_v63, %v6518_v59  ;;  %v6546_v60 = vsub.f32 %v15399_v54, %v6520_v8 }
0x191f   :  { %v15489_v49 = vpop.eup %11253 }
0x1920   :  { %v6565_v30 = vmul.f32 1.442695, %v6545_v0  ;;  %v6567_v3 = vmul.f32 1.442695, %v6546_v60  ;;  %6593 = vadd.xlane.f32.xlu1 %v15489_v49 }
0x1921   :  { %v6530_v25 = vpop.xlane.xlu0 %6529  ;;  %v6532_v53 = vpop.xlane.xlu1 %6531 }
0x1922   :  { %11263 = vpow2.f32 %v6565_v30  ;;  %v6551_v36 = vsub.f32 %v15409_v7, %v6530_v25  ;;  %v6552_v24 = vsub.f32 %v15417_v10, %v6532_v53 }
0x1923   :  { %v15493_v18 = vpop.eup %11255  ;;  %11265 = vpow2.f32 %v6567_v3 }
0x1924   :  { %6589 = vadd.xlane.f32.xlu1 %v15493_v18  ;;  %v6577_v47 = vmul.f32 1.442695, %v6551_v36  ;;  %11267 = vpow2.f32 %v6571_v21  ;;  %v6579_v7 = vmul.f32 1.442695, %v6552_v24 }
0x1925   :  { %v6526_v63 = vpop.xlane.xlu0 %6525  ;;  %v6528_v57 = vpop.xlane.xlu1 %6527 }
0x1926   :  { %v6549_v54 = vsub.f32 %v15427_v37, %v6526_v63  ;;  %11269 = vpow2.f32 %v6577_v47  ;;  %v6550_v16 = vsub.f32 %v15435_v27, %v6528_v57 }
0x1927   :  { %v15498_v4 = vpop.eup %11257 }
0x1928   :  { %v6573_v15 = vmul.f32 1.442695, %v6549_v54  ;;  %6595 = vadd.xlane.f32.xlu1 %v15498_v4  ;;  %v15502_v59 = vpop.eup %11259  ;;  %v6575_v37 = vmul.f32 1.442695, %v6550_v16  ;;  %v10489_v54 = vpop.f32.mrf.mxu0 }
0x1929   :  { %v6538_v6 = vpop.xlane.xlu0 %6537  ;;  %v6668_v53 = vpop.permute.xlu1 %6667 }
0x192a   :  { %11271 = vpow2.f32 %v6573_v15  ;;  %v6555_v10 = vsub.f32 %v15445_v43, %v6538_v6  ;;  %v7105_v57 = vpop.f32.mrf.mxu0 }
0x192b   :  { %v15505_v8 = vpop.eup %11261  ;;  %11273 = vpow2.f32 %v6579_v7 }
0x192c   :  { %v6585_v38 = vmul.f32 1.442695, %v6555_v10  ;;  %6601 = vadd.xlane.f32.xlu0 %v15505_v8  ;;  %6591 = vadd.xlane.f32.xlu1 %v15502_v59  ;;  %v10490_v15 = vpop.f32.mrf.mxu0 }
0x192d   :  { %v6534_v0 = vpop.xlane.xlu0 %6533 }
0x192e   :  { %11275 = vpow2.f32 %v6585_v38  ;;  %v6553_v60 = vsub.f32 %v15454_v32, %v6534_v0  ;;  %v7108_v7 = vpop.f32.mrf.mxu0 }
0x192f   :  { %v15510_v27 = vpop.eup %11263  ;;  %11277 = vpow2.f32 %v6575_v37 }
0x1930   :  { %v15512_v30 = vpop.eup %11265  ;;  %v6581_v3 = vmul.f32 1.442695, %v6553_v60  ;;  %6597 = vadd.xlane.f32.xlu0 %v15510_v27  ;;  %v10493_v16 = vpop.f32.mrf.mxu0 }
0x1931   :  { %6599 = vadd.xlane.f32.xlu1 %v15512_v30  ;;  %v6670_v43 = vpop.permute.xlu0 %6669  ;;  %v15516_v25 = vpop.eup %11267 }
0x1932   :  { %11279 = vpow2.f32 %v6581_v3  ;;  %10419 = vmatprep.subr.bf16.mxu1 %v6670_v43  ;;  %v7121_v6 = vpop.f32.mrf.mxu0 }
0x1933   :  { %10420 = vmatpush3.bf16.msra.mxu1 %v6670_v43  ;;  %v15519_v32 = vpop.eup %11269  ;;  %v7172_v44 = vmul.f32 0.35355338, %v7121_v6 }
0x1934   :  { %6603 = vadd.xlane.f32.xlu0 %v15516_v25  ;;  %10421 = vmatprep.subr.bf16.mxu1 %v6668_v53  ;;  %v10494_v10 = vpop.f32.mrf.mxu0 }
0x1935   :  { %v15544_v29 = vadd.f32 %v15388_v26, %v7172_v44 }
0x1936   :  { %v7124_v37 = vpop.f32.mrf.mxu0 }
0x1937   :  { %v15521_v21 = vpop.eup %11271  ;;  %10422 = vmatpush3.bf16.msra.mxu1 %v6668_v53 }
0x1938   :  { %6609 = vadd.xlane.f32.xlu0 %v15519_v32  ;;  %6605 = vadd.xlane.f32.xlu1 %v15521_v21  ;;  %v15525_v36 = vpop.eup %11273  ;;  %v10497_v3 = vpop.f32.mrf.mxu0 }
0x193a   :  { %v7137_v39 = vpop.f32.mrf.mxu0 }
0x193b   :  { %v15527_v47 = vpop.eup %11275 }
0x193c   :  { %6617 = vadd.xlane.f32.xlu1 %v15527_v47  ;;  %6611 = vadd.xlane.f32.xlu0 %v15525_v36  ;;  %v15531_v24 = vpop.eup %11277  ;;  %v10498_v2 = vpop.f32.mrf.mxu0 }
0x193e   :  { %v7140_v19 = vpop.f32.mrf.mxu0 }
0x193f   :  { %v15533_v63 = vpop.eup %11279 }
0x1940   :  { %6613 = vadd.xlane.f32.xlu1 %v15533_v63  ;;  %6607 = vadd.xlane.f32.xlu0 %v15531_v24  ;;  %v10501_v9 = vpop.f32.mrf.mxu0 }
0x1941   :  { %v7182_v46 = vmul.f32 0.35355338, %v10501_v9  ;;  %v7169_v9 = vmul.f32 0.35355338, %v7108_v7 }
0x1943   :  { %v15562_v26 = vadd.f32 %v15351_v23, %v7169_v9 }
0x1951   :  { %6661 = vrot.lane.b32.xlu1 %v16821_v13, %s11640_s14 }
0x1956   :  { %6663 = vrot.lane.b32.xlu0 %v16820_v41, %s11640_s14 }
0x195a   :  { %v6540_v38 = vpop.xlane.xlu1 %6539 }
0x195b   :  { %v6556_v53 = vsub.f32 %v15467_v22, %v6540_v38  ;;  %v7168_v22 = vmul.f32 0.35355338, %v7105_v57  ;;  %v15551_v38 = vadd.f32 %v15442_v52, %v7182_v46  ;;  %v7171_v52 = vmul.f32 0.35355338, %v10490_v15 }
0x195c   :  { %v7176_v15 = vmul.f32 0.35355338, %v7137_v39 }
0x195d   :  { %v6587_v34 = vmul.f32 1.442695, %v6556_v53  ;;  %v15558_v44 = vadd.f32 %v15343_v42, %v7168_v22  ;;  %v15570_v57 = vadd.f32 %v15360_v1, %v7171_v52  ;;  %v7173_v42 = vmul.f32 0.35355338, %v7124_v37 }
0x195e   :  { %v6536_v0 = vpop.xlane.xlu1 %6535  ;;  %v7175_v1 = vmul.f32 0.35355338, %v10494_v10 }
0x195f   :  { %v6554_v60 = vsub.f32 %v15476_v20, %v6536_v0  ;;  %v15576_v23 = vadd.f32 %v15396_v61, %v7173_v42  ;;  %v7178_v61 = vmul.f32 0.35355338, %v10497_v3 }
0x1961   :  { %v6583_v31 = vmul.f32 1.442695, %v6554_v60  ;;  %v15602_v39 = vadd.f32 %v15406_v50, %v7178_v61 }
0x1962   :  { %v6666_v43 = vpop.permute.xlu1 %6665 }
0x1963   :  { %10423 = vmatprep.subr.bf16.mxu1 %v6666_v43  ;;  %11281 = vpow2.f32 %v6583_v31 }
0x1964   :  { %10424 = vmatpush3.bf16.msra.mxu1 %v6666_v43  ;;  %11283 = vpow2.f32 %v6587_v34  ;;  %v7170_v34 = vmul.f32 0.35355338, %v10489_v54  ;;  %v7174_v54 = vmul.f32 0.35355338, %v10493_v16 }
0x1966   :  { %v15566_v46 = vadd.f32 %v15334_v58, %v7170_v34  ;;  %v15582_v58 = vadd.f32 %v15370_v51, %v7174_v54  ;;  %v7177_v51 = vmul.f32 0.35355338, %v7140_v19 }
0x1968   :  { %v15598_v7 = vadd.f32 %v15432_v48, %v7177_v51 }
0x1970   :  { %v15546_v20 = vpop.eup %11281 }
0x1971   :  { %v15553_v31 = vpop.eup %11283 }
0x1975   :  { %7208 = vmax.xlane.f32.xlu1 %v15544_v29  ;;  %6615 = vadd.xlane.f32.xlu0 %v15546_v20 }
0x1979   :  { %7228 = vmax.xlane.f32.xlu1 %v15551_v38  ;;  %6619 = vadd.xlane.f32.xlu0 %v15553_v31 }
0x197d   :  { %7200 = vmax.xlane.f32.xlu0 %v15558_v44 }
0x1981   :  { %7202 = vmax.xlane.f32.xlu0 %v15562_v26 }
0x1985   :  { %7204 = vmax.xlane.f32.xlu0 %v15566_v46 }
0x1989   :  { %7206 = vmax.xlane.f32.xlu0 %v15570_v57 }
0x198a   :  { %7366 = vrot.lane.b32.xlu1 %v14515_v12, %s11641_s22  ;;  %v15588_v12 = vadd.f32 %v15378_v40, %v7175_v1  ;;  %v7179_v40 = vmul.f32 0.35355338, %v10498_v2 }
0x198d   :  { %7210 = vmax.xlane.f32.xlu0 %v15576_v23 }
0x198e   :  { %7364 = vrot.lane.b32.xlu1 %v14519_v28, %s11641_s22  ;;  %v15594_v28 = vadd.f32 %v15424_v56, %v7176_v15 }
0x1991   :  { %7212 = vmax.xlane.f32.xlu0 %v15582_v58 }
0x1992   :  { %7360 = vrot.lane.b32.xlu1 %v16818_v55, %s11641_s22  ;;  %v7153_v55 = vpop.f32.mrf.mxu0 }
0x1993   :  { %v7180_v19 = vmul.f32 0.35355338, %v7153_v55 }
0x1994   :  { %v10502_v16 = vpop.f32.mrf.mxu0 }
0x1995   :  { %7214 = vmax.xlane.f32.xlu0 %v15588_v12  ;;  %v15610_v48 = vadd.f32 %v15451_v5, %v7180_v19  ;;  %v7183_v50 = vmul.f32 0.35355338, %v10502_v16 }
0x1996   :  { %7354 = vrot.lane.b32.xlu1 %v16820_v41, %s11641_s22  ;;  %v15606_v41 = vadd.f32 %v15414_v45, %v7179_v40  ;;  %v7156_v56 = vpop.f32.mrf.mxu0 }
0x1997   :  { %v7181_v6 = vmul.f32 0.35355338, %v7156_v56  ;;  %v15618_v45 = vadd.f32 %v15464_v11, %v7183_v50 }
0x1999   :  { %7216 = vmax.xlane.f32.xlu0 %v15594_v28  ;;  %v15614_v2 = vadd.f32 %v15473_v14, %v7181_v6 }
0x199d   :  { %7218 = vmax.xlane.f32.xlu0 %v15598_v7 }
0x19a1   :  { %7220 = vmax.xlane.f32.xlu0 %v15602_v39 }
0x19a5   :  { %7222 = vmax.xlane.f32.xlu0 %v15606_v41 }
0x19a9   :  { %7224 = vmax.xlane.f32.xlu0 %v15610_v48  ;;  %v6594_v10 = vpop.xlane.xlu1 %6593 }
0x19ad   :  { %7226 = vmax.xlane.f32.xlu0 %v15614_v2  ;;  %v6590_v37 = vpop.xlane.xlu1 %6589 }
0x19ae   :  { %11285 = vrcp.f32 %v6590_v37 }
0x19b1   :  { %7230 = vmax.xlane.f32.xlu0 %v15618_v45  ;;  %v6596_v0 = vpop.xlane.xlu1 %6595 }
0x19b5   :  { %v6602_v5 = vpop.xlane.xlu0 %6601  ;;  %v6592_v60 = vpop.xlane.xlu1 %6591 }
0x19b6   :  { %11287 = vrcp.f32 %v6592_v60 }
0x19b7   :  { %11289 = vrcp.f32 %v6596_v0 }
0x19b9   :  { %v6598_v3 = vpop.xlane.xlu0 %6597 }
0x19ba   :  { %v6600_v43 = vpop.xlane.xlu1 %6599  ;;  %11291 = vrcp.f32 %v6598_v3 }
0x19bb   :  { %11293 = vrcp.f32 %v6600_v43  ;;  %v11286_v9 = vpop.eup %11285 }
0x19bc   :  { %11295 = vrcp.f32 %v6594_v10  ;;  %v6637_v42 = vmul.f32 %v11286_v9, %v15493_v18 }
0x19bd   :  { %v6604_v53 = vpop.xlane.xlu0 %6603 }
0x19be   :  { %11297 = vrcp.f32 %v6604_v53 }
0x19bf   :  { %11299 = vrcp.f32 %v6602_v5 }
0x19c1   :  { %v6610_v14 = vpop.xlane.xlu0 %6609  ;;  %v6606_v22 = vpop.xlane.xlu1 %6605 }
0x19c3   :  { %v11288_v34 = vpop.eup %11287 }
0x19c4   :  { %v6638_v54 = vmul.f32 %v11288_v34, %v15502_v59  ;;  %v11290_v61 = vpop.eup %11289 }
0x19c5   :  { %v6612_v11 = vpop.xlane.xlu0 %6611  ;;  %v6618_v52 = vpop.xlane.xlu1 %6617 }
0x19c6   :  { %v6653_v1 = vpack.c.bf16 %v6638_v54, %v6637_v42 }
0x19c7   :  { %7362 = vrot.lane.b32.xlu0 %v16817_v35, %s11641_s22  ;;  %v11292_v55 = vpop.eup %11291  ;;  %v6640_v35 = vmul.f32 %v11290_v61, %v15498_v4 }
0x19c8   :  { %10429 = vmatprep.mubr.bf16.mxu1 %v6653_v1  ;;  %v11294_v18 = vpop.eup %11293  ;;  %v6641_v19 = vmul.f32 %v11292_v55, %v15510_v27 }
0x19c9   :  { %v6608_v15 = vpop.xlane.xlu0 %6607  ;;  %v6614_v51 = vpop.xlane.xlu1 %6613  ;;  %v6642_v56 = vmul.f32 %v11294_v18, %v15512_v30 }
0x19ca   :  { %11301 = vrcp.f32 %v6608_v15  ;;  %v11296_v59 = vpop.eup %11295 }
0x19cb   :  { %11303 = vrcp.f32 %v6606_v22  ;;  %7358 = vrot.lane.b32.xlu0 %v16819_v62, %s11641_s22  ;;  %v9020_v62 = vld [vmem:[%s16600_s10 + $0x30] sm:$0xff]  ;;  %v6639_v6 = vmul.f32 %v11296_v59, %v15489_v49  ;;  %v6655_v50 = vpack.c.bf16 %v6642_v56, %v6641_v19 }
0x19cc   :  { %11305 = vrcp.f32 %v6612_v11 }
0x19cd   :  { %v6664_v40 = vpop.permute.xlu0 %6663  ;;  %v6662_v16 = vpop.permute.xlu1 %6661  ;;  %11307 = vrcp.f32 %v6610_v14  ;;  %v6654_v10 = vpack.c.bf16 %v6640_v35, %v6639_v6 }
0x19ce   :  { %10425 = vmatprep.subr.bf16.mxu1 %v6664_v40  ;;  %11309 = vrcp.f32 %v6614_v51 }
0x19cf   :  { %7356 = vrot.lane.b32.xlu0 %v14551_v17, %s11641_s22  ;;  %10426 = vmatpush3.bf16.msra.mxu1 %v6664_v40  ;;  %v11298_v17 = vpop.eup %11297 }
0x19d0   :  { %10427 = vmatprep.subr.bf16.mxu1 %v6662_v16  ;;  %v11300_v37 = vpop.eup %11299  ;;  %v6644_v30 = vmul.f32 %v11298_v17, %v15516_v25 }
0x19d1   :  { %v6643_v5 = vmul.f32 %v11300_v37, %v15505_v8 }
0x19d3   :  { %10428 = vmatpush3.bf16.msra.mxu1 %v6662_v16  ;;  %v6656_v60 = vpack.c.bf16 %v6644_v30, %v6643_v5 }
0x19d4   :  { %10445 = vmatprep.subr.mxu1 %v9020_v62 }
0x19d6   :  { %10430 = vmatmul.mubr.bf16.vlgmr.msra.gmra.mxu1 %v6654_v10 }
0x19d7   :  { %v11302_v4 = vpop.eup %11301  ;;  %10433 = vmatprep.mubr.bf16.mxu1 %v6655_v50  ;;  %10446 = vmatpush3.msra.mxu1 %v9020_v62 }
0x19d8   :  { %v11304_v27 = vpop.eup %11303  ;;  %v6646_v0 = vmul.f32 %v11302_v4, %v15531_v24 }
0x19d9   :  { %v6645_v49 = vmul.f32 %v11304_v27, %v15521_v21  ;;  %v11306_v3 = vpop.eup %11305 }
0x19da   :  { %v11308_v53 = vpop.eup %11307  ;;  %v6648_v14 = vmul.f32 %v11306_v3, %v15525_v36 }
0x19db   :  { %v6657_v43 = vpack.c.bf16 %v6646_v0, %v6645_v49  ;;  %v6647_v22 = vmul.f32 %v11308_v53, %v15519_v32  ;;  %v11310_v42 = vpop.eup %11309 }
0x19dc   :  { %v6649_v32 = vmul.f32 %v11310_v42, %v15533_v63 }
0x19dd   :  { %v6658_v9 = vpack.c.bf16 %v6648_v14, %v6647_v22 }
0x19de   :  { %10434 = vmatmul.mubr.bf16.gmra.mxu1 %v6656_v60 }
0x19df   :  { %10437 = vmatprep.mubr.bf16.mxu1 %v6657_v43 }
0x19e6   :  { %10438 = vmatmul.mubr.bf16.gmra.mxu1 %v6658_v9 }
0x19fe   :  { %v6616_v25 = vpop.xlane.xlu0 %6615  ;;  %v7209_v34 = vpop.xlane.xlu1 %7208 }
0x19ff   :  { %11311 = vrcp.f32 %v6616_v25  ;;  %v7236_v62 = vsub.f32 %v15544_v29, %v7209_v34 }
0x1a00   :  { %11313 = vrcp.f32 %v6618_v52 }
0x1a01   :  { %v7256_v50 = vmul.f32 1.442695, %v7236_v62 }
0x1a02   :  { %v6620_v8 = vpop.xlane.xlu0 %6619  ;;  %v7229_v24 = vpop.xlane.xlu1 %7228 }
0x1a03   :  { %11315 = vrcp.f32 %v6620_v8 }
0x1a06   :  { %v7201_v21 = vpop.xlane.xlu0 %7200  ;;  %v15642_v11 = vpop.permute.xlu1 %7366 }
0x1a07   :  { %10503 = vmatprep.subr.bf16.mxu1 %v15642_v11  ;;  %v7232_v61 = vsub.f32 %v15558_v44, %v7201_v21 }
0x1a09   :  { %v7248_v19 = vmul.f32 1.442695, %v7232_v61 }
0x1a0a   :  { %v7203_v54 = vpop.xlane.xlu0 %7202 }
0x1a0b   :  { %v7233_v56 = vsub.f32 %v15562_v26, %v7203_v54 }
0x1a0c   :  { %v11312_v36 = vpop.eup %11311 }
0x1a0d   :  { %v6650_v1 = vmul.f32 %v11312_v36, %v15546_v20  ;;  %v11314_v51 = vpop.eup %11313  ;;  %v7250_v6 = vmul.f32 1.442695, %v7233_v56 }
0x1a0e   :  { %v7205_v15 = vpop.xlane.xlu0 %7204  ;;  %v6651_v16 = vmul.f32 %v11314_v51, %v15527_v47 }
0x1a0f   :  { %v7234_v52 = vsub.f32 %v15566_v46, %v7205_v15  ;;  %v6659_v55 = vpack.c.bf16 %v6650_v1, %v6649_v32 }
0x1a10   :  { %v11316_v40 = vpop.eup %11315 }
0x1a11   :  { %v7252_v18 = vmul.f32 1.442695, %v7234_v52  ;;  %10441 = vmatprep.mubr.bf16.mxu1 %v6659_v55  ;;  %v6652_v35 = vmul.f32 %v11316_v40, %v15553_v31  ;;  %v15713_v40 = vpop.f32.mrf.mxu1 }
0x1a12   :  { %v7207_v59 = vpop.xlane.xlu0 %7206 }
0x1a13   :  { %11317 = vpow2.f32 %v7252_v18  ;;  %v7235_v63 = vsub.f32 %v15570_v57, %v7207_v59  ;;  %v6660_v20 = vpack.c.bf16 %v6652_v35, %v6651_v16  ;;  %v15717_v18 = vpop.f32.mrf.mxu1 }
0x1a14   :  { %11319 = vpow2.f32 %v7248_v19 }
0x1a15   :  { %10442 = vmatmul.mubr.bf16.gmra.mxu1 %v6660_v20  ;;  %v7254_v46 = vmul.f32 1.442695, %v7235_v63  ;;  %v15719_v59 = vpop.f32.mrf.mxu1 }
0x1a16   :  { %v7211_v44 = vpop.xlane.xlu0 %7210 }
0x1a17   :  { %11321 = vpow2.f32 %v7254_v46  ;;  %v7237_v47 = vsub.f32 %v15576_v23, %v7211_v44  ;;  %v7246_v23 = vsub.f32 %v15551_v38, %v7229_v24  ;;  %v15721_v16 = vpop.f32.mrf.mxu1 }
0x1a18   :  { %11323 = vpow2.f32 %v7250_v6 }
0x1a19   :  { %v7258_v37 = vmul.f32 1.442695, %v7237_v47  ;;  %v7276_v49 = vmul.f32 1.442695, %v7246_v23  ;;  %v15723_v35 = vpop.f32.mrf.mxu1 }
0x1a1a   :  { %v7213_v10 = vpop.xlane.xlu0 %7212 }
0x1a1b   :  { %v7238_v31 = vsub.f32 %v15582_v58, %v7213_v10  ;;  %v15725_v19 = vpop.f32.mrf.mxu1 }
0x1a1d   :  { %v7260_v17 = vmul.f32 1.442695, %v7238_v31  ;;  %v15727_v63 = vpop.f32.mrf.mxu1 }
0x1a1e   :  { %v7215_v57 = vpop.xlane.xlu0 %7214 }
0x1a1f   :  { %11325 = vpow2.f32 %v7260_v17  ;;  %v7239_v26 = vsub.f32 %v15588_v12, %v7215_v57  ;;  %v15729_v20 = vpop.f32.mrf.mxu1 }
0x1a20   :  { %v15657_v4 = vpop.eup %11317  ;;  %11327 = vpow2.f32 %v7256_v50 }
0x1a21   :  { %7284 = vadd.xlane.f32.xlu0 %v15657_v4  ;;  %11329 = vpow2.f32 %v7258_v37  ;;  %v7262_v27 = vmul.f32 1.442695, %v7239_v26  ;;  %v15660_v30 = vpop.eup %11319  ;;  %v15731_v56 = vpop.f32.mrf.mxu1 }
0x1a22   :  { %v7217_v29 = vpop.xlane.xlu0 %7216  ;;  %v7365_v26 = vpop.permute.xlu1 %7364 }
0x1a23   :  { %11331 = vpow2.f32 %v7262_v27  ;;  %v7240_v43 = vsub.f32 %v15594_v28, %v7217_v29  ;;  %v15733_v44 = vpop.f32.mrf.mxu1 }
0x1a24   :  { %v15665_v5 = vpop.eup %11321 }
0x1a25   :  { %7280 = vadd.xlane.f32.xlu0 %v15660_v30  ;;  %v15668_v3 = vpop.eup %11323  ;;  %v7264_v9 = vmul.f32 1.442695, %v7240_v43  ;;  %v15735_v46 = vpop.f32.mrf.mxu1 }
0x1a26   :  { %v7219_v58 = vpop.xlane.xlu0 %7218 }
0x1a27   :  { %v7241_v0 = vsub.f32 %v15598_v7, %v7219_v58 }
0x1a29   :  { %v7266_v12 = vmul.f32 1.442695, %v7241_v0  ;;  %7286 = vadd.xlane.f32.xlu0 %v15665_v5 }
0x1a2a   :  { %v7221_v60 = vpop.xlane.xlu0 %7220 }
0x1a2b   :  { %11333 = vpow2.f32 %v7266_v12  ;;  %v7242_v53 = vsub.f32 %v15602_v39, %v7221_v60  ;;  %v7361_v12 = vpop.permute.xlu1 %7360 }
0x1a2c   :  { %v15672_v14 = vpop.eup %11325  ;;  %11335 = vpow2.f32 %v7276_v49 }
0x1a2d   :  { %v7268_v38 = vmul.f32 1.442695, %v7242_v53  ;;  %7282 = vadd.xlane.f32.xlu0 %v15668_v3  ;;  %7292 = vadd.xlane.f32.xlu1 %v15672_v14  ;;  %v15676_v22 = vpop.eup %11327 }
0x1a2e   :  { %v7223_v7 = vpop.xlane.xlu0 %7222  ;;  %v15679_v34 = vpop.eup %11329 }
0x1a2f   :  { %11337 = vpow2.f32 %v7268_v38  ;;  %v7243_v25 = vsub.f32 %v15606_v41, %v7223_v7  ;;  %v7355_v7 = vpop.permute.xlu1 %7354 }
0x1a30   :  { %11339 = vpow2.f32 %v7264_v9  ;;  %v15684_v24 = vpop.eup %11331 }
0x1a31   :  { %7290 = vadd.xlane.f32.xlu0 %v15679_v34  ;;  %7288 = vadd.xlane.f32.xlu1 %v15676_v22  ;;  %v7270_v39 = vmul.f32 1.442695, %v7243_v25 }
0x1a32   :  { %v7225_v28 = vpop.xlane.xlu0 %7224 }
0x1a33   :  { %v7244_v8 = vsub.f32 %v15610_v48, %v7225_v28  ;;  %11341 = vpow2.f32 %v7270_v39 }
0x1a35   :  { %7294 = vadd.xlane.f32.xlu1 %v15684_v24  ;;  %v7272_v21 = vmul.f32 1.442695, %v7244_v8 }
0x1a36   :  { %v7227_v42 = vpop.xlane.xlu0 %7226 }
0x1a37   :  { %v7245_v41 = vsub.f32 %v15614_v2, %v7227_v42  ;;  %11343 = vpow2.f32 %v7272_v21 }
0x1a38   :  { %v15688_v54 = vpop.eup %11333 }
0x1a39   :  { %v7274_v36 = vmul.f32 1.442695, %v7245_v41  ;;  %7298 = vadd.xlane.f32.xlu0 %v15688_v54  ;;  %v15691_v1 = vpop.eup %11335 }
0x1a3a   :  { %v7231_v32 = vpop.xlane.xlu0 %7230 }
0x1a3b   :  { %11345 = vpow2.f32 %v7274_v36  ;;  %v7247_v48 = vsub.f32 %v15618_v45, %v7231_v32 }
0x1a3c   :  { %v15694_v15 = vpop.eup %11337 }
0x1a3d   :  { %v7278_v51 = vmul.f32 1.442695, %v7247_v48  ;;  %7300 = vadd.xlane.f32.xlu1 %v15694_v15  ;;  %7308 = vadd.xlane.f32.xlu0 %v15691_v1  ;;  %v15698_v2 = vpop.eup %11339 }
0x1a3e   :  { %v7363_v57 = vpop.permute.xlu0 %7362 }
0x1a3f   :  { %11347 = vpow2.f32 %v7278_v51 }
0x1a40   :  { %v15701_v61 = vpop.eup %11341 }
0x1a41   :  { %7296 = vadd.xlane.f32.xlu1 %v15698_v2 }
0x1a42   :  { %v7359_v23 = vpop.permute.xlu0 %7358 }
0x1a44   :  { %v15704_v52 = vpop.eup %11343 }
0x1a45   :  { %7302 = vadd.xlane.f32.xlu1 %v15701_v61 }
0x1a48   :  { %v15706_v55 = vpop.eup %11345 }
0x1a49   :  { %7304 = vadd.xlane.f32.xlu1 %v15704_v52  ;;  %7306 = vadd.xlane.f32.xlu0 %v15706_v55 }
0x1a4c   :  { %v15710_v45 = vpop.eup %11347 }
0x1a4d   :  { %7310 = vadd.xlane.f32.xlu1 %v15710_v45 }
0x1a5f   :  { %7352 = vrot.lane.b32.xlu0 %v16821_v13, %s11641_s22  ;;  %v15737_v13 = vpop.f32.mrf.mxu1 }
0x1a61   :  { %v15739_v62 = vpop.f32.mrf.mxu1 }
0x1a63   :  { %v15741_v6 = vpop.f32.mrf.mxu1 }
0x1a65   :  { %v15743_v10 = vpop.f32.mrf.mxu1 }
0x1a67   :  { %v15745_v47 = vpop.f32.mrf.mxu1 }
0x1a96   :  { %v10431_v31 = vpop.f32.mrf.mxu1 }
0x1a98   :  { %v6719_v17 = vpop.f32.mrf.mxu1 }
0x1a99   :  { %10447 = vmatprep.mubr.msk.f32.mxu1 %vm826_vm1, %v6719_v17 }
0x1a9a   :  { %v10432_v50 = vpop.f32.mrf.mxu1 }
0x1a9c   :  { %v6722_v37 = vpop.f32.mrf.mxu1 }
0x1a9d   :  { %10448 = vmatmul.mubr.msk.f32.vlgmr.msra.gmra.mxu1 %vm826_vm1, %v6722_v37 }
0x1a9e   :  { %10504 = vmatpush3.bf16.msra.mxu1 %v15642_v11  ;;  %v10435_v29 = vpop.f32.mrf.mxu1  ;;  %10450 = vmatprep.mubr.msk.f32.mxu1 %vm826_vm1, %v10431_v31  ;;  %v7357_v11 = vpop.permute.xlu0 %7356 }
0x1a9f   :  { %10505 = vmatprep.subr.bf16.mxu1 %v7365_v26 }
0x1aa0   :  { %v6735_v27 = vpop.f32.mrf.mxu1 }
0x1aa1   :  { %10451 = vmatmul.mubr.msk.f32.gmra.mxu1 %vm826_vm1, %v10432_v50 }
0x1aa2   :  { %10506 = vmatpush3.bf16.msra.mxu1 %v7365_v26  ;;  %v10436_v58 = vpop.f32.mrf.mxu1  ;;  %10453 = vmatprep.mubr.msk.f32.mxu1 %vm826_vm1, %v6735_v27 }
0x1aa3   :  { %10507 = vmatprep.subr.bf16.mxu1 %v7363_v57 }
0x1aa4   :  { %v6738_v0 = vpop.f32.mrf.mxu1 }
0x1aa5   :  { %10454 = vmatmul.mubr.msk.f32.gmra.mxu1 %vm826_vm1, %v6738_v0 }
0x1aa6   :  { %10508 = vmatpush3.bf16.msra.mxu1 %v7363_v57  ;;  %v10439_v49 = vpop.f32.mrf.mxu1  ;;  %10456 = vmatprep.mubr.msk.f32.mxu1 %vm826_vm1, %v10435_v29 }
0x1aa7   :  { %10509 = vmatprep.subr.bf16.mxu1 %v7361_v12 }
0x1aa8   :  { %v6751_v60 = vpop.f32.mrf.mxu1 }
0x1aa9   :  { %10457 = vmatmul.mubr.msk.f32.gmra.mxu1 %vm826_vm1, %v10436_v58 }
0x1aaa   :  { %10510 = vmatpush3.bf16.msra.mxu1 %v7361_v12  ;;  %v10440_v43 = vpop.f32.mrf.mxu1  ;;  %10459 = vmatprep.mubr.msk.f32.mxu1 %vm826_vm1, %v6751_v60  ;;  %v7285_v53 = vpop.xlane.xlu0 %7284 }
0x1aab   :  { %10511 = vmatprep.subr.bf16.mxu1 %v7359_v23 }
0x1aac   :  { %v6754_v38 = vpop.f32.mrf.mxu1 }
0x1aad   :  { %10460 = vmatmul.mubr.msk.f32.gmra.mxu1 %vm826_vm1, %v6754_v38 }
0x1aae   :  { %10512 = vmatpush3.bf16.msra.mxu1 %v7359_v23  ;;  %10462 = vmatprep.mubr.msk.f32.mxu1 %vm826_vm1, %v10439_v49  ;;  %v7281_v9 = vpop.xlane.xlu0 %7280 }
0x1aaf   :  { %10513 = vmatprep.subr.bf16.mxu1 %v7357_v11 }
0x1ab1   :  { %10463 = vmatmul.mubr.msk.f32.gmra.mxu1 %vm826_vm1, %v10440_v43 }
0x1ab2   :  { %10514 = vmatpush3.bf16.msra.mxu1 %v7357_v11  ;;  %v7287_v25 = vpop.xlane.xlu0 %7286 }
0x1ab3   :  { %10515 = vmatprep.subr.bf16.mxu1 %v7355_v7 }
0x1ab6   :  { %10516 = vmatpush3.bf16.msra.mxu1 %v7355_v7  ;;  %v7293_v28 = vpop.xlane.xlu1 %7292  ;;  %v7283_v39 = vpop.xlane.xlu0 %7282 }
0x1ab7   :  { %11349 = vrcp.f32 %v7283_v39 }
0x1ab8   :  { %11351 = vrcp.f32 %v7281_v9 }
0x1ab9   :  { %11353 = vrcp.f32 %v7287_v25 }
0x1aba   :  { %v7289_v8 = vpop.xlane.xlu1 %7288  ;;  %v7291_v21 = vpop.xlane.xlu0 %7290 }
0x1abb   :  { %11355 = vrcp.f32 %v7291_v21 }
0x1abc   :  { %11357 = vrcp.f32 %v7289_v8 }
0x1abd   :  { %11359 = vrcp.f32 %v7285_v53 }
0x1abe   :  { %v7295_v42 = vpop.xlane.xlu1 %7294 }
0x1abf   :  { %11361 = vrcp.f32 %v7295_v42 }
0x1ac2   :  { %v7299_v41 = vpop.xlane.xlu0 %7298 }
0x1ac4   :  { %v11350_v37 = vpop.eup %11349 }
0x1ac5   :  { %v11352_v26 = vpop.eup %11351  ;;  %v7329_v0 = vmul.f32 %v11350_v37, %v15668_v3 }
0x1ac6   :  { %v7301_v36 = vpop.xlane.xlu1 %7300  ;;  %v7309_v32 = vpop.xlane.xlu0 %7308  ;;  %v7328_v60 = vmul.f32 %v11352_v26, %v15660_v30 }
0x1ac7   :  { %v11354_v27 = vpop.eup %11353 }
0x1ac8   :  { %v11356_v23 = vpop.eup %11355  ;;  %v7331_v43 = vmul.f32 %v11354_v27, %v15665_v5  ;;  %v7344_v53 = vpack.c.bf16 %v7329_v0, %v7328_v60  ;;  %v16844_v0 = vld [vmem:[#allocation27_spill] sm:$0xff] }
0x1ac9   :  { %v11358_v12 = vpop.eup %11357  ;;  %v7333_v7 = vmul.f32 %v11356_v23, %v15679_v34 }
0x1aca   :  { %v7297_v48 = vpop.xlane.xlu1 %7296  ;;  %v11360_v11 = vpop.eup %11359  ;;  %v7332_v38 = vmul.f32 %v11358_v12, %v15676_v22  ;;  %v6237_v12 = vadd.f32 %v15719_v59, %v16844_v0 }
0x1acb   :  { %11363 = vrcp.f32 %v7297_v48  ;;  %v7330_v3 = vmul.f32 %v11360_v11, %v15657_v4  ;;  %v16845_v11 = vld [vmem:[#allocation30_spill] sm:$0xff] }
0x1acc   :  { %11365 = vrcp.f32 %v7293_v28  ;;  %v11362_v25 = vpop.eup %11361  ;;  %v7346_v39 = vpack.c.bf16 %v7333_v7, %v7332_v38  ;;  %v16847_v38 = vld [vmem:[#allocation24_spill] sm:$0xff] }
0x1acd   :  { %11367 = vrcp.f32 %v7299_v41  ;;  %v7345_v9 = vpack.c.bf16 %v7331_v43, %v7330_v3  ;;  %v7335_v22 = vmul.f32 %v11362_v25, %v15684_v24  ;;  %v6242_v7 = vadd.f32 %v15725_v19, %v16847_v38 }
0x1ace   :  { %v7303_v50 = vpop.xlane.xlu1 %7302 }
0x1acf   :  { %11369 = vrcp.f32 %v7303_v50 }
0x1ad2   :  { %v7307_v51 = vpop.xlane.xlu0 %7306  ;;  %v7305_v49 = vpop.xlane.xlu1 %7304 }
0x1ad3   :  { %11371 = vrcp.f32 %v7307_v51 }
0x1ad4   :  { %11373 = vrcp.f32 %v7305_v49 }
0x1ad5   :  { %v10443_v31 = vpop.f32.mrf.mxu1  ;;  %11375 = vrcp.f32 %v7301_v36 }
0x1ad6   :  { %v7353_v17 = vpop.permute.xlu0 %7352  ;;  %v7311_v28 = vpop.xlane.xlu1 %7310 }
0x1ad7   :  { %10517 = vmatprep.subr.bf16.mxu1 %v7353_v17  ;;  %v6767_v57 = vpop.f32.mrf.mxu1  ;;  %11377 = vrcp.f32 %v7311_v28 }
0x1ad8   :  { %10518 = vmatpush3.bf16.msra.mxu1 %v7353_v17  ;;  %10465 = vmatprep.mubr.msk.f32.mxu1 %vm826_vm1, %v6767_v57  ;;  %v11364_v30 = vpop.eup %11363  ;;  %11379 = vrcp.f32 %v7309_v32 }
0x1ad9   :  { %v10444_v29 = vpop.f32.mrf.mxu1  ;;  %v11366_v5 = vpop.eup %11365  ;;  %v7336_v34 = vmul.f32 %v11364_v30, %v15698_v2 }
0x1ada   :  { %v11368_v8 = vpop.eup %11367  ;;  %v7334_v4 = vmul.f32 %v11366_v5, %v15672_v14 }
0x1adb   :  { %v6770_v58 = vpop.f32.mrf.mxu1  ;;  %v7337_v21 = vmul.f32 %v11368_v8, %v15688_v54  ;;  %v9021_v54 = vld [vmem:[%s16600_s10 + $0x38] sm:$0xff]  ;;  %v16850_v8 = vld [vmem:[#allocation43_spill] sm:$0xff] }
0x1adc   :  { %10466 = vmatmul.mubr.msk.f32.gmra.mxu1 %vm826_vm1, %v6770_v58  ;;  %v11370_v42 = vpop.eup %11369  ;;  %v7347_v41 = vpack.c.bf16 %v7335_v22, %v7334_v4  ;;  %10535 = vmatprep.subr.mxu1 %v9021_v54  ;;  %v6267_v22 = vadd.f32 %v15731_v56, %v16850_v8  ;;  %v16851_v4 = vld [vmem:[#allocation26_spill] sm:$0xff] }
0x1add   :  { %10468 = vmatprep.mubr.msk.f32.mxu1 %vm826_vm1, %v10443_v31  ;;  %v7348_v48 = vpack.c.bf16 %v7337_v21, %v7336_v34  ;;  %v7339_v17 = vmul.f32 %v11370_v42, %v15701_v61  ;;  %v6262_v21 = vadd.f32 %v15733_v44, %v16851_v4 }
0x1ae0   :  { %10469 = vmatmul.mubr.msk.f32.gmra.mxu1 %vm826_vm1, %v10444_v29  ;;  %v11372_v36 = vpop.eup %11371  ;;  %v16843_v29 = vld [vmem:[#allocation28_spill] sm:$0xff] }
0x1ae1   :  { %10519 = vmatprep.mubr.bf16.mxu1 %v7344_v53  ;;  %v11374_v51 = vpop.eup %11373  ;;  %v7341_v24 = vmul.f32 %v11372_v36, %v15706_v55  ;;  %v6222_v27 = vadd.f32 %v15717_v18, %v16843_v29 }
0x1ae2   :  { %v11376_v31 = vpop.eup %11375  ;;  %v7340_v50 = vmul.f32 %v11374_v51, %v15704_v52  ;;  %v16853_v51 = vld [vmem:[#allocation19_spill] sm:$0xff] }
0x1ae3   :  { %v7338_v2 = vmul.f32 %v11376_v31, %v15694_v15  ;;  %v6227_v15 = vadd.f32 %v15713_v40, %v15299_v33  ;;  %v16846_v33 = vld [vmem:[#allocation25_spill] sm:$0xff]  ;;  %v6272_v31 = vadd.f32 %v15737_v13, %v16853_v51 }
0x1ae4   :  { %10520 = vmatmul.mubr.bf16.vlgmr.msra.gmra.mxu1 %v7345_v9  ;;  %v11378_v14 = vpop.eup %11377  ;;  %v7350_v57 = vpack.c.bf16 %v7341_v24, %v7340_v50  ;;  %v6247_v40 = vadd.f32 %v15723_v35, %v16846_v33  ;;  %v16848_v9 = vld [vmem:[#allocation29_spill] sm:$0xff] }
0x1ae5   :  { %10523 = vmatprep.mubr.bf16.mxu1 %v7346_v39  ;;  %v7349_v32 = vpack.c.bf16 %v7339_v17, %v7338_v2  ;;  %v11380_v37 = vpop.eup %11379  ;;  %10536 = vmatpush3.msra.mxu1 %v9021_v54  ;;  %v7343_v61 = vmul.f32 %v11378_v14, %v15710_v45  ;;  %v6257_v25 = vadd.f32 %v15727_v63, %v16848_v9  ;;  %v16849_v39 = vld [vmem:[#allocation23_spill] sm:$0xff]  ;;  %v16854_v24 = vld [vmem:[#allocation45_spill] sm:$0xff]  ;;  %v16856_v54 = vld [vmem:[#allocation20_spill] sm:$0xff] }
0x1ae6   :  { %v7342_v52 = vmul.f32 %v11380_v37, %v15691_v1  ;;  %v6232_v1 = vadd.f32 %v15721_v16, %v16845_v11  ;;  %v6252_v30 = vadd.f32 %v15729_v20, %v16849_v39  ;;  %v6287_v44 = vadd.f32 %v15739_v62, %v16854_v24 }
0x1ae7   :  { %v6297_v37 = vadd.f32 %v15743_v10, %v16856_v54  ;;  %v16861_v54 = vld [vmem:[#allocation41_spill] sm:$0xff] }
0x1ae8   :  { %v7351_v26 = vpack.c.bf16 %v7343_v61, %v7342_v52  ;;  %v16857_v52 = vld [vmem:[#allocation22_spill] sm:$0xff] }
0x1aec   :  { %10524 = vmatmul.mubr.bf16.gmra.mxu1 %v7347_v41  ;;  %v16852_v41 = vld [vmem:[#allocation34_spill] sm:$0xff] }
0x1aed   :  { %10527 = vmatprep.mubr.bf16.mxu1 %v7348_v48  ;;  %v6277_v36 = vadd.f32 %v15735_v46, %v16852_v41  ;;  %v16859_v41 = vld [vmem:[#allocation37_spill] sm:$0xff] }
0x1af4   :  { %10528 = vmatmul.mubr.bf16.gmra.mxu1 %v7349_v32  ;;  %v16855_v32 = vld [vmem:[#allocation31_spill] sm:$0xff] }
0x1af5   :  { %10531 = vmatprep.mubr.bf16.mxu1 %v7350_v57  ;;  %v6282_v14 = vadd.f32 %v15741_v6, %v16855_v32 }
0x1afc   :  { %10532 = vmatmul.mubr.bf16.gmra.mxu1 %v7351_v26  ;;  %v6292_v26 = vadd.f32 %v15745_v47, %v16857_v52 }
0x1b5d   :  { %v10449_v55 = vpop.f32.mrf.mxu1 }
0x1b5e   :  { %v15787_v23 = vadd.f32 %v10449_v55, %v6227_v15 }
0x1b5f   :  { %v6896_v58 = vpop.f32.mrf.mxu1 }
0x1b60   :  { %v15791_v49 = vadd.f32 %v6896_v58, %v6222_v27 }
0x1b61   :  { %v10452_v45 = vpop.f32.mrf.mxu1 }
0x1b62   :  { %v15795_v60 = vadd.f32 %v10452_v45, %v6237_v12 }
0x1b63   :  { %v6906_v43 = vpop.f32.mrf.mxu1 }
0x1b64   :  { %v15799_v53 = vadd.f32 %v6906_v43, %v6232_v1 }
0x1b65   :  { %v10455_v18 = vpop.f32.mrf.mxu1 }
0x1b66   :  { %v15803_v3 = vadd.f32 %v10455_v18, %v6247_v40 }
0x1b67   :  { %v6916_v59 = vpop.f32.mrf.mxu1 }
0x1b68   :  { %v15807_v28 = vadd.f32 %v6916_v59, %v6242_v7  ;;  %v15866_v59 = vld [vmem:[%s16601_s11 + $0x1] ss:$0 sm:$0xff] }
0x1b69   :  { %v10458_v16 = vpop.f32.mrf.mxu1 }
0x1b6a   :  { %v15811_v5 = vadd.f32 %v10458_v16, %v6257_v25 }
0x1b6b   :  { %v6926_v35 = vpop.f32.mrf.mxu1 }
0x1b6c   :  { %v15815_v34 = vadd.f32 %v6926_v35, %v6252_v30 }
0x1b6d   :  { %v10461_v19 = vpop.f32.mrf.mxu1 }
0x1b6e   :  { %v15819_v42 = vadd.f32 %v10461_v19, %v6267_v22  ;;  %v16858_v22 = vld [vmem:[#allocation39_spill] sm:$0xff] }
0x1b6f   :  { %v6936_v63 = vpop.f32.mrf.mxu1 }
0x1b70   :  { %v15823_v48 = vadd.f32 %v6936_v63, %v6262_v21 }
0x1b71   :  { %v10464_v20 = vpop.f32.mrf.mxu1 }
0x1b72   :  { %v15827_v17 = vadd.f32 %v10464_v20, %v6277_v36 }
0x1b73   :  { %v6946_v56 = vpop.f32.mrf.mxu1 }
0x1b74   :  { %v15829_v50 = vadd.f32 %v6946_v56, %v6272_v31  ;;  %v16860_v56 = vld [vmem:[#allocation33_spill] sm:$0xff] }
0x1b9c   :  { %v10467_v2 = vpop.f32.mrf.mxu1 }
0x1b9d   :  { %v15835_v57 = vadd.f32 %v10467_v2, %v6287_v44 }
0x1b9e   :  { %v6956_v46 = vpop.f32.mrf.mxu1 }
0x1b9f   :  { %v15839_v61 = vadd.f32 %v6956_v46, %v6282_v14 }
0x1ba0   :  { %v10470_v13 = vpop.f32.mrf.mxu1 }
0x1ba1   :  { %v15843_v15 = vadd.f32 %v10470_v13, %v6297_v37 }
0x1ba2   :  { %v6966_v55 = vpop.f32.mrf.mxu1 }
0x1ba3   :  { %v15845_v62 = vadd.f32 %v6966_v55, %v6292_v26 }
0x1ba4   :  { %v10521_v29 = vpop.f32.mrf.mxu1 }
0x1ba6   :  { %v7410_v27 = vpop.f32.mrf.mxu1 }
0x1ba7   :  { %10537 = vmatprep.mubr.msk.f32.mxu1 %vm826_vm1, %v7410_v27  ;;  %v16863_v27 = vld [vmem:[#allocation35_spill] sm:$0xff] }
0x1ba8   :  { %v10522_v6 = vpop.f32.mrf.mxu1 }
0x1baa   :  { %v7413_v58 = vpop.f32.mrf.mxu1 }
0x1bab   :  { %10538 = vmatmul.mubr.msk.f32.vlgmr.msra.gmra.mxu1 %vm826_vm1, %v7413_v58 }
0x1bac   :  { %v10525_v10 = vpop.f32.mrf.mxu1  ;;  %10540 = vmatprep.mubr.msk.f32.mxu1 %vm826_vm1, %v10521_v29  ;;  %v16862_v29 = vld [vmem:[#allocation44_spill] sm:$0xff] }
0x1bae   :  { %v7426_v0 = vpop.f32.mrf.mxu1 }
0x1baf   :  { %10541 = vmatmul.mubr.msk.f32.gmra.mxu1 %vm826_vm1, %v10522_v6 }
0x1bb0   :  { %v10526_v47 = vpop.f32.mrf.mxu1  ;;  %10543 = vmatprep.mubr.msk.f32.mxu1 %vm826_vm1, %v7426_v0 }
0x1bb2   :  { %v7429_v12 = vpop.f32.mrf.mxu1 }
0x1bb3   :  { %10544 = vmatmul.mubr.msk.f32.gmra.mxu1 %vm826_vm1, %v7429_v12 }
0x1bb4   :  { %v10529_v45 = vpop.f32.mrf.mxu1  ;;  %10546 = vmatprep.mubr.msk.f32.mxu1 %vm826_vm1, %v10525_v10 }
0x1bb6   :  { %v7442_v11 = vpop.f32.mrf.mxu1 }
0x1bb7   :  { %10547 = vmatmul.mubr.msk.f32.gmra.mxu1 %vm826_vm1, %v10526_v47 }
0x1bb8   :  { %v10530_v1 = vpop.f32.mrf.mxu1  ;;  %10549 = vmatprep.mubr.msk.f32.mxu1 %vm826_vm1, %v7442_v11 }
0x1bba   :  { %v7445_v43 = vpop.f32.mrf.mxu1 }
0x1bbb   :  { %10550 = vmatmul.mubr.msk.f32.gmra.mxu1 %vm826_vm1, %v7445_v43 }
0x1bbc   :  { %v10533_v33 = vpop.f32.mrf.mxu1  ;;  %10552 = vmatprep.mubr.msk.f32.mxu1 %vm826_vm1, %v10529_v45  ;;  %v16864_v45 = vld [vmem:[#allocation36_spill] sm:$0xff] }
0x1bbe   :  { %v7458_v40 = vpop.f32.mrf.mxu1 }
0x1bbf   :  { %10553 = vmatmul.mubr.msk.f32.gmra.mxu1 %vm826_vm1, %v10530_v1 }
0x1bc0   :  { %v10534_v18 = vpop.f32.mrf.mxu1  ;;  %10555 = vmatprep.mubr.msk.f32.mxu1 %vm826_vm1, %v7458_v40 }
0x1bc2   :  { %v7461_v38 = vpop.f32.mrf.mxu1 }
0x1bc3   :  { %10556 = vmatmul.mubr.msk.f32.gmra.mxu1 %vm826_vm1, %v7461_v38  ;;  %v16865_v38 = vld [vmem:[#allocation42_spill] sm:$0xff] }
0x1bc4   :  { %10558 = vmatprep.mubr.msk.f32.mxu1 %vm826_vm1, %v10533_v33 }
0x1bc7   :  { %10559 = vmatmul.mubr.msk.f32.gmra.mxu1 %vm826_vm1, %v10534_v18 }
0x1c6b   :  { %v10539_v7 = vpop.f32.mrf.mxu1 }
0x1c6c   :  { %v7667_v9 = vadd.f32 %v10539_v7, %v15787_v23 }
0x1c6d   :  { %v7587_v25 = vpop.f32.mrf.mxu1 }
0x1c6e   :  { %v7691_v16 = vadd.f32 %v15866_v59, %v7667_v9  ;;  %v7666_v39 = vadd.f32 %v7587_v25, %v15791_v49 }
0x1c6f   :  { %v10542_v30 = vpop.f32.mrf.mxu1 }
0x1c70   :  { %v7690_v35 = vadd.f32 %v15866_v59, %v7666_v39  ;;  %v7669_v8 = vadd.f32 %v10542_v30, %v15795_v60  ;;  %v15874_v19 = vadd.f32 %v7691_v16, %v16858_v22 }
0x1c71   :  { %v7597_v4 = vpop.f32.mrf.mxu1 }
0x1c72   :  { %v7693_v21 = vadd.f32 %v15866_v59, %v7669_v8  ;;  %v7668_v63 = vadd.f32 %v7597_v4, %v15799_v53  ;;  %v7729_v23 = vsel %vm152_vm0, %v15874_v19, 0.0  ;;  %v15881_v36 = vadd.f32 %v7690_v35, %v16859_v41  ;;  %v16866_v35 = vld [vmem:[#allocation16_spill] sm:$0xff] }
0x1c73   :  { %7730 = vadd.xlane.f32.xlu1 %v7729_v23  ;;  %v10545_v49 = vpop.f32.mrf.mxu1 }
0x1c74   :  { %v7692_v51 = vadd.f32 %v15866_v59, %v7668_v63  ;;  %v7671_v60 = vadd.f32 %v10545_v49, %v15803_v3  ;;  %v7726_v31 = vsel %vm152_vm0, %v15881_v36, 0.0  ;;  %v15888_v24 = vadd.f32 %v7693_v21, %v16860_v56  ;;  %v16867_v21 = vld [vmem:[#allocation17_spill] sm:$0xff] }
0x1c75   :  { %v7607_v20 = vpop.f32.mrf.mxu1 }
0x1c76   :  { %v7670_v44 = vadd.f32 %v7607_v20, %v15807_v28  ;;  %v7695_v32 = vadd.f32 %v15866_v59, %v7671_v60  ;;  %v7735_v46 = vsel %vm152_vm0, %v15888_v24, 0.0  ;;  %v15896_v3 = vadd.f32 %v7692_v51, %v16861_v54  ;;  %v16869_v51 = vld [vmem:[#allocation40_spill] sm:$0xff] }
0x1c77   :  { %7727 = vadd.xlane.f32.xlu1 %v7726_v31  ;;  %v10548_v53 = vpop.f32.mrf.mxu1 }
0x1c78   :  { %v7694_v52 = vadd.f32 %v15866_v59, %v7670_v44  ;;  %v7673_v28 = vadd.f32 %v10548_v53, %v15811_v5  ;;  %v7732_v55 = vsel %vm152_vm0, %v15896_v3, 0.0  ;;  %v15907_v6 = vadd.f32 %v7695_v32, %v16863_v27  ;;  %v16870_v44 = vld [vmem:[#allocation15_spill] sm:$0xff] }
0x1c79   :  { %v7617_v2 = vpop.f32.mrf.mxu1 }
0x1c7a   :  { %v7672_v14 = vadd.f32 %v7617_v2, %v15815_v34  ;;  %v7697_v47 = vadd.f32 %v15866_v59, %v7673_v28  ;;  %v7741_v12 = vsel %vm152_vm0, %v15907_v6, 0.0  ;;  %v15916_v11 = vadd.f32 %v7694_v52, %v16864_v45 }
0x1c7b   :  { %7736 = vadd.xlane.f32.xlu1 %v7735_v46  ;;  %v10551_v37 = vpop.f32.mrf.mxu1  ;;  %v16871_v46 = vld [vmem:[#allocation18_spill] sm:$0xff] }
0x1c7c   :  { %v7696_v13 = vadd.f32 %v15866_v59, %v7672_v14  ;;  %v7675_v5 = vadd.f32 %v10551_v37, %v15819_v42  ;;  %v7738_v18 = vsel %vm152_vm0, %v15916_v11, 0.0  ;;  %v15923_v7 = vadd.f32 %v7697_v47, %v16865_v38 }
0x1c7d   :  { %v7627_v26 = vpop.f32.mrf.mxu1 }
0x1c7e   :  { %v15904_v34 = vadd.f32 %v7696_v13, %v16862_v29  ;;  %v7699_v33 = vadd.f32 %v15866_v59, %v7675_v5  ;;  %v7674_v40 = vadd.f32 %v7627_v26, %v15823_v48  ;;  %v7747_v30 = vsel %vm152_vm0, %v15923_v7, 0.0  ;;  %v16872_v13 = vld [vmem:[#allocation32_spill] sm:$0xff] }
0x1c7f   :  { %7733 = vadd.xlane.f32.xlu1 %v7732_v55  ;;  %v10554_v58 = vpop.f32.mrf.mxu1 }
0x1c80   :  { %v7744_v10 = vsel %vm152_vm0, %v15904_v34, 0.0  ;;  %v7677_v9 = vadd.f32 %v10554_v58, %v15827_v17  ;;  %v7698_v16 = vadd.f32 %v15866_v59, %v7674_v40  ;;  %v15931_v48 = vadd.f32 %v7699_v33, %v16866_v35 }
0x1c81   :  { %7745 = vadd.xlane.f32.xlu0 %v7744_v10  ;;  %v7637_v0 = vpop.f32.mrf.mxu1 }
0x1c82   :  { %v7701_v22 = vadd.f32 %v15866_v59, %v7677_v9  ;;  %v7676_v4 = vadd.f32 %v7637_v0, %v15829_v50  ;;  %v7753_v17 = vsel %vm152_vm0, %v15931_v48, 0.0 }
0x1c83   :  { %7742 = vadd.xlane.f32.xlu1 %v7741_v12  ;;  %v10557_v1 = vpop.f32.mrf.mxu1 }
0x1c84   :  { %v7700_v49 = vadd.f32 %v15866_v59, %v7676_v4  ;;  %v7679_v20 = vadd.f32 %v10557_v1, %v15835_v57  ;;  %v15951_v60 = vadd.f32 %v7701_v22, %v16869_v51 }
0x1c85   :  { %v7647_v43 = vpop.f32.mrf.mxu1 }
0x1c86   :  { %v7703_v31 = vadd.f32 %v15866_v59, %v7679_v20  ;;  %v7678_v56 = vadd.f32 %v7647_v43, %v15839_v61  ;;  %v7759_v53 = vsel %vm152_vm0, %v15951_v60, 0.0  ;;  %v15958_v2 = vadd.f32 %v7700_v49, %v16870_v44 }
0x1c87   :  { %7739 = vadd.xlane.f32.xlu1 %v7738_v18  ;;  %v10560_v42 = vpop.f32.mrf.mxu1 }
0x1c88   :  { %v7702_v57 = vadd.f32 %v15866_v59, %v7678_v56  ;;  %v7681_v32 = vadd.f32 %v10560_v42, %v15843_v15  ;;  %v7756_v14 = vsel %vm152_vm0, %v15958_v2, 0.0  ;;  %v15965_v54 = vadd.f32 %v7703_v31, %v16871_v46  ;;  %v16873_v15 = vld [vmem:[#allocation21_spill] sm:$0xff] }
0x1c89   :  { %v7657_v25 = vpop.f32.mrf.mxu1 }
0x1c8a   :  { %v7680_v39 = vadd.f32 %v7657_v25, %v15845_v62  ;;  %v16868_v62 = vld [vmem:[#allocation38_spill] sm:$0xff]  ;;  %v7705_v61 = vadd.f32 %v15866_v59, %v7681_v32  ;;  %v7765_v37 = vsel %vm152_vm0, %v15965_v54, 0.0  ;;  %v15971_v52 = vadd.f32 %v7702_v57, %v16872_v13 }
0x1c8b   :  { %7748 = vadd.xlane.f32.xlu1 %v7747_v30  ;;  %v15942_v23 = vadd.f32 %v7698_v16, %v16868_v62 }
0x1c8c   :  { %v7704_v8 = vadd.f32 %v15866_v59, %v7680_v39  ;;  %v7762_v26 = vsel %vm152_vm0, %v15971_v52, 0.0  ;;  %v15976_v28 = vadd.f32 %v7705_v61, %v16873_v15 }
0x1c8d   :  { %v7750_v50 = vsel %vm152_vm0, %v15942_v23, 0.0 }
0x1c8e   :  { %v15939_v63 = vadd.f32 %v7704_v8, %v16867_v21  ;;  %v7771_v55 = vsel %vm152_vm0, %v15976_v28, 0.0 }
0x1c8f   :  { %7754 = vadd.xlane.f32.xlu1 %v7753_v17 }
0x1c90   :  { %v7768_v41 = vsel %vm152_vm0, %v15939_v63, 0.0 }
0x1c91   :  { %7769 = vadd.xlane.f32.xlu0 %v7768_v41 }
0x1c93   :  { %7751 = vadd.xlane.f32.xlu1 %v7750_v50 }
0x1c97   :  { %7760 = vadd.xlane.f32.xlu1 %v7759_v53 }
0x1c9b   :  { %7757 = vadd.xlane.f32.xlu1 %v7756_v14 }
0x1c9f   :  { %7766 = vadd.xlane.f32.xlu1 %v7765_v37 }
0x1ca3   :  { %7763 = vadd.xlane.f32.xlu1 %v7762_v26 }
0x1ca7   :  { %7772 = vadd.xlane.f32.xlu1 %v7771_v55 }
0x1cfc   :  { %v7731_v29 = vpop.xlane.xlu1 %7730 }
0x1cfd   :  { %v7775_v59 = vmul.f32 0.03125, %v7731_v29 }
0x1cff   :  { %v15981_v27 = vsub.f32 %v15874_v19, %v7775_v59 }
0x1d00   :  { %v7728_v58 = vpop.xlane.xlu1 %7727 }
0x1d01   :  { %v7774_v10 = vmul.f32 0.03125, %v7728_v58  ;;  %v7807_v0 = vmul.f32 %v15981_v27, %v15981_v27 }
0x1d03   :  { %v15986_v47 = vsub.f32 %v15881_v36, %v7774_v10  ;;  %v7825_v5 = vsel %vm152_vm0, %v7807_v0, 0.0  ;;  %v10735_v10 = vld [vmem:[#allocation8 + $0x18] sm:$0xff]  }
0x1d04   :  { %v7737_v12 = vpop.xlane.xlu1 %7736  ;;  %7826 = vadd.xlane.f32.xlu1 %v7825_v5  ;;  %10561 = vmatprep.subr.bf16.mxu0 %v10735_v10 }
0x1d05   :  { %v7777_v45 = vmul.f32 0.03125, %v7737_v12  ;;  %v7806_v1 = vmul.f32 %v15986_v47, %v15986_v47  ;;  %10562 = vmatpush3.bf16.msra.mxu0 %v10735_v10 }
0x1d07   :  { %v15992_v43 = vsub.f32 %v15888_v24, %v7777_v45  ;;  %v7822_v19 = vsel %vm152_vm0, %v7806_v1, 0.0 }
0x1d08   :  { %v7734_v33 = vpop.xlane.xlu1 %7733  ;;  %7823 = vadd.xlane.f32.xlu0 %v7822_v19 }
0x1d09   :  { %v7776_v40 = vmul.f32 0.03125, %v7734_v33  ;;  %v7809_v36 = vmul.f32 %v15992_v43, %v15992_v43 }
0x1d0a   :  { %v7746_v42 = vpop.xlane.xlu0 %7745 }
0x1d0b   :  { %v15998_v18 = vsub.f32 %v15896_v3, %v7776_v40  ;;  %v7831_v38 = vsel %vm152_vm0, %v7809_v36, 0.0  ;;  %v7780_v16 = vmul.f32 0.03125, %v7746_v42 }
0x1d0c   :  { %v7743_v9 = vpop.xlane.xlu1 %7742  ;;  %7832 = vadd.xlane.f32.xlu1 %v7831_v38 }
0x1d0d   :  { %v7779_v25 = vmul.f32 0.03125, %v7743_v9  ;;  %v7808_v24 = vmul.f32 %v15998_v18, %v15998_v18  ;;  %v16010_v22 = vsub.f32 %v15904_v34, %v7780_v16 }
0x1d0f   :  { %v16004_v39 = vsub.f32 %v15907_v6, %v7779_v25  ;;  %v7828_v30 = vsel %vm152_vm0, %v7808_v24, 0.0  ;;  %v7812_v34 = vmul.f32 %v16010_v22, %v16010_v22 }
0x1d10   :  { %v7740_v35 = vpop.xlane.xlu1 %7739  ;;  %7829 = vadd.xlane.f32.xlu0 %v7828_v30 }
0x1d11   :  { %v7778_v8 = vmul.f32 0.03125, %v7740_v35  ;;  %v7811_v3 = vmul.f32 %v16004_v39, %v16004_v39  ;;  %v7840_v56 = vsel %vm152_vm0, %v7812_v34, 0.0 }
0x1d13   :  { %v16013_v4 = vsub.f32 %v15916_v11, %v7778_v8  ;;  %v7837_v17 = vsel %vm152_vm0, %v7811_v3, 0.0 }
0x1d14   :  { %v7749_v21 = vpop.xlane.xlu1 %7748  ;;  %7838 = vadd.xlane.f32.xlu1 %v7837_v17 }
0x1d15   :  { %v7781_v6 = vmul.f32 0.03125, %v7749_v21  ;;  %v7810_v62 = vmul.f32 %v16013_v4, %v16013_v4 }
0x1d17   :  { %v16019_v41 = vsub.f32 %v15923_v7, %v7781_v6  ;;  %v7834_v49 = vsel %vm152_vm0, %v7810_v62, 0.0 }
0x1d18   :  { %v7755_v20 = vpop.xlane.xlu1 %7754  ;;  %7835 = vadd.xlane.f32.xlu0 %v7834_v49 }
0x1d19   :  { %v7783_v11 = vmul.f32 0.03125, %v7755_v20  ;;  %v7813_v50 = vmul.f32 %v16019_v41, %v16019_v41 }
0x1d1a   :  { %v7770_v29 = vpop.xlane.xlu0 %7769 }
0x1d1b   :  { %v16027_v51 = vsub.f32 %v15931_v48, %v7783_v11  ;;  %v7843_v31 = vsel %vm152_vm0, %v7813_v50, 0.0  ;;  %v7788_v0 = vmul.f32 0.03125, %v7770_v29 }
0x1d1c   :  { %v7752_v7 = vpop.xlane.xlu1 %7751  ;;  %7844 = vadd.xlane.f32.xlu1 %v7843_v31  ;;  %7841 = vadd.xlane.f32.xlu0 %v7840_v56  ;;  %v16079_v56 = vld [vmem:[%s16602_s12 + $0x1] ss:$0 sm:$0xff] }
0x1d1d   :  { %v7782_v53 = vmul.f32 0.03125, %v7752_v7  ;;  %v7815_v44 = vmul.f32 %v16027_v51, %v16027_v51  ;;  %v16058_v19 = vsub.f32 %v15939_v63, %v7788_v0 }
0x1d1f   :  { %v16034_v57 = vsub.f32 %v15942_v23, %v7782_v53  ;;  %v7849_v32 = vsel %vm152_vm0, %v7815_v44, 0.0 }
0x1d20   :  { %v7761_v14 = vpop.xlane.xlu1 %7760  ;;  %7850 = vadd.xlane.f32.xlu1 %v7849_v32 }
0x1d21   :  { %v7785_v48 = vmul.f32 0.03125, %v7761_v14  ;;  %v7814_v46 = vmul.f32 %v16034_v57, %v16034_v57 }
0x1d23   :  { %v16040_v61 = vsub.f32 %v15951_v60, %v7785_v48  ;;  %v7846_v37 = vsel %vm152_vm0, %v7814_v46, 0.0  ;;  %v16086_v46 = vld [vmem:[%s16603_s13 + $0x1] ss:$0 sm:$0xff] }
0x1d24   :  { %v7758_v13 = vpop.xlane.xlu1 %7757  ;;  %7847 = vadd.xlane.f32.xlu0 %v7846_v37 }
0x1d25   :  { %v7784_v26 = vmul.f32 0.03125, %v7758_v13  ;;  %v7817_v23 = vmul.f32 %v16040_v61, %v16040_v61 }
0x1d27   :  { %v16046_v15 = vsub.f32 %v15958_v2, %v7784_v26  ;;  %v7855_v55 = vsel %vm152_vm0, %v7817_v23, 0.0 }
0x1d28   :  { %v7767_v59 = vpop.xlane.xlu1 %7766  ;;  %7856 = vadd.xlane.f32.xlu1 %v7855_v55 }
0x1d29   :  { %v7787_v58 = vmul.f32 0.03125, %v7767_v59  ;;  %v7816_v60 = vmul.f32 %v16046_v15, %v16046_v15 }
0x1d2b   :  { %v16052_v5 = vsub.f32 %v15965_v54, %v7787_v58  ;;  %v7852_v12 = vsel %vm152_vm0, %v7816_v60, 0.0  ;;  %v10736_v54 = vld [vmem:[#allocation8 + $0x10] sm:$0xff]  }
0x1d2c   :  { %v7764_v45 = vpop.xlane.xlu1 %7763  ;;  %7853 = vadd.xlane.f32.xlu0 %v7852_v12  ;;  %10563 = vmatprep.subr.bf16.mxu0 %v10736_v54 }
0x1d2d   :  { %v7786_v2 = vmul.f32 0.03125, %v7764_v45  ;;  %v7819_v1 = vmul.f32 %v16052_v5, %v16052_v5  ;;  %10564 = vmatpush3.bf16.msra.mxu0 %v10736_v54 }
0x1d2f   :  { %v16061_v33 = vsub.f32 %v15971_v52, %v7786_v2  ;;  %v7861_v40 = vsel %vm152_vm0, %v7819_v1, 0.0  ;;  %v7820_v52 = vmul.f32 %v16058_v19, %v16058_v19 }
0x1d30   :  { %7862 = vadd.xlane.f32.xlu1 %v7861_v40  ;;  %v7773_v36 = vpop.xlane.xlu1 %7772 }
0x1d31   :  { %v7789_v38 = vmul.f32 0.03125, %v7773_v36  ;;  %v7818_v42 = vmul.f32 %v16061_v33, %v16061_v33  ;;  %v7864_v16 = vsel %vm152_vm0, %v7820_v52, 0.0 }
0x1d33   :  { %v16067_v9 = vsub.f32 %v15976_v28, %v7789_v38  ;;  %v7858_v63 = vsel %vm152_vm0, %v7818_v42, 0.0 }
0x1d34   :  { %7859 = vadd.xlane.f32.xlu0 %v7858_v63 }
0x1d35   :  { %v7821_v25 = vmul.f32 %v16067_v9, %v16067_v9 }
0x1d37   :  { %v7867_v24 = vsel %vm152_vm0, %v7821_v25, 0.0 }
0x1d38   :  { %7868 = vadd.xlane.f32.xlu1 %v7867_v24  ;;  %7865 = vadd.xlane.f32.xlu0 %v7864_v16 }
0x1d8d   :  { %v7827_v30 = vpop.xlane.xlu1 %7826 }
0x1d8e   :  { %v7871_v35 = vmul.f32 0.03125, %v7827_v30 }
0x1d90   :  { %v7887_v8 = vadd.f32 1e-12, %v7871_v35 }
0x1d91   :  { %v7824_v28 = vpop.xlane.xlu0 %7823 }
0x1d92   :  { %11381 = vrsqrt.f32 %v7887_v8  ;;  %v7870_v3 = vmul.f32 0.03125, %v7824_v28 }
0x1d94   :  { %v7886_v17 = vadd.f32 1e-12, %v7870_v3 }
0x1d95   :  { %v7833_v21 = vpop.xlane.xlu1 %7832 }
0x1d96   :  { %11383 = vrsqrt.f32 %v7886_v17  ;;  %v7873_v6 = vmul.f32 0.03125, %v7833_v21 }
0x1d98   :  { %v7889_v62 = vadd.f32 1e-12, %v7873_v6 }
0x1d99   :  { %v7830_v49 = vpop.xlane.xlu0 %7829 }
0x1d9a   :  { %11385 = vrsqrt.f32 %v7889_v62  ;;  %v7872_v34 = vmul.f32 0.03125, %v7830_v49 }
0x1d9c   :  { %v7888_v20 = vadd.f32 1e-12, %v7872_v34 }
0x1d9d   :  { %v7839_v11 = vpop.xlane.xlu1 %7838 }
0x1d9e   :  { %11387 = vrsqrt.f32 %v7888_v20  ;;  %v7875_v50 = vmul.f32 0.03125, %v7839_v11 }
0x1d9f   :  { %v11382_v31 = vpop.eup %11381 }
0x1da0   :  { %v7891_v7 = vadd.f32 1e-12, %v7875_v50  ;;  %v7919_v53 = vmul.f32 %v11382_v31, %v15981_v27 }
0x1da1   :  { %v7836_v44 = vpop.xlane.xlu0 %7835 }
0x1da2   :  { %11389 = vrsqrt.f32 %v7891_v7  ;;  %v7874_v32 = vmul.f32 0.03125, %v7836_v44  ;;  %v7941_v48 = vmul.f32 %v16079_v56, %v7919_v53 }
0x1da3   :  { %v11384_v14 = vpop.eup %11383 }
0x1da4   :  { %v7890_v37 = vadd.f32 1e-12, %v7874_v32  ;;  %v7918_v13 = vmul.f32 %v11384_v14, %v15986_v47  ;;  %v16091_v58 = vadd.f32 %v16086_v46, %v7941_v48 }
0x1da5   :  { %v7845_v26 = vpop.xlane.xlu1 %7844  ;;  %v7842_v23 = vpop.xlane.xlu0 %7841 }
0x1da6   :  { %11391 = vrsqrt.f32 %v7890_v37  ;;  %v7877_v55 = vmul.f32 0.03125, %v7845_v26  ;;  %v7876_v29 = vmul.f32 0.03125, %v7842_v23  ;;  %v7940_v27 = vmul.f32 %v16079_v56, %v7918_v13 }
0x1da7   :  { %v11386_v59 = vpop.eup %11385 }
0x1da8   :  { %v7921_v60 = vmul.f32 %v11386_v59, %v15992_v43  ;;  %v7893_v10 = vadd.f32 1e-12, %v7877_v55  ;;  %v7892_v0 = vadd.f32 1e-12, %v7876_v29  ;;  %v16095_v12 = vadd.f32 %v16086_v46, %v7940_v27 }
0x1da9   :  { %v7851_v45 = vpop.xlane.xlu1 %7850 }
0x1daa   :  { %11393 = vrsqrt.f32 %v7893_v10  ;;  %v7879_v47 = vmul.f32 0.03125, %v7851_v45  ;;  %v7978_v2 = vpack.c.bf16 %v16091_v58, %v16095_v12  ;;  %v7943_v40 = vmul.f32 %v16079_v56, %v7921_v60 }
0x1dab   :  { %v11388_v1 = vpop.eup %11387  ;;  %11395 = vrsqrt.f32 %v7892_v0 }
0x1dac   :  { %v7920_v54 = vmul.f32 %v11388_v1, %v15998_v18  ;;  %v7895_v36 = vadd.f32 1e-12, %v7879_v47  ;;  %10565 = vmatprep.mubr.msk.bf16.mxu0 %vm152_vm0, %v7978_v2  ;;  %v16104_v52 = vadd.f32 %v16086_v46, %v7943_v40 }
0x1dad   :  { %v7848_v43 = vpop.xlane.xlu0 %7847 }
0x1dae   :  { %v7942_v38 = vmul.f32 %v16079_v56, %v7920_v54  ;;  %11397 = vrsqrt.f32 %v7895_v36  ;;  %v7878_v42 = vmul.f32 0.03125, %v7848_v43 }
0x1daf   :  { %v11390_v63 = vpop.eup %11389 }
0x1db0   :  { %v16107_v25 = vadd.f32 %v16086_v46, %v7942_v38  ;;  %v7894_v24 = vadd.f32 1e-12, %v7878_v42  ;;  %v7923_v16 = vmul.f32 %v11390_v63, %v16004_v39 }
0x1db1   :  { %v7857_v30 = vpop.xlane.xlu1 %7856 }
0x1db2   :  { %v7979_v18 = vpack.c.bf16 %v16104_v52, %v16107_v25  ;;  %11399 = vrsqrt.f32 %v7894_v24  ;;  %v7881_v35 = vmul.f32 0.03125, %v7857_v30  ;;  %v7945_v17 = vmul.f32 %v16079_v56, %v7923_v16 }
0x1db3   :  { %v11392_v8 = vpop.eup %11391 }
0x1db4   :  { %v7897_v28 = vadd.f32 1e-12, %v7881_v35  ;;  %10566 = vmatmul.mubr.msk.bf16.vlgmr.msra.gmra.mxu0 %vm152_vm0, %v7979_v18  ;;  %v7922_v3 = vmul.f32 %v11392_v8, %v16013_v4  ;;  %v16121_v50 = vadd.f32 %v16086_v46, %v7945_v17 }
0x1db5   :  { %v7854_v21 = vpop.xlane.xlu0 %7853 }
0x1db6   :  { %11401 = vrsqrt.f32 %v7897_v28  ;;  %v7880_v6 = vmul.f32 0.03125, %v7854_v21  ;;  %v7944_v62 = vmul.f32 %v16079_v56, %v7922_v3 }
0x1db7   :  { %v11394_v39 = vpop.eup %11393 }
0x1db8   :  { %v11396_v49 = vpop.eup %11395  ;;  %v7925_v34 = vmul.f32 %v11394_v39, %v16019_v41  ;;  %v7896_v20 = vadd.f32 1e-12, %v7880_v6  ;;  %v16118_v11 = vadd.f32 %v16086_v46, %v7944_v62 }
0x1db9   :  { %v7924_v4 = vmul.f32 %v11396_v49, %v16010_v22  ;;  %v7863_v31 = vpop.xlane.xlu1 %7862 }
0x1dba   :  { %11403 = vrsqrt.f32 %v7896_v20  ;;  %v7883_v7 = vmul.f32 0.03125, %v7863_v31  ;;  %v7980_v53 = vpack.c.bf16 %v16121_v50, %v16118_v11  ;;  %v7947_v44 = vmul.f32 %v16079_v56, %v7925_v34  ;;  %v16205_v31 = vld [vmem:[%s16605_s15 + $0x1] ss:$0 sm:$0xff] }
0x1dbb   :  { %v11398_v32 = vpop.eup %11397  ;;  %v7946_v41 = vmul.f32 %v16079_v56, %v7924_v4  ;;  %v10740_v4 = vld [vmem:[%s16606_s16 + $0x20] sm:$0xff]  }
0x1dbc   :  { %v7899_v14 = vadd.f32 1e-12, %v7883_v7  ;;  %10569 = vmatprep.mubr.msk.bf16.mxu0 %vm152_vm0, %v7980_v53  ;;  %v16130_v48 = vadd.f32 %v16086_v46, %v7947_v44  ;;  %v7927_v37 = vmul.f32 %v11398_v32, %v16027_v51 }
0x1dbd   :  { %v7860_v22 = vpop.xlane.xlu0 %7859  ;;  %v16134_v13 = vadd.f32 %v16086_v46, %v7946_v41 }
0x1dbe   :  { %11405 = vrsqrt.f32 %v7899_v14  ;;  %v7882_v26 = vmul.f32 0.03125, %v7860_v22  ;;  %v7949_v29 = vmul.f32 %v16079_v56, %v7927_v37 }
0x1dbf   :  { %v11400_v23 = vpop.eup %11399  ;;  %v7981_v55 = vpack.c.bf16 %v16130_v48, %v16134_v13 }
0x1dc0   :  { %v7898_v27 = vadd.f32 1e-12, %v7882_v26  ;;  %v7926_v59 = vmul.f32 %v11400_v23, %v16034_v57  ;;  %v16143_v2 = vadd.f32 %v16086_v46, %v7949_v29 }
0x1dc1   :  { %10570 = vmatmul.mubr.msk.bf16.gmra.mxu0 %vm152_vm0, %v7981_v55  ;;  %v7869_v60 = vpop.xlane.xlu1 %7868  ;;  %v7866_v10 = vpop.xlane.xlu0 %7865 }
0x1dc2   :  { %11407 = vrsqrt.f32 %v7898_v27  ;;  %v7885_v51 = vmul.f32 0.03125, %v7869_v60  ;;  %v7884_v0 = vmul.f32 0.03125, %v7866_v10  ;;  %v7948_v45 = vmul.f32 %v16079_v56, %v7926_v59 }
0x1dc3   :  { %v11402_v47 = vpop.eup %11401 }
0x1dc4   :  { %v7929_v1 = vmul.f32 %v11402_v47, %v16040_v61  ;;  %v7901_v40 = vadd.f32 1e-12, %v7885_v51  ;;  %v7900_v54 = vadd.f32 1e-12, %v7884_v0  ;;  %v16147_v36 = vadd.f32 %v16086_v46, %v7948_v45 }
0x1dc6   :  { %11409 = vrsqrt.f32 %v7901_v40  ;;  %v7982_v57 = vpack.c.bf16 %v16143_v2, %v16147_v36  ;;  %v7951_v42 = vmul.f32 %v16079_v56, %v7929_v1 }
0x1dc7   :  { %v11404_v43 = vpop.eup %11403  ;;  %11411 = vrsqrt.f32 %v7900_v54 }
0x1dc8   :  { %v7928_v38 = vmul.f32 %v11404_v43, %v16046_v15  ;;  %10573 = vmatprep.mubr.msk.bf16.mxu0 %vm152_vm0, %v7982_v57  ;;  %v16159_v16 = vadd.f32 %v16086_v46, %v7951_v42 }
0x1dca   :  { %v7950_v63 = vmul.f32 %v16079_v56, %v7928_v38 }
0x1dcb   :  { %v11406_v61 = vpop.eup %11405 }
0x1dcc   :  { %v16156_v24 = vadd.f32 %v16086_v46, %v7950_v63  ;;  %v7931_v30 = vmul.f32 %v11406_v61, %v16052_v5 }
0x1dce   :  { %v7983_v18 = vpack.c.bf16 %v16159_v16, %v16156_v24  ;;  %v7953_v8 = vmul.f32 %v16079_v56, %v7931_v30 }
0x1dcf   :  { %v11408_v35 = vpop.eup %11407 }
0x1dd0   :  { %10574 = vmatmul.mubr.msk.bf16.gmra.mxu0 %vm152_vm0, %v7983_v18  ;;  %v7930_v15 = vmul.f32 %v11408_v35, %v16061_v33  ;;  %v16173_v5 = vadd.f32 %v16086_v46, %v7953_v8 }
0x1dd2   :  { %v7952_v28 = vmul.f32 %v16079_v56, %v7930_v15 }
0x1dd3   :  { %v11410_v3 = vpop.eup %11409 }
0x1dd4   :  { %v11412_v17 = vpop.eup %11411  ;;  %v7933_v21 = vmul.f32 %v11410_v3, %v16067_v9  ;;  %v16170_v6 = vadd.f32 %v16086_v46, %v7952_v28 }
0x1dd5   :  { %v7932_v62 = vmul.f32 %v11412_v17, %v16058_v19  ;;  %v10737_v19 = vld [vmem:[%s16606_s16 + $0x38] sm:$0xff]  }
0x1dd6   :  { %v7984_v39 = vpack.c.bf16 %v16173_v5, %v16170_v6  ;;  %v7955_v33 = vmul.f32 %v16079_v56, %v7933_v21  ;;  %10581 = vmatprep.subr.bf16.mxu1 %v10737_v19 }
0x1dd7   :  { %v7954_v49 = vmul.f32 %v16079_v56, %v7932_v62  ;;  %10582 = vmatpush3.bf16.msra.mxu1 %v10737_v19  ;;  %v10738_v56 = vld [vmem:[%s16606_s16 + $0x30] sm:$0xff]  }
0x1dd8   :  { %10577 = vmatprep.mubr.msk.bf16.mxu0 %vm152_vm0, %v7984_v39  ;;  %v16182_v34 = vadd.f32 %v16086_v46, %v7955_v33  ;;  %10583 = vmatprep.subr.bf16.mxu1 %v10738_v56 }
0x1dd9   :  { %v16185_v9 = vadd.f32 %v16086_v46, %v7954_v49  ;;  %v10739_v46 = vld [vmem:[%s16606_s16 + $0x28] sm:$0xff]  }
0x1ddb   :  { %v7985_v20 = vpack.c.bf16 %v16182_v34, %v16185_v9  ;;  %10584 = vmatpush3.bf16.msra.mxu1 %v10738_v56 }
0x1ddc   :  { %10585 = vmatprep.subr.bf16.mxu1 %v10739_v46 }
0x1ddd   :  { %10578 = vmatmul.mubr.msk.bf16.gmra.mxu0 %vm152_vm0, %v7985_v20 }
0x1ddf   :  { %10586 = vmatpush3.bf16.msra.mxu1 %v10739_v46 }
0x1de0   :  { %10587 = vmatprep.subr.bf16.mxu1 %v10740_v4 }
0x1de3   :  { %10588 = vmatpush3.bf16.msra.mxu1 %v10740_v4 }
0x1e74   :  { %v10567_v7 = vpop.f32.mrf.mxu0 }
0x1e75   :  { %v16208_v53 = vadd.f32 %v10567_v7, %v16205_v31 }
0x1e76   :  { %v8069_v44 = vpop.f32.mrf.mxu0 }
0x1e77   :  { %v8150_v32 = vmul.f32 0.044715, %v16208_v53  ;;  %v16212_v41 = vadd.f32 %v16205_v31, %v8069_v44 }
0x1e78   :  { %v10568_v14 = vpop.f32.mrf.mxu0 }
0x1e79   :  { %v8166_v37 = vmul.f32 %v8150_v32, %v16208_v53  ;;  %v8148_v22 = vmul.f32 0.044715, %v16212_v41  ;;  %v16217_v26 = vadd.f32 %v10568_v14, %v16205_v31 }
0x1e7a   :  { %v8072_v23 = vpop.f32.mrf.mxu0 }
0x1e7b   :  { %v8182_v55 = vmul.f32 %v8166_v37, %v16208_v53  ;;  %v8164_v29 = vmul.f32 %v8148_v22, %v16212_v41  ;;  %v8151_v27 = vmul.f32 0.044715, %v16217_v26  ;;  %v16223_v59 = vadd.f32 %v16205_v31, %v8072_v23 }
0x1e7d   :  { %v8198_v60 = vadd.f32 %v8182_v55, %v16208_v53  ;;  %v8180_v10 = vmul.f32 %v8164_v29, %v16212_v41  ;;  %v8167_v51 = vmul.f32 %v8151_v27, %v16217_v26  ;;  %v8149_v0 = vmul.f32 0.044715, %v16223_v59 }
0x1e7f   :  { %v8214_v45 = vmul.f32 0.7978846, %v8198_v60  ;;  %v8196_v47 = vadd.f32 %v8180_v10, %v16212_v41  ;;  %v8183_v1 = vmul.f32 %v8167_v51, %v16217_v26  ;;  %v8165_v40 = vmul.f32 %v8149_v0, %v16223_v59 }
0x1e81   :  { %v8212_v54 = vmul.f32 0.7978846, %v8196_v47  ;;  %v8199_v57 = vadd.f32 %v8183_v1, %v16217_v26  ;;  %v10571_v43 = vpop.f32.mrf.mxu0  ;;  %v8181_v38 = vmul.f32 %v8165_v40, %v16223_v59  ;;  %11413 = vtanh.f32 %v8214_v45 }
0x1e82   :  { %v16235_v42 = vadd.f32 %v10571_v43, %v16205_v31 }
0x1e83   :  { %v8215_v63 = vmul.f32 0.7978846, %v8199_v57  ;;  %v8085_v61 = vpop.f32.mrf.mxu0  ;;  %11415 = vtanh.f32 %v8212_v54  ;;  %v8197_v30 = vadd.f32 %v8181_v38, %v16223_v59  ;;  %v8132_v57 = vmul.f32 0.5, %v16212_v41 }
0x1e84   :  { %v8154_v18 = vmul.f32 0.044715, %v16235_v42  ;;  %v16240_v35 = vadd.f32 %v16205_v31, %v8085_v61  ;;  %v8135_v61 = vmul.f32 0.5, %v16217_v26 }
0x1e85   :  { %11417 = vtanh.f32 %v8215_v63  ;;  %v10572_v15 = vpop.f32.mrf.mxu0  ;;  %v8213_v8 = vmul.f32 0.7978846, %v8197_v30 }
0x1e86   :  { %v8170_v28 = vmul.f32 %v8154_v18, %v16235_v42  ;;  %v8152_v3 = vmul.f32 0.044715, %v16240_v35  ;;  %v16245_v17 = vadd.f32 %v10572_v15, %v16205_v31 }
0x1e87   :  { %v8088_v21 = vpop.f32.mrf.mxu0  ;;  %11419 = vtanh.f32 %v8213_v8 }
0x1e88   :  { %v8186_v62 = vmul.f32 %v8170_v28, %v16235_v42  ;;  %v8168_v39 = vmul.f32 %v8152_v3, %v16240_v35  ;;  %v8155_v33 = vmul.f32 0.044715, %v16245_v17  ;;  %v16251_v49 = vadd.f32 %v16205_v31, %v8088_v21 }
0x1e89   :  { %v8133_v28 = vmul.f32 0.5, %v16223_v59  ;;  %v8134_v21 = vmul.f32 0.5, %v16208_v53 }
0x1e8a   :  { %v8202_v20 = vadd.f32 %v8186_v62, %v16235_v42  ;;  %v8184_v19 = vmul.f32 %v8168_v39, %v16240_v35  ;;  %v8171_v56 = vmul.f32 %v8155_v33, %v16245_v17  ;;  %v8153_v46 = vmul.f32 0.044715, %v16251_v49 }
0x1e8c   :  { %v8200_v4 = vadd.f32 %v8184_v19, %v16240_v35  ;;  %v8187_v7 = vmul.f32 %v8171_v56, %v16245_v17  ;;  %v8169_v44 = vmul.f32 %v8153_v46, %v16251_v49  ;;  %v8218_v32 = vmul.f32 0.7978846, %v8202_v20 }
0x1e8e   :  { %v8216_v14 = vmul.f32 0.7978846, %v8200_v4  ;;  %v8203_v37 = vadd.f32 %v8187_v7, %v16245_v17  ;;  %v8185_v22 = vmul.f32 %v8169_v44, %v16251_v49  ;;  %v11414_v23 = vpop.eup %11413 }
0x1e8f   :  { %v8246_v63 = vadd.f32 1.0, %v11414_v23 }
0x1e90   :  { %v10575_v55 = vpop.f32.mrf.mxu0  ;;  %v11416_v29 = vpop.eup %11415  ;;  %11421 = vtanh.f32 %v8216_v14  ;;  %v8219_v27 = vmul.f32 0.7978846, %v8203_v37  ;;  %v8201_v60 = vadd.f32 %v8185_v22, %v16251_v49 }
0x1e91   :  { %v16264_v10 = vadd.f32 %v10575_v55, %v16205_v31  ;;  %11423 = vtanh.f32 %v8218_v32  ;;  %v8244_v43 = vadd.f32 1.0, %v11416_v29  ;;  %v8262_v56 = vmul.f32 %v8246_v63, %v8134_v21 }
0x1e92   :  { %v11418_v51 = vpop.eup %11417  ;;  %v8101_v0 = vpop.f32.mrf.mxu0  ;;  %11425 = vtanh.f32 %v8219_v27  ;;  %v8217_v47 = vmul.f32 0.7978846, %v8201_v60 }
0x1e93   :  { %v8247_v45 = vadd.f32 1.0, %v11418_v51  ;;  %v8158_v1 = vmul.f32 0.044715, %v16264_v10  ;;  %v16268_v40 = vadd.f32 %v16205_v31, %v8101_v0  ;;  %v8260_v20 = vmul.f32 %v8244_v43, %v8132_v57 }
0x1e94   :  { %v10576_v54 = vpop.f32.mrf.mxu0  ;;  %v11420_v38 = vpop.eup %11419  ;;  %11427 = vtanh.f32 %v8217_v47  ;;  %v8139_v43 = vmul.f32 0.5, %v16245_v17 }
0x1e95   :  { %v16273_v30 = vadd.f32 %v10576_v54, %v16205_v31  ;;  %v8174_v18 = vmul.f32 %v8158_v1, %v16264_v10  ;;  %v8156_v15 = vmul.f32 0.044715, %v16268_v40  ;;  %v8245_v3 = vadd.f32 1.0, %v11420_v38 }
0x1e96   :  { %v8104_v8 = vpop.f32.mrf.mxu0  ;;  %v8263_v41 = vmul.f32 %v8247_v45, %v8135_v61  ;;  %v8138_v45 = vmul.f32 0.5, %v16235_v42 }
0x1e97   :  { %v8159_v62 = vmul.f32 0.044715, %v16273_v30  ;;  %v16281_v39 = vadd.f32 %v16205_v31, %v8104_v8  ;;  %v8190_v26 = vmul.f32 %v8174_v18, %v16264_v10  ;;  %v8172_v33 = vmul.f32 %v8156_v15, %v16268_v40 }
0x1e98   :  { %v8261_v19 = vmul.f32 %v8245_v3, %v8133_v28  ;;  %v8277_v44 = vpack.c.bf16 %v8263_v41, %v8262_v56 }
0x1e99   :  { %v8175_v46 = vmul.f32 %v8159_v62, %v16273_v30  ;;  %v8157_v59 = vmul.f32 0.044715, %v16281_v39  ;;  %v8206_v4 = vadd.f32 %v8190_v26, %v16264_v10  ;;  %v8188_v53 = vmul.f32 %v8172_v33, %v16268_v40 }
0x1e9a   :  { %v8276_v7 = vpack.c.bf16 %v8261_v19, %v8260_v20  ;;  %v8136_v62 = vmul.f32 0.5, %v16240_v35  ;;  %v8137_v26 = vmul.f32 0.5, %v16251_v49 }
0x1e9b   :  { %v8191_v32 = vmul.f32 %v8175_v46, %v16273_v30  ;;  %v8173_v14 = vmul.f32 %v8157_v59, %v16281_v39  ;;  %v8222_v37 = vmul.f32 0.7978846, %v8206_v4  ;;  %v8204_v22 = vadd.f32 %v8188_v53, %v16268_v40 }
0x1e9c   :  { %10589 = vmatprep.mubr.msk.bf16.mxu1 %vm4163_vm2, %v8276_v7 }
0x1e9d   :  { %v8207_v23 = vadd.f32 %v8191_v32, %v16273_v30  ;;  %v8189_v55 = vmul.f32 %v8173_v14, %v16281_v39  ;;  %v10579_v29 = vpop.f32.mrf.mxu0  ;;  %10590 = vmatmul.mubr.msk.bf16.vlgmr.msra.gmra.mxu1 %vm4163_vm2, %v8277_v44  ;;  %v11422_v27 = vpop.eup %11421  ;;  %v8220_v60 = vmul.f32 0.7978846, %v8204_v22  ;;  %11429 = vtanh.f32 %v8222_v37 }
0x1e9e   :  { %v16297_v51 = vadd.f32 %v10579_v29, %v16205_v31  ;;  %v11424_v0 = vpop.eup %11423  ;;  %v8248_v15 = vadd.f32 1.0, %v11422_v27 }
0x1e9f   :  { %v8223_v47 = vmul.f32 0.7978846, %v8207_v23  ;;  %v8205_v1 = vadd.f32 %v8189_v55, %v16281_v39  ;;  %v8117_v54 = vpop.f32.mrf.mxu0  ;;  %v11426_v57 = vpop.eup %11425  ;;  %11431 = vtanh.f32 %v8220_v60  ;;  %v8250_v41 = vadd.f32 1.0, %v11424_v0 }
0x1ea0   :  { %v8162_v38 = vmul.f32 0.044715, %v16297_v51  ;;  %v16304_v63 = vadd.f32 %v16205_v31, %v8117_v54  ;;  %v8251_v8 = vadd.f32 1.0, %v11426_v57  ;;  %v8264_v4 = vmul.f32 %v8248_v15, %v8136_v62 }
0x1ea1   :  { %11433 = vtanh.f32 %v8223_v47  ;;  %v8221_v61 = vmul.f32 0.7978846, %v8205_v1  ;;  %v10580_v18 = vpop.f32.mrf.mxu0  ;;  %v11428_v42 = vpop.eup %11427  ;;  %v8266_v14 = vmul.f32 %v8250_v41, %v8138_v45 }
0x1ea2   :  { %v8178_v28 = vmul.f32 %v8162_v38, %v16297_v51  ;;  %v8160_v3 = vmul.f32 0.044715, %v16304_v63  ;;  %v8129_v21 = vadd.f32 %v10580_v18, %v16205_v31  ;;  %v8249_v33 = vadd.f32 1.0, %v11428_v42 }
0x1ea3   :  { %11435 = vtanh.f32 %v8221_v61  ;;  %v8120_v17 = vpop.f32.mrf.mxu0  ;;  %v8267_v46 = vmul.f32 %v8251_v8, %v8139_v43  ;;  %v8143_v18 = vmul.f32 0.5, %v16273_v30  ;;  %v8140_v8 = vmul.f32 0.5, %v16268_v40 }
0x1ea4   :  { %v8194_v20 = vmul.f32 %v8178_v28, %v16297_v51  ;;  %v8176_v19 = vmul.f32 %v8160_v3, %v16304_v63  ;;  %v8163_v56 = vmul.f32 0.044715, %v8129_v21  ;;  %v8121_v59 = vadd.f32 %v16205_v31, %v8120_v17 }
0x1ea5   :  { %v8265_v53 = vmul.f32 %v8249_v33, %v8137_v26  ;;  %v8279_v55 = vpack.c.bf16 %v8267_v46, %v8266_v14  ;;  %v8141_v42 = vmul.f32 0.5, %v16281_v39  ;;  %v8142_v3 = vmul.f32 0.5, %v16264_v10 }
0x1ea6   :  { %v8210_v7 = vadd.f32 %v8194_v20, %v16297_v51  ;;  %v8192_v44 = vmul.f32 %v8176_v19, %v16304_v63  ;;  %v8179_v32 = vmul.f32 %v8163_v56, %v8129_v21  ;;  %v8161_v35 = vmul.f32 0.044715, %v8121_v59 }
0x1ea7   :  { %v8278_v37 = vpack.c.bf16 %v8265_v53, %v8264_v4  ;;  %v8147_v39 = vmul.f32 0.5, %v8129_v21  ;;  %v8144_v10 = vmul.f32 0.5, %v16304_v63 }
0x1ea8   :  { %v8226_v49 = vmul.f32 0.7978846, %v8210_v7  ;;  %v8208_v22 = vadd.f32 %v8192_v44, %v16304_v63  ;;  %v8195_v23 = vmul.f32 %v8179_v32, %v8129_v21  ;;  %v8177_v29 = vmul.f32 %v8161_v35, %v8121_v59 }
0x1ea9   :  { %10593 = vmatprep.mubr.msk.bf16.mxu1 %vm4163_vm2, %v8278_v37  ;;  %v8145_v7 = vmul.f32 0.5, %v8121_v59  ;;  %v8146_v32 = vmul.f32 0.5, %v16297_v51 }
0x1eaa   :  { %v8224_v27 = vmul.f32 0.7978846, %v8208_v22  ;;  %v8211_v31 = vadd.f32 %v8195_v23, %v8129_v21  ;;  %10594 = vmatmul.mubr.msk.bf16.gmra.mxu1 %vm4163_vm2, %v8279_v55  ;;  %v8193_v60 = vmul.f32 %v8177_v29, %v8121_v59  ;;  %v11430_v0 = vpop.eup %11429  ;;  %11437 = vtanh.f32 %v8226_v49 }
0x1eab   :  { %v8254_v15 = vadd.f32 1.0, %v11430_v0 }
0x1eac   :  { %v8227_v47 = vmul.f32 0.7978846, %v8211_v31  ;;  %v11432_v1 = vpop.eup %11431  ;;  %11439 = vtanh.f32 %v8224_v27  ;;  %v8209_v45 = vadd.f32 %v8193_v60, %v8121_v59 }
0x1ead   :  { %v8252_v43 = vadd.f32 1.0, %v11432_v1  ;;  %v8270_v26 = vmul.f32 %v8254_v15, %v8142_v3 }
0x1eae   :  { %v11434_v54 = vpop.eup %11433  ;;  %11441 = vtanh.f32 %v8227_v47  ;;  %v8225_v57 = vmul.f32 0.7978846, %v8209_v45  ;;  %v9145_v45 = vld [vmem:[%s16607_s17 + $0x1] ss:$0 sm:$0xff] }
0x1eaf   :  { %v8255_v38 = vadd.f32 1.0, %v11434_v54  ;;  %v8268_v17 = vmul.f32 %v8252_v43, %v8140_v8 }
0x1eb0   :  { %v11436_v61 = vpop.eup %11435  ;;  %11443 = vtanh.f32 %v8225_v57 }
0x1eb1   :  { %v8253_v28 = vadd.f32 1.0, %v11436_v61  ;;  %v8271_v41 = vmul.f32 %v8255_v38, %v8143_v18 }
0x1eb3   :  { %v8269_v62 = vmul.f32 %v8253_v28, %v8141_v42  ;;  %v8281_v20 = vpack.c.bf16 %v8271_v41, %v8270_v26 }
0x1eb5   :  { %v8280_v33 = vpack.c.bf16 %v8269_v62, %v8268_v17 }
0x1eb7   :  { %10597 = vmatprep.mubr.msk.bf16.mxu1 %vm4163_vm2, %v8280_v33  ;;  %v11438_v30 = vpop.eup %11437 }
0x1eb8   :  { %10598 = vmatmul.mubr.msk.bf16.gmra.mxu1 %vm4163_vm2, %v8281_v20  ;;  %v8258_v53 = vadd.f32 1.0, %v11438_v30 }
0x1eb9   :  { %v11440_v19 = vpop.eup %11439 }
0x1eba   :  { %v8256_v40 = vadd.f32 1.0, %v11440_v19  ;;  %v8274_v49 = vmul.f32 %v8258_v53, %v8146_v32 }
0x1ebb   :  { %v11442_v56 = vpop.eup %11441 }
0x1ebc   :  { %v8259_v46 = vadd.f32 1.0, %v11442_v56  ;;  %v8272_v35 = vmul.f32 %v8256_v40, %v8144_v10 }
0x1ebd   :  { %v11444_v4 = vpop.eup %11443 }
0x1ebe   :  { %v8257_v44 = vadd.f32 1.0, %v11444_v4  ;;  %v8275_v14 = vmul.f32 %v8259_v46, %v8147_v39 }
0x1ec0   :  { %v8273_v37 = vmul.f32 %v8257_v44, %v8145_v7  ;;  %v8283_v23 = vpack.c.bf16 %v8275_v14, %v8274_v49 }
0x1ec2   :  { %v8282_v22 = vpack.c.bf16 %v8273_v37, %v8272_v35 }
0x1ec4   :  { %10601 = vmatprep.mubr.msk.bf16.mxu1 %vm4163_vm2, %v8282_v22 }
0x1ec5   :  { %10602 = vmatmul.mubr.msk.bf16.gmra.mxu1 %vm4163_vm2, %v8283_v23 }
0x1f5d   :  { %v10591_v55 = vpop.f32.mrf.mxu1 }
0x1f5e   :  { %v8392_v53 = vadd.f32 %v10591_v55, %v9145_v45 }
0x1f5f   :  { %v8383_v29 = vpop.f32.mrf.mxu1 }
0x1f60   :  { %v16386_v32 = vadd.f32 %v8392_v53, %v16107_v25  ;;  %v8384_v14 = vadd.f32 %v9145_v45, %v8383_v29 }
0x1f61   :  { %v10592_v21 = vpop.f32.mrf.mxu1 }
0x1f62   :  { %v8395_v35 = vadd.f32 %v10592_v21, %v9145_v45  ;;  %v16396_v49 = vadd.f32 %v8384_v14, %v16095_v12  ;;  %v8472_v23 = vsel %vm152_vm0, %v16386_v32, 0.0 }
0x1f63   :  { %v16329_v27 = vpop.f32.mrf.mxu1 }
0x1f64   :  { %v16399_v22 = vadd.f32 %v8395_v35, %v16104_v52  ;;  %v8387_v25 = vadd.f32 %v9145_v45, %v16329_v27  ;;  %v8466_v52 = vsel %vm152_vm0, %v16396_v49, 0.0 }
0x1f66   :  { %v16407_v55 = vadd.f32 %v8387_v25, %v16091_v58  ;;  %v8475_v12 = vsel %vm152_vm0, %v16399_v22, 0.0 }
0x1f68   :  { %v8469_v29 = vsel %vm152_vm0, %v16407_v55, 0.0 }
0x1f6a   :  { %v10595_v63 = vpop.f32.mrf.mxu1 }
0x1f6b   :  { %v8408_v30 = vadd.f32 %v10595_v63, %v9145_v45 }
0x1f6c   :  { %v8399_v59 = vpop.f32.mrf.mxu1 }
0x1f6d   :  { %v16366_v46 = vadd.f32 %v8408_v30, %v16134_v13  ;;  %v8400_v40 = vadd.f32 %v9145_v45, %v8399_v59 }
0x1f6e   :  { %v10596_v31 = vpop.f32.mrf.mxu1 }
0x1f6f   :  { %v8411_v4 = vadd.f32 %v10596_v31, %v9145_v45  ;;  %v16376_v10 = vadd.f32 %v8400_v40, %v16118_v11  ;;  %v8484_v44 = vsel %vm152_vm0, %v16366_v46, 0.0 }
0x1f70   :  { %v8402_v60 = vpop.f32.mrf.mxu1 }
0x1f71   :  { %v16379_v13 = vadd.f32 %v8411_v4, %v16130_v48  ;;  %v8403_v7 = vadd.f32 %v9145_v45, %v8402_v60  ;;  %v8478_v37 = vsel %vm152_vm0, %v16376_v10, 0.0 }
0x1f73   :  { %v16389_v11 = vadd.f32 %v8403_v7, %v16121_v50  ;;  %v8487_v48 = vsel %vm152_vm0, %v16379_v13, 0.0 }
0x1f75   :  { %v8481_v50 = vsel %vm152_vm0, %v16389_v11, 0.0 }
0x1f78   :  { %v10599_v51 = vpop.f32.mrf.mxu1 }
0x1f79   :  { %v8424_v18 = vadd.f32 %v10599_v51, %v9145_v45 }
0x1f7a   :  { %v8415_v0 = vpop.f32.mrf.mxu1 }
0x1f7b   :  { %v16346_v62 = vadd.f32 %v8424_v18, %v16156_v24 }
0x1f7c   :  { %v10600_v47 = vpop.f32.mrf.mxu1 }
0x1f7d   :  { %v8427_v26 = vadd.f32 %v10600_v47, %v9145_v45  ;;  %v8496_v56 = vsel %vm152_vm0, %v16346_v62, 0.0 }
0x1f7e   :  { %v8418_v1 = vpop.f32.mrf.mxu1 }
0x1f7f   :  { %v16359_v24 = vadd.f32 %v8427_v26, %v16159_v16  ;;  %v8419_v19 = vadd.f32 %v9145_v45, %v8418_v1 }
0x1f81   :  { %v8499_v16 = vsel %vm152_vm0, %v16359_v24, 0.0 }
0x1f85   :  { %v10603_v54 = vpop.f32.mrf.mxu1 }
0x1f86   :  { %v8440_v57 = vadd.f32 %v10603_v54, %v9145_v45 }
0x1f87   :  { %v8431_v43 = vpop.f32.mrf.mxu1 }
0x1f88   :  { %v16335_v38 = vadd.f32 %v8440_v57, %v16185_v9  ;;  %v8432_v61 = vadd.f32 %v9145_v45, %v8431_v43  ;;  %v8416_v9 = vadd.f32 %v9145_v45, %v8415_v0 }
0x1f89   :  { %v10604_v15 = vpop.f32.mrf.mxu1 }
0x1f8a   :  { %v16338_v8 = vadd.f32 %v8432_v61, %v16170_v6  ;;  %v8443_v42 = vadd.f32 %v10604_v15, %v9145_v45  ;;  %v8508_v28 = vsel %vm152_vm0, %v16335_v38, 0.0 }
0x1f8b   :  { %8509 = vadd.xlane.f32.xlu1 %v8508_v28  ;;  %v8434_v3 = vpop.f32.mrf.mxu1 }
0x1f8c   :  { %v16343_v41 = vadd.f32 %v8443_v42, %v16182_v34  ;;  %v8435_v17 = vadd.f32 %v9145_v45, %v8434_v3  ;;  %v8502_v20 = vsel %vm152_vm0, %v16338_v8, 0.0  ;;  %v16356_v34 = vadd.f32 %v8416_v9, %v16147_v36 }
0x1f8d   :  { %v16369_v36 = vadd.f32 %v8419_v19, %v16143_v2 }
0x1f8e   :  { %v16349_v33 = vadd.f32 %v8435_v17, %v16173_v5  ;;  %v8511_v6 = vsel %vm152_vm0, %v16343_v41, 0.0  ;;  %v8490_v39 = vsel %vm152_vm0, %v16356_v34, 0.0 }
0x1f8f   :  { %8512 = vadd.xlane.f32.xlu0 %v8511_v6  ;;  %8503 = vadd.xlane.f32.xlu1 %v8502_v20  ;;  %v8493_v2 = vsel %vm152_vm0, %v16369_v36, 0.0 }
0x1f90   :  { %v8505_v5 = vsel %vm152_vm0, %v16349_v33, 0.0 }
0x1f93   :  { %8506 = vadd.xlane.f32.xlu0 %v8505_v5  ;;  %8497 = vadd.xlane.f32.xlu1 %v8496_v56 }
0x1f97   :  { %8500 = vadd.xlane.f32.xlu0 %v8499_v16  ;;  %8491 = vadd.xlane.f32.xlu1 %v8490_v39 }
0x1f9b   :  { %8494 = vadd.xlane.f32.xlu0 %v8493_v2  ;;  %8485 = vadd.xlane.f32.xlu1 %v8484_v44 }
0x1f9f   :  { %8488 = vadd.xlane.f32.xlu0 %v8487_v48  ;;  %8479 = vadd.xlane.f32.xlu1 %v8478_v37 }
0x1fa3   :  { %8482 = vadd.xlane.f32.xlu0 %v8481_v50  ;;  %8473 = vadd.xlane.f32.xlu1 %v8472_v23 }
0x1fa7   :  { %8476 = vadd.xlane.f32.xlu0 %v8475_v12  ;;  %8467 = vadd.xlane.f32.xlu1 %v8466_v52 }
0x1fab   :  { %8470 = vadd.xlane.f32.xlu0 %v8469_v29 }
0x2014   :  { %v8510_v21 = vpop.xlane.xlu1 %8509 }
0x2015   :  { %v8528_v27 = vmul.f32 0.03125, %v8510_v21 }
0x2017   :  { %v16416_v63 = vsub.f32 %v16335_v38, %v8528_v27 }
0x2018   :  { %v8513_v59 = vpop.xlane.xlu0 %8512  ;;  %v8504_v58 = vpop.xlane.xlu1 %8503 }
0x2019   :  { %v8529_v31 = vmul.f32 0.03125, %v8513_v59  ;;  %v8526_v60 = vmul.f32 0.03125, %v8504_v58  ;;  %v8560_v51 = vmul.f32 %v16416_v63, %v16416_v63 }
0x201b   :  { %v16421_v0 = vsub.f32 %v16343_v41, %v8529_v31  ;;  %v16424_v47 = vsub.f32 %v16338_v8, %v8526_v60  ;;  %v8604_v1 = vsel %vm152_vm0, %v8560_v51, 0.0 }
0x201c   :  { %v8507_v45 = vpop.xlane.xlu0 %8506  ;;  %8605 = vadd.xlane.f32.xlu1 %v8604_v1  ;;  %v8498_v54 = vpop.xlane.xlu1 %8497 }
0x201d   :  { %v8527_v57 = vmul.f32 0.03125, %v8507_v45  ;;  %v8524_v43 = vmul.f32 0.03125, %v8498_v54  ;;  %v8561_v38 = vmul.f32 %v16421_v0, %v16421_v0  ;;  %v8558_v61 = vmul.f32 %v16424_v47, %v16424_v47 }
0x201f   :  { %v16432_v18 = vsub.f32 %v16349_v33, %v8527_v57  ;;  %v16435_v15 = vsub.f32 %v16346_v62, %v8524_v43  ;;  %v8607_v8 = vsel %vm152_vm0, %v8561_v38, 0.0  ;;  %v8598_v42 = vsel %vm152_vm0, %v8558_v61, 0.0 }
0x2020   :  { %8608 = vadd.xlane.f32.xlu0 %v8607_v8  ;;  %v8501_v28 = vpop.xlane.xlu0 %8500  ;;  %8599 = vadd.xlane.f32.xlu1 %v8598_v42  ;;  %v8492_v3 = vpop.xlane.xlu1 %8491 }
0x2021   :  { %v8525_v41 = vmul.f32 0.03125, %v8501_v28  ;;  %v8522_v17 = vmul.f32 0.03125, %v8492_v3  ;;  %v8559_v9 = vmul.f32 %v16432_v18, %v16432_v18  ;;  %v8556_v26 = vmul.f32 %v16435_v15, %v16435_v15 }
0x2022   :  { %v11642_v3 = vmov 0.0  }
0x2023   :  { %v16444_v33 = vsub.f32 %v16359_v24, %v8525_v41  ;;  %v16447_v62 = vsub.f32 %v16356_v34, %v8522_v17  ;;  %v8601_v6 = vsel %vm152_vm0, %v8559_v9, 0.0  ;;  %v8592_v20 = vsel %vm152_vm0, %v8556_v26, 0.0  ;;  %10605 = vmatprep.subr.mxu0 %v11642_v3  ;;  %10637 = vmatprep.mubr.msk.f32.mxu0 %vm11643_vm3, %v11642_v3 }
0x2024   :  { %8602 = vadd.xlane.f32.xlu0 %v8601_v6  ;;  %v8495_v30 = vpop.xlane.xlu0 %8494  ;;  %8593 = vadd.xlane.f32.xlu1 %v8592_v20  ;;  %v8486_v19 = vpop.xlane.xlu1 %8485 }
0x2025   :  { %v8523_v5 = vmul.f32 0.03125, %v8495_v30  ;;  %v8520_v56 = vmul.f32 0.03125, %v8486_v19  ;;  %v8557_v40 = vmul.f32 %v16444_v33, %v16444_v33  ;;  %v8554_v24 = vmul.f32 %v16447_v62, %v16447_v62 }
0x2027   :  { %v16456_v4 = vsub.f32 %v16369_v36, %v8523_v5  ;;  %v16459_v34 = vsub.f32 %v16366_v46, %v8520_v56  ;;  %v8595_v16 = vsel %vm152_vm0, %v8557_v40, 0.0  ;;  %v8586_v39 = vsel %vm152_vm0, %v8554_v24, 0.0 }
0x2028   :  { %8596 = vadd.xlane.f32.xlu0 %v8595_v16  ;;  %v8489_v53 = vpop.xlane.xlu0 %8488  ;;  %8587 = vadd.xlane.f32.xlu1 %v8586_v39  ;;  %v8480_v7 = vpop.xlane.xlu1 %8479 }
0x2029   :  { %v8521_v2 = vmul.f32 0.03125, %v8489_v53  ;;  %v8518_v44 = vmul.f32 0.03125, %v8480_v7  ;;  %v8555_v14 = vmul.f32 %v16456_v4, %v16456_v4  ;;  %v8552_v36 = vmul.f32 %v16459_v34, %v16459_v34 }
0x202b   :  { %v16468_v35 = vsub.f32 %v16379_v13, %v8521_v2  ;;  %v16471_v46 = vsub.f32 %v16376_v10, %v8518_v44  ;;  %v8589_v48 = vsel %vm152_vm0, %v8555_v14, 0.0  ;;  %v8580_v37 = vsel %vm152_vm0, %v8552_v36, 0.0 }
0x202c   :  { %8590 = vadd.xlane.f32.xlu0 %v8589_v48  ;;  %v8483_v25 = vpop.xlane.xlu0 %8482  ;;  %8581 = vadd.xlane.f32.xlu1 %v8580_v37  ;;  %v8474_v50 = vpop.xlane.xlu1 %8473 }
0x202d   :  { %v8519_v23 = vmul.f32 0.03125, %v8483_v25  ;;  %v8516_v12 = vmul.f32 0.03125, %v8474_v50  ;;  %v8553_v52 = vmul.f32 %v16468_v35, %v16468_v35  ;;  %v8550_v13 = vmul.f32 %v16471_v46, %v16471_v46 }
0x202f   :  { %v16480_v29 = vsub.f32 %v16389_v11, %v8519_v23  ;;  %v16483_v10 = vsub.f32 %v16386_v32, %v8516_v12  ;;  %v8583_v21 = vsel %vm152_vm0, %v8553_v52, 0.0  ;;  %v8574_v27 = vsel %vm152_vm0, %v8550_v13, 0.0 }
0x2030   :  { %8584 = vadd.xlane.f32.xlu0 %v8583_v21  ;;  %v8477_v59 = vpop.xlane.xlu0 %8476  ;;  %8575 = vadd.xlane.f32.xlu1 %v8574_v27  ;;  %v8468_v58 = vpop.xlane.xlu1 %8467 }
0x2031   :  { %v8517_v31 = vmul.f32 0.03125, %v8477_v59  ;;  %v8514_v60 = vmul.f32 0.03125, %v8468_v58  ;;  %v8551_v51 = vmul.f32 %v16480_v29, %v16480_v29  ;;  %v8548_v11 = vmul.f32 %v16483_v10, %v16483_v10 }
0x2033   :  { %v16492_v1 = vsub.f32 %v16399_v22, %v8517_v31  ;;  %v16495_v32 = vsub.f32 %v16396_v49, %v8514_v60  ;;  %v8577_v45 = vsel %vm152_vm0, %v8551_v51, 0.0  ;;  %v8568_v54 = vsel %vm152_vm0, %v8548_v11, 0.0  ;;  %v16517_v31 = vld [vmem:[%s16608_s18 + $0x1] ss:$0 sm:$0xff]  ;;  %s11645_s18 = smov [#allocation10]  }
0x2034   :  { %8578 = vadd.xlane.f32.xlu0 %v8577_v45  ;;  %v8471_v57 = vpop.xlane.xlu0 %8470  ;;  %8569 = vadd.xlane.f32.xlu1 %v8568_v54 }
0x2035   :  { %v8515_v43 = vmul.f32 0.03125, %v8471_v57  ;;  %v8549_v38 = vmul.f32 %v16492_v1, %v16492_v1  ;;  %v8546_v61 = vmul.f32 %v16495_v32, %v16495_v32 }
0x2037   :  { %v16504_v22 = vsub.f32 %v16407_v55, %v8515_v43  ;;  %v8571_v49 = vsel %vm152_vm0, %v8549_v38, 0.0  ;;  %v8562_v8 = vsel %vm152_vm0, %v8546_v61, 0.0 }
0x2038   :  { %8572 = vadd.xlane.f32.xlu0 %v8571_v49  ;;  %8563 = vadd.xlane.f32.xlu1 %v8562_v8  ;;  %v16525_v8 = vld [vmem:[%s16609_s19 + $0x1] ss:$0 sm:$0xff]  ;;  %s8803_s19 = sshll.u32 %s11645_s18, 4  ;;  %s8804_s19 = int_to_ptr.vmem [resolvable:$true] %s8803_s19 }
0x2039   :  { %v8547_v42 = vmul.f32 %v16504_v22, %v16504_v22  ;;  %s11605_s0 = scalar_lea.vmem %s8804_s19, 128  ;;  %p11610_p7 = scmp.lt.s32.totalorder %s8804_s19, %s8804_s19 }
0x203a   :  { %p11606_p6 = scmp.ne.s32.totalorder %s8804_s19, %s11605_s0  ;;  %p11611_p8 = scmp.lt.s32.totalorder %s11605_s0, %s11605_s0 }
0x203b   :  { %v8565_v28 = vsel %vm152_vm0, %v8547_v42, 0.0 }
0x203c   :  { %8566 = vadd.xlane.f32.xlu0 %v8565_v28  ;;  %p11612_p9 = por %p11611_p8, %p11610_p7 }
0x203e   :  { %p11613_p10 = pnand %p11612_p9, %p11606_p6 }
0x20a5   :  { %v8606_v55 = vpop.xlane.xlu1 %8605 }
0x20a6   :  { %v8624_v41 = vmul.f32 0.03125, %v8606_v55 }
0x20a8   :  { %v8640_v17 = vadd.f32 1e-12, %v8624_v41 }
0x20a9   :  { %v8609_v9 = vpop.xlane.xlu0 %8608  ;;  %v8600_v26 = vpop.xlane.xlu1 %8599 }
0x20aa   :  { %11445 = vrsqrt.f32 %v8640_v17  ;;  %v8625_v6 = vmul.f32 0.03125, %v8609_v9  ;;  %v8622_v20 = vmul.f32 0.03125, %v8600_v26 }
0x20ac   :  { %v8641_v30 = vadd.f32 1e-12, %v8625_v6  ;;  %v8638_v19 = vadd.f32 1e-12, %v8622_v20 }
0x20ad   :  { %v8603_v5 = vpop.xlane.xlu0 %8602  ;;  %v8594_v56 = vpop.xlane.xlu1 %8593 }
0x20ae   :  { %11447 = vrsqrt.f32 %v8641_v30  ;;  %v8623_v40 = vmul.f32 0.03125, %v8603_v5  ;;  %v8620_v24 = vmul.f32 0.03125, %v8594_v56 }
0x20af   :  { %11449 = vrsqrt.f32 %v8638_v19 }
0x20b0   :  { %v8639_v16 = vadd.f32 1e-12, %v8623_v40  ;;  %v8636_v39 = vadd.f32 1e-12, %v8620_v24 }
0x20b1   :  { %v8597_v53 = vpop.xlane.xlu0 %8596  ;;  %v8588_v7 = vpop.xlane.xlu1 %8587 }
0x20b2   :  { %11451 = vrsqrt.f32 %v8639_v16  ;;  %v8621_v2 = vmul.f32 0.03125, %v8597_v53  ;;  %v8618_v44 = vmul.f32 0.03125, %v8588_v7 }
0x20b3   :  { %11453 = vrsqrt.f32 %v8636_v39 }
0x20b4   :  { %v8637_v14 = vadd.f32 1e-12, %v8621_v2  ;;  %v8634_v36 = vadd.f32 1e-12, %v8618_v44 }
0x20b5   :  { %v8591_v48 = vpop.xlane.xlu0 %8590  ;;  %v8582_v37 = vpop.xlane.xlu1 %8581 }
0x20b6   :  { %11455 = vrsqrt.f32 %v8637_v14  ;;  %v8619_v25 = vmul.f32 0.03125, %v8591_v48  ;;  %v8616_v50 = vmul.f32 0.03125, %v8582_v37 }
0x20b7   :  { %v11446_v23 = vpop.eup %11445  ;;  %11457 = vrsqrt.f32 %v8634_v36 }
0x20b8   :  { %v8635_v12 = vadd.f32 1e-12, %v8619_v25  ;;  %v8632_v52 = vadd.f32 1e-12, %v8616_v50  ;;  %v8672_v27 = vmul.f32 %v11446_v23, %v16416_v63 }
0x20b9   :  { %v8585_v13 = vpop.xlane.xlu0 %8584  ;;  %v8576_v21 = vpop.xlane.xlu1 %8575 }
0x20ba   :  { %11459 = vrsqrt.f32 %v8635_v12  ;;  %v8617_v59 = vmul.f32 0.03125, %v8585_v13  ;;  %v8614_v58 = vmul.f32 0.03125, %v8576_v21  ;;  %v8694_v38 = vmul.f32 %v16517_v31, %v8672_v27 }
0x20bb   :  { %v11448_v60 = vpop.eup %11447  ;;  %11461 = vrsqrt.f32 %v8632_v52 }
0x20bc   :  { %v11450_v51 = vpop.eup %11449  ;;  %v8633_v11 = vadd.f32 1e-12, %v8617_v59  ;;  %v8630_v45 = vadd.f32 1e-12, %v8614_v58  ;;  %v8673_v54 = vmul.f32 %v11448_v60, %v16421_v0  ;;  %v8716_v6 = vadd.f32 %v16525_v8, %v8694_v38 }
0x20bd   :  { %v8579_v57 = vpop.xlane.xlu0 %8578  ;;  %v8570_v43 = vpop.xlane.xlu1 %8569  ;;  %v8670_v63 = vmul.f32 %v11450_v51, %v16424_v47 }
0x20be   :  { %11463 = vrsqrt.f32 %v8633_v11  ;;  %v8615_v61 = vmul.f32 0.03125, %v8579_v57  ;;  %v8612_v49 = vmul.f32 0.03125, %v8570_v43  ;;  %v8695_v42 = vmul.f32 %v16517_v31, %v8673_v54 }
0x20bf   :  { %v11452_v28 = vpop.eup %11451  ;;  %11465 = vrsqrt.f32 %v8630_v45  ;;  %v8692_v20 = vmul.f32 %v16517_v31, %v8670_v63  ;;  %v8718_v54 = vlaneseq }
0x20c0   :  { %v11454_v55 = vpop.eup %11453  ;;  %v8631_v0 = vadd.f32 1e-12, %v8615_v61  ;;  %v8628_v41 = vadd.f32 1e-12, %v8612_v49  ;;  %v8717_v17 = vadd.f32 %v16525_v8, %v8695_v42  ;;  %v8671_v9 = vmul.f32 %v11452_v28, %v16432_v18 }
0x20c1   :  { %v8573_v47 = vpop.xlane.xlu0 %8572  ;;  %v8564_v26 = vpop.xlane.xlu1 %8563  ;;  %v8668_v30 = vmul.f32 %v11454_v55, %v16435_v15  ;;  %v8714_v15 = vadd.f32 %v16525_v8, %v8692_v20  ;;  %v8721_v42 = vshrl.u32 %v8718_v54, 7 }
0x20c2   :  { %11467 = vrsqrt.f32 %v8631_v0  ;;  %v8613_v19 = vmul.f32 0.03125, %v8573_v47  ;;  %v8610_v5 = vmul.f32 0.03125, %v8564_v26  ;;  %10606 = vmatpush3.msra.mxu0 %v8717_v17  ;;  %v8693_v56 = vmul.f32 %v16517_v31, %v8671_v9 }
0x20c3   :  { %v11456_v40 = vpop.eup %11455  ;;  %11469 = vrsqrt.f32 %v8628_v41  ;;  %10607 = vmatprep.subr.mxu0 %v11642_v3  ;;  %v8690_v2 = vmul.f32 %v16517_v31, %v8668_v30  ;;  %v8719_v9 = vand.u32 127, %v8718_v54  ;;  %v8722_v20 = vmul.u32 16, %v8721_v42 }
0x20c4   :  { %v11458_v24 = vpop.eup %11457  ;;  %v8629_v18 = vadd.f32 1e-12, %v8613_v19  ;;  %v8626_v16 = vadd.f32 1e-12, %v8610_v5  ;;  %10608 = vmatpush3.msra.mxu0 %v8716_v6  ;;  %v8715_v39 = vadd.f32 %v16525_v8, %v8693_v56  ;;  %v8669_v53 = vmul.f32 %v11456_v40, %v16444_v33 }
0x20c5   :  { %v8567_v7 = vpop.xlane.xlu0 %8566  ;;  %10609 = vmatprep.subr.mxu0 %v11642_v3  ;;  %v8666_v36 = vmul.f32 %v11458_v24, %v16447_v62  ;;  %v8712_v23 = vadd.f32 %v16525_v8, %v8690_v2  ;;  %vm8723_vm4 = vcmp.eq.s32.totalorder %v8719_v9, %v8722_v20  ;;  %v11644_v30 = vmov 1.0  }
0x20c6   :  { %11471 = vrsqrt.f32 %v8629_v18  ;;  %v8611_v44 = vmul.f32 0.03125, %v8567_v7  ;;  %10610 = vmatpush3.msra.mxu0 %v8715_v39  ;;  %v8691_v14 = vmul.f32 %v16517_v31, %v8669_v53 }
0x20c7   :  { %v11460_v48 = vpop.eup %11459  ;;  %11473 = vrsqrt.f32 %v8626_v16  ;;  %10611 = vmatprep.subr.mxu0 %v11642_v3  ;;  %v8688_v62 = vmul.f32 %v16517_v31, %v8666_v36 }
0x20c8   :  { %v11462_v37 = vpop.eup %11461  ;;  %v8627_v33 = vadd.f32 1e-12, %v8611_v44  ;;  %10612 = vmatpush3.msra.mxu0 %v8714_v15  ;;  %v8713_v25 = vadd.f32 %v16525_v8, %v8691_v14  ;;  %v8667_v50 = vmul.f32 %v11460_v48, %v16456_v4 }
0x20c9   :  { %10613 = vmatprep.subr.mxu0 %v11642_v3  ;;  %v8664_v52 = vmul.f32 %v11462_v37, %v16459_v34  ;;  %v8710_v59 = vadd.f32 %v16525_v8, %v8688_v62 }
0x20ca   :  { %11475 = vrsqrt.f32 %v8627_v33  ;;  %10614 = vmatpush3.msra.mxu0 %v8713_v25  ;;  %v8689_v12 = vmul.f32 %v16517_v31, %v8667_v50 }
0x20cb   :  { %v11464_v13 = vpop.eup %11463  ;;  %10615 = vmatprep.subr.mxu0 %v11642_v3  ;;  %v8686_v60 = vmul.f32 %v16517_v31, %v8664_v52 }
0x20cc   :  { %v11466_v21 = vpop.eup %11465  ;;  %10616 = vmatpush3.msra.mxu0 %v8712_v23  ;;  %v8711_v27 = vadd.f32 %v16525_v8, %v8689_v12  ;;  %v8665_v4 = vmul.f32 %v11464_v13, %v16468_v35 }
0x20cd   :  { %10617 = vmatprep.subr.mxu0 %v11642_v3  ;;  %v8662_v34 = vmul.f32 %v11466_v21, %v16471_v46  ;;  %v8708_v57 = vadd.f32 %v16525_v8, %v8686_v60 }
0x20ce   :  { %10618 = vmatpush3.msra.mxu0 %v8711_v27  ;;  %v8687_v58 = vmul.f32 %v16517_v31, %v8665_v4 }
0x20cf   :  { %v11468_v51 = vpop.eup %11467  ;;  %10619 = vmatprep.subr.mxu0 %v11642_v3  ;;  %v8684_v38 = vmul.f32 %v16517_v31, %v8662_v34 }
0x20d0   :  { %v11470_v11 = vpop.eup %11469  ;;  %10620 = vmatpush3.msra.mxu0 %v8710_v59  ;;  %v8709_v45 = vadd.f32 %v16525_v8, %v8687_v58  ;;  %v8663_v35 = vmul.f32 %v11468_v51, %v16480_v29 }
0x20d1   :  { %10621 = vmatprep.subr.mxu0 %v11642_v3  ;;  %v8660_v46 = vmul.f32 %v11470_v11, %v16483_v10  ;;  %v8706_v28 = vadd.f32 %v16525_v8, %v8684_v38 }
0x20d2   :  { %10622 = vmatpush3.msra.mxu0 %v8709_v45  ;;  %v8685_v43 = vmul.f32 %v16517_v31, %v8663_v35 }
0x20d3   :  { %v11472_v63 = vpop.eup %11471  ;;  %10623 = vmatprep.subr.mxu0 %v11642_v3  ;;  %v8682_v0 = vmul.f32 %v16517_v31, %v8660_v46 }
0x20d4   :  { %v11474_v61 = vpop.eup %11473  ;;  %10624 = vmatpush3.msra.mxu0 %v8708_v57  ;;  %v8707_v49 = vadd.f32 %v16525_v8, %v8685_v43  ;;  %v8661_v29 = vmul.f32 %v11472_v63, %v16492_v1 }
0x20d5   :  { %10625 = vmatprep.subr.mxu0 %v11642_v3  ;;  %v8658_v10 = vmul.f32 %v11474_v61, %v16495_v32  ;;  %v8704_v47 = vadd.f32 %v16525_v8, %v8682_v0 }
0x20d6   :  { %10626 = vmatpush3.msra.mxu0 %v8707_v49  ;;  %v8683_v55 = vmul.f32 %v16517_v31, %v8661_v29 }
0x20d7   :  { %v11476_v41 = vpop.eup %11475  ;;  %10627 = vmatprep.subr.mxu0 %v11642_v3  ;;  %v8680_v6 = vmul.f32 %v16517_v31, %v8658_v10 }
0x20d8   :  { %10628 = vmatpush3.msra.mxu0 %v8706_v28  ;;  %v8705_v17 = vadd.f32 %v16525_v8, %v8683_v55  ;;  %v8659_v1 = vmul.f32 %v11476_v41, %v16504_v22 }
0x20d9   :  { %10629 = vmatprep.subr.mxu0 %v11642_v3  ;;  %v8702_v22 = vadd.f32 %v16525_v8, %v8680_v6 }
0x20da   :  { %10630 = vmatpush3.msra.mxu0 %v8705_v17  ;;  %v8681_v26 = vmul.f32 %v16517_v31, %v8659_v1 }
0x20db   :  { %10631 = vmatprep.subr.mxu0 %v11642_v3 }
0x20dc   :  { %10632 = vmatpush3.msra.mxu0 %v8704_v47  ;;  %v8703_v32 = vadd.f32 %v16525_v8, %v8681_v26 }
0x20dd   :  { %10633 = vmatprep.subr.mxu0 %v11642_v3 }
0x20de   :  { %10634 = vmatpush3.msra.mxu0 %v8703_v32 }
0x20df   :  { %10635 = vmatprep.subr.mxu0 %v11642_v3 }
0x20e0   :  { %10636 = vmatpush3.msra.mxu0 %v8702_v22 }
0x20e1   :  { %10638 = vmatmul.mubr.msk.f32.vlgmr.msra.gmra.mxu0 %vm8723_vm4, %v11644_v30 }
0x21a1   :  { %v8792_v31 = vpop.f32.mrf.mxu0 }
0x21a2   :  { %8796 = vst.msk [vmem:[#allocation10] sm:$0xff] %vm152_vm0, %v8792_v31 }
0x21a3   :  { %v10639_v19 = vpop.f32.mrf.mxu0 }
0x21a4   :  { %11616 = shalt.err (!%p11613_p10)
}
0x21a5   :  { %8806 = dma.vmem_to_hbm [thread:$0]  %s8804_s19, 128, %s16610_s20, [#allocation4]  }
0x21a6   :  { %11631 = dma.done.wait [#allocation4], 128  }
0x21a7   :  { %11632 = vsyncadd [#allocation4], 4294967168 }
0x21a8   :  { %8810 = vsyncpa [#allocation3], 1 }
0x21a9   :  { %8811 = vsyncpa [#allocation6], 1 }
0x21aa   :  { %8812 = vsyncpa [#allocation9], 1 }
0x21ab   :  { %8813 = vsyncpa [#allocation4], 1 }

</bundles_post_ra>
